<compile_context>
chip_gen: v7x
topology: tpu7x:2x2x1
jax: 0.10.0
libtpu: 0.0.40
codegen_flags: <defaults>
</compile_context>

<pallas_src>
import functools

import jax
import jax.numpy as jnp
from jax.experimental import pallas as pl
from jax.experimental.pallas import tpu as pltpu

# "syn" working resolution (plays the role of the fixed (256, 512) resize in
# the original module, scaled down for the small test shapes).
SYN_H, SYN_W = 16, 32
NCLS = 19
ENSEMBLE = True            # config_diss['ensemble']  (ours configuration, prior=True)

IMAGENET_MEAN = (0.485, 0.456, 0.406)
IMAGENET_STD = (0.229, 0.224, 0.225)

ID_INDEX = [20, 21, 24, 25, 26, 32, 19, 0, 1, 22, 23, 2, 3, 4, 27, 28, 31, 5,
            33, 6, 7, 8, 9, 10, 11, 12, 13, 14, 15, 29, 30, 16, 17, 18, 34]
# inverse of id_to_trainid restricted to train ids 0..18 (strictly increasing,
# so "min over the argmax set" gives the label of the first argmax).
TRAINID_TO_LABELID = jnp.array([7, 8, 11, 12, 13, 17, 19, 20, 21, 22, 23, 24,
                                25, 26, 27, 28, 31, 32, 33], jnp.float32)


# ----------------------------------------------------------------------------
# Pallas plumbing
# ----------------------------------------------------------------------------
def pick_tile(n, max_tile=4096, min_tile=512):
    """Largest power-of-two pixel tile (multiple of 128) giving >=2 grid steps
    when possible (keeps both v7x TensorCores busy)."""
    t = max_tile
    while t > min_tile and n <= t:
        t //= 2
    return t


def _call_pixels(kernel, *, tile, n, tiled, bcast, out_ch):
    """Run `kernel` over a 1-D grid of pixel tiles.

    tiled : list of (C, n) arrays, blocked as (C, tile) along the lane axis.
    bcast : list of small 2-D arrays (weights), full block every step.
    out_ch: list of output channel counts; outputs are (C, n) float32.
    """
    n_pad = pl.cdiv(n, tile) * tile
    tiled_p = [a if n_pad == n else jnp.pad(a, ((0, 0), (0, n_pad - n)))
               for a in tiled]

    in_specs = [pl.BlockSpec((a.shape[0], tile), lambda i: (0, i))
                for a in tiled_p]
    in_specs += [pl.BlockSpec(w.shape, lambda i: (0, 0)) for w in bcast]
    out_specs = [pl.BlockSpec((c, tile), lambda i: (0, i)) for c in out_ch]
    out_shapes = [jax.ShapeDtypeStruct((c, n_pad), jnp.float32) for c in out_ch]

    res = pl.pallas_call(
        kernel,
        out_shape=out_shapes,
        grid_spec=pltpu.PrefetchScalarGridSpec(
            num_scalar_prefetch=0,
            grid=(n_pad // tile,),
            in_specs=in_specs,
            out_specs=out_specs),
        compiler_params=pltpu.CompilerParams(
            dimension_semantics=("parallel",)),
    )(*tiled_p, *bcast)
    if not isinstance(res, (list, tuple)):
        res = (res,)
    return tuple(o[:, :n] for o in res)


# ----------------------------------------------------------------------------
# Kernels
# ----------------------------------------------------------------------------
def _seg_kernel(x_ref, w_ref, b_ref, labtab_ref,
                mask_ref, arg_ref, labout_ref, ent_ref, dist_ref):
    """Fused seg 1x1-conv + softmax statistics.

    x_ref      : (3, T)   raw image pixels (normalisation folded into w/b)
    w_ref      : (19, 3)  effective weights, b_ref: (19, 1) effective bias
    labtab_ref : (19, 1)  trainId -> labelId lookup table
    outputs    : mask (19,T), argmax (1,T), label map (1,T), entropy (1,T),
                 top1-top2 distance (1,T)
    """
    # tiny-K 1x1 conv as a 3-term VPU FMA (avoids a zero-padded MXU pass)
    logits = (w_ref[:, 0:1] * x_ref[0:1, :]
              + w_ref[:, 1:2] * x_ref[1:2, :]
              + w_ref[:, 2:3] * x_ref[2:3, :]
              + b_ref[...])                                  # (19, T)

    mx = jnp.max(logits, axis=0, keepdims=True)
    ex = jnp.exp(logits - mx)
    p = ex / jnp.sum(ex, axis=0, keepdims=True)              # softmax

    pmax = jnp.max(p, axis=0, keepdims=True)
    ismax = p == pmax                                        # ties -> multiple 1s (matches ref)
    mask_ref[...] = ismax.astype(jnp.float32)

    iota = jax.lax.broadcasted_iota(jnp.int32, p.shape, 0).astype(jnp.float32)
    first = jnp.min(jnp.where(ismax, iota, float(NCLS)), axis=0, keepdims=True)
    arg_ref[...] = first

    lab_b = jnp.broadcast_to(labtab_ref[...], p.shape)
    labout_ref[...] = jnp.min(jnp.where(ismax, lab_b, 255.0),
                              axis=0, keepdims=True)

    # entropy with an underflow guard (ref computes -p*log(p) unguarded)
    plogp = p * jnp.log(jnp.maximum(p, 1e-30))
    ent_ref[...] = -jnp.sum(plogp, axis=0, keepdims=True)

    # top1 - top2 (0 on exact ties, like torch.topk)
    p_wo = jnp.where(iota == first, -1.0, p)
    dist_ref[...] = pmax - jnp.max(p_wo, axis=0, keepdims=True)


def _syn_kernel(imgs_ref, sem_ref, lab_ref, i1_ref, w_ref, b_ref,
                syn1_ref, pd_ref):
    """Pix2Pix stand-in (1x1 conv + tanh) fused with the vgg-diff preprocessing
    and the VGG19_difference stand-in (per-pixel L1 over channels).

    imgs_ref : (3, T)  bilinear-resized image, Normalize(0.5, 0.5)
    sem_ref  : (19, T) resized one-hot-ish seg mask (id_index permutation folded
                       into the weights)
    lab_ref  : (1, T)  resized label map
    i1_ref   : (3, T)  nearest-resized ImageNet-normalised image
    w_ref    : (23, 3) stand-in weights [img(3) | mask(19) | label(1)] x out
    outputs  : syn1 (3,T) = ImageNet-normalised generated image, pd (1,T) = L1
    """
    acc = None
    for j in range(3):
        g = (jnp.sum(w_ref[0:3, j:j + 1] * imgs_ref[...], axis=0, keepdims=True)
             + jnp.sum(w_ref[3:22, j:j + 1] * sem_ref[...], axis=0, keepdims=True)
             + w_ref[22:23, j:j + 1] * lab_ref[...]
             + b_ref[j:j + 1, :])
        g = jnp.tanh(g)                                      # generated in (-1, 1)
        # ((g+1)/2*255) resized-to-same-size then /255 then ImageNet-normalised
        s1 = ((g + 1.0) * 0.5 - IMAGENET_MEAN[j]) / IMAGENET_STD[j]
        syn1_ref[j:j + 1, :] = s1
        d = jnp.abs(i1_ref[j:j + 1, :] - s1)
        acc = d if acc is None else acc + d
    pd_ref[...] = acc


def _diss_kernel(i1_ref, s1_ref, sem_ref, ent_ref, pd_ref, dist_ref,
                 wd_ref, bd_ref, o_ref):
    """DissimNetPrior stand-in head, feature assembly fused in.

    2-class softmax[..., 1] == sigmoid(logit1 - logit0), so only the weight
    difference column wd (28, 1) and bias difference bd (1, 1) are needed.
    Feature order: [image(3), syn(3), semantic(19), entropy(1), pdiff(1), dist(1)].
    """
    l = (jnp.sum(wd_ref[0:3, :] * i1_ref[...], axis=0, keepdims=True)
         + jnp.sum(wd_ref[3:6, :] * s1_ref[...], axis=0, keepdims=True)
         + jnp.sum(wd_ref[6:25, :] * sem_ref[...], axis=0, keepdims=True)
         + wd_ref[25:26, :] * ent_ref[...]
         + wd_ref[26:27, :] * pd_ref[...]
         + wd_ref[27:28, :] * dist_ref[...]
         + bd_ref[...])
    p1 = 1.0 / (1.0 + jnp.exp(-l))
    if ENSEMBLE:
        out = p1 * 0.75 + ent_ref[...] * 0.25
    else:
        out = p1
    o_ref[...] = out * 255.0


# ----------------------------------------------------------------------------
# parameters (deterministic stand-ins for the pretrained nets)
# ----------------------------------------------------------------------------
def init_params(key):
    k1, k2, k3, k4 = jax.random.split(key, 4)
    return {
        # seg_net stand-in: 1x1 conv 3 -> 19 classes
        "seg_w": jax.random.normal(k1, (NCLS, 3), jnp.float32) * 0.5,
        "seg_b": jax.random.normal(k2, (NCLS, 1), jnp.float32) * 0.1,
        # syn_net (Pix2Pix) stand-in: 1x1 conv (3 img + 35 mask + 1 label) -> 3
        "syn_w": jax.random.normal(k3, (3, 39), jnp.float32) * 0.1,
        "syn_b": jnp.zeros((3, 1), jnp.float32),
        # diss_model stand-in: 1x1 conv (3+3+19+1+1+1) -> 2 classes
        "diss_w": jax.random.normal(k4, (28, 2), jnp.float32) * 0.1,
        "diss_b": jnp.zeros((1, 2), jnp.float32),
    }


# ----------------------------------------------------------------------------
# forward pass
# ----------------------------------------------------------------------------
def road_anomaly_forward(img, params):
    """img: (B, 3, H, W) float32 in [0, 255]  ->  (seg_final, diss_pred)."""
    B, C, H, W = img.shape
    sh, sw = SYN_H, SYN_W
    img = img.astype(jnp.float32)
    n_full = B * H * W
    n_syn = B * sh * sw

    mean = jnp.array(IMAGENET_MEAN, jnp.float32)
    std = jnp.array(IMAGENET_STD, jnp.float32)

    # channels-first flat view of the image
    imgc = img.transpose(1, 0, 2, 3)                        # (3, B, H, W)
    xflat = imgc.reshape(3, n_full)

    # fold to_tensor(/255) + ImageNet normalisation into the seg 1x1 conv
    wseg = params["seg_w"] / (255.0 * std)[None, :]          # (19, 3)
    bseg = params["seg_b"] - params["seg_w"] @ (mean / std)[:, None]
    lab_tab = TRAINID_TO_LABELID.reshape(NCLS, 1)

    # ---- fused segmentation + softmax statistics --------------------------
    tile = pick_tile(n_full)
    mask19, seg_arg, lab_map, ent, dist = _call_pixels(
        _seg_kernel, tile=tile, n=n_full,
        tiled=[xflat], bcast=[wseg, bseg, lab_tab],
        out_ch=[NCLS, 1, 1, 1, 1])

    seg_final = seg_arg.reshape(B, H, W)                     # float, like torch
    mask19_f = mask19.reshape(NCLS, B, H, W)
    lab_f = lab_map.reshape(1, B, H, W)
    ent_f = ent.reshape(1, B, H, W)
    dist_f = dist.reshape(1, B, H, W)

    # ---- resizes to the fixed syn resolution -------------------------------
    # TODO(synk): torchvision Resize NEAREST/BILINEAR pixel-center conventions
    # approximated with jax.image.resize.
    mask19_s = jax.image.resize(mask19_f, (NCLS, B, sh, sw), "nearest")
    lab_s = jax.image.resize(lab_f, (1, B, sh, sw), "nearest")
    lab_s = jnp.where(lab_s == 255.0, 35.0, lab_s)
    ent_s = jax.image.resize(ent_f, (1, B, sh, sw), "nearest")
    dist_s = jax.image.resize(dist_f, (1, B, sh, sw), "nearest")
    img_bil = jax.image.resize(imgc, (3, B, sh, sw), "linear")
    img_nn = jax.image.resize(imgc, (3, B, sh, sw), "nearest")

    img_syn = img_bil / 127.5 - 1.0                          # /255 then Normalize(.5,.5)
    img1 = (img_nn / 255.0 - mean.reshape(3, 1, 1, 1)) / std.reshape(3, 1, 1, 1)

    # per-batch normalisation constants (computed at full res, like the ref);
    # guarded against 0-denominators (ref divides unguarded).
    def bmin(x): return x.reshape(B, -1).min(axis=1).reshape(1, B, 1, 1)
    def bmax(x): return x.reshape(B, -1).max(axis=1).reshape(1, B, 1, 1)
    def safe(d): return jnp.where(d == 0.0, 1.0, d)

    ent_n = (ent_s - bmin(ent_f)) / safe(bmax(ent_f))        # *255 then /255 cancels
    dist_n = 1.0 - (dist_s - bmin(dist_f)) / safe(bmax(dist_f))

    # ---- synthesis + perceptual diff (fused) --------------------------------
    # fold the 19->35 zero-pad + id_index gather of the mask into the weights
    syn_w = params["syn_w"]                                  # (3, 39)
    c_of_k = jnp.array([ID_INDEX.index(k) for k in range(NCLS)], jnp.int32)
    w_maskp = syn_w[:, 3:38][:, c_of_k]                      # (3, 19)
    syn_w_k = jnp.concatenate([syn_w[:, 0:3], w_maskp, syn_w[:, 38:39]],
                              axis=1).T                      # (23, 3)

    tile_s = pick_tile(n_syn)
    syn1, pd = _call_pixels(
        _syn_kernel, tile=tile_s, n=n_syn,
        tiled=[img_syn.reshape(3, n_syn), mask19_s.reshape(NCLS, n_syn),
               lab_s.reshape(1, n_syn), img1.reshape(3, n_syn)],
        bcast=[syn_w_k, params["syn_b"]],
        out_ch=[3, 1])

    pd_f = pd.reshape(1, B, sh, sw)
    pd_n = (pd_f - bmin(pd_f)) / safe(bmax(pd_f) - bmin(pd_f))

    # ---- dissimilarity head (prior path) + ensemble -------------------------
    wd = (params["diss_w"][:, 1] - params["diss_w"][:, 0]).reshape(28, 1)
    bd = (params["diss_b"][0, 1] - params["diss_b"][0, 0]).reshape(1, 1)
    (diss,) = _call_pixels(
        _diss_kernel, tile=tile_s, n=n_syn,
        tiled=[img1.reshape(3, n_syn), syn1, mask19_s.reshape(NCLS, n_syn),
               ent_n.reshape(1, n_syn), pd_n.reshape(1, n_syn),
               dist_n.reshape(1, n_syn)],
        bcast=[wd, bd],
        out_ch=[1])
    diss_pred = diss.reshape(B, sh, sw)

    return seg_final, diss_pred


# ----------------------------------------------------------------------------
if __name__ == "__main__":
    key = jax.random.PRNGKey(0)
    k_img, k_par = jax.random.split(key)
    B, C, H, W = 2, 3, 32, 64
    img = jax.random.uniform(k_img, (B, C, H, W), jnp.float32, 0.0, 255.0)
    params = init_params(k_par)

    fwd = jax.jit(functools.partial(road_anomaly_forward))
    seg_final, diss_pred = fwd(img, params)
    jax.block_until_ready((seg_final, diss_pred))

    assert seg_final.shape == (B, H, W)
    assert diss_pred.shape == (B, SYN_H, SYN_W)
    assert bool(jnp.all(jnp.isfinite(seg_final)))
    assert bool(jnp.all(jnp.isfinite(diss_pred)))
    print("KERNEL_OK")
</pallas_src>

<mosaic_0001>
module attributes {stable_mosaic.version = 11 : i64} {
  func.func @_seg_kernel(%arg0: i32, %arg1: memref<3x2048xf32, #tpu.memory_space<vmem>>, %arg2: memref<19x3xf32, #tpu.memory_space<vmem>>, %arg3: memref<19x1xf32, #tpu.memory_space<vmem>>, %arg4: memref<19x1xf32, #tpu.memory_space<vmem>>, %arg5: memref<19x2048xf32, #tpu.memory_space<vmem>>, %arg6: memref<1x2048xf32, #tpu.memory_space<vmem>>, %arg7: memref<1x2048xf32, #tpu.memory_space<vmem>>, %arg8: memref<1x2048xf32, #tpu.memory_space<vmem>>, %arg9: memref<1x2048xf32, #tpu.memory_space<vmem>>) attributes {dimension_semantics = [#tpu.dimension_semantics<parallel>], iteration_bounds = array<i64: 2>, scalar_prefetch = 0 : i64, scratch_operands = 0 : i64, tpu.core_type = #tpu.core_type<tc>, window_params = [{transform_indices = @transform_0, window_bounds = array<i64: 3, 2048>}, {pipeline_mode = #tpu.pipeline_mode<synchronous>, transform_indices = @transform_1, window_bounds = array<i64: 19, 3>}, {pipeline_mode = #tpu.pipeline_mode<synchronous>, transform_indices = @transform_2, window_bounds = array<i64: 19, 1>}, {pipeline_mode = #tpu.pipeline_mode<synchronous>, transform_indices = @transform_3, window_bounds = array<i64: 19, 1>}, {transform_indices = @transform_4, window_bounds = array<i64: 19, 2048>}, {transform_indices = @transform_5, window_bounds = array<i64: 1, 2048>}, {transform_indices = @transform_6, window_bounds = array<i64: 1, 2048>}, {transform_indices = @transform_7, window_bounds = array<i64: 1, 2048>}, {transform_indices = @transform_8, window_bounds = array<i64: 1, 2048>}]} {
    %c0 = arith.constant 0 : index
    %c0_0 = arith.constant 0 : index
    %0 = vector.load %arg2[%c0, %c0_0] : memref<19x3xf32, #tpu.memory_space<vmem>>, vector<19x1xf32>
    %c0_1 = arith.constant 0 : index
    %c0_2 = arith.constant 0 : index
    %1 = vector.load %arg1[%c0_1, %c0_2] : memref<3x2048xf32, #tpu.memory_space<vmem>>, vector<1x2048xf32>
    %2 = vector.broadcast %0 : vector<19x1xf32> to vector<19x2048xf32>
    %3 = vector.broadcast %1 : vector<1x2048xf32> to vector<19x2048xf32>
    %4 = arith.mulf %2, %3 : vector<19x2048xf32>
    %c0_3 = arith.constant 0 : index
    %c1 = arith.constant 1 : index
    %5 = vector.load %arg2[%c0_3, %c1] : memref<19x3xf32, #tpu.memory_space<vmem>>, vector<19x1xf32>
    %c1_4 = arith.constant 1 : index
    %c0_5 = arith.constant 0 : index
    %6 = vector.load %arg1[%c1_4, %c0_5] : memref<3x2048xf32, #tpu.memory_space<vmem>>, vector<1x2048xf32>
    %7 = vector.broadcast %5 : vector<19x1xf32> to vector<19x2048xf32>
    %8 = vector.broadcast %6 : vector<1x2048xf32> to vector<19x2048xf32>
    %9 = arith.mulf %7, %8 : vector<19x2048xf32>
    %10 = arith.addf %4, %9 : vector<19x2048xf32>
    %c0_6 = arith.constant 0 : index
    %c2 = arith.constant 2 : index
    %11 = vector.load %arg2[%c0_6, %c2] : memref<19x3xf32, #tpu.memory_space<vmem>>, vector<19x1xf32>
    %c2_7 = arith.constant 2 : index
    %c0_8 = arith.constant 0 : index
    %12 = vector.load %arg1[%c2_7, %c0_8] : memref<3x2048xf32, #tpu.memory_space<vmem>>, vector<1x2048xf32>
    %13 = vector.broadcast %11 : vector<19x1xf32> to vector<19x2048xf32>
    %14 = vector.broadcast %12 : vector<1x2048xf32> to vector<19x2048xf32>
    %15 = arith.mulf %13, %14 : vector<19x2048xf32>
    %16 = arith.addf %10, %15 : vector<19x2048xf32>
    %c0_9 = arith.constant 0 : index
    %c0_10 = arith.constant 0 : index
    %17 = vector.load %arg3[%c0_9, %c0_10] : memref<19x1xf32, #tpu.memory_space<vmem>>, vector<19x1xf32>
    %18 = vector.broadcast %17 : vector<19x1xf32> to vector<19x2048xf32>
    %19 = arith.addf %16, %18 : vector<19x2048xf32>
    %cst = arith.constant dense<0xFF800000> : vector<2048xf32>
    %20 = vector.multi_reduction <maximumf>, %19, %cst [0] : vector<19x2048xf32> to vector<2048xf32>
    %21 = vector.shape_cast %20 : vector<2048xf32> to vector<1x2048xf32>
    %22 = vector.broadcast %21 : vector<1x2048xf32> to vector<19x2048xf32>
    %23 = arith.subf %19, %22 : vector<19x2048xf32>
    %24 = math.exp %23 : vector<19x2048xf32>
    %cst_11 = arith.constant dense<0.000000e+00> : vector<2048xf32>
    %25 = vector.multi_reduction <add>, %24, %cst_11 [0] : vector<19x2048xf32> to vector<2048xf32>
    %26 = vector.shape_cast %25 : vector<2048xf32> to vector<1x2048xf32>
    %27 = vector.broadcast %26 : vector<1x2048xf32> to vector<19x2048xf32>
    %28 = arith.divf %24, %27 : vector<19x2048xf32>
    %cst_12 = arith.constant dense<0xFF800000> : vector<2048xf32>
    %29 = vector.multi_reduction <maximumf>, %28, %cst_12 [0] : vector<19x2048xf32> to vector<2048xf32>
    %30 = vector.shape_cast %29 : vector<2048xf32> to vector<1x2048xf32>
    %31 = vector.broadcast %30 : vector<1x2048xf32> to vector<19x2048xf32>
    %32 = arith.cmpf oeq, %28, %31 : vector<19x2048xf32>
    %33 = arith.extui %32 : vector<19x2048xi1> to vector<19x2048xi32>
    %34 = arith.sitofp %33 : vector<19x2048xi32> to vector<19x2048xf32>
    %c0_13 = arith.constant 0 : index
    %c0_14 = arith.constant 0 : index
    %35 = vector.load %arg5[%c0_13, %c0_14] : memref<19x2048xf32, #tpu.memory_space<vmem>>, vector<19x2048xf32>
    tpu.vector_store %arg5[%c0_13, %c0_14], %34 {strides = array<i32>} : memref<19x2048xf32, #tpu.memory_space<vmem>>, vector<19x2048xf32>,
    %36 = tpu.iota {dimensions = array<i32: 0>} : vector<19x2048xi32>
    %37 = arith.sitofp %36 : vector<19x2048xi32> to vector<19x2048xf32>
    %cst_15 = arith.constant 1.900000e+01 : f32
    %38 = vector.broadcast %cst_15 : f32 to vector<19x2048xf32>
    %39 = arith.select %32, %37, %38 : vector<19x2048xi1>, vector<19x2048xf32>
    %cst_16 = arith.constant dense<0x7F800000> : vector<2048xf32>
    %40 = vector.multi_reduction <minimumf>, %39, %cst_16 [0] : vector<19x2048xf32> to vector<2048xf32>
    %41 = vector.shape_cast %40 : vector<2048xf32> to vector<1x2048xf32>
    %c0_17 = arith.constant 0 : index
    %c0_18 = arith.constant 0 : index
    %42 = vector.load %arg6[%c0_17, %c0_18] : memref<1x2048xf32, #tpu.memory_space<vmem>>, vector<1x2048xf32>
    tpu.vector_store %arg6[%c0_17, %c0_18], %41 {strides = array<i32>} : memref<1x2048xf32, #tpu.memory_space<vmem>>, vector<1x2048xf32>,
    %c0_19 = arith.constant 0 : index
    %c0_20 = arith.constant 0 : index
    %43 = vector.load %arg4[%c0_19, %c0_20] : memref<19x1xf32, #tpu.memory_space<vmem>>, vector<19x1xf32>
    %44 = vector.shape_cast %43 : vector<19x1xf32> to vector<19x1xf32>
    %45 = vector.broadcast %44 : vector<19x1xf32> to vector<19x2048xf32>
    %cst_21 = arith.constant 2.550000e+02 : f32
    %46 = vector.broadcast %cst_21 : f32 to vector<19x2048xf32>
    %47 = arith.select %32, %45, %46 : vector<19x2048xi1>, vector<19x2048xf32>
    %cst_22 = arith.constant dense<0x7F800000> : vector<2048xf32>
    %48 = vector.multi_reduction <minimumf>, %47, %cst_22 [0] : vector<19x2048xf32> to vector<2048xf32>
    %49 = vector.shape_cast %48 : vector<2048xf32> to vector<1x2048xf32>
    %c0_23 = arith.constant 0 : index
    %c0_24 = arith.constant 0 : index
    %50 = vector.load %arg7[%c0_23, %c0_24] : memref<1x2048xf32, #tpu.memory_space<vmem>>, vector<1x2048xf32>
    tpu.vector_store %arg7[%c0_23, %c0_24], %49 {strides = array<i32>} : memref<1x2048xf32, #tpu.memory_space<vmem>>, vector<1x2048xf32>,
    %cst_25 = arith.constant 1.000000e-30 : f32
    %51 = vector.broadcast %cst_25 : f32 to vector<19x2048xf32>
    %52 = arith.maximumf %28, %51 : vector<19x2048xf32>
    %53 = math.log %52 : vector<19x2048xf32>
    %54 = arith.mulf %28, %53 : vector<19x2048xf32>
    %cst_26 = arith.constant dense<0.000000e+00> : vector<2048xf32>
    %55 = vector.multi_reduction <add>, %54, %cst_26 [0] : vector<19x2048xf32> to vector<2048xf32>
    %56 = vector.shape_cast %55 : vector<2048xf32> to vector<1x2048xf32>
    %cst_27 = arith.constant 0.000000e+00 : f32
    %57 = vector.broadcast %cst_27 : f32 to vector<1x2048xf32>
    %58 = arith.subf %57, %56 : vector<1x2048xf32>
    %c0_28 = arith.constant 0 : index
    %c0_29 = arith.constant 0 : index
    %59 = vector.load %arg8[%c0_28, %c0_29] : memref<1x2048xf32, #tpu.memory_space<vmem>>, vector<1x2048xf32>
    tpu.vector_store %arg8[%c0_28, %c0_29], %58 {strides = array<i32>} : memref<1x2048xf32, #tpu.memory_space<vmem>>, vector<1x2048xf32>,
    %60 = vector.broadcast %41 : vector<1x2048xf32> to vector<19x2048xf32>
    %61 = arith.cmpf oeq, %37, %60 : vector<19x2048xf32>
    %cst_30 = arith.constant -1.000000e+00 : f32
    %62 = vector.broadcast %cst_30 : f32 to vector<19x2048xf32>
    %63 = arith.select %61, %62, %28 : vector<19x2048xi1>, vector<19x2048xf32>
    %cst_31 = arith.constant dense<0xFF800000> : vector<2048xf32>
    %64 = vector.multi_reduction <maximumf>, %63, %cst_31 [0] : vector<19x2048xf32> to vector<2048xf32>
    %65 = vector.shape_cast %64 : vector<2048xf32> to vector<1x2048xf32>
    %66 = arith.subf %30, %65 : vector<1x2048xf32>
    %c0_32 = arith.constant 0 : index
    %c0_33 = arith.constant 0 : index
    %67 = vector.load %arg9[%c0_32, %c0_33] : memref<1x2048xf32, #tpu.memory_space<vmem>>, vector<1x2048xf32>
    tpu.vector_store %arg9[%c0_32, %c0_33], %66 {strides = array<i32>} : memref<1x2048xf32, #tpu.memory_space<vmem>>, vector<1x2048xf32>,
    return
  }
  func.func @transform_0(%arg0: i32) -> (i32, i32) {
    %c0_i32 = arith.constant 0 : i32
    %c0_i32_0 = arith.constant 0 : i32
    return %c0_i32, %arg0 : i32, i32
  }
  func.func @transform_1(%arg0: i32) -> (i32, i32) {
    %c0_i32 = arith.constant 0 : i32
    %c0_i32_0 = arith.constant 0 : i32
    %c0_i32_1 = arith.constant 0 : i32
    return %c0_i32, %c0_i32_0 : i32, i32
  }
  func.func @transform_2(%arg0: i32) -> (i32, i32) {
    %c0_i32 = arith.constant 0 : i32
    %c0_i32_0 = arith.constant 0 : i32
    %c0_i32_1 = arith.constant 0 : i32
    return %c0_i32, %c0_i32_0 : i32, i32
  }
  func.func @transform_3(%arg0: i32) -> (i32, i32) {
    %c0_i32 = arith.constant 0 : i32
    %c0_i32_0 = arith.constant 0 : i32
    %c0_i32_1 = arith.constant 0 : i32
    return %c0_i32, %c0_i32_0 : i32, i32
  }
  func.func @transform_4(%arg0: i32) -> (i32, i32) {
    %c0_i32 = arith.constant 0 : i32
    %c0_i32_0 = arith.constant 0 : i32
    return %c0_i32, %arg0 : i32, i32
  }
  func.func @transform_5(%arg0: i32) -> (i32, i32) {
    %c0_i32 = arith.constant 0 : i32
    %c0_i32_0 = arith.constant 0 : i32
    return %c0_i32, %arg0 : i32, i32
  }
  func.func @transform_6(%arg0: i32) -> (i32, i32) {
    %c0_i32 = arith.constant 0 : i32
    %c0_i32_0 = arith.constant 0 : i32
    return %c0_i32, %arg0 : i32, i32
  }
  func.func @transform_7(%arg0: i32) -> (i32, i32) {
    %c0_i32 = arith.constant 0 : i32
    %c0_i32_0 = arith.constant 0 : i32
    return %c0_i32, %arg0 : i32, i32
  }
  func.func @transform_8(%arg0: i32) -> (i32, i32) {
    %c0_i32 = arith.constant 0 : i32
    %c0_i32_0 = arith.constant 0 : i32
    return %c0_i32, %arg0 : i32, i32
  }
}

module attributes {stable_mosaic.version = 11 : i64} {
  func.func @_syn_kernel(%arg0: i32, %arg1: memref<3x512xf32, #tpu.memory_space<vmem>>, %arg2: memref<19x512xf32, #tpu.memory_space<vmem>>, %arg3: memref<1x512xf32, #tpu.memory_space<vmem>>, %arg4: memref<3x512xf32, #tpu.memory_space<vmem>>, %arg5: memref<23x3xf32, #tpu.memory_space<vmem>>, %arg6: memref<3x1xf32, #tpu.memory_space<vmem>>, %arg7: memref<3x512xf32, #tpu.memory_space<vmem>>, %arg8: memref<1x512xf32, #tpu.memory_space<vmem>>) attributes {dimension_semantics = [#tpu.dimension_semantics<parallel>], iteration_bounds = array<i64: 2>, scalar_prefetch = 0 : i64, scratch_operands = 0 : i64, tpu.core_type = #tpu.core_type<tc>, window_params = [{transform_indices = @transform_0, window_bounds = array<i64: 3, 512>}, {transform_indices = @transform_1, window_bounds = array<i64: 19, 512>}, {transform_indices = @transform_2, window_bounds = array<i64: 1, 512>}, {transform_indices = @transform_3, window_bounds = array<i64: 3, 512>}, {pipeline_mode = #tpu.pipeline_mode<synchronous>, transform_indices = @transform_4, window_bounds = array<i64: 23, 3>}, {pipeline_mode = #tpu.pipeline_mode<synchronous>, transform_indices = @transform_5, window_bounds = array<i64: 3, 1>}, {transform_indices = @transform_6, window_bounds = array<i64: 3, 512>}, {transform_indices = @transform_7, window_bounds = array<i64: 1, 512>}]} {
    %c0 = arith.constant 0 : index
    %c0_0 = arith.constant 0 : index
    %0 = vector.load %arg5[%c0, %c0_0] : memref<23x3xf32, #tpu.memory_space<vmem>>, vector<3x1xf32>
    %c0_1 = arith.constant 0 : index
    %c0_2 = arith.constant 0 : index
    %1 = vector.load %arg1[%c0_1, %c0_2] : memref<3x512xf32, #tpu.memory_space<vmem>>, vector<3x512xf32>
    %2 = vector.broadcast %0 : vector<3x1xf32> to vector<3x512xf32>
    %3 = arith.mulf %2, %1 : vector<3x512xf32>
    %cst = arith.constant dense<0.000000e+00> : vector<512xf32>
    %4 = vector.multi_reduction <add>, %3, %cst [0] : vector<3x512xf32> to vector<512xf32>
    %5 = vector.shape_cast %4 : vector<512xf32> to vector<1x512xf32>
    %c3 = arith.constant 3 : index
    %c0_3 = arith.constant 0 : index
    %6 = vector.load %arg5[%c3, %c0_3] : memref<23x3xf32, #tpu.memory_space<vmem>>, vector<19x1xf32>
    %c0_4 = arith.constant 0 : index
    %c0_5 = arith.constant 0 : index
    %7 = vector.load %arg2[%c0_4, %c0_5] : memref<19x512xf32, #tpu.memory_space<vmem>>, vector<19x512xf32>
    %8 = vector.broadcast %6 : vector<19x1xf32> to vector<19x512xf32>
    %9 = arith.mulf %8, %7 : vector<19x512xf32>
    %cst_6 = arith.constant dense<0.000000e+00> : vector<512xf32>
    %10 = vector.multi_reduction <add>, %9, %cst_6 [0] : vector<19x512xf32> to vector<512xf32>
    %11 = vector.shape_cast %10 : vector<512xf32> to vector<1x512xf32>
    %12 = arith.addf %5, %11 : vector<1x512xf32>
    %c22 = arith.constant 22 : index
    %c0_7 = arith.constant 0 : index
    %13 = vector.load %arg5[%c22, %c0_7] : memref<23x3xf32, #tpu.memory_space<vmem>>, vector<1x1xf32>
    %c0_8 = arith.constant 0 : index
    %c0_9 = arith.constant 0 : index
    %14 = vector.load %arg3[%c0_8, %c0_9] : memref<1x512xf32, #tpu.memory_space<vmem>>, vector<1x512xf32>
    %15 = vector.broadcast %13 : vector<1x1xf32> to vector<1x512xf32>
    %16 = arith.mulf %15, %14 : vector<1x512xf32>
    %17 = arith.addf %12, %16 : vector<1x512xf32>
    %c0_10 = arith.constant 0 : index
    %c0_11 = arith.constant 0 : index
    %18 = vector.load %arg6[%c0_10, %c0_11] : memref<3x1xf32, #tpu.memory_space<vmem>>, vector<1x1xf32>
    %19 = vector.broadcast %18 : vector<1x1xf32> to vector<1x512xf32>
    %20 = arith.addf %17, %19 : vector<1x512xf32>
    %21 = math.tanh %20 : vector<1x512xf32>
    %cst_12 = arith.constant 1.000000e+00 : f32
    %22 = vector.broadcast %cst_12 : f32 to vector<1x512xf32>
    %23 = arith.addf %21, %22 : vector<1x512xf32>
    %cst_13 = arith.constant 5.000000e-01 : f32
    %24 = vector.broadcast %cst_13 : f32 to vector<1x512xf32>
    %25 = arith.mulf %23, %24 : vector<1x512xf32>
    %cst_14 = arith.constant 4.850000e-01 : f32
    %26 = vector.broadcast %cst_14 : f32 to vector<1x512xf32>
    %27 = arith.subf %25, %26 : vector<1x512xf32>
    %cst_15 = arith.constant 2.290000e-01 : f32
    %28 = vector.broadcast %cst_15 : f32 to vector<1x512xf32>
    %29 = arith.divf %27, %28 : vector<1x512xf32>
    %c0_16 = arith.constant 0 : index
    %c0_17 = arith.constant 0 : index
    %30 = vector.load %arg7[%c0_16, %c0_17] : memref<3x512xf32, #tpu.memory_space<vmem>>, vector<1x512xf32>
    tpu.vector_store %arg7[%c0_16, %c0_17], %29 {strides = array<i32>} : memref<3x512xf32, #tpu.memory_space<vmem>>, vector<1x512xf32>,
    %c0_18 = arith.constant 0 : index
    %c0_19 = arith.constant 0 : index
    %31 = vector.load %arg4[%c0_18, %c0_19] : memref<3x512xf32, #tpu.memory_space<vmem>>, vector<1x512xf32>
    %32 = arith.subf %31, %29 : vector<1x512xf32>
    %33 = math.absf %32 : vector<1x512xf32>
    %c0_20 = arith.constant 0 : index
    %c1 = arith.constant 1 : index
    %34 = vector.load %arg5[%c0_20, %c1] : memref<23x3xf32, #tpu.memory_space<vmem>>, vector<3x1xf32>
    %c0_21 = arith.constant 0 : index
    %c0_22 = arith.constant 0 : index
    %35 = vector.load %arg1[%c0_21, %c0_22] : memref<3x512xf32, #tpu.memory_space<vmem>>, vector<3x512xf32>
    %36 = vector.broadcast %34 : vector<3x1xf32> to vector<3x512xf32>
    %37 = arith.mulf %36, %35 : vector<3x512xf32>
    %cst_23 = arith.constant dense<0.000000e+00> : vector<512xf32>
    %38 = vector.multi_reduction <add>, %37, %cst_23 [0] : vector<3x512xf32> to vector<512xf32>
    %39 = vector.shape_cast %38 : vector<512xf32> to vector<1x512xf32>
    %c3_24 = arith.constant 3 : index
    %c1_25 = arith.constant 1 : index
    %40 = vector.load %arg5[%c3_24, %c1_25] : memref<23x3xf32, #tpu.memory_space<vmem>>, vector<19x1xf32>
    %c0_26 = arith.constant 0 : index
    %c0_27 = arith.constant 0 : index
    %41 = vector.load %arg2[%c0_26, %c0_27] : memref<19x512xf32, #tpu.memory_space<vmem>>, vector<19x512xf32>
    %42 = vector.broadcast %40 : vector<19x1xf32> to vector<19x512xf32>
    %43 = arith.mulf %42, %41 : vector<19x512xf32>
    %cst_28 = arith.constant dense<0.000000e+00> : vector<512xf32>
    %44 = vector.multi_reduction <add>, %43, %cst_28 [0] : vector<19x512xf32> to vector<512xf32>
    %45 = vector.shape_cast %44 : vector<512xf32> to vector<1x512xf32>
    %46 = arith.addf %39, %45 : vector<1x512xf32>
    %c22_29 = arith.constant 22 : index
    %c1_30 = arith.constant 1 : index
    %47 = vector.load %arg5[%c22_29, %c1_30] : memref<23x3xf32, #tpu.memory_space<vmem>>, vector<1x1xf32>
    %c0_31 = arith.constant 0 : index
    %c0_32 = arith.constant 0 : index
    %48 = vector.load %arg3[%c0_31, %c0_32] : memref<1x512xf32, #tpu.memory_space<vmem>>, vector<1x512xf32>
    %49 = vector.broadcast %47 : vector<1x1xf32> to vector<1x512xf32>
    %50 = arith.mulf %49, %48 : vector<1x512xf32>
    %51 = arith.addf %46, %50 : vector<1x512xf32>
    %c1_33 = arith.constant 1 : index
    %c0_34 = arith.constant 0 : index
    %52 = vector.load %arg6[%c1_33, %c0_34] : memref<3x1xf32, #tpu.memory_space<vmem>>, vector<1x1xf32>
    %53 = vector.broadcast %52 : vector<1x1xf32> to vector<1x512xf32>
    %54 = arith.addf %51, %53 : vector<1x512xf32>
    %55 = math.tanh %54 : vector<1x512xf32>
    %cst_35 = arith.constant 1.000000e+00 : f32
    %56 = vector.broadcast %cst_35 : f32 to vector<1x512xf32>
    %57 = arith.addf %55, %56 : vector<1x512xf32>
    %cst_36 = arith.constant 5.000000e-01 : f32
    %58 = vector.broadcast %cst_36 : f32 to vector<1x512xf32>
    %59 = arith.mulf %57, %58 : vector<1x512xf32>
    %cst_37 = arith.constant 4.560000e-01 : f32
    %60 = vector.broadcast %cst_37 : f32 to vector<1x512xf32>
    %61 = arith.subf %59, %60 : vector<1x512xf32>
    %cst_38 = arith.constant 2.240000e-01 : f32
    %62 = vector.broadcast %cst_38 : f32 to vector<1x512xf32>
    %63 = arith.divf %61, %62 : vector<1x512xf32>
    %c1_39 = arith.constant 1 : index
    %c0_40 = arith.constant 0 : index
    %64 = vector.load %arg7[%c1_39, %c0_40] : memref<3x512xf32, #tpu.memory_space<vmem>>, vector<1x512xf32>
    tpu.vector_store %arg7[%c1_39, %c0_40], %63 {strides = array<i32>} : memref<3x512xf32, #tpu.memory_space<vmem>>, vector<1x512xf32>,
    %c1_41 = arith.constant 1 : index
    %c0_42 = arith.constant 0 : index
    %65 = vector.load %arg4[%c1_41, %c0_42] : memref<3x512xf32, #tpu.memory_space<vmem>>, vector<1x512xf32>
    %66 = arith.subf %65, %63 : vector<1x512xf32>
    %67 = math.absf %66 : vector<1x512xf32>
    %68 = arith.addf %33, %67 : vector<1x512xf32>
    %c0_43 = arith.constant 0 : index
    %c2 = arith.constant 2 : index
    %69 = vector.load %arg5[%c0_43, %c2] : memref<23x3xf32, #tpu.memory_space<vmem>>, vector<3x1xf32>
    %c0_44 = arith.constant 0 : index
    %c0_45 = arith.constant 0 : index
    %70 = vector.load %arg1[%c0_44, %c0_45] : memref<3x512xf32, #tpu.memory_space<vmem>>, vector<3x512xf32>
    %71 = vector.broadcast %69 : vector<3x1xf32> to vector<3x512xf32>
    %72 = arith.mulf %71, %70 : vector<3x512xf32>
    %cst_46 = arith.constant dense<0.000000e+00> : vector<512xf32>
    %73 = vector.multi_reduction <add>, %72, %cst_46 [0] : vector<3x512xf32> to vector<512xf32>
    %74 = vector.shape_cast %73 : vector<512xf32> to vector<1x512xf32>
    %c3_47 = arith.constant 3 : index
    %c2_48 = arith.constant 2 : index
    %75 = vector.load %arg5[%c3_47, %c2_48] : memref<23x3xf32, #tpu.memory_space<vmem>>, vector<19x1xf32>
    %c0_49 = arith.constant 0 : index
    %c0_50 = arith.constant 0 : index
    %76 = vector.load %arg2[%c0_49, %c0_50] : memref<19x512xf32, #tpu.memory_space<vmem>>, vector<19x512xf32>
    %77 = vector.broadcast %75 : vector<19x1xf32> to vector<19x512xf32>
    %78 = arith.mulf %77, %76 : vector<19x512xf32>
    %cst_51 = arith.constant dense<0.000000e+00> : vector<512xf32>
    %79 = vector.multi_reduction <add>, %78, %cst_51 [0] : vector<19x512xf32> to vector<512xf32>
    %80 = vector.shape_cast %79 : vector<512xf32> to vector<1x512xf32>
    %81 = arith.addf %74, %80 : vector<1x512xf32>
    %c22_52 = arith.constant 22 : index
    %c2_53 = arith.constant 2 : index
    %82 = vector.load %arg5[%c22_52, %c2_53] : memref<23x3xf32, #tpu.memory_space<vmem>>, vector<1x1xf32>
    %c0_54 = arith.constant 0 : index
    %c0_55 = arith.constant 0 : index
    %83 = vector.load %arg3[%c0_54, %c0_55] : memref<1x512xf32, #tpu.memory_space<vmem>>, vector<1x512xf32>
    %84 = vector.broadcast %82 : vector<1x1xf32> to vector<1x512xf32>
    %85 = arith.mulf %84, %83 : vector<1x512xf32>
    %86 = arith.addf %81, %85 : vector<1x512xf32>
    %c2_56 = arith.constant 2 : index
    %c0_57 = arith.constant 0 : index
    %87 = vector.load %arg6[%c2_56, %c0_57] : memref<3x1xf32, #tpu.memory_space<vmem>>, vector<1x1xf32>
    %88 = vector.broadcast %87 : vector<1x1xf32> to vector<1x512xf32>
    %89 = arith.addf %86, %88 : vector<1x512xf32>
    %90 = math.tanh %89 : vector<1x512xf32>
    %cst_58 = arith.constant 1.000000e+00 : f32
    %91 = vector.broadcast %cst_58 : f32 to vector<1x512xf32>
    %92 = arith.addf %90, %91 : vector<1x512xf32>
    %cst_59 = arith.constant 5.000000e-01 : f32
    %93 = vector.broadcast %cst_59 : f32 to vector<1x512xf32>
    %94 = arith.mulf %92, %93 : vector<1x512xf32>
    %cst_60 = arith.constant 4.060000e-01 : f32
    %95 = vector.broadcast %cst_60 : f32 to vector<1x512xf32>
    %96 = arith.subf %94, %95 : vector<1x512xf32>
    %cst_61 = arith.constant 2.250000e-01 : f32
    %97 = vector.broadcast %cst_61 : f32 to vector<1x512xf32>
    %98 = arith.divf %96, %97 : vector<1x512xf32>
    %c2_62 = arith.constant 2 : index
    %c0_63 = arith.constant 0 : index
    %99 = vector.load %arg7[%c2_62, %c0_63] : memref<3x512xf32, #tpu.memory_space<vmem>>, vector<1x512xf32>
    tpu.vector_store %arg7[%c2_62, %c0_63], %98 {strides = array<i32>} : memref<3x512xf32, #tpu.memory_space<vmem>>, vector<1x512xf32>,
    %c2_64 = arith.constant 2 : index
    %c0_65 = arith.constant 0 : index
    %100 = vector.load %arg4[%c2_64, %c0_65] : memref<3x512xf32, #tpu.memory_space<vmem>>, vector<1x512xf32>
    %101 = arith.subf %100, %98 : vector<1x512xf32>
    %102 = math.absf %101 : vector<1x512xf32>
    %103 = arith.addf %68, %102 : vector<1x512xf32>
    %c0_66 = arith.constant 0 : index
    %c0_67 = arith.constant 0 : index
    %104 = vector.load %arg8[%c0_66, %c0_67] : memref<1x512xf32, #tpu.memory_space<vmem>>, vector<1x512xf32>
    tpu.vector_store %arg8[%c0_66, %c0_67], %103 {strides = array<i32>} : memref<1x512xf32, #tpu.memory_space<vmem>>, vector<1x512xf32>,
    return
  }
  func.func @transform_0(%arg0: i32) -> (i32, i32) {
    %c0_i32 = arith.constant 0 : i32
    %c0_i32_0 = arith.constant 0 : i32
    return %c0_i32, %arg0 : i32, i32
  }
  func.func @transform_1(%arg0: i32) -> (i32, i32) {
    %c0_i32 = arith.constant 0 : i32
    %c0_i32_0 = arith.constant 0 : i32
    return %c0_i32, %arg0 : i32, i32
  }
  func.func @transform_2(%arg0: i32) -> (i32, i32) {
    %c0_i32 = arith.constant 0 : i32
    %c0_i32_0 = arith.constant 0 : i32
    return %c0_i32, %arg0 : i32, i32
  }
  func.func @transform_3(%arg0: i32) -> (i32, i32) {
    %c0_i32 = arith.constant 0 : i32
    %c0_i32_0 = arith.constant 0 : i32
    return %c0_i32, %arg0 : i32, i32
  }
  func.func @transform_4(%arg0: i32) -> (i32, i32) {
    %c0_i32 = arith.constant 0 : i32
    %c0_i32_0 = arith.constant 0 : i32
    %c0_i32_1 = arith.constant 0 : i32
    return %c0_i32, %c0_i32_0 : i32, i32
  }
  func.func @transform_5(%arg0: i32) -> (i32, i32) {
    %c0_i32 = arith.constant 0 : i32
    %c0_i32_0 = arith.constant 0 : i32
    %c0_i32_1 = arith.constant 0 : i32
    return %c0_i32, %c0_i32_0 : i32, i32
  }
  func.func @transform_6(%arg0: i32) -> (i32, i32) {
    %c0_i32 = arith.constant 0 : i32
    %c0_i32_0 = arith.constant 0 : i32
    return %c0_i32, %arg0 : i32, i32
  }
  func.func @transform_7(%arg0: i32) -> (i32, i32) {
    %c0_i32 = arith.constant 0 : i32
    %c0_i32_0 = arith.constant 0 : i32
    return %c0_i32, %arg0 : i32, i32
  }
}

module attributes {stable_mosaic.version = 11 : i64} {
  func.func @_diss_kernel(%arg0: i32, %arg1: memref<3x512xf32, #tpu.memory_space<vmem>>, %arg2: memref<3x512xf32, #tpu.memory_space<vmem>>, %arg3: memref<19x512xf32, #tpu.memory_space<vmem>>, %arg4: memref<1x512xf32, #tpu.memory_space<vmem>>, %arg5: memref<1x512xf32, #tpu.memory_space<vmem>>, %arg6: memref<1x512xf32, #tpu.memory_space<vmem>>, %arg7: memref<28x1xf32, #tpu.memory_space<vmem>>, %arg8: memref<1x1xf32, #tpu.memory_space<vmem>>, %arg9: memref<1x512xf32, #tpu.memory_space<vmem>>) attributes {dimension_semantics = [#tpu.dimension_semantics<parallel>], iteration_bounds = array<i64: 2>, scalar_prefetch = 0 : i64, scratch_operands = 0 : i64, tpu.core_type = #tpu.core_type<tc>, window_params = [{transform_indices = @transform_0, window_bounds = array<i64: 3, 512>}, {transform_indices = @transform_1, window_bounds = array<i64: 3, 512>}, {transform_indices = @transform_2, window_bounds = array<i64: 19, 512>}, {transform_indices = @transform_3, window_bounds = array<i64: 1, 512>}, {transform_indices = @transform_4, window_bounds = array<i64: 1, 512>}, {transform_indices = @transform_5, window_bounds = array<i64: 1, 512>}, {pipeline_mode = #tpu.pipeline_mode<synchronous>, transform_indices = @transform_6, window_bounds = array<i64: 28, 1>}, {pipeline_mode = #tpu.pipeline_mode<synchronous>, transform_indices = @transform_7, window_bounds = array<i64: 1, 1>}, {transform_indices = @transform_8, window_bounds = array<i64: 1, 512>}]} {
    %c0 = arith.constant 0 : index
    %c0_0 = arith.constant 0 : index
    %0 = vector.load %arg7[%c0, %c0_0] : memref<28x1xf32, #tpu.memory_space<vmem>>, vector<3x1xf32>
    %c0_1 = arith.constant 0 : index
    %c0_2 = arith.constant 0 : index
    %1 = vector.load %arg1[%c0_1, %c0_2] : memref<3x512xf32, #tpu.memory_space<vmem>>, vector<3x512xf32>
    %2 = vector.broadcast %0 : vector<3x1xf32> to vector<3x512xf32>
    %3 = arith.mulf %2, %1 : vector<3x512xf32>
    %cst = arith.constant dense<0.000000e+00> : vector<512xf32>
    %4 = vector.multi_reduction <add>, %3, %cst [0] : vector<3x512xf32> to vector<512xf32>
    %5 = vector.shape_cast %4 : vector<512xf32> to vector<1x512xf32>
    %c3 = arith.constant 3 : index
    %c0_3 = arith.constant 0 : index
    %6 = vector.load %arg7[%c3, %c0_3] : memref<28x1xf32, #tpu.memory_space<vmem>>, vector<3x1xf32>
    %c0_4 = arith.constant 0 : index
    %c0_5 = arith.constant 0 : index
    %7 = vector.load %arg2[%c0_4, %c0_5] : memref<3x512xf32, #tpu.memory_space<vmem>>, vector<3x512xf32>
    %8 = vector.broadcast %6 : vector<3x1xf32> to vector<3x512xf32>
    %9 = arith.mulf %8, %7 : vector<3x512xf32>
    %cst_6 = arith.constant dense<0.000000e+00> : vector<512xf32>
    %10 = vector.multi_reduction <add>, %9, %cst_6 [0] : vector<3x512xf32> to vector<512xf32>
    %11 = vector.shape_cast %10 : vector<512xf32> to vector<1x512xf32>
    %12 = arith.addf %5, %11 : vector<1x512xf32>
    %c6 = arith.constant 6 : index
    %c0_7 = arith.constant 0 : index
    %13 = vector.load %arg7[%c6, %c0_7] : memref<28x1xf32, #tpu.memory_space<vmem>>, vector<19x1xf32>
    %c0_8 = arith.constant 0 : index
    %c0_9 = arith.constant 0 : index
    %14 = vector.load %arg3[%c0_8, %c0_9] : memref<19x512xf32, #tpu.memory_space<vmem>>, vector<19x512xf32>
    %15 = vector.broadcast %13 : vector<19x1xf32> to vector<19x512xf32>
    %16 = arith.mulf %15, %14 : vector<19x512xf32>
    %cst_10 = arith.constant dense<0.000000e+00> : vector<512xf32>
    %17 = vector.multi_reduction <add>, %16, %cst_10 [0] : vector<19x512xf32> to vector<512xf32>
    %18 = vector.shape_cast %17 : vector<512xf32> to vector<1x512xf32>
    %19 = arith.addf %12, %18 : vector<1x512xf32>
    %c25 = arith.constant 25 : index
    %c0_11 = arith.constant 0 : index
    %20 = vector.load %arg7[%c25, %c0_11] : memref<28x1xf32, #tpu.memory_space<vmem>>, vector<1x1xf32>
    %c0_12 = arith.constant 0 : index
    %c0_13 = arith.constant 0 : index
    %21 = vector.load %arg4[%c0_12, %c0_13] : memref<1x512xf32, #tpu.memory_space<vmem>>, vector<1x512xf32>
    %22 = vector.broadcast %20 : vector<1x1xf32> to vector<1x512xf32>
    %23 = arith.mulf %22, %21 : vector<1x512xf32>
    %24 = arith.addf %19, %23 : vector<1x512xf32>
    %c26 = arith.constant 26 : index
    %c0_14 = arith.constant 0 : index
    %25 = vector.load %arg7[%c26, %c0_14] : memref<28x1xf32, #tpu.memory_space<vmem>>, vector<1x1xf32>
    %c0_15 = arith.constant 0 : index
    %c0_16 = arith.constant 0 : index
    %26 = vector.load %arg5[%c0_15, %c0_16] : memref<1x512xf32, #tpu.memory_space<vmem>>, vector<1x512xf32>
    %27 = vector.broadcast %25 : vector<1x1xf32> to vector<1x512xf32>
    %28 = arith.mulf %27, %26 : vector<1x512xf32>
    %29 = arith.addf %24, %28 : vector<1x512xf32>
    %c27 = arith.constant 27 : index
    %c0_17 = arith.constant 0 : index
    %30 = vector.load %arg7[%c27, %c0_17] : memref<28x1xf32, #tpu.memory_space<vmem>>, vector<1x1xf32>
    %c0_18 = arith.constant 0 : index
    %c0_19 = arith.constant 0 : index
    %31 = vector.load %arg6[%c0_18, %c0_19] : memref<1x512xf32, #tpu.memory_space<vmem>>, vector<1x512xf32>
    %32 = vector.broadcast %30 : vector<1x1xf32> to vector<1x512xf32>
    %33 = arith.mulf %32, %31 : vector<1x512xf32>
    %34 = arith.addf %29, %33 : vector<1x512xf32>
    %c0_20 = arith.constant 0 : index
    %c0_21 = arith.constant 0 : index
    %35 = vector.load %arg8[%c0_20, %c0_21] : memref<1x1xf32, #tpu.memory_space<vmem>>, vector<1x1xf32>
    %36 = vector.broadcast %35 : vector<1x1xf32> to vector<1x512xf32>
    %37 = arith.addf %34, %36 : vector<1x512xf32>
    %cst_22 = arith.constant 0.000000e+00 : f32
    %38 = vector.broadcast %cst_22 : f32 to vector<1x512xf32>
    %39 = arith.subf %38, %37 : vector<1x512xf32>
    %40 = math.exp %39 : vector<1x512xf32>
    %cst_23 = arith.constant 1.000000e+00 : f32
    %41 = vector.broadcast %cst_23 : f32 to vector<1x512xf32>
    %42 = arith.addf %41, %40 : vector<1x512xf32>
    %cst_24 = arith.constant 1.000000e+00 : f32
    %43 = vector.broadcast %cst_24 : f32 to vector<1x512xf32>
    %44 = arith.divf %43, %42 : vector<1x512xf32>
    %cst_25 = arith.constant 7.500000e-01 : f32
    %45 = vector.broadcast %cst_25 : f32 to vector<1x512xf32>
    %46 = arith.mulf %44, %45 : vector<1x512xf32>
    %c0_26 = arith.constant 0 : index
    %c0_27 = arith.constant 0 : index
    %47 = vector.load %arg4[%c0_26, %c0_27] : memref<1x512xf32, #tpu.memory_space<vmem>>, vector<1x512xf32>
    %cst_28 = arith.constant 2.500000e-01 : f32
    %48 = vector.broadcast %cst_28 : f32 to vector<1x512xf32>
    %49 = arith.mulf %47, %48 : vector<1x512xf32>
    %50 = arith.addf %46, %49 : vector<1x512xf32>
    %cst_29 = arith.constant 2.550000e+02 : f32
    %51 = vector.broadcast %cst_29 : f32 to vector<1x512xf32>
    %52 = arith.mulf %50, %51 : vector<1x512xf32>
    %c0_30 = arith.constant 0 : index
    %c0_31 = arith.constant 0 : index
    %53 = vector.load %arg9[%c0_30, %c0_31] : memref<1x512xf32, #tpu.memory_space<vmem>>, vector<1x512xf32>
    tpu.vector_store %arg9[%c0_30, %c0_31], %52 {strides = array<i32>} : memref<1x512xf32, #tpu.memory_space<vmem>>, vector<1x512xf32>,
    return
  }
  func.func @transform_0(%arg0: i32) -> (i32, i32) {
    %c0_i32 = arith.constant 0 : i32
    %c0_i32_0 = arith.constant 0 : i32
    return %c0_i32, %arg0 : i32, i32
  }
  func.func @transform_1(%arg0: i32) -> (i32, i32) {
    %c0_i32 = arith.constant 0 : i32
    %c0_i32_0 = arith.constant 0 : i32
    return %c0_i32, %arg0 : i32, i32
  }
  func.func @transform_2(%arg0: i32) -> (i32, i32) {
    %c0_i32 = arith.constant 0 : i32
    %c0_i32_0 = arith.constant 0 : i32
    return %c0_i32, %arg0 : i32, i32
  }
  func.func @transform_3(%arg0: i32) -> (i32, i32) {
    %c0_i32 = arith.constant 0 : i32
    %c0_i32_0 = arith.constant 0 : i32
    return %c0_i32, %arg0 : i32, i32
  }
  func.func @transform_4(%arg0: i32) -> (i32, i32) {
    %c0_i32 = arith.constant 0 : i32
    %c0_i32_0 = arith.constant 0 : i32
    return %c0_i32, %arg0 : i32, i32
  }
  func.func @transform_5(%arg0: i32) -> (i32, i32) {
    %c0_i32 = arith.constant 0 : i32
    %c0_i32_0 = arith.constant 0 : i32
    return %c0_i32, %arg0 : i32, i32
  }
  func.func @transform_6(%arg0: i32) -> (i32, i32) {
    %c0_i32 = arith.constant 0 : i32
    %c0_i32_0 = arith.constant 0 : i32
    %c0_i32_1 = arith.constant 0 : i32
    return %c0_i32, %c0_i32_0 : i32, i32
  }
  func.func @transform_7(%arg0: i32) -> (i32, i32) {
    %c0_i32 = arith.constant 0 : i32
    %c0_i32_0 = arith.constant 0 : i32
    %c0_i32_1 = arith.constant 0 : i32
    return %c0_i32, %c0_i32_0 : i32, i32
  }
  func.func @transform_8(%arg0: i32) -> (i32, i32) {
    %c0_i32 = arith.constant 0 : i32
    %c0_i32_0 = arith.constant 0 : i32
    return %c0_i32, %arg0 : i32, i32
  }
}

</mosaic_0001>

<bundles_post_ra>
// kernel: road_anomaly_forward.3
= control target key start
LH: loop header
LB: loop body
LE: loop exit
PB: predicated region body
PF: predicated region fallthrough
CT: control target
= control target key end

     0   :  { %s3961_s27 = smov 0   ;;  %s3963_s28 = smov 0   ;;  %s7217_s0 = inlined_call_operand.vmem [shape: f32[3,4096], index: 0, kind: input, shape index: {}]   ;;  %s7218_s1 = inlined_call_operand.vmem [shape: f32[19,3], index: 1, kind: input, shape index: {}]   ;;  %s7219_s2 = inlined_call_operand.vmem [shape: f32[19,1], index: 2, kind: input, shape index: {}]   ;;  %s7220_s3 = inlined_call_operand.vmem [shape: f32[19,1], index: 3, kind: input, shape index: {}]   ;;  %s7221_s4 = inlined_call_operand.vmem [shape: f32[19,4096], index: 4, kind: output, shape index: {0}]   ;;  %s7222_s5 = inlined_call_operand.vmem [shape: f32[1,4096], index: 5, kind: output, shape index: {1}]   ;;  %s7223_s6 = inlined_call_operand.vmem [shape: f32[1,4096], index: 6, kind: output, shape index: {2}]   ;;  %s7224_s7 = inlined_call_operand.vmem [shape: f32[1,4096], index: 7, kind: output, shape index: {3}]   ;;  %s7225_s8 = inlined_call_operand.vmem [shape: f32[1,4096], index: 8, kind: output, shape index: {4}]  }
   0x1   :  { %s3965_s29 = smov 0  }
   0x2 LB: > { %s3974_s30 = sadd.s32 4294967295, %s3909_s29   ;;  %s3976_s9 = sadd.s32 1, %s3909_s29   ;;  %s3909_s29 = sphi %s3965_s29, %s8412_s29   ;;  %s3905_s28 = sphi %s3963_s28, %s8411_s28   ;;  %s3901_s27 = sphi %s3961_s27, %s8410_s27  }
   0x3   : > { %s112_s10 = ssub.s32 %s3909_s29, %s3976_s9  ;;  %s115_s11 = sadd.s32 1, %s3905_s28 }
   0x4   : > { %p113_p0 = scmp.eq.s32.totalorder %s112_s10, 0  ;;  %p125_p1 = scmp.ne.s32.totalorder %s3905_s28, %s3901_s27 }
   0x5   : > { %p126_p2 = scmp.eq.s32.totalorder %s3974_s30, 1  ;;  %p3562_p3 = scmp.ge.s32.totalorder %s3909_s29, 1 }
   0x6   : > { %s3984_s12 = scalar_select %p113_p0, %s3905_s28, %s115_s11  }
   0x7   : > { %p3986_p4 = por %p126_p2, %p125_p1  ;;  %p272_p5 = scmp.lt.s32.totalorder %s3909_s29, 3 }
   0x9   : > { %p273_p6 = pnand %p3562_p3, %p272_p5 }
   0xb   : > { %276 = sbr.rel (%p273_p6) target bundleno = 756 (0x2f4), region = 36 }
  0x12   : > { %v348_v0 = vld [vmem:[%s7218_s1] sm:$0xff]  ;;  %v3911_v1 = vmov 1   ;;  %v3912_v2 = vmov 0   ;;  %v349_v3 = vld [vmem:[%s7218_s1 + $0x8] sm:$0xff]  ;;  %v350_v4 = vld [vmem:[%s7218_s1 + $0x10] sm:$0x7]  ;;  %v371_v12 = vlaneseq }
  0x13   : > { %3658 = vset.pattern.permute.xlu1 %v3911_v1  ;;  %3657 = vset.pattern.permute.xlu0 %v3912_v2  ;;  %v3913_v5 = vmov 2   ;;  %v887_v6 = vld [vmem:[%s7219_s2] sm:$0xff]  ;;  %v888_v7 = vld [vmem:[%s7219_s2 + $0x8] sm:$0xff]  ;;  %v889_v9 = vld [vmem:[%s7219_s2 + $0x10] sm:$0x7]  ;;  %s3563_s16 = sshll.u32 %s3974_s30, 4 }
  0x14   : > { %504 = vperm.xlu1 %3658, %v348_v0   ;;  %356 = vperm.xlu0 %3657, %v348_v0   ;;  %v2103_v8 = vld [vmem:[%s7220_s3] sm:$0xff]  ;;  %v2105_v10 = vld [vmem:[%s7220_s3 + $0x10] sm:$0x7]  ;;  %v2104_v11 = vld [vmem:[%s7220_s3 + $0x8] sm:$0xff]  ;;  %p322_p7 = scmp.lt.s32.totalorder %s3563_s16, 31  ;;  %v4021_v13 = vshrl.u32 %v371_v12, 7 }
  0x15   : > { %vm7356_vm0 = vcmask 1042432   ;;  %s294_s21 = sand.u32 1, %s3901_s27  }
  0x16   : > { %s8414_s16 = smov (!%p322_p7, %s3563_s16), 31  ;;  %7540 = vst [vmem:[#allocation3_spill] sm:$0xff] %v4021_v13  ;;  %v373_v14 = vsub.s32 0, %v4021_v13  ;;  %v377_v15 = vsub.s32 1, %v4021_v13  ;;  %v381_v16 = vsub.s32 2, %v4021_v13  ;;  %v385_v17 = vsub.s32 3, %v4021_v13 }
  0x17   : > { %s3564_s17 = sshll.u32 %s8414_s16, 2  ;;  %v389_v19 = vsub.s32 4, %v4021_v13  ;;  %v393_v20 = vsub.s32 5, %v4021_v13  ;;  %v397_v21 = vsub.s32 6, %v4021_v13  ;;  %v401_v22 = vsub.s32 7, %v4021_v13  ;;  %s5392_s27 = smul.u32 384, %s294_s21 }
  0x18   : > { %508 = vperm.xlu1 %3658, %v349_v3   ;;  %361 = vperm.xlu0 %3657, %v349_v3   ;;  %s4026_s20 = scalar_lea.vmem %s7217_s0, %s3564_s17  ;;  %s6093_s25 = scalar_lea.vmem %s7222_s5, %s8414_s16 }
  0x19   : > { %v351_v18 = vld [vmem:[%s4026_s20] ss:$4 sm:$0xff]  ;;  %v3570_v32 = vld [vmem:[%s4026_s20 + $0x1] ss:$4 sm:$0xff]  ;;  %v3572_v51 = vld [vmem:[%s4026_s20 + $0x2] ss:$4 sm:$0xff]  ;;  %s6354_s10 = scalar_lea.vmem %s7223_s6, %s8414_s16  ;;  %s6682_s15 = scalar_lea.vmem %s7224_s7, %s8414_s16 }
  0x1a   : > { %v3569_v23 = vld [vmem:[%s4026_s20 + $0x20] ss:$4 sm:$0xff]  ;;  %v4038_v24 = vrot.slane %v351_v18, %v373_v14  ;;  %v4040_v25 = vrot.slane %v351_v18, %v377_v15  ;;  %v4042_v26 = vrot.slane %v351_v18, %v381_v16  ;;  %v4044_v27 = vrot.slane %v351_v18, %v385_v17  ;;  %v3571_v41 = vld [vmem:[%s4026_s20 + $0x21] ss:$4 sm:$0xff]  ;;  %v3573_v60 = vld [vmem:[%s4026_s20 + $0x22] ss:$4 sm:$0xff]  ;;  %s346_s19 = scalar_lea.vmem %s7225_s8, %s8414_s16 }
  0x1b   : > { %v4046_v28 = vrot.slane %v351_v18, %v389_v19  ;;  %v4048_v29 = vrot.slane %v351_v18, %v393_v20  ;;  %v4050_v30 = vrot.slane %v351_v18, %v397_v21  ;;  %v4052_v31 = vrot.slane %v351_v18, %v401_v22  ;;  %s5485_s22 = scalar_lea.vmem [#allocation2], %s5392_s27  ;;  %s3626_s16 = sshll.u32 (%p3986_p4), %s3974_s30, 7 }
  0x1c   : > { %512 = vperm.xlu1 %3658, %v350_v4   ;;  %366 = vperm.xlu0 %3657, %v350_v4   ;;  %v4055_v33 = vrot.slane %v3569_v23, %v373_v14  ;;  %v4057_v34 = vrot.slane %v3569_v23, %v377_v15  ;;  %v4059_v35 = vrot.slane %v3569_v23, %v381_v16  ;;  %s7112_s27 = scalar_lea.vmem (%p3986_p4), %s7221_s4, %s3626_s16 }
  0x1d   : > { %v4061_v36 = vrot.slane %v3569_v23, %v385_v17  ;;  %v4063_v37 = vrot.slane %v3569_v23, %v389_v19  ;;  %v4065_v38 = vrot.slane %v3569_v23, %v393_v20  ;;  %v4067_v39 = vrot.slane %v3569_v23, %v397_v21 }
  0x1e   : > { %v4069_v40 = vrot.slane %v3569_v23, %v401_v22  ;;  %v4072_v42 = vrot.slane %v3570_v32, %v373_v14  ;;  %v4074_v43 = vrot.slane %v3570_v32, %v377_v15  ;;  %v4076_v44 = vrot.slane %v3570_v32, %v381_v16 }
  0x1f   : > { %v4078_v45 = vrot.slane %v3570_v32, %v385_v17  ;;  %v4080_v47 = vrot.slane %v3570_v32, %v389_v19  ;;  %v4082_v48 = vrot.slane %v3570_v32, %v393_v20  ;;  %v4084_v49 = vrot.slane %v3570_v32, %v397_v21 }
  0x20   : > { %3660 = vset.pattern.permute.xlu1 %v3913_v5  ;;  %3659 = vset.pattern.permute.xlu0 %v3913_v5  ;;  %v4086_v50 = vrot.slane %v3570_v32, %v401_v22  ;;  %v4089_v52 = vrot.slane %v3571_v41, %v373_v14  ;;  %v4091_v53 = vrot.slane %v3571_v41, %v377_v15 }
  0x21   : > { %702 = vperm.xlu1 %3660, %v349_v3   ;;  %698 = vperm.xlu0 %3659, %v348_v0   ;;  %v4093_v54 = vrot.slane %v3571_v41, %v381_v16  ;;  %v4095_v55 = vrot.slane %v3571_v41, %v385_v17  ;;  %v4097_v56 = vrot.slane %v3571_v41, %v389_v19 }
  0x22   : > { %v4099_v57 = vrot.slane %v3571_v41, %v393_v20  ;;  %v4101_v58 = vrot.slane %v3571_v41, %v397_v21  ;;  %v4103_v59 = vrot.slane %v3571_v41, %v401_v22  ;;  %v4106_v61 = vrot.slane %v3572_v51, %v373_v14 }
  0x23   : > { %v4108_v62 = vrot.slane %v3572_v51, %v377_v15  ;;  %v4110_v63 = vrot.slane %v3572_v51, %v381_v16  ;;  %v4112_v0 = vrot.slane %v3572_v51, %v385_v17  ;;  %v4114_v1 = vrot.slane %v3572_v51, %v389_v19 }
  0x24   : > { %7541 = vst [vmem:[#allocation4_spill] sm:$0xff] %v4106_v61  ;;  %v4118_v3 = vrot.slane %v3572_v51, %v397_v21  ;;  %v4122_v5 = vrot.slane %v3573_v60, %v373_v14  ;;  %v4134_v12 = vrot.slane %v3573_v60, %v397_v21  ;;  %v4136_v18 = vrot.slane %v3573_v60, %v401_v22 }
  0x25   : > { %706 = vperm.xlu1 %3660, %v350_v4   ;;  %3661 = vset.pattern.permute.xlu0 %v3912_v2  ;;  %7542 = vst [vmem:[#allocation5_spill] sm:$0xff] %v4108_v62  ;;  %7543 = vst [vmem:[#allocation6_spill] sm:$0xff] %v4110_v63  ;;  %v4120_v4 = vrot.slane %v3572_v51, %v401_v22 }
  0x26   : > { %892 = vperm.xlu0 %3661, %v887_v6   ;;  %7544 = vst [vmem:[#allocation7_spill] sm:$0xff] %v4112_v0  ;;  %7545 = vst [vmem:[#allocation8_spill] sm:$0xff] %v4114_v1  ;;  %v4124_v6 = vrot.slane %v3573_v60, %v377_v15 }
  0x27   : > { %7547 = vst [vmem:[#allocation10_spill] sm:$0xff] %v4118_v3  ;;  %7548 = vst [vmem:[#allocation11_spill] sm:$0xff] %v4120_v4 }
  0x28   : > { %7549 = vst [vmem:[#allocation12_spill] sm:$0xff] %v4122_v5  ;;  %7550 = vst [vmem:[#allocation13_spill] sm:$0xff] %v4124_v6 }
  0x29   : > { %3662 = vset.pattern.permute.xlu1 %v3912_v2  ;;  %v4116_v2 = vrot.slane %v3572_v51, %v393_v20  ;;  %7555 = vst [vmem:[#allocation18_spill] sm:$0xff] %v4134_v12  ;;  %7556 = vst [vmem:[#allocation19_spill] sm:$0xff] %v4136_v18 }
  0x2a   : > { %897 = vperm.xlu1 %3662, %v888_v7   ;;  %2108 = vperm.xlu0 %3661, %v2103_v8   ;;  %v4126_v7 = vrot.slane %v3573_v60, %v381_v16  ;;  %v4128_v8 = vrot.slane %v3573_v60, %v385_v17 }
  0x2b   : > { %7546 = vst [vmem:[#allocation9_spill] sm:$0xff] %v4116_v2 }
  0x2c   : > { %7551 = vst [vmem:[#allocation14_spill] sm:$0xff] %v4126_v7  ;;  %7552 = vst [vmem:[#allocation15_spill] sm:$0xff] %v4128_v8 }
  0x2e   : > { %902 = vperm.xlu1 %3662, %v889_v9   ;;  %2118 = vperm.xlu0 %3661, %v2105_v10   ;;  %v4130_v10 = vrot.slane %v3573_v60, %v389_v19 }
  0x30   : > { %7553 = vst [vmem:[#allocation16_spill] sm:$0xff] %v4130_v10 }
  0x32   : > { %2113 = vperm.xlu1 %3662, %v2104_v11   ;;  %v4132_v11 = vrot.slane %v3573_v60, %v393_v20 }
  0x34   : > { %7554 = vst [vmem:[#allocation17_spill] sm:$0xff] %v4132_v11 }
  0x93   : > { %v357_v46 = vpop.permute.xlu0 %356  ;;  %v505_v6 = vpop.permute.xlu1 %504 }
  0x94   : > { %v4139_v23 = vmul.f32 %v4038_v24, %v357_v46  ;;  %v4142_v14 = vmul.f32 %v4040_v25, %v357_v46  ;;  %v4145_v15 = vmul.f32 %v4042_v26, %v357_v46  ;;  %v4148_v16 = vmul.f32 %v4044_v27, %v357_v46 }
  0x95   : > { %v4151_v17 = vmul.f32 %v4046_v28, %v357_v46  ;;  %v4154_v19 = vmul.f32 %v4048_v29, %v357_v46  ;;  %v4157_v20 = vmul.f32 %v4050_v30, %v357_v46  ;;  %v4160_v21 = vmul.f32 %v4052_v31, %v357_v46 }
  0x96   : > { %v4163_v22 = vmul.f32 %v4055_v33, %v357_v46  ;;  %v4166_v32 = vmul.f32 %v4057_v34, %v357_v46  ;;  %v4169_v41 = vmul.f32 %v4059_v35, %v357_v46  ;;  %v4172_v51 = vmul.f32 %v4061_v36, %v357_v46 }
  0x97   : > { %v362_v9 = vpop.permute.xlu0 %361  ;;  %7557 = vst [vmem:[#allocation20_spill] sm:$0xff] %v4154_v19  ;;  %7558 = vst [vmem:[#allocation21_spill] sm:$0xff] %v4157_v20  ;;  %v4175_v60 = vmul.f32 %v4063_v37, %v357_v46  ;;  %v4178_v13 = vmul.f32 %v4065_v38, %v357_v46  ;;  %v4181_v18 = vmul.f32 %v4067_v39, %v357_v46 }
  0x98   : > { %7559 = vst [vmem:[#allocation22_spill] sm:$0xff] %v4160_v21  ;;  %7560 = vst [vmem:[#allocation23_spill] sm:$0xff] %v4163_v22  ;;  %v4184_v12 = vmul.f32 %v4069_v40, %v357_v46  ;;  %v4187_v11 = vmul.f32 %v4038_v24, %v362_v9  ;;  %v4190_v10 = vmul.f32 %v4040_v25, %v362_v9 }
  0x99   : > { %7561 = vst [vmem:[#allocation24_spill] sm:$0xff] %v4166_v32  ;;  %7562 = vst [vmem:[#allocation25_spill] sm:$0xff] %v4169_v41  ;;  %v4193_v8 = vmul.f32 %v4042_v26, %v362_v9  ;;  %v4196_v7 = vmul.f32 %v4044_v27, %v362_v9  ;;  %v4199_v4 = vmul.f32 %v4046_v28, %v362_v9 }
  0x9a   : > { %7563 = vst [vmem:[#allocation26_spill] sm:$0xff] %v4172_v51  ;;  %7564 = vst [vmem:[#allocation27_spill] sm:$0xff] %v4175_v60  ;;  %v4202_v46 = vmul.f32 %v4048_v29, %v362_v9  ;;  %v4205_v3 = vmul.f32 %v4050_v30, %v362_v9  ;;  %v4208_v2 = vmul.f32 %v4052_v31, %v362_v9 }
  0x9b   : > { %7565 = vst [vmem:[#allocation28_spill] sm:$0xff] %v4178_v13  ;;  %7566 = vst [vmem:[#allocation29_spill] sm:$0xff] %v4181_v18  ;;  %v367_v5 = vpop.permute.xlu0 %366  ;;  %v4211_v1 = vmul.f32 %v4055_v33, %v362_v9  ;;  %v4214_v0 = vmul.f32 %v4057_v34, %v362_v9  ;;  %v4217_v63 = vmul.f32 %v4059_v35, %v362_v9 }
  0x9c   : > { %7567 = vst [vmem:[#allocation30_spill] sm:$0xff] %v4184_v12  ;;  %7568 = vst [vmem:[#allocation31_spill] sm:$0xff] %v4187_v11  ;;  %v4220_v62 = vmul.f32 %v4061_v36, %v362_v9  ;;  %v4223_v61 = vmul.f32 %v4063_v37, %v362_v9 }
  0x9d   : > { %7569 = vst [vmem:[#allocation32_spill] sm:$0xff] %v4190_v10  ;;  %7570 = vst [vmem:[#allocation33_spill] sm:$0xff] %v4193_v8 }
  0x9e   : > { %7571 = vst [vmem:[#allocation34_spill] sm:$0xff] %v4196_v7  ;;  %7572 = vst [vmem:[#allocation35_spill] sm:$0xff] %v4199_v4 }
  0x9f   : > { %7573 = vst [vmem:[#allocation36_spill] sm:$0xff] %v4202_v46  ;;  %7574 = vst [vmem:[#allocation37_spill] sm:$0xff] %v4205_v3  ;;  %v4226_v3 = vmul.f32 %v4065_v38, %v362_v9 }
  0xa0   : > { %7575 = vst [vmem:[#allocation38_spill] sm:$0xff] %v4208_v2  ;;  %7576 = vst [vmem:[#allocation39_spill] sm:$0xff] %v4211_v1  ;;  %v4229_v2 = vmul.f32 %v4067_v39, %v362_v9  ;;  %v4232_v1 = vmul.f32 %v4069_v40, %v362_v9  ;;  %v4253_v9 = vmul.f32 %v4050_v30, %v367_v5 }
  0xa1   : > { %7577 = vst [vmem:[#allocation40_spill] sm:$0xff] %v4214_v0  ;;  %7578 = vst [vmem:[#allocation41_spill] sm:$0xff] %v4217_v63  ;;  %v4235_v0 = vmul.f32 %v4038_v24, %v367_v5  ;;  %v4238_v63 = vmul.f32 %v4040_v25, %v367_v5  ;;  %v4256_v24 = vmul.f32 %v4052_v31, %v367_v5 }
  0xa2   : > { %7579 = vst [vmem:[#allocation42_spill] sm:$0xff] %v4220_v62  ;;  %7580 = vst [vmem:[#allocation43_spill] sm:$0xff] %v4223_v61  ;;  %v4241_v62 = vmul.f32 %v4042_v26, %v367_v5  ;;  %v4244_v61 = vmul.f32 %v4044_v27, %v367_v5  ;;  %v4259_v25 = vmul.f32 %v4055_v33, %v367_v5 }
  0xa3   : > { %7581 = vst [vmem:[#allocation44_spill] sm:$0xff] %v4226_v3  ;;  %7582 = vst [vmem:[#allocation45_spill] sm:$0xff] %v4229_v2  ;;  %v4247_v3 = vmul.f32 %v4046_v28, %v367_v5  ;;  %v4250_v2 = vmul.f32 %v4048_v29, %v367_v5  ;;  %v4262_v26 = vmul.f32 %v4057_v34, %v367_v5  ;;  %v509_v29 = vpop.permute.xlu1 %508 }
  0xa4   : > { %7583 = vst [vmem:[#allocation46_spill] sm:$0xff] %v4232_v1  ;;  %7584 = vst [vmem:[#allocation47_spill] sm:$0xff] %v4235_v0  ;;  %v4265_v27 = vmul.f32 %v4059_v35, %v367_v5  ;;  %v4268_v28 = vmul.f32 %v4061_v36, %v367_v5  ;;  %v4274_v30 = vmul.f32 %v4065_v38, %v367_v5 }
  0xa5   : > { %7585 = vst [vmem:[#allocation48_spill] sm:$0xff] %v4238_v63  ;;  %7586 = vst [vmem:[#allocation49_spill] sm:$0xff] %v4241_v62  ;;  %v4277_v31 = vmul.f32 %v4067_v39, %v367_v5  ;;  %v4280_v33 = vmul.f32 %v4069_v40, %v367_v5  ;;  %v597_v34 = vmul.f32 %v4072_v42, %v505_v6 }
  0xa6   : > { %7587 = vst [vmem:[#allocation50_spill] sm:$0xff] %v4244_v61  ;;  %7588 = vst [vmem:[#allocation51_spill] sm:$0xff] %v4247_v3  ;;  %v598_v35 = vmul.f32 %v4074_v43, %v505_v6  ;;  %v599_v36 = vmul.f32 %v4076_v44, %v505_v6  ;;  %v603_v38 = vmul.f32 %v4084_v49, %v505_v6 }
  0xa7   : > { %7589 = vst [vmem:[#allocation52_spill] sm:$0xff] %v4250_v2  ;;  %7590 = vst [vmem:[#allocation53_spill] sm:$0xff] %v4253_v9  ;;  %v4271_v2 = vmul.f32 %v4063_v37, %v367_v5  ;;  %v601_v37 = vmul.f32 %v4080_v47, %v505_v6  ;;  %v604_v39 = vmul.f32 %v4086_v50, %v505_v6  ;;  %v513_v62 = vpop.permute.xlu1 %512 }
  0xa8   : > { %7591 = vst [vmem:[#allocation54_spill] sm:$0xff] %v4256_v24  ;;  %7592 = vst [vmem:[#allocation55_spill] sm:$0xff] %v4259_v25  ;;  %v606_v40 = vmul.f32 %v4091_v53, %v505_v6  ;;  %v607_v5 = vmul.f32 %v4093_v54, %v505_v6  ;;  %v612_v25 = vmul.f32 %v4103_v59, %v505_v6 }
  0xa9   : > { %7593 = vst [vmem:[#allocation56_spill] sm:$0xff] %v4262_v26  ;;  %7594 = vst [vmem:[#allocation57_spill] sm:$0xff] %v4265_v27  ;;  %v610_v27 = vmul.f32 %v4099_v57, %v505_v6  ;;  %v611_v26 = vmul.f32 %v4101_v58, %v505_v6  ;;  %v613_v24 = vmul.f32 %v4072_v42, %v509_v29 }
  0xaa   : > { %7595 = vst [vmem:[#allocation58_spill] sm:$0xff] %v4268_v28  ;;  %7596 = vst [vmem:[#allocation59_spill] sm:$0xff] %v4271_v2  ;;  %v600_v28 = vmul.f32 %v4078_v45, %v505_v6  ;;  %v602_v2 = vmul.f32 %v4082_v48, %v505_v6  ;;  %v614_v9 = vmul.f32 %v4074_v43, %v509_v29 }
  0xab   : > { %7597 = vst [vmem:[#allocation60_spill] sm:$0xff] %v4274_v30  ;;  %7598 = vst [vmem:[#allocation61_spill] sm:$0xff] %v4277_v31  ;;  %v605_v31 = vmul.f32 %v4089_v52, %v505_v6  ;;  %v609_v30 = vmul.f32 %v4097_v56, %v505_v6  ;;  %v615_v3 = vmul.f32 %v4076_v44, %v509_v29 }
  0xac   : > { %7599 = vst [vmem:[#allocation62_spill] sm:$0xff] %v4280_v33  ;;  %v608_v33 = vmul.f32 %v4095_v55, %v505_v6  ;;  %v616_v61 = vmul.f32 %v4078_v45, %v509_v29  ;;  %v617_v63 = vmul.f32 %v4080_v47, %v509_v29  ;;  %v618_v0 = vmul.f32 %v4082_v48, %v509_v29 }
  0xad   : > { %v619_v1 = vmul.f32 %v4084_v49, %v509_v29  ;;  %v620_v46 = vmul.f32 %v4086_v50, %v509_v29  ;;  %v621_v4 = vmul.f32 %v4089_v52, %v509_v29  ;;  %v622_v6 = vmul.f32 %v4091_v53, %v509_v29 }
  0xae   : > { %v623_v7 = vmul.f32 %v4093_v54, %v509_v29  ;;  %v624_v8 = vmul.f32 %v4095_v55, %v509_v29  ;;  %v625_v10 = vmul.f32 %v4097_v56, %v509_v29  ;;  %v626_v11 = vmul.f32 %v4099_v57, %v509_v29 }
  0xaf   : > { %v627_v12 = vmul.f32 %v4101_v58, %v509_v29  ;;  %v628_v18 = vmul.f32 %v4103_v59, %v509_v29  ;;  %v629_v13 = vmul.f32 %v4072_v42, %v513_v62  ;;  %v630_v60 = vmul.f32 %v4074_v43, %v513_v62 }
  0xb0   : > { %v631_v51 = vmul.f32 %v4076_v44, %v513_v62  ;;  %v632_v41 = vmul.f32 %v4078_v45, %v513_v62  ;;  %v633_v32 = vmul.f32 %v4080_v47, %v513_v62  ;;  %v634_v22 = vmul.f32 %v4082_v48, %v513_v62 }
  0xb1   : > { %v635_v21 = vmul.f32 %v4084_v49, %v513_v62  ;;  %v636_v20 = vmul.f32 %v4086_v50, %v513_v62  ;;  %v637_v19 = vmul.f32 %v4089_v52, %v513_v62  ;;  %v638_v29 = vmul.f32 %v4091_v53, %v513_v62 }
  0xb2   : > { %v639_v42 = vmul.f32 %v4093_v54, %v513_v62  ;;  %v640_v43 = vmul.f32 %v4095_v55, %v513_v62  ;;  %v641_v44 = vmul.f32 %v4097_v56, %v513_v62  ;;  %v642_v45 = vmul.f32 %v4099_v57, %v513_v62  ;;  %v7600_v55 = vld [vmem:[#allocation20_spill] sm:$0xff]  ;;  %v7602_v57 = vld [vmem:[#allocation21_spill] sm:$0xff] }
  0xb3   : > { %v643_v47 = vmul.f32 %v4101_v58, %v513_v62  ;;  %v644_v48 = vmul.f32 %v4103_v59, %v513_v62  ;;  %v4331_v49 = vadd.f32 %v597_v34, %v4139_v23  ;;  %v4334_v50 = vadd.f32 %v598_v35, %v4142_v14  ;;  %v7604_v59 = vld [vmem:[#allocation22_spill] sm:$0xff]  ;;  %v7606_v23 = vld [vmem:[#allocation23_spill] sm:$0xff] }
  0xb4   : > { %v4337_v52 = vadd.f32 %v599_v36, %v4145_v15  ;;  %v4340_v53 = vadd.f32 %v600_v28, %v4148_v16  ;;  %v4343_v54 = vadd.f32 %v601_v37, %v4151_v17  ;;  %v4346_v56 = vadd.f32 %v602_v2, %v7600_v55  ;;  %v7608_v15 = vld [vmem:[#allocation24_spill] sm:$0xff]  ;;  %v7610_v16 = vld [vmem:[#allocation25_spill] sm:$0xff]  ;;  %v7612_v17 = vld [vmem:[#allocation26_spill] sm:$0xff] }
  0xb5   : > { %v4349_v58 = vadd.f32 %v603_v38, %v7602_v57  ;;  %v4352_v62 = vadd.f32 %v604_v39, %v7604_v59  ;;  %v4355_v14 = vadd.f32 %v605_v31, %v7606_v23  ;;  %v4358_v34 = vadd.f32 %v606_v40, %v7608_v15  ;;  %v7614_v2 = vld [vmem:[#allocation27_spill] sm:$0xff]  ;;  %v7616_v37 = vld [vmem:[#allocation28_spill] sm:$0xff]  ;;  %v7618_v39 = vld [vmem:[#allocation29_spill] sm:$0xff] }
  0xb6   : > { %7601 = vst [vmem:[#allocation20_spill] sm:$0xff] %v4346_v56  ;;  %v4361_v28 = vadd.f32 %v607_v5, %v7610_v16  ;;  %v4364_v35 = vadd.f32 %v608_v33, %v7612_v17  ;;  %v4367_v36 = vadd.f32 %v609_v30, %v7614_v2  ;;  %v4370_v38 = vadd.f32 %v610_v27, %v7616_v37  ;;  %v7620_v31 = vld [vmem:[#allocation30_spill] sm:$0xff]  ;;  %v7622_v40 = vld [vmem:[#allocation31_spill] sm:$0xff]  ;;  %v7624_v5 = vld [vmem:[#allocation32_spill] sm:$0xff] }
  0xb7   : > { %7603 = vst [vmem:[#allocation21_spill] sm:$0xff] %v4349_v58  ;;  %7605 = vst [vmem:[#allocation22_spill] sm:$0xff] %v4352_v62  ;;  %v4373_v55 = vadd.f32 %v611_v26, %v7618_v39  ;;  %v4376_v57 = vadd.f32 %v612_v25, %v7620_v31  ;;  %v4379_v59 = vadd.f32 %v613_v24, %v7622_v40  ;;  %v7626_v33 = vld [vmem:[#allocation33_spill] sm:$0xff]  ;;  %v7628_v30 = vld [vmem:[#allocation34_spill] sm:$0xff] }
  0xb8   : > { %7607 = vst [vmem:[#allocation23_spill] sm:$0xff] %v4355_v14  ;;  %7609 = vst [vmem:[#allocation24_spill] sm:$0xff] %v4358_v34  ;;  %v4382_v23 = vadd.f32 %v614_v9, %v7624_v5  ;;  %v4385_v15 = vadd.f32 %v615_v3, %v7626_v33  ;;  %v4388_v16 = vadd.f32 %v616_v61, %v7628_v30  ;;  %v7630_v27 = vld [vmem:[#allocation35_spill] sm:$0xff]  ;;  %v7632_v26 = vld [vmem:[#allocation36_spill] sm:$0xff] }
  0xb9   : > { %7611 = vst [vmem:[#allocation25_spill] sm:$0xff] %v4361_v28  ;;  %7613 = vst [vmem:[#allocation26_spill] sm:$0xff] %v4364_v35  ;;  %v4391_v17 = vadd.f32 %v617_v63, %v7630_v27  ;;  %v4394_v2 = vadd.f32 %v618_v0, %v7632_v26  ;;  %v7634_v25 = vld [vmem:[#allocation37_spill] sm:$0xff]  ;;  %v7636_v24 = vld [vmem:[#allocation38_spill] sm:$0xff] }
  0xba   : > { %7615 = vst [vmem:[#allocation27_spill] sm:$0xff] %v4367_v36  ;;  %7617 = vst [vmem:[#allocation28_spill] sm:$0xff] %v4370_v38  ;;  %v4397_v37 = vadd.f32 %v619_v1, %v7634_v25  ;;  %v4400_v39 = vadd.f32 %v620_v46, %v7636_v24  ;;  %v7638_v9 = vld [vmem:[#allocation39_spill] sm:$0xff]  ;;  %v7640_v3 = vld [vmem:[#allocation40_spill] sm:$0xff] }
  0xbb   : > { %7619 = vst [vmem:[#allocation29_spill] sm:$0xff] %v4373_v55  ;;  %7621 = vst [vmem:[#allocation30_spill] sm:$0xff] %v4376_v57  ;;  %v4403_v31 = vadd.f32 %v621_v4, %v7638_v9  ;;  %v4406_v40 = vadd.f32 %v622_v6, %v7640_v3  ;;  %v7642_v61 = vld [vmem:[#allocation41_spill] sm:$0xff]  ;;  %v7644_v63 = vld [vmem:[#allocation42_spill] sm:$0xff] }
  0xbc   : > { %7623 = vst [vmem:[#allocation31_spill] sm:$0xff] %v4379_v59  ;;  %7625 = vst [vmem:[#allocation32_spill] sm:$0xff] %v4382_v23  ;;  %v4409_v5 = vadd.f32 %v623_v7, %v7642_v61  ;;  %v4412_v33 = vadd.f32 %v624_v8, %v7644_v63  ;;  %v7646_v0 = vld [vmem:[#allocation43_spill] sm:$0xff]  ;;  %v7648_v1 = vld [vmem:[#allocation44_spill] sm:$0xff] }
  0xbd   : > { %7627 = vst [vmem:[#allocation33_spill] sm:$0xff] %v4385_v15  ;;  %7629 = vst [vmem:[#allocation34_spill] sm:$0xff] %v4388_v16  ;;  %v4415_v30 = vadd.f32 %v625_v10, %v7646_v0  ;;  %v4418_v27 = vadd.f32 %v626_v11, %v7648_v1  ;;  %v7650_v46 = vld [vmem:[#allocation45_spill] sm:$0xff]  ;;  %v7652_v4 = vld [vmem:[#allocation46_spill] sm:$0xff]  ;;  %v699_v11 = vpop.permute.xlu0 %698 }
  0xbe   : > { %7631 = vst [vmem:[#allocation35_spill] sm:$0xff] %v4391_v17  ;;  %7633 = vst [vmem:[#allocation36_spill] sm:$0xff] %v4394_v2  ;;  %v4421_v26 = vadd.f32 %v627_v12, %v7650_v46  ;;  %v4424_v25 = vadd.f32 %v628_v18, %v7652_v4  ;;  %v7654_v6 = vld [vmem:[#allocation47_spill] sm:$0xff]  ;;  %v7656_v7 = vld [vmem:[#allocation48_spill] sm:$0xff] }
  0xbf   : > { %7635 = vst [vmem:[#allocation37_spill] sm:$0xff] %v4397_v37  ;;  %7637 = vst [vmem:[#allocation38_spill] sm:$0xff] %v4400_v39  ;;  %v4427_v24 = vadd.f32 %v629_v13, %v7654_v6  ;;  %v4430_v9 = vadd.f32 %v630_v60, %v7656_v7  ;;  %v7658_v8 = vld [vmem:[#allocation49_spill] sm:$0xff]  ;;  %v7660_v10 = vld [vmem:[#allocation50_spill] sm:$0xff] }
  0xc0   : > { %7639 = vst [vmem:[#allocation39_spill] sm:$0xff] %v4403_v31  ;;  %7641 = vst [vmem:[#allocation40_spill] sm:$0xff] %v4406_v40  ;;  %v4433_v3 = vadd.f32 %v631_v51, %v7658_v8  ;;  %v4436_v61 = vadd.f32 %v632_v41, %v7660_v10  ;;  %v7662_v63 = vld [vmem:[#allocation51_spill] sm:$0xff]  ;;  %v7664_v12 = vld [vmem:[#allocation52_spill] sm:$0xff] }
  0xc1   : > { %7643 = vst [vmem:[#allocation41_spill] sm:$0xff] %v4409_v5  ;;  %7645 = vst [vmem:[#allocation42_spill] sm:$0xff] %v4412_v33  ;;  %v4439_v0 = vadd.f32 %v633_v32, %v7662_v63  ;;  %v4442_v1 = vadd.f32 %v634_v22, %v7664_v12  ;;  %v7666_v18 = vld [vmem:[#allocation53_spill] sm:$0xff]  ;;  %v7668_v13 = vld [vmem:[#allocation54_spill] sm:$0xff]  ;;  %v703_v22 = vpop.permute.xlu1 %702 }
  0xc2   : > { %7647 = vst [vmem:[#allocation43_spill] sm:$0xff] %v4415_v30  ;;  %7649 = vst [vmem:[#allocation44_spill] sm:$0xff] %v4418_v27  ;;  %v4445_v46 = vadd.f32 %v635_v21, %v7666_v18  ;;  %v4448_v4 = vadd.f32 %v636_v20, %v7668_v13  ;;  %v7670_v60 = vld [vmem:[#allocation55_spill] sm:$0xff]  ;;  %v7672_v51 = vld [vmem:[#allocation56_spill] sm:$0xff] }
  0xc3   : > { %7651 = vst [vmem:[#allocation45_spill] sm:$0xff] %v4421_v26  ;;  %7653 = vst [vmem:[#allocation46_spill] sm:$0xff] %v4424_v25  ;;  %v4451_v6 = vadd.f32 %v637_v19, %v7670_v60  ;;  %v4454_v7 = vadd.f32 %v638_v29, %v7672_v51  ;;  %v7674_v41 = vld [vmem:[#allocation57_spill] sm:$0xff]  ;;  %v7676_v32 = vld [vmem:[#allocation58_spill] sm:$0xff] }
  0xc4   : > { %7655 = vst [vmem:[#allocation47_spill] sm:$0xff] %v4427_v24  ;;  %7657 = vst [vmem:[#allocation48_spill] sm:$0xff] %v4430_v9  ;;  %v4457_v8 = vadd.f32 %v639_v42, %v7674_v41  ;;  %v4460_v10 = vadd.f32 %v640_v43, %v7676_v32  ;;  %v7678_v63 = vld [vmem:[#allocation59_spill] sm:$0xff]  ;;  %v7680_v21 = vld [vmem:[#allocation60_spill] sm:$0xff] }
  0xc5   : > { %7659 = vst [vmem:[#allocation49_spill] sm:$0xff] %v4433_v3  ;;  %7661 = vst [vmem:[#allocation50_spill] sm:$0xff] %v4436_v61  ;;  %v4463_v12 = vadd.f32 %v641_v44, %v7678_v63  ;;  %v4466_v18 = vadd.f32 %v642_v45, %v7680_v21  ;;  %v7682_v20 = vld [vmem:[#allocation61_spill] sm:$0xff]  ;;  %v7684_v19 = vld [vmem:[#allocation62_spill] sm:$0xff]  ;;  %v707_v40 = vpop.permute.xlu1 %706 }
  0xc6   : > { %7663 = vst [vmem:[#allocation51_spill] sm:$0xff] %v4439_v0  ;;  %7665 = vst [vmem:[#allocation52_spill] sm:$0xff] %v4442_v1  ;;  %v4469_v13 = vadd.f32 %v643_v47, %v7682_v20  ;;  %v4472_v60 = vadd.f32 %v644_v48, %v7684_v19  ;;  %v7686_v29 = vld [vmem:[#allocation4_spill] sm:$0xff]  ;;  %v7687_v42 = vld [vmem:[#allocation5_spill] sm:$0xff] }
  0xc7   : > { %7667 = vst [vmem:[#allocation53_spill] sm:$0xff] %v4445_v46  ;;  %7669 = vst [vmem:[#allocation54_spill] sm:$0xff] %v4448_v4  ;;  %v791_v51 = vmul.f32 %v7686_v29, %v699_v11  ;;  %v792_v41 = vmul.f32 %v7687_v42, %v699_v11  ;;  %v7689_v32 = vld [vmem:[#allocation7_spill] sm:$0xff]  ;;  %v7691_v63 = vld [vmem:[#allocation9_spill] sm:$0xff]  ;;  %v807_v27 = vmul.f32 %v7686_v29, %v703_v22 }
  0xc8   : > { %7671 = vst [vmem:[#allocation55_spill] sm:$0xff] %v4451_v6  ;;  %7673 = vst [vmem:[#allocation56_spill] sm:$0xff] %v4454_v7  ;;  %v7690_v7 = vld [vmem:[#allocation8_spill] sm:$0xff]  ;;  %v7692_v45 = vld [vmem:[#allocation10_spill] sm:$0xff]  ;;  %v808_v30 = vmul.f32 %v7687_v42, %v703_v22  ;;  %v810_v5 = vmul.f32 %v7689_v32, %v703_v22  ;;  %v812_v39 = vmul.f32 %v7691_v63, %v703_v22 }
  0xc9   : > { %7675 = vst [vmem:[#allocation57_spill] sm:$0xff] %v4457_v8  ;;  %7677 = vst [vmem:[#allocation58_spill] sm:$0xff] %v4460_v10  ;;  %v7688_v8 = vld [vmem:[#allocation6_spill] sm:$0xff]  ;;  %v794_v10 = vmul.f32 %v7689_v32, %v699_v11  ;;  %v795_v44 = vmul.f32 %v7690_v7, %v699_v11  ;;  %v797_v21 = vmul.f32 %v7692_v45, %v699_v11  ;;  %v7694_v20 = vld [vmem:[#allocation12_spill] sm:$0xff] }
  0xca   : > { %7679 = vst [vmem:[#allocation59_spill] sm:$0xff] %v4463_v12  ;;  %7681 = vst [vmem:[#allocation60_spill] sm:$0xff] %v4466_v18  ;;  %v793_v43 = vmul.f32 %v7688_v8, %v699_v11  ;;  %v796_v12 = vmul.f32 %v7691_v63, %v699_v11  ;;  %v7693_v18 = vld [vmem:[#allocation11_spill] sm:$0xff]  ;;  %v7695_v48 = vld [vmem:[#allocation13_spill] sm:$0xff]  ;;  %v809_v33 = vmul.f32 %v7688_v8, %v703_v22 }
  0xcb   : > { %7683 = vst [vmem:[#allocation61_spill] sm:$0xff] %v4469_v13  ;;  %7685 = vst [vmem:[#allocation62_spill] sm:$0xff] %v4472_v60  ;;  %v798_v47 = vmul.f32 %v7693_v18, %v699_v11  ;;  %v799_v13 = vmul.f32 %v7694_v20, %v699_v11  ;;  %v800_v19 = vmul.f32 %v7695_v48, %v699_v11  ;;  %v7696_v60 = vld [vmem:[#allocation14_spill] sm:$0xff]  ;;  %v7697_v4 = vld [vmem:[#allocation15_spill] sm:$0xff] }
  0xcc   : > { %v801_v6 = vmul.f32 %v7696_v60, %v699_v11  ;;  %v802_v46 = vmul.f32 %v7697_v4, %v699_v11  ;;  %v7698_v1 = vld [vmem:[#allocation16_spill] sm:$0xff]  ;;  %v7699_v61 = vld [vmem:[#allocation17_spill] sm:$0xff]  ;;  %v7700_v9 = vld [vmem:[#allocation18_spill] sm:$0xff]  ;;  %v811_v31 = vmul.f32 %v7690_v7, %v703_v22  ;;  %v813_v37 = vmul.f32 %v7692_v45, %v703_v22 }
  0xcd   : > { %v803_v0 = vmul.f32 %v7698_v1, %v699_v11  ;;  %v804_v3 = vmul.f32 %v7699_v61, %v699_v11  ;;  %v805_v24 = vmul.f32 %v7700_v9, %v699_v11  ;;  %v7701_v25 = vld [vmem:[#allocation19_spill] sm:$0xff]  ;;  %v814_v2 = vmul.f32 %v7693_v18, %v703_v22 }
  0xce   : > { %v806_v26 = vmul.f32 %v7701_v25, %v699_v11  ;;  %v815_v17 = vmul.f32 %v7694_v20, %v703_v22  ;;  %v816_v11 = vmul.f32 %v7695_v48, %v703_v22  ;;  %v817_v16 = vmul.f32 %v7696_v60, %v703_v22 }
  0xcf   : > { %v818_v15 = vmul.f32 %v7697_v4, %v703_v22  ;;  %v819_v23 = vmul.f32 %v7698_v1, %v703_v22  ;;  %v820_v59 = vmul.f32 %v7699_v61, %v703_v22  ;;  %v821_v57 = vmul.f32 %v7700_v9, %v703_v22 }
  0xd0   : > { %v822_v55 = vmul.f32 %v7701_v25, %v703_v22  ;;  %v823_v38 = vmul.f32 %v7686_v29, %v707_v40  ;;  %v824_v36 = vmul.f32 %v7687_v42, %v707_v40  ;;  %v825_v35 = vmul.f32 %v7688_v8, %v707_v40 }
  0xd1   : > { %v826_v28 = vmul.f32 %v7689_v32, %v707_v40  ;;  %v827_v34 = vmul.f32 %v7690_v7, %v707_v40  ;;  %v828_v14 = vmul.f32 %v7691_v63, %v707_v40  ;;  %v829_v62 = vmul.f32 %v7692_v45, %v707_v40 }
  0xd2   : > { %v830_v58 = vmul.f32 %v7693_v18, %v707_v40  ;;  %v831_v56 = vmul.f32 %v7694_v20, %v707_v40  ;;  %v832_v22 = vmul.f32 %v7695_v48, %v707_v40  ;;  %v833_v29 = vmul.f32 %v7696_v60, %v707_v40 }
  0xd3   : > { %v834_v42 = vmul.f32 %v7697_v4, %v707_v40  ;;  %v835_v8 = vmul.f32 %v7698_v1, %v707_v40  ;;  %v836_v32 = vmul.f32 %v7699_v61, %v707_v40  ;;  %v837_v7 = vmul.f32 %v7700_v9, %v707_v40  ;;  %v7702_v4 = vld [vmem:[#allocation20_spill] sm:$0xff]  ;;  %v7703_v61 = vld [vmem:[#allocation21_spill] sm:$0xff] }
  0xd4   : > { %v838_v63 = vmul.f32 %v7701_v25, %v707_v40  ;;  %v839_v45 = vadd.f32 %v791_v51, %v4331_v49  ;;  %v840_v18 = vadd.f32 %v792_v41, %v4334_v50  ;;  %v841_v20 = vadd.f32 %v793_v43, %v4337_v52  ;;  %v7704_v25 = vld [vmem:[#allocation22_spill] sm:$0xff]  ;;  %v7705_v49 = vld [vmem:[#allocation23_spill] sm:$0xff]  ;;  %v7706_v41 = vld [vmem:[#allocation24_spill] sm:$0xff] }
  0xd5   : > { %v842_v48 = vadd.f32 %v794_v10, %v4340_v53  ;;  %v843_v60 = vadd.f32 %v795_v44, %v4343_v54  ;;  %v844_v1 = vadd.f32 %v796_v12, %v7702_v4  ;;  %v845_v9 = vadd.f32 %v797_v21, %v7703_v61  ;;  %v7707_v43 = vld [vmem:[#allocation25_spill] sm:$0xff]  ;;  %v7708_v10 = vld [vmem:[#allocation26_spill] sm:$0xff]  ;;  %v7709_v44 = vld [vmem:[#allocation27_spill] sm:$0xff] }
  0xd6   : > { %v846_v40 = vadd.f32 %v798_v47, %v7704_v25  ;;  %v847_v51 = vadd.f32 %v799_v13, %v7705_v49  ;;  %v848_v50 = vadd.f32 %v800_v19, %v7706_v41  ;;  %v849_v52 = vadd.f32 %v801_v6, %v7707_v43  ;;  %v7710_v4 = vld [vmem:[#allocation28_spill] sm:$0xff]  ;;  %v7711_v21 = vld [vmem:[#allocation29_spill] sm:$0xff]  ;;  %v7712_v25 = vld [vmem:[#allocation30_spill] sm:$0xff] }
  0xd7   : > { %v850_v53 = vadd.f32 %v802_v46, %v7708_v10  ;;  %v851_v54 = vadd.f32 %v803_v0, %v7709_v44  ;;  %v852_v12 = vadd.f32 %v804_v3, %v7710_v4  ;;  %v853_v61 = vadd.f32 %v805_v24, %v7711_v21  ;;  %v7713_v13 = vld [vmem:[#allocation31_spill] sm:$0xff]  ;;  %v7714_v19 = vld [vmem:[#allocation32_spill] sm:$0xff]  ;;  %v7715_v6 = vld [vmem:[#allocation33_spill] sm:$0xff]  ;;  %v4542_v0 = vpop.permute.xlu1 %897 }
  0xd8   : > { %v854_v47 = vadd.f32 %v806_v26, %v7712_v25  ;;  %v855_v49 = vadd.f32 %v807_v27, %v7713_v13  ;;  %v856_v41 = vadd.f32 %v808_v30, %v7714_v19  ;;  %v857_v43 = vadd.f32 %v809_v33, %v7715_v6  ;;  %v7716_v10 = vld [vmem:[#allocation34_spill] sm:$0xff]  ;;  %7717 = vst [vmem:[#allocation4_spill] sm:$0xff] %v4542_v0  ;;  %v7718_v44 = vld [vmem:[#allocation35_spill] sm:$0xff]  ;;  %v7719_v4 = vld [vmem:[#allocation36_spill] sm:$0xff] }
  0xd9   : > { %v858_v46 = vadd.f32 %v810_v5, %v7716_v10  ;;  %v859_v3 = vadd.f32 %v811_v31, %v7718_v44  ;;  %v860_v21 = vadd.f32 %v812_v39, %v7719_v4  ;;  %v7720_v24 = vld [vmem:[#allocation37_spill] sm:$0xff]  ;;  %v7721_v26 = vld [vmem:[#allocation38_spill] sm:$0xff]  ;;  %v7722_v27 = vld [vmem:[#allocation39_spill] sm:$0xff] }
  0xda   : > { %v861_v25 = vadd.f32 %v813_v37, %v7720_v24  ;;  %v862_v13 = vadd.f32 %v814_v2, %v7721_v26  ;;  %v863_v19 = vadd.f32 %v815_v17, %v7722_v27  ;;  %v7723_v30 = vld [vmem:[#allocation40_spill] sm:$0xff]  ;;  %v7724_v33 = vld [vmem:[#allocation41_spill] sm:$0xff]  ;;  %v7725_v10 = vld [vmem:[#allocation42_spill] sm:$0xff] }
  0xdb   : > { %v864_v6 = vadd.f32 %v816_v11, %v7723_v30  ;;  %v865_v5 = vadd.f32 %v817_v16, %v7724_v33  ;;  %v866_v0 = vadd.f32 %v818_v15, %v7725_v10  ;;  %v7726_v31 = vld [vmem:[#allocation43_spill] sm:$0xff]  ;;  %v7728_v4 = vld [vmem:[#allocation44_spill] sm:$0xff]  ;;  %v7730_v24 = vld [vmem:[#allocation45_spill] sm:$0xff] }
  0xdc   : > { %v4553_v44 = vadd.f32 %v819_v23, %v7726_v31  ;;  %v4556_v39 = vadd.f32 %v820_v59, %v7728_v4  ;;  %v4559_v37 = vadd.f32 %v821_v57, %v7730_v24  ;;  %v7732_v2 = vld [vmem:[#allocation46_spill] sm:$0xff]  ;;  %v7733_v17 = vld [vmem:[#allocation47_spill] sm:$0xff]  ;;  %v7734_v11 = vld [vmem:[#allocation48_spill] sm:$0xff]  ;;  %v893_v23 = vpop.permute.xlu0 %892 }
  0xdd   : > { %v4562_v26 = vadd.f32 %v822_v55, %v7732_v2  ;;  %v871_v27 = vadd.f32 %v823_v38, %v7733_v17  ;;  %v872_v30 = vadd.f32 %v824_v36, %v7734_v11  ;;  %v7735_v16 = vld [vmem:[#allocation49_spill] sm:$0xff]  ;;  %v7736_v15 = vld [vmem:[#allocation50_spill] sm:$0xff]  ;;  %v7737_v31 = vld [vmem:[#allocation51_spill] sm:$0xff] }
  0xde   : > { %7727 = vst [vmem:[#allocation5_spill] sm:$0xff] %v4553_v44  ;;  %7729 = vst [vmem:[#allocation6_spill] sm:$0xff] %v4556_v39  ;;  %v873_v33 = vadd.f32 %v825_v35, %v7735_v16  ;;  %v874_v10 = vadd.f32 %v826_v28, %v7736_v15  ;;  %v875_v44 = vadd.f32 %v827_v34, %v7737_v31  ;;  %v7738_v59 = vld [vmem:[#allocation52_spill] sm:$0xff]  ;;  %v7739_v39 = vld [vmem:[#allocation53_spill] sm:$0xff]  ;;  %v4586_v34 = vpop.permute.xlu1 %902 }
  0xdf   : > { %7731 = vst [vmem:[#allocation7_spill] sm:$0xff] %v4559_v37  ;;  %v876_v4 = vadd.f32 %v828_v14, %v7738_v59  ;;  %v877_v57 = vadd.f32 %v829_v62, %v7739_v39  ;;  %v7740_v24 = vld [vmem:[#allocation54_spill] sm:$0xff]  ;;  %v7741_v55 = vld [vmem:[#allocation55_spill] sm:$0xff]  ;;  %v7742_v38 = vld [vmem:[#allocation56_spill] sm:$0xff]  ;;  %v4600_v31 = vadd.f32 %v893_v23, %v839_v45  ;;  %v4606_v59 = vadd.f32 %v893_v23, %v842_v48 }
  0xe0   : > { %v4572_v37 = vadd.f32 %v830_v58, %v7740_v24  ;;  %v4575_v2 = vadd.f32 %v831_v56, %v7741_v55  ;;  %v4578_v17 = vadd.f32 %v832_v22, %v7742_v38  ;;  %v7743_v36 = vld [vmem:[#allocation57_spill] sm:$0xff]  ;;  %v7744_v28 = vld [vmem:[#allocation58_spill] sm:$0xff]  ;;  %v7745_v14 = vld [vmem:[#allocation59_spill] sm:$0xff]  ;;  %v4608_v24 = vadd.f32 %v893_v23, %v843_v60 }
  0xe1   : > { %v4581_v35 = vadd.f32 %v833_v29, %v7743_v36  ;;  %v4584_v11 = vadd.f32 %v834_v42, %v7744_v28  ;;  %v4589_v16 = vadd.f32 %v835_v8, %v7745_v14  ;;  %v7746_v62 = vld [vmem:[#allocation60_spill] sm:$0xff]  ;;  %v7747_v39 = vld [vmem:[#allocation61_spill] sm:$0xff]  ;;  %v7748_v15 = vld [vmem:[#allocation62_spill] sm:$0xff]  ;;  %v4602_v29 = vadd.f32 %v893_v23, %v840_v18 }
  0xe2   : > { %v4592_v58 = vadd.f32 %v836_v32, %v7746_v62  ;;  %v4595_v56 = vadd.f32 %v837_v7, %v7747_v39  ;;  %v4598_v22 = vadd.f32 %v838_v63, %v7748_v15  ;;  %v4604_v42 = vadd.f32 %v893_v23, %v841_v20  ;;  %v7750_v60 = vld [vmem:[#allocation4_spill] sm:$0xff] }
  0xe3   : > { %v4610_v8 = vadd.f32 %v893_v23, %v844_v1  ;;  %v4612_v32 = vadd.f32 %v893_v23, %v845_v9  ;;  %v4614_v55 = vadd.f32 %v893_v23, %v846_v40  ;;  %v4616_v7 = vadd.f32 %v893_v23, %v847_v51 }
  0xe4   : > { %v4618_v63 = vadd.f32 %v893_v23, %v848_v50  ;;  %v4620_v45 = vadd.f32 %v893_v23, %v849_v52  ;;  %v4623_v18 = vadd.f32 %v4586_v34, %v871_v27  ;;  %v4625_v20 = vadd.f32 %v893_v23, %v850_v53 }
  0xe5   : > { %v4627_v48 = vadd.f32 %v893_v23, %v851_v54  ;;  %v4630_v1 = vadd.f32 %v7750_v60, %v855_v49  ;;  %v4633_v9 = vadd.f32 %v4586_v34, %v872_v30  ;;  %v4635_v40 = vadd.f32 %v893_v23, %v852_v12  ;;  %v7766_v28 = vld [vmem:[#allocation5_spill] sm:$0xff]  ;;  %v7768_v14 = vld [vmem:[#allocation6_spill] sm:$0xff] }
  0xe6   : > { %7749 = vst [vmem:[#allocation8_spill] sm:$0xff] %v4623_v18  ;;  %v4637_v51 = vadd.f32 %v893_v23, %v853_v61  ;;  %v4639_v50 = vadd.f32 %v893_v23, %v854_v47  ;;  %v4642_v52 = vadd.f32 %v7750_v60, %v856_v41  ;;  %v4645_v53 = vadd.f32 %v7750_v60, %v857_v43  ;;  %v7770_v39 = vld [vmem:[#allocation7_spill] sm:$0xff] }
  0xe7   : > { %7751 = vst [vmem:[#allocation9_spill] sm:$0xff] %v4633_v9  ;;  %v4648_v54 = vadd.f32 %v7750_v60, %v858_v46  ;;  %v4651_v49 = vadd.f32 %v4586_v34, %v873_v33  ;;  %v4654_v27 = vadd.f32 %v4586_v34, %v874_v10  ;;  %v4657_v12 = vadd.f32 %v7750_v60, %v859_v3 }
  0xe8   : > { %7752 = vst [vmem:[#allocation10_spill] sm:$0xff] %v4645_v53  ;;  %v4660_v61 = vadd.f32 %v7750_v60, %v860_v21  ;;  %v4663_v47 = vadd.f32 %v7750_v60, %v861_v25  ;;  %v955_v41 = vsel %vm7356_vm0, %v4623_v18, -inf  ;;  %v4668_v43 = vadd.f32 %v7750_v60, %v862_v13 }
  0xe9   : > { %7753 = vst [vmem:[#allocation11_spill] sm:$0xff] %v4648_v54  ;;  %7754 = vst [vmem:[#allocation12_spill] sm:$0xff] %v4651_v49  ;;  %v4671_v46 = vadd.f32 %v4586_v34, %v875_v44  ;;  %v953_v30 = vmax.f32 %v4600_v31, %v4630_v1  ;;  %v964_v3 = vsel %vm7356_vm0, %v4633_v9, -inf  ;;  %v4678_v21 = vadd.f32 %v7750_v60, %v863_v19 }
  0xea   : > { %7755 = vst [vmem:[#allocation13_spill] sm:$0xff] %v4654_v27  ;;  %7756 = vst [vmem:[#allocation14_spill] sm:$0xff] %v4657_v12  ;;  %v4681_v25 = vadd.f32 %v7750_v60, %v864_v6  ;;  %v4684_v33 = vadd.f32 %v7750_v60, %v865_v5  ;;  %v963_v13 = vmax.f32 %v4602_v29, %v4642_v52  ;;  %v973_v23 = vsel %vm7356_vm0, %v4651_v49, -inf }
  0xeb   : > { %7757 = vst [vmem:[#allocation15_spill] sm:$0xff] %v4660_v61  ;;  %7758 = vst [vmem:[#allocation16_spill] sm:$0xff] %v4663_v47  ;;  %v4689_v44 = vadd.f32 %v7750_v60, %v866_v0  ;;  %v956_v10 = vmax.f32 %v953_v30, %v955_v41  ;;  %v982_v19 = vsel %vm7356_vm0, %v4654_v27, -inf  ;;  %v4696_v38 = vadd.f32 %v4586_v34, %v876_v4 }
  0xec   : > { %7759 = vst [vmem:[#allocation17_spill] sm:$0xff] %v4668_v43  ;;  %7760 = vst [vmem:[#allocation18_spill] sm:$0xff] %v4671_v46  ;;  %v965_v6 = vmax.f32 %v963_v13, %v964_v3  ;;  %v972_v5 = vmax.f32 %v4604_v42, %v4645_v53  ;;  %v981_v36 = vmax.f32 %v4606_v59, %v4648_v54  ;;  %v991_v4 = vsel %vm7356_vm0, %v4671_v46, -inf }
  0xed   : > { %7761 = vst [vmem:[#allocation19_spill] sm:$0xff] %v4678_v21  ;;  %7762 = vst [vmem:[#allocation20_spill] sm:$0xff] %v4681_v25  ;;  %v4704_v0 = vadd.f32 %v7750_v60, %v7766_v28  ;;  %v4708_v62 = vadd.f32 %v7750_v60, %v7768_v14  ;;  %v4712_v15 = vadd.f32 %v7750_v60, %v7770_v39  ;;  %v957_v46 = vrot.slane %v956_v10, 4 }
  0xee   : > { %7763 = vst [vmem:[#allocation21_spill] sm:$0xff] %v4684_v33  ;;  %7764 = vst [vmem:[#allocation22_spill] sm:$0xff] %v4689_v44  ;;  %v4717_v41 = vadd.f32 %v4586_v34, %v877_v57  ;;  %v974_v30 = vmax.f32 %v972_v5, %v973_v23  ;;  %v983_v3 = vmax.f32 %v981_v36, %v982_v19  ;;  %v966_v23 = vrot.slane %v965_v6, 4 }
  0xef   : > { %7765 = vst [vmem:[#allocation23_spill] sm:$0xff] %v4696_v38  ;;  %7767 = vst [vmem:[#allocation24_spill] sm:$0xff] %v4704_v0  ;;  %v990_v13 = vmax.f32 %v4608_v24, %v4657_v12  ;;  %v4723_v28 = vadd.f32 %v7750_v60, %v4562_v26  ;;  %v4727_v14 = vadd.f32 %v4586_v34, %v4572_v37  ;;  %v1000_v5 = vsel %vm7356_vm0, %v4696_v38, -inf }
  0xf0   : > { %7769 = vst [vmem:[#allocation25_spill] sm:$0xff] %v4708_v62  ;;  %7771 = vst [vmem:[#allocation26_spill] sm:$0xff] %v4712_v15  ;;  %v4731_v39 = vadd.f32 %v4586_v34, %v4575_v2  ;;  %v4735_v57 = vadd.f32 %v4586_v34, %v4578_v17  ;;  %v4741_v26 = vadd.f32 %v4586_v34, %v4581_v35  ;;  %v975_v36 = vrot.slane %v974_v30, 4 }
  0xf1   : > { %7772 = vst [vmem:[#allocation27_spill] sm:$0xff] %v4717_v41  ;;  %7773 = vst [vmem:[#allocation28_spill] sm:$0xff] %v4723_v28  ;;  %v992_v19 = vmax.f32 %v990_v13, %v991_v4  ;;  %v4745_v37 = vadd.f32 %v4586_v34, %v4584_v11  ;;  %v4749_v2 = vadd.f32 %v4586_v34, %v4589_v16  ;;  %v984_v4 = vrot.slane %v983_v3, 4 }
  0xf2   : > { %7774 = vst [vmem:[#allocation29_spill] sm:$0xff] %v4727_v14  ;;  %7775 = vst [vmem:[#allocation30_spill] sm:$0xff] %v4731_v39  ;;  %v999_v17 = vmax.f32 %v4610_v8, %v4660_v61  ;;  %v4755_v60 = vadd.f32 %v4586_v34, %v4592_v58  ;;  %v1009_v35 = vsel %vm7356_vm0, %v4717_v41, -inf  ;;  %v4761_v11 = vadd.f32 %v4586_v34, %v4595_v56 }
  0xf3   : > { %7776 = vst [vmem:[#allocation31_spill] sm:$0xff] %v4735_v57  ;;  %7777 = vst [vmem:[#allocation32_spill] sm:$0xff] %v4741_v26  ;;  %v958_v13 = vmax.f32 %v956_v10, %v957_v46  ;;  %v1008_v16 = vmax.f32 %v4612_v32, %v4663_v47  ;;  %v4767_v27 = vadd.f32 %v4586_v34, %v4598_v22  ;;  %v993_v49 = vrot.slane %v992_v19, 4 }
  0xf4   : > { %7778 = vst [vmem:[#allocation33_spill] sm:$0xff] %v4745_v37  ;;  %7779 = vst [vmem:[#allocation34_spill] sm:$0xff] %v4749_v2  ;;  %v1001_v38 = vmax.f32 %v999_v17, %v1000_v5  ;;  %v967_v58 = vmax.f32 %v965_v6, %v966_v23  ;;  %v1018_v9 = vsel %vm7356_vm0, %v4727_v14, -inf  ;;  %v1017_v41 = vmax.f32 %v4614_v55, %v4668_v43 }
  0xf5   : > { %7780 = vst [vmem:[#allocation35_spill] sm:$0xff] %v4755_v60  ;;  %7781 = vst [vmem:[#allocation36_spill] sm:$0xff] %v4761_v11  ;;  %v1010_v18 = vmax.f32 %v1008_v16, %v1009_v35  ;;  %v1027_v56 = vsel %vm7356_vm0, %v4731_v39, -inf  ;;  %v1036_v46 = vsel %vm7356_vm0, %v4735_v57, -inf  ;;  %v976_v10 = vmax.f32 %v974_v30, %v975_v36 }
  0xf6   : > { %7782 = vst [vmem:[#allocation37_spill] sm:$0xff] %v4767_v27  ;;  %v985_v5 = vmax.f32 %v983_v3, %v984_v4  ;;  %v1026_v34 = vmax.f32 %v4616_v7, %v4678_v21  ;;  %v1035_v22 = vmax.f32 %v4618_v63, %v4681_v25  ;;  %v959_v6 = vrot.slane %v958_v13, 2 }
  0xf7   : > { %v1002_v23 = vrot.slane %v1001_v38, 4  ;;  %v1019_v17 = vmax.f32 %v1017_v41, %v1018_v9  ;;  %v1045_v35 = vsel %vm7356_vm0, %v4741_v26, -inf  ;;  %v1044_v39 = vmax.f32 %v4620_v45, %v4684_v33 }
  0xf8   : > { %v1028_v16 = vmax.f32 %v1026_v34, %v1027_v56  ;;  %v1037_v14 = vmax.f32 %v1035_v22, %v1036_v46  ;;  %v1054_v30 = vsel %vm7356_vm0, %v4745_v37, -inf  ;;  %v968_v3 = vrot.slane %v967_v58, 2 }
  0xf9   : > { %v1011_v36 = vrot.slane %v1010_v18, 4  ;;  %v1053_v4 = vmax.f32 %v4625_v20, %v4689_v44  ;;  %v1063_v57 = vsel %vm7356_vm0, %v4749_v2, -inf  ;;  %v994_v9 = vmax.f32 %v992_v19, %v993_v49 }
  0xfa   : > { %v1046_v41 = vmax.f32 %v1044_v39, %v1045_v35  ;;  %v1062_v56 = vmax.f32 %v4627_v48, %v4704_v0  ;;  %v1072_v46 = vsel %vm7356_vm0, %v4755_v60, -inf  ;;  %v1020_v34 = vrot.slane %v1019_v17, 4 }
  0xfb   : > { %v1055_v22 = vmax.f32 %v1053_v4, %v1054_v30  ;;  %v1071_v37 = vmax.f32 %v4635_v40, %v4708_v62  ;;  %v1081_v26 = vsel %vm7356_vm0, %v4761_v11, -inf  ;;  %v1029_v44 = vrot.slane %v1028_v16, 4 }
  0xfc   : > { %v1038_v33 = vrot.slane %v1037_v14, 4  ;;  %v1064_v25 = vmax.f32 %v1062_v56, %v1063_v57  ;;  %v1080_v49 = vmax.f32 %v4637_v51, %v4712_v15  ;;  %v977_v39 = vrot.slane %v976_v10, 2 }
  0xfd   : > { %v1003_v19 = vmax.f32 %v1001_v38, %v1002_v23  ;;  %v1012_v35 = vmax.f32 %v1010_v18, %v1011_v36  ;;  %v1073_v2 = vmax.f32 %v1071_v37, %v1072_v46  ;;  %v1047_v0 = vrot.slane %v1046_v41, 4 }
  0xfe   : > { %v1082_v60 = vmax.f32 %v1080_v49, %v1081_v26  ;;  %v1089_v30 = vmax.f32 %v4639_v50, %v4723_v28  ;;  %v1090_v4 = vsel %vm7356_vm0, %v4767_v27, -inf  ;;  %v986_v62 = vrot.slane %v985_v5, 2 }
  0xff   : > { %v995_v11 = vrot.slane %v994_v9, 2  ;;  %v1021_v21 = vmax.f32 %v1019_v17, %v1020_v34  ;;  %v1056_v43 = vrot.slane %v1055_v22, 4  ;;  %v1030_v57 = vmax.f32 %v1028_v16, %v1029_v44 }
 0x100   : > { %v1039_v56 = vmax.f32 %v1037_v14, %v1038_v33  ;;  %v1065_v47 = vrot.slane %v1064_v25, 4  ;;  %v1091_v15 = vmax.f32 %v1089_v30, %v1090_v4  ;;  %v960_v61 = vmax.f32 %v958_v13, %v959_v6 }
 0x101   : > { %v969_v38 = vmax.f32 %v967_v58, %v968_v3  ;;  %v1004_v18 = vrot.slane %v1003_v19, 2  ;;  %v1074_v37 = vrot.slane %v1073_v2, 4  ;;  %v978_v23 = vmax.f32 %v976_v10, %v977_v39 }
 0x102   : > { %v1013_v26 = vrot.slane %v1012_v35, 2  ;;  %v1048_v36 = vmax.f32 %v1046_v41, %v1047_v0  ;;  %v1083_v46 = vrot.slane %v1082_v60, 4  ;;  %v987_v49 = vmax.f32 %v985_v5, %v986_v62 }
 0x103   : > { %v1022_v28 = vrot.slane %v1021_v21, 2  ;;  %v1057_v12 = vmax.f32 %v1055_v22, %v1056_v43  ;;  %v1092_v27 = vrot.slane %v1091_v15, 4  ;;  %v996_v54 = vmax.f32 %v994_v9, %v995_v11 }
 0x104   : > { %v1031_v53 = vrot.slane %v1030_v57, 2  ;;  %v1040_v17 = vrot.slane %v1039_v56, 2  ;;  %v1066_v34 = vmax.f32 %v1064_v25, %v1065_v47  ;;  %v961_v44 = vrot.slane %v960_v61, 1 }
 0x105   : > { %v970_v33 = vrot.slane %v969_v38, 1  ;;  %v1005_v14 = vmax.f32 %v1003_v19, %v1004_v18  ;;  %v1075_v16 = vmax.f32 %v1073_v2, %v1074_v37  ;;  %v979_v13 = vrot.slane %v978_v23, 1 }
 0x106   : > { %v1014_v58 = vmax.f32 %v1012_v35, %v1013_v26  ;;  %v1049_v6 = vrot.slane %v1048_v36, 2  ;;  %v1084_v3 = vmax.f32 %v1082_v60, %v1083_v46  ;;  %v988_v10 = vrot.slane %v987_v49, 1 }
 0x107   : > { %v1023_v39 = vmax.f32 %v1021_v21, %v1022_v28  ;;  %v1058_v0 = vrot.slane %v1057_v12, 2  ;;  %v1093_v41 = vmax.f32 %v1091_v15, %v1092_v27  ;;  %v997_v62 = vrot.slane %v996_v54, 1 }
 0x108   : > { %v1032_v5 = vmax.f32 %v1030_v57, %v1031_v53  ;;  %v1041_v43 = vmax.f32 %v1039_v56, %v1040_v17  ;;  %v1067_v22 = vrot.slane %v1066_v34, 2  ;;  %v4805_v11 = vmax.f32 %v960_v61, %v961_v44 }
 0x109   : > { %v4807_v9 = vmax.f32 %v969_v38, %v970_v33  ;;  %v1006_v47 = vrot.slane %v1005_v14, 1  ;;  %v1076_v25 = vrot.slane %v1075_v16, 2  ;;  %v4809_v19 = vmax.f32 %v978_v23, %v979_v13 }
 0x10a   : > { %v1015_v2 = vrot.slane %v1014_v58, 1  ;;  %v1050_v35 = vmax.f32 %v1048_v36, %v1049_v6  ;;  %v1085_v30 = vrot.slane %v1084_v3, 2  ;;  %v4811_v60 = vmax.f32 %v987_v49, %v988_v10 }
 0x10b   : > { %v1024_v21 = vrot.slane %v1023_v39, 1  ;;  %v1059_v28 = vmax.f32 %v1057_v12, %v1058_v0  ;;  %v1094_v27 = vrot.slane %v1093_v41, 2  ;;  %v4813_v15 = vmax.f32 %v996_v54, %v997_v62 }
 0x10c   : > { %v1033_v53 = vrot.slane %v1032_v5, 1  ;;  %v1042_v4 = vrot.slane %v1041_v43, 1  ;;  %v1068_v61 = vmax.f32 %v1066_v34, %v1067_v22  ;;  %v4815_v57 = vmax.f32 %v1005_v14, %v1006_v47 }
 0x10d   : > { %v1077_v56 = vmax.f32 %v1075_v16, %v1076_v25  ;;  %v1098_v38 = vsub.f32 %v4600_v31, %v4805_v11  ;;  %v1099_v18 = vsub.f32 %v4602_v29, %v4807_v9  ;;  %v4821_v37 = vmax.f32 %v1014_v58, %v1015_v2 }
 0x10e   : > { %v1051_v23 = vrot.slane %v1050_v35, 1  ;;  %v1086_v26 = vmax.f32 %v1084_v3, %v1085_v30  ;;  %v1100_v54 = vsub.f32 %v4604_v42, %v4809_v19  ;;  %v4825_v12 = vmax.f32 %v1023_v39, %v1024_v21 }
 0x10f   : > { %v1060_v36 = vrot.slane %v1059_v28, 1  ;;  %v1095_v46 = vmax.f32 %v1093_v41, %v1094_v27  ;;  %v1101_v49 = vsub.f32 %v4606_v59, %v4811_v60  ;;  %v4829_v17 = vmax.f32 %v1032_v5, %v1033_v53 }
 0x110   : > { %v4831_v31 = vmax.f32 %v1041_v43, %v1042_v4  ;;  %v1069_v34 = vrot.slane %v1068_v61, 1  ;;  %v1102_v29 = vsub.f32 %v4608_v24, %v4813_v15  ;;  %v1078_v44 = vrot.slane %v1077_v56, 1 }
 0x111   : > { %v1103_v33 = vsub.f32 %v4610_v8, %v4815_v57  ;;  %v1146_v42 = vmul.f32 1.442695, %v1098_v38  ;;  %v1148_v14 = vmul.f32 1.442695, %v1099_v18  ;;  %v4837_v16 = vmax.f32 %v1050_v35, %v1051_v23 }
 0x112   : > { %v1087_v13 = vrot.slane %v1086_v26, 1  ;;  %v1104_v59 = vsub.f32 %v4612_v32, %v4821_v37  ;;  %v1150_v58 = vmul.f32 1.442695, %v1100_v54  ;;  %v4841_v6 = vmax.f32 %v1059_v28, %v1060_v36  ;;  %v7786_v36 = vld [vmem:[#allocation15_spill] sm:$0xff] }
 0x113   : > { %v1096_v3 = vrot.slane %v1095_v46, 1  ;;  %v1105_v10 = vsub.f32 %v4614_v55, %v4825_v12  ;;  %v1152_v24 = vmul.f32 1.442695, %v1101_v49  ;;  %v4845_v39 = vmax.f32 %v1068_v61, %v1069_v34 }
 0x114   : > { %v1106_v8 = vsub.f32 %v4616_v7, %v4829_v17  ;;  %3663 = vpow2.f32 %v1146_v42  ;;  %v1154_v0 = vmul.f32 1.442695, %v1102_v29  ;;  %v4849_v41 = vmax.f32 %v1077_v56, %v1078_v44  ;;  %v7784_v56 = vld [vmem:[#allocation11_spill] sm:$0xff]  ;;  %v7787_v29 = vld [vmem:[#allocation16_spill] sm:$0xff] }
 0x115   : > { %v1107_v32 = vsub.f32 %v4618_v63, %v4831_v31  ;;  %3665 = vpow2.f32 %v1148_v14  ;;  %v1156_v62 = vmul.f32 1.442695, %v1103_v33  ;;  %v4853_v5 = vmax.f32 %v1086_v26, %v1087_v13  ;;  %v7788_v14 = vld [vmem:[#allocation17_spill] sm:$0xff] }
 0x116   : > { %v1108_v55 = vsub.f32 %v4620_v45, %v4837_v16  ;;  %3667 = vpow2.f32 %v1150_v58  ;;  %v1158_v43 = vmul.f32 1.442695, %v1104_v59  ;;  %v4857_v22 = vmax.f32 %v1095_v46, %v1096_v3  ;;  %v7789_v3 = vld [vmem:[#allocation19_spill] sm:$0xff] }
 0x117   : > { %v1109_v7 = vsub.f32 %v4625_v20, %v4841_v6  ;;  %3669 = vpow2.f32 %v1152_v24  ;;  %v1160_v47 = vmul.f32 1.442695, %v1105_v10  ;;  %v1110_v25 = vsub.f32 %v4627_v48, %v4845_v39 }
 0x118   : > { %3671 = vpow2.f32 %v1154_v0  ;;  %v1162_v63 = vmul.f32 1.442695, %v1106_v8  ;;  %v1111_v2 = vsub.f32 %v4635_v40, %v4849_v41  ;;  %v1164_v35 = vmul.f32 1.442695, %v1107_v32  ;;  %v7791_v0 = vld [vmem:[#allocation20_spill] sm:$0xff] }
 0x119   : > { %3673 = vpow2.f32 %v1156_v62  ;;  %v1112_v45 = vsub.f32 %v4637_v51, %v4853_v5  ;;  %v1166_v30 = vmul.f32 1.442695, %v1108_v55  ;;  %v1113_v20 = vsub.f32 %v4639_v50, %v4857_v22  ;;  %v7783_v51 = vld [vmem:[#allocation10_spill] sm:$0xff] }
 0x11a   : > { %3675 = vpow2.f32 %v1158_v43  ;;  %v1168_v21 = vmul.f32 1.442695, %v1109_v7  ;;  %v1114_v48 = vsub.f32 %v4630_v1, %v4805_v11  ;;  %v1170_v28 = vmul.f32 1.442695, %v1110_v25  ;;  %v7792_v43 = vld [vmem:[#allocation21_spill] sm:$0xff] }
 0x11b   : > { %3677 = vpow2.f32 %v1160_v47  ;;  %v1115_v40 = vsub.f32 %v4642_v52, %v4807_v9  ;;  %v1172_v27 = vmul.f32 1.442695, %v1111_v2  ;;  %v1116_v4 = vsub.f32 %v7783_v51, %v4809_v19  ;;  %v7785_v52 = vld [vmem:[#allocation14_spill] sm:$0xff] }
 0x11c   : > { %3679 = vpow2.f32 %v1162_v63  ;;  %v1174_v61 = vmul.f32 1.442695, %v1112_v45  ;;  %v1117_v38 = vsub.f32 %v7784_v56, %v4811_v60  ;;  %v1176_v1 = vmul.f32 1.442695, %v1113_v20  ;;  %v7794_v63 = vld [vmem:[#allocation22_spill] sm:$0xff] }
 0x11d   : > { %3681 = vpow2.f32 %v1164_v35  ;;  %v1118_v23 = vsub.f32 %v7785_v52, %v4813_v15  ;;  %v1178_v26 = vmul.f32 1.442695, %v1114_v48  ;;  %v1119_v46 = vsub.f32 %v7786_v36, %v4815_v57  ;;  %v7804_v36 = vld [vmem:[#allocation9_spill] sm:$0xff] }
 0x11e   : > { %v4873_v53 = vpop.eup %3663  ;;  %3683 = vpow2.f32 %v1166_v30  ;;  %v1180_v49 = vmul.f32 1.442695, %v1115_v40  ;;  %v1120_v44 = vsub.f32 %v7787_v29, %v4821_v37  ;;  %v1182_v33 = vmul.f32 1.442695, %v1116_v4  ;;  %v7796_v30 = vld [vmem:[#allocation24_spill] sm:$0xff]  ;;  %v7800_v4 = vld [vmem:[#allocation26_spill] sm:$0xff] }
 0x11f   : > { %v4877_v50 = vpop.eup %3665  ;;  %3685 = vpow2.f32 %v1168_v21  ;;  %v1121_v13 = vsub.f32 %v7788_v14, %v4825_v12  ;;  %v1184_v59 = vmul.f32 1.442695, %v1117_v38  ;;  %v1122_v10 = vsub.f32 %v7789_v3, %v4829_v17 }
 0x120   : > { %v4881_v18 = vpop.eup %3667  ;;  %3687 = vpow2.f32 %v1170_v28  ;;  %v1186_v24 = vmul.f32 1.442695, %v1118_v23  ;;  %v1123_v32 = vsub.f32 %v7791_v0, %v4831_v31  ;;  %v1188_v62 = vmul.f32 1.442695, %v1119_v46  ;;  %v7798_v28 = vld [vmem:[#allocation25_spill] sm:$0xff] }
 0x121   : > { %v4885_v54 = vpop.eup %3669  ;;  %3689 = vpow2.f32 %v1172_v27  ;;  %v1124_v7 = vsub.f32 %v7792_v43, %v4837_v16  ;;  %v1190_v47 = vmul.f32 1.442695, %v1120_v44  ;;  %v1125_v2 = vsub.f32 %v7794_v63, %v4841_v6  ;;  %v7806_v44 = vld [vmem:[#allocation12_spill] sm:$0xff] }
 0x122   : > { %v4889_v34 = vpop.eup %3671  ;;  %3691 = vpow2.f32 %v1174_v61  ;;  %v1192_v35 = vmul.f32 1.442695, %v1121_v13  ;;  %v1126_v20 = vsub.f32 %v7796_v30, %v4845_v39  ;;  %v1194_v21 = vmul.f32 1.442695, %v1122_v10 }
 0x123   : > { %v4893_v42 = vpop.eup %3673  ;;  %3693 = vpow2.f32 %v1176_v1  ;;  %v1127_v40 = vsub.f32 %v7798_v28, %v4849_v41  ;;  %v1196_v27 = vmul.f32 1.442695, %v1123_v32  ;;  %v1128_v61 = vsub.f32 %v7800_v4, %v4853_v5  ;;  %v7802_v1 = vld [vmem:[#allocation8_spill] sm:$0xff] }
 0x124   : > { %v4897_v58 = vpop.eup %3675  ;;  %3695 = vpow2.f32 %v1178_v26  ;;  %v1198_v56 = vmul.f32 1.442695, %v1124_v7  ;;  %v1130_v52 = vsub.f32 %v7802_v1, %v4805_v11  ;;  %v1200_v23 = vmul.f32 1.442695, %v1125_v2  ;;  %v7807_v11 = vld [vmem:[#allocation13_spill] sm:$0xff] }
 0x125   : > { %v4901_v8 = vpop.eup %3677  ;;  %3697 = vpow2.f32 %v1180_v49  ;;  %v1131_v46 = vsub.f32 %v7804_v36, %v4807_v9  ;;  %v1202_v49 = vmul.f32 1.442695, %v1126_v20  ;;  %v1204_v14 = vmul.f32 1.442695, %v1127_v40  ;;  %v7808_v9 = vld [vmem:[#allocation18_spill] sm:$0xff] }
 0x126   : > { %7790 = vst [vmem:[#allocation38_spill] sm:$0xff] %v4901_v8  ;;  %v4905_v55 = vpop.eup %3679  ;;  %3699 = vpow2.f32 %v1182_v33  ;;  %v1132_v33 = vsub.f32 %v7806_v44, %v4809_v19  ;;  %v1206_v3 = vmul.f32 1.442695, %v1128_v61  ;;  %v1210_v0 = vmul.f32 1.442695, %v1130_v52  ;;  %v7809_v19 = vld [vmem:[#allocation23_spill] sm:$0xff] }
 0x127   : > { %v4909_v25 = vpop.eup %3681  ;;  %3701 = vpow2.f32 %v1184_v59  ;;  %v1133_v59 = vsub.f32 %v7807_v11, %v4811_v60  ;;  %v1212_v43 = vmul.f32 1.442695, %v1131_v46  ;;  %v7810_v60 = vld [vmem:[#allocation27_spill] sm:$0xff] }
 0x128   : > { %7793 = vst [vmem:[#allocation39_spill] sm:$0xff] %v4909_v25  ;;  %v4913_v45 = vpop.eup %3683  ;;  %3703 = vpow2.f32 %v1186_v24  ;;  %v1134_v24 = vsub.f32 %v7808_v9, %v4813_v15  ;;  %v1214_v63 = vmul.f32 1.442695, %v1132_v33  ;;  %v7811_v15 = vld [vmem:[#allocation29_spill] sm:$0xff]  ;;  %v7821_v33 = vld [vmem:[#allocation34_spill] sm:$0xff]  ;;  %v7824_v9 = vld [vmem:[#allocation36_spill] sm:$0xff] }
 0x129   : > { %7795 = vst [vmem:[#allocation40_spill] sm:$0xff] %v4913_v45  ;;  %v4917_v48 = vpop.eup %3685  ;;  %3705 = vpow2.f32 %v1188_v62  ;;  %v1135_v62 = vsub.f32 %v7809_v19, %v4815_v57  ;;  %v1216_v30 = vmul.f32 1.442695, %v1133_v59  ;;  %v7812_v57 = vld [vmem:[#allocation28_spill] sm:$0xff]  ;;  %v7823_v59 = vld [vmem:[#allocation35_spill] sm:$0xff]  ;;  %v7826_v19 = vld [vmem:[#allocation37_spill] sm:$0xff] }
 0x12a   : > { %7797 = vst [vmem:[#allocation41_spill] sm:$0xff] %v4917_v48  ;;  %v4921_v51 = vpop.eup %3687  ;;  %3707 = vpow2.f32 %v1190_v47  ;;  %v1136_v47 = vsub.f32 %v7810_v60, %v4821_v37  ;;  %v1218_v28 = vmul.f32 1.442695, %v1134_v24  ;;  %v7814_v37 = vld [vmem:[#allocation30_spill] sm:$0xff] }
 0x12b   : > { %7799 = vst [vmem:[#allocation42_spill] sm:$0xff] %v4921_v51  ;;  %v4925_v38 = vpop.eup %3689  ;;  %3709 = vpow2.f32 %v1192_v35  ;;  %v1137_v35 = vsub.f32 %v7811_v15, %v4825_v12  ;;  %v1220_v4 = vmul.f32 1.442695, %v1135_v62  ;;  %v7816_v12 = vld [vmem:[#allocation31_spill] sm:$0xff] }
 0x12c   : > { %7801 = vst [vmem:[#allocation43_spill] sm:$0xff] %v4925_v38  ;;  %v4929_v26 = vpop.eup %3691  ;;  %3711 = vpow2.f32 %v1194_v21  ;;  %v1129_v21 = vsub.f32 %v7812_v57, %v4857_v22  ;;  %v1222_v1 = vmul.f32 1.442695, %v1136_v47 }
 0x12d   : > { %7803 = vst [vmem:[#allocation44_spill] sm:$0xff] %v4929_v26  ;;  %v4933_v29 = vpop.eup %3693  ;;  %3713 = vpow2.f32 %v1196_v27  ;;  %v1138_v27 = vsub.f32 %v7814_v37, %v4829_v17  ;;  %v1224_v46 = vmul.f32 1.442695, %v1137_v35  ;;  %v7820_v17 = vld [vmem:[#allocation33_spill] sm:$0xff] }
 0x12e   : > { %7805 = vst [vmem:[#allocation45_spill] sm:$0xff] %v4933_v29  ;;  %v4937_v13 = vpop.eup %3695  ;;  %3715 = vpow2.f32 %v1198_v56  ;;  %v1139_v56 = vsub.f32 %v7816_v12, %v4831_v31  ;;  %v1141_v44 = vsub.f32 %v7820_v17, %v4841_v6  ;;  %v1208_v11 = vmul.f32 1.442695, %v1129_v21 }
 0x12f   : > { %v4941_v10 = vpop.eup %3697  ;;  %3717 = vpow2.f32 %v1200_v23  ;;  %v7818_v23 = vld [vmem:[#allocation32_spill] sm:$0xff]  ;;  %v1226_v24 = vmul.f32 1.442695, %v1138_v27  ;;  %v1145_v6 = vsub.f32 %v7826_v19, %v4857_v22 }
 0x130   : > { %v4945_v32 = vpop.eup %3699  ;;  %3719 = vpow2.f32 %v1202_v49  ;;  %v1140_v36 = vsub.f32 %v7818_v23, %v4837_v16  ;;  %v1144_v16 = vsub.f32 %v7824_v9, %v4853_v5  ;;  %v1228_v62 = vmul.f32 1.442695, %v1139_v56 }
 0x131   : > { %v4949_v7 = vpop.eup %3701  ;;  %3721 = vpow2.f32 %v1204_v14  ;;  %v1142_v14 = vsub.f32 %v7821_v33, %v4845_v39  ;;  %v1242_v5 = vadd.f32 %v4937_v13, %v4873_v53  ;;  %v1251_v22 = vadd.f32 %v4941_v10, %v4877_v50 }
 0x132   : > { %v4953_v2 = vpop.eup %3703  ;;  %3723 = vpow2.f32 %v1206_v3  ;;  %v1143_v3 = vsub.f32 %v7823_v59, %v4849_v41  ;;  %v1232_v41 = vmul.f32 1.442695, %v1141_v44  ;;  %v1238_v35 = vmul.f32 1.442695, %v1144_v16 }
 0x133   : > { %v4957_v20 = vpop.eup %3705  ;;  %3725 = vpow2.f32 %v1210_v0  ;;  %v1234_v47 = vmul.f32 1.442695, %v1142_v14  ;;  %v1240_v57 = vmul.f32 1.442695, %v1145_v6  ;;  %v1260_v21 = vadd.f32 %v4945_v32, %v4881_v18 }
 0x134   : > { %v4961_v40 = vpop.eup %3707  ;;  %3727 = vpow2.f32 %v1212_v43  ;;  %v1230_v43 = vmul.f32 1.442695, %v1140_v36  ;;  %v1236_v15 = vmul.f32 1.442695, %v1143_v3  ;;  %v1287_v12 = vadd.f32 %v4957_v20, %v4893_v42 }
 0x135   : > { %7813 = vst [vmem:[#allocation46_spill] sm:$0xff] %v4961_v40  ;;  %v4965_v61 = vpop.eup %3709  ;;  %3729 = vpow2.f32 %v1214_v63  ;;  %v1296_v36 = vadd.f32 %v4961_v40, %v4897_v58 }
 0x136   : > { %7815 = vst [vmem:[#allocation47_spill] sm:$0xff] %v4965_v61  ;;  %v4969_v52 = vpop.eup %3711  ;;  %3731 = vpow2.f32 %v1216_v30  ;;  %v1305_v33 = vadd.f32 %v4965_v61, %v4901_v8 }
 0x137   : > { %7817 = vst [vmem:[#allocation48_spill] sm:$0xff] %v4969_v52  ;;  %v4973_v49 = vpop.eup %3713  ;;  %3733 = vpow2.f32 %v1218_v28  ;;  %v1269_v28 = vadd.f32 %v4949_v7, %v4885_v54 }
 0x138   : > { %7819 = vst [vmem:[#allocation49_spill] sm:$0xff] %v4973_v49  ;;  %v4979_v31 = vpop.eup %3715  ;;  %3735 = vpow2.f32 %v1220_v4  ;;  %v1278_v4 = vadd.f32 %v4953_v2, %v4889_v34 }
 0x139   : > { %7822 = vst [vmem:[#allocation50_spill] sm:$0xff] %v4979_v31  ;;  %v4985_v0 = vpop.eup %3717  ;;  %3737 = vpow2.f32 %v1222_v1 }
 0x13a   : > { %7825 = vst [vmem:[#allocation51_spill] sm:$0xff] %v4985_v0  ;;  %v4989_v39 = vpop.eup %3719  ;;  %3739 = vpow2.f32 %v1224_v46 }
 0x13b   : > { %7827 = vst [vmem:[#allocation52_spill] sm:$0xff] %v4989_v39  ;;  %v4991_v60 = vpop.eup %3721  ;;  %3741 = vpow2.f32 %v1208_v11 }
 0x13c   : > { %7828 = vst [vmem:[#allocation53_spill] sm:$0xff] %v4991_v60  ;;  %v4995_v63 = vpop.eup %3723  ;;  %3743 = vpow2.f32 %v1226_v24 }
 0x13d   : > { %7829 = vst [vmem:[#allocation54_spill] sm:$0xff] %v4995_v63  ;;  %v4999_v30 = vpop.eup %3725  ;;  %3745 = vpow2.f32 %v1228_v62 }
 0x13e   : > { %v5005_v37 = vpop.eup %3727  ;;  %3747 = vpow2.f32 %v1230_v43  ;;  %v1243_v27 = vsel %vm7356_vm0, %v4999_v30, 0.0 }
 0x13f   : > { %v5013_v56 = vpop.eup %3729  ;;  %3749 = vpow2.f32 %v1232_v41  ;;  %v1244_v1 = vadd.f32 %v1243_v27, %v1242_v5  ;;  %v1252_v23 = vsel %vm7356_vm0, %v5005_v37, 0.0 }
 0x140   : > { %v5019_v46 = vpop.eup %3731  ;;  %3751 = vpow2.f32 %v1234_v47  ;;  %v1253_v17 = vadd.f32 %v1252_v23, %v1251_v22  ;;  %v1261_v44 = vsel %vm7356_vm0, %v5013_v56, 0.0 }
 0x141   : > { %v5025_v14 = vpop.eup %3733  ;;  %3753 = vpow2.f32 %v1236_v15  ;;  %v1245_v11 = vrot.slane %v1244_v1, 4  ;;  %v1262_v59 = vadd.f32 %v1261_v44, %v1260_v21  ;;  %v1270_v3 = vsel %vm7356_vm0, %v5019_v46, 0.0 }
 0x142   : > { %v5029_v9 = vpop.eup %3735  ;;  %3755 = vpow2.f32 %v1238_v35  ;;  %v1254_v16 = vrot.slane %v1253_v17, 4  ;;  %v1271_v24 = vadd.f32 %v1270_v3, %v1269_v28  ;;  %v1279_v19 = vsel %vm7356_vm0, %v5025_v14, 0.0 }
 0x143   : > { %v5033_v6 = vpop.eup %3737  ;;  %v1246_v62 = vadd.f32 %v1245_v11, %v1244_v1  ;;  %v1263_v43 = vrot.slane %v1262_v59, 4  ;;  %v1280_v41 = vadd.f32 %v1279_v19, %v1278_v4  ;;  %v1288_v47 = vsel %vm7356_vm0, %v5029_v9, 0.0 }
 0x144   : > { %7830 = vst [vmem:[#allocation55_spill] sm:$0xff] %v5033_v6  ;;  %v5037_v5 = vpop.eup %3739  ;;  %v1255_v15 = vadd.f32 %v1254_v16, %v1253_v17  ;;  %v1272_v22 = vrot.slane %v1271_v24, 4  ;;  %v1289_v21 = vadd.f32 %v1288_v47, %v1287_v12  ;;  %v1297_v35 = vsel %vm7356_vm0, %v5033_v6, 0.0 }
 0x145   : > { %7831 = vst [vmem:[#allocation56_spill] sm:$0xff] %v5037_v5  ;;  %v5041_v28 = vpop.eup %3741  ;;  %v1247_v27 = vrot.slane %v1246_v62, 2  ;;  %v1264_v23 = vadd.f32 %v1263_v43, %v1262_v59  ;;  %v1281_v44 = vrot.slane %v1280_v41, 4  ;;  %v1298_v3 = vadd.f32 %v1297_v35, %v1296_v36 }
 0x146   : > { %7832 = vst [vmem:[#allocation57_spill] sm:$0xff] %v5041_v28  ;;  %v5043_v1 = vpop.eup %3743  ;;  %v1256_v4 = vrot.slane %v1255_v15, 2  ;;  %v1273_v11 = vadd.f32 %v1272_v22, %v1271_v24  ;;  %v1290_v19 = vrot.slane %v1289_v21, 4  ;;  %v1306_v61 = vsel %vm7356_vm0, %v5037_v5, 0.0 }
 0x147   : > { %7833 = vst [vmem:[#allocation58_spill] sm:$0xff] %v5043_v1  ;;  %v5047_v17 = vpop.eup %3745  ;;  %v1248_v12 = vadd.f32 %v1247_v27, %v1246_v62  ;;  %v1265_v16 = vrot.slane %v1264_v23, 2  ;;  %v1282_v47 = vadd.f32 %v1281_v44, %v1280_v41  ;;  %v1299_v8 = vrot.slane %v1298_v3, 4 }
 0x148   : > { %7834 = vst [vmem:[#allocation59_spill] sm:$0xff] %v5047_v17  ;;  %v5049_v6 = vpop.eup %3747  ;;  %v1257_v40 = vadd.f32 %v1256_v4, %v1255_v15  ;;  %v1307_v59 = vadd.f32 %v1306_v61, %v1305_v33  ;;  %3757 = vpow2.f32 %v1240_v57  ;;  %v1274_v36 = vrot.slane %v1273_v11, 2 }
 0x149   : > { %7835 = vst [vmem:[#allocation60_spill] sm:$0xff] %v5049_v6  ;;  %v5051_v43 = vpop.eup %3749  ;;  %v1314_v24 = vadd.f32 %v4969_v52, %v4905_v55  ;;  %v1249_v35 = vrot.slane %v1248_v12, 1  ;;  %v5057_v5 = vadd.f32 %v1265_v16, %v1264_v23  ;;  %v1291_v62 = vadd.f32 %v1290_v19, %v1289_v21 }
 0x14a   : > { %7836 = vst [vmem:[#allocation61_spill] sm:$0xff] %v5051_v43  ;;  %v5055_v22 = vpop.eup %3751  ;;  %v1323_v41 = vadd.f32 %v4973_v49, %v4909_v25  ;;  %v1283_v15 = vrot.slane %v1282_v47, 2  ;;  %v1300_v61 = vadd.f32 %v1299_v8, %v1298_v3  ;;  %v1332_v57 = vadd.f32 %v4979_v31, %v4913_v45 }
 0x14b   : > { %7837 = vst [vmem:[#allocation62_spill] sm:$0xff] %v5055_v22  ;;  %v5061_v27 = vpop.eup %3753  ;;  %v1341_v33 = vadd.f32 %v4985_v0, %v4917_v48  ;;  %v1258_v4 = vrot.slane %v1257_v40, 1  ;;  %v1308_v52 = vrot.slane %v1307_v59, 4  ;;  %v1350_v21 = vadd.f32 %v4989_v39, %v4921_v51 }
 0x14c   : > { %7838 = vst [vmem:[#allocation4_spill] sm:$0xff] %v5061_v27  ;;  %v5067_v44 = vpop.eup %3755  ;;  %v1359_v23 = vadd.f32 %v4991_v60, %v4925_v38  ;;  %v1275_v19 = vadd.f32 %v1274_v36, %v1273_v11  ;;  %v1315_v8 = vsel %vm7356_vm0, %v5043_v1, 0.0  ;;  %v1368_v3 = vadd.f32 %v4995_v63, %v4929_v26 }
 0x14d   : > { %7839 = vst [vmem:[#allocation5_spill] sm:$0xff] %v5067_v44  ;;  %v1377_v16 = vadd.f32 %v5041_v28, %v4933_v29  ;;  %v1250_v0 = vadd.f32 %v1249_v35, %v1248_v12  ;;  %v1267_v31 = vrot.slane %v5057_v5, 1  ;;  %v1292_v48 = vrot.slane %v1291_v62, 2 }
 0x14e   : > { %v1316_v45 = vadd.f32 %v1315_v8, %v1314_v24  ;;  %v1284_v49 = vadd.f32 %v1283_v15, %v1282_v47  ;;  %v1301_v39 = vrot.slane %v1300_v61, 2  ;;  %v1324_v60 = vsel %vm7356_vm0, %v5047_v17, 0.0 }
 0x14f   : > { %v1333_v11 = vsel %vm7356_vm0, %v5049_v6, 0.0  ;;  %v1259_v36 = vadd.f32 %v1258_v4, %v1257_v40  ;;  %v1309_v38 = vadd.f32 %v1308_v52, %v1307_v59  ;;  %v1325_v63 = vadd.f32 %v1324_v60, %v1323_v41 }
 0x150   : > { %v1317_v51 = vrot.slane %v1316_v45, 4  ;;  %v1276_v26 = vrot.slane %v1275_v19, 1  ;;  %v1334_v25 = vadd.f32 %v1333_v11, %v1332_v57  ;;  %v1342_v12 = vsel %vm7356_vm0, %v5051_v43, 0.0 }
 0x151   : > { %v1351_v24 = vsel %vm7356_vm0, %v5055_v22, 0.0  ;;  %v1293_v47 = vadd.f32 %v1292_v48, %v1291_v62  ;;  %v1326_v15 = vrot.slane %v1325_v63, 4  ;;  %v1343_v8 = vadd.f32 %v1342_v12, %v1341_v33 }
 0x152   : > { %v1318_v35 = vadd.f32 %v1317_v51, %v1316_v45  ;;  %v5088_v28 = vpop.eup %3757  ;;  %v1335_v29 = vrot.slane %v1334_v25, 4  ;;  %v1352_v6 = vadd.f32 %v1351_v24, %v1350_v21  ;;  %v1360_v40 = vsel %vm7356_vm0, %v5061_v27, 0.0 }
 0x153   : > { %7840 = vst [vmem:[#allocation6_spill] sm:$0xff] %v5088_v28  ;;  %v1369_v52 = vsel %vm7356_vm0, %v5067_v44, 0.0  ;;  %v1310_v60 = vrot.slane %v1309_v38, 2  ;;  %v1327_v41 = vadd.f32 %v1326_v15, %v1325_v63  ;;  %v1344_v57 = vrot.slane %v1343_v8, 4 }
 0x154   : > { %v1319_v59 = vrot.slane %v1318_v35, 2  ;;  %v1336_v4 = vadd.f32 %v1335_v29, %v1334_v25  ;;  %v1353_v11 = vrot.slane %v1352_v6, 4  ;;  %v1361_v48 = vadd.f32 %v1360_v40, %v1359_v23 }
 0x155   : > { %v1370_v45 = vadd.f32 %v1369_v52, %v1368_v3  ;;  %v1302_v51 = vadd.f32 %v1301_v39, %v1300_v61  ;;  %v1328_v62 = vrot.slane %v1327_v41, 2  ;;  %v1345_v33 = vadd.f32 %v1344_v57, %v1343_v8 }
 0x156   : > { %v1378_v21 = vsel %vm7356_vm0, %v5088_v28, 0.0  ;;  %v1337_v12 = vrot.slane %v1336_v4, 2  ;;  %v1354_v24 = vadd.f32 %v1353_v11, %v1352_v6  ;;  %v1362_v27 = vrot.slane %v1361_v48, 4 }
 0x157   : > { %v1371_v22 = vrot.slane %v1370_v45, 4  ;;  %v1285_v43 = vrot.slane %v1284_v49, 1  ;;  %v1311_v44 = vadd.f32 %v1310_v60, %v1309_v38  ;;  %v1346_v17 = vrot.slane %v1345_v33, 2 }
 0x158   : > { %v1379_v1 = vadd.f32 %v1378_v21, %v1377_v16  ;;  %v1320_v63 = vadd.f32 %v1319_v59, %v1318_v35  ;;  %v1355_v15 = vrot.slane %v1354_v24, 2  ;;  %v1363_v25 = vadd.f32 %v1362_v27, %v1361_v48 }
 0x159   : > { %v1372_v29 = vadd.f32 %v1371_v22, %v1370_v45  ;;  %v1268_v23 = vadd.f32 %v1267_v31, %v5057_v5  ;;  %v1294_v39 = vrot.slane %v1293_v47, 1  ;;  %v1329_v61 = vadd.f32 %v1328_v62, %v1327_v41 }
 0x15a   : > { %v1380_v3 = vrot.slane %v1379_v1, 4  ;;  %v1277_v8 = vadd.f32 %v1276_v26, %v1275_v19  ;;  %v1303_v40 = vrot.slane %v1302_v51, 1  ;;  %v1338_v52 = vadd.f32 %v1337_v12, %v1336_v4 }
 0x15b   : > { %v1364_v57 = vrot.slane %v1363_v25, 2  ;;  %v1312_v6 = vrot.slane %v1311_v44, 1  ;;  %v1347_v11 = vadd.f32 %v1346_v17, %v1345_v33  ;;  %3759 = vrcp.f32 %v1250_v0 }
 0x15c   : > { %v1381_v28 = vadd.f32 %v1380_v3, %v1379_v1  ;;  %v1286_v38 = vadd.f32 %v1285_v43, %v1284_v49  ;;  %v1321_v60 = vrot.slane %v1320_v63, 1  ;;  %v1356_v16 = vadd.f32 %v1355_v15, %v1354_v24 }
 0x15d   : > { %v1373_v35 = vrot.slane %v1372_v29, 2  ;;  %v1295_v59 = vadd.f32 %v1294_v39, %v1293_v47  ;;  %v1330_v27 = vrot.slane %v1329_v61, 1  ;;  %v1365_v22 = vadd.f32 %v1364_v57, %v1363_v25 }
 0x15e   : > { %3761 = vrcp.f32 %v1259_v36  ;;  %v1304_v31 = vadd.f32 %v1303_v40, %v1302_v51  ;;  %v1339_v5 = vrot.slane %v1338_v52, 1  ;;  %v1382_v41 = vrot.slane %v1381_v28, 2 }
 0x15f   : > { %3763 = vrcp.f32 %v1268_v23  ;;  %v1313_v26 = vadd.f32 %v1312_v6, %v1311_v44  ;;  %v1348_v19 = vrot.slane %v1347_v11, 1  ;;  %v1322_v4 = vadd.f32 %v1321_v60, %v1320_v63  ;;  %v7841_v44 = vld [vmem:[#allocation3_spill] sm:$0xff] }
 0x160   : > { %3765 = vrcp.f32 %v1277_v8  ;;  %v1357_v48 = vrot.slane %v1356_v16, 1  ;;  %v1374_v17 = vadd.f32 %v1373_v35, %v1372_v29  ;;  %v1331_v0 = vadd.f32 %v1330_v27, %v1329_v61 }
 0x161   : > { %3767 = vrcp.f32 %v1286_v38  ;;  %v1366_v49 = vrot.slane %v1365_v22, 1  ;;  %v1340_v1 = vadd.f32 %v1339_v5, %v1338_v52  ;;  %v1383_v43 = vadd.f32 %v1382_v41, %v1381_v28 }
 0x162   : > { %3769 = vrcp.f32 %v1295_v59  ;;  %v1349_v47 = vadd.f32 %v1348_v19, %v1347_v11  ;;  %v1358_v36 = vadd.f32 %v1357_v48, %v1356_v16  ;;  %v1375_v45 = vrot.slane %v1374_v17, 1 }
 0x163   : > { %3771 = vrcp.f32 %v1304_v31  ;;  %v1367_v62 = vadd.f32 %v1366_v49, %v1365_v22  ;;  %v1788_v33 = vadd.s32 8, %v7841_v44  ;;  %v1384_v21 = vrot.slane %v1383_v43, 1 }
 0x164   : > { %3773 = vrcp.f32 %v1313_v26  ;;  %v1789_v12 = vadd.s32 16, %v7841_v44  ;;  %v3914_v24 = vmov 1966171168   ;;  %v1376_v25 = vadd.f32 %v1375_v45, %v1374_v17  ;;  %v7876_v45 = vld [vmem:[#allocation48_spill] sm:$0xff] }
 0x165   : > { %3775 = vrcp.f32 %v1322_v4  ;;  %v3760_v51 = vpop.eup %3759  ;;  %v5099_v63 = vunpack.c.l.s4 %v3914_v24  ;;  %v5111_v3 = vcvt.s32.f32 %v7841_v44  ;;  %v5113_v8 = vcvt.s32.f32 %v1788_v33  ;;  %v7867_v4 = vld [vmem:[#allocation55_spill] sm:$0xff] }
 0x166   : > { %3777 = vrcp.f32 %v1331_v0  ;;  %v5102_v29 = vmul.f32 %v3760_v51, %v4873_v53  ;;  %v5105_v23 = vmul.f32 %v3760_v51, %v4937_v13  ;;  %v5108_v61 = vmul.f32 %v3760_v51, %v4999_v30  ;;  %v7880_v24 = vld [vmem:[#allocation39_spill] sm:$0xff]  ;;  %v7908_v13 = vld [vmem:[#allocation4_spill] sm:$0xff] }
 0x167   : > { %3779 = vrcp.f32 %v1340_v1  ;;  %7842 = vst [vmem:[#allocation7_spill] sm:$0xff] %v5099_v63  ;;  %7846 = vst [vmem:[#allocation15_spill] sm:$0xff] %v5111_v3  ;;  %v1385_v52 = vadd.f32 %v1384_v21, %v1383_v43  ;;  %v5118_v53 = vcvt.s32.f32 %v1789_v12  ;;  %v7873_v1 = vld [vmem:[#allocation56_spill] sm:$0xff] }
 0x168   : > { %v3762_v15 = vpop.eup %3761  ;;  %3781 = vrcp.f32 %v1349_v47  ;;  %7843 = vst [vmem:[#allocation10_spill] sm:$0xff] %v5102_v29  ;;  %7844 = vst [vmem:[#allocation11_spill] sm:$0xff] %v5105_v23 }
 0x169   : > { %v3764_v28 = vpop.eup %3763  ;;  %3783 = vrcp.f32 %v1358_v36  ;;  %7845 = vst [vmem:[#allocation14_spill] sm:$0xff] %v5108_v61  ;;  %7847 = vst [vmem:[#allocation16_spill] sm:$0xff] %v5113_v8  ;;  %v5116_v57 = vmul.f32 %v3762_v15, %v4877_v50  ;;  %v5125_v30 = vmul.f32 %v3762_v15, %v4941_v10  ;;  %v5131_v60 = vmul.f32 %v3762_v15, %v5005_v37 }
 0x16a   : > { %v3766_v39 = vpop.eup %3765  ;;  %3785 = vrcp.f32 %v1367_v62  ;;  %7849 = vst [vmem:[#allocation19_spill] sm:$0xff] %v5118_v53  ;;  %v5122_v11 = vmul.f32 %v3764_v28, %v4881_v18  ;;  %v5128_v38 = vmul.f32 %v3764_v28, %v4945_v32  ;;  %v5137_v35 = vmul.f32 %v3764_v28, %v5013_v56  ;;  %v7878_v62 = vld [vmem:[#allocation58_spill] sm:$0xff]  ;;  %v7882_v28 = vld [vmem:[#allocation49_spill] sm:$0xff] }
 0x16b   : > { %v3768_v40 = vpop.eup %3767  ;;  %7848 = vst [vmem:[#allocation17_spill] sm:$0xff] %v5116_v57  ;;  %7851 = vst [vmem:[#allocation21_spill] sm:$0xff] %v5125_v30  ;;  %v5134_v50 = vmul.f32 %v3766_v39, %v4885_v54  ;;  %3787 = vrcp.f32 %v1376_v25  ;;  %v1450_v18 = vmax.f32 %v5102_v29, %v5105_v23  ;;  %v5145_v32 = vmul.f32 %v3766_v39, %v4949_v7 }
 0x16c   : > { %v3770_v6 = vpop.eup %3769  ;;  %7850 = vst [vmem:[#allocation20_spill] sm:$0xff] %v5122_v11  ;;  %7852 = vst [vmem:[#allocation22_spill] sm:$0xff] %v5128_v38  ;;  %v5142_v10 = vmul.f32 %v3768_v40, %v4889_v34  ;;  %v5148_v37 = vmul.f32 %v3766_v39, %v5019_v46  ;;  %v1451_v54 = vsel %vm7356_vm0, %v5108_v61, -inf  ;;  %3789 = vrcp.f32 %v1385_v52  ;;  %v7884_v39 = vld [vmem:[#allocation59_spill] sm:$0xff] }
 0x16d   : > { %7853 = vst [vmem:[#allocation24_spill] sm:$0xff] %v5131_v60  ;;  %v3772_v16 = vpop.eup %3771  ;;  %7854 = vst [vmem:[#allocation25_spill] sm:$0xff] %v5134_v50  ;;  %v5153_v56 = vmul.f32 %v3768_v40, %v4953_v2  ;;  %v5156_v22 = vmul.f32 %v3768_v40, %v5025_v14  ;;  %v1452_v31 = vmax.f32 %v1450_v18, %v1451_v54  ;;  %v7865_v14 = vld [vmem:[#allocation46_spill] sm:$0xff] }
 0x16e   : > { %7855 = vst [vmem:[#allocation26_spill] sm:$0xff] %v5137_v35  ;;  %v3774_v59 = vpop.eup %3773  ;;  %7856 = vst [vmem:[#allocation8_spill] sm:$0xff] %v5142_v10  ;;  %v5159_v5 = vmul.f32 %v3770_v6, %v4893_v42  ;;  %v5162_v7 = vmul.f32 %v3770_v6, %v4957_v20  ;;  %v5165_v46 = vmul.f32 %v3770_v6, %v5029_v9  ;;  %v7869_v20 = vld [vmem:[#allocation38_spill] sm:$0xff]  ;;  %v7871_v9 = vld [vmem:[#allocation47_spill] sm:$0xff] }
 0x16f   : > { %7857 = vst [vmem:[#allocation9_spill] sm:$0xff] %v5145_v32  ;;  %7858 = vst [vmem:[#allocation12_spill] sm:$0xff] %v5148_v37  ;;  %v3776_v27 = vpop.eup %3775  ;;  %v1459_v41 = vmax.f32 %v5116_v57, %v5125_v30  ;;  %v5170_v2 = vmul.f32 %v3772_v16, %v4897_v58  ;;  %v5173_v19 = vmul.f32 %v3772_v16, %v7865_v14  ;;  %v1453_v42 = vrot.slane %v1452_v31, 4  ;;  %v7894_v14 = vld [vmem:[#allocation42_spill] sm:$0xff] }
 0x170   : > { %7859 = vst [vmem:[#allocation13_spill] sm:$0xff] %v5153_v56  ;;  %7860 = vst [vmem:[#allocation18_spill] sm:$0xff] %v5156_v22  ;;  %v3778_v34 = vpop.eup %3777  ;;  %v5176_v48 = vmul.f32 %v3772_v16, %v7867_v4  ;;  %v5179_v0 = vmul.f32 %v3774_v59, %v7869_v20  ;;  %v5182_v49 = vmul.f32 %v3774_v59, %v7871_v9  ;;  %v1460_v58 = vsel %vm7356_vm0, %v5131_v60, -inf  ;;  %v7888_v16 = vld [vmem:[#allocation41_spill] sm:$0xff] }
 0x171   : > { %7861 = vst [vmem:[#allocation23_spill] sm:$0xff] %v5159_v5  ;;  %7862 = vst [vmem:[#allocation27_spill] sm:$0xff] %v5162_v7  ;;  %v3780_v26 = vpop.eup %3779  ;;  %v5185_v43 = vmul.f32 %v3774_v59, %v7873_v1  ;;  %v5190_v36 = vmul.f32 %v3776_v27, %v4905_v55  ;;  %v5193_v51 = vmul.f32 %v3776_v27, %v7876_v45  ;;  %v7886_v55 = vld [vmem:[#allocation40_spill] sm:$0xff]  ;;  %v7890_v59 = vld [vmem:[#allocation50_spill] sm:$0xff]  ;;  %v1496_v44 = vsel %vm7356_vm0, %v5165_v46, -inf }
 0x172   : > { %7863 = vst [vmem:[#allocation29_spill] sm:$0xff] %v5165_v46  ;;  %7864 = vst [vmem:[#allocation28_spill] sm:$0xff] %v5170_v2  ;;  %v3782_v17 = vpop.eup %3781  ;;  %v5196_v33 = vmul.f32 %v3776_v27, %v7878_v62  ;;  %v1454_v21 = vmax.f32 %v1452_v31, %v1453_v42  ;;  %v5199_v15 = vmul.f32 %v3778_v34, %v7880_v24  ;;  %v7892_v27 = vld [vmem:[#allocation60_spill] sm:$0xff]  ;;  %v7896_v42 = vld [vmem:[#allocation51_spill] sm:$0xff] }
 0x173   : > { %7866 = vst [vmem:[#allocation30_spill] sm:$0xff] %v5173_v19  ;;  %7868 = vst [vmem:[#allocation31_spill] sm:$0xff] %v5176_v48  ;;  %v3784_v47 = vpop.eup %3783  ;;  %v5202_v25 = vmul.f32 %v3778_v34, %v7882_v28  ;;  %v5205_v40 = vmul.f32 %v3778_v34, %v7884_v39  ;;  %v1461_v52 = vmax.f32 %v1459_v41, %v1460_v58  ;;  %v7898_v34 = vld [vmem:[#allocation61_spill] sm:$0xff]  ;;  %v7900_v58 = vld [vmem:[#allocation43_spill] sm:$0xff] }
 0x174   : > { %7870 = vst [vmem:[#allocation32_spill] sm:$0xff] %v5179_v0  ;;  %7872 = vst [vmem:[#allocation33_spill] sm:$0xff] %v5182_v49  ;;  %v3786_v12 = vpop.eup %3785  ;;  %v5208_v6 = vmul.f32 %v3780_v26, %v7886_v55  ;;  %v5211_v18 = vmul.f32 %v3782_v17, %v7888_v16  ;;  %v5214_v54 = vmul.f32 %v3780_v26, %v7890_v59  ;;  %v7902_v62 = vld [vmem:[#allocation52_spill] sm:$0xff]  ;;  %v7904_v28 = vld [vmem:[#allocation62_spill] sm:$0xff]  ;;  %v1455_v39 = vrot.slane %v1454_v21, 2 }
 0x175   : > { %7874 = vst [vmem:[#allocation34_spill] sm:$0xff] %v5185_v43  ;;  %7875 = vst [vmem:[#allocation35_spill] sm:$0xff] %v5190_v36  ;;  %v5217_v31 = vmul.f32 %v3780_v26, %v7892_v27  ;;  %v5220_v4 = vmul.f32 %v3784_v47, %v7894_v14  ;;  %v5223_v20 = vmul.f32 %v3782_v17, %v7896_v42  ;;  %v1462_v9 = vrot.slane %v1461_v52, 4  ;;  %v3788_v1 = vpop.eup %3787  ;;  %v7906_v14 = vld [vmem:[#allocation53_spill] sm:$0xff] }
 0x176   : > { %7877 = vst [vmem:[#allocation36_spill] sm:$0xff] %v5193_v51  ;;  %7879 = vst [vmem:[#allocation37_spill] sm:$0xff] %v5196_v33  ;;  %v5226_v41 = vmul.f32 %v3782_v17, %v7898_v34  ;;  %v5229_v45 = vmul.f32 %v3786_v12, %v7900_v58  ;;  %v5232_v24 = vmul.f32 %v3784_v47, %v7902_v62  ;;  %v1469_v17 = vsel %vm7356_vm0, %v5137_v35, -inf  ;;  %v3790_v27 = vpop.eup %3789 }
 0x177   : > { %7881 = vst [vmem:[#allocation46_spill] sm:$0xff] %v5199_v15  ;;  %7883 = vst [vmem:[#allocation55_spill] sm:$0xff] %v5202_v25  ;;  %v5235_v26 = vmul.f32 %v3784_v47, %v7904_v28  ;;  %v1463_v55 = vmax.f32 %v1461_v52, %v1462_v9  ;;  %v1468_v16 = vmax.f32 %v5122_v11, %v5128_v38  ;;  %v1478_v34 = vsel %vm7356_vm0, %v5148_v37, -inf }
 0x178   : > { %7885 = vst [vmem:[#allocation38_spill] sm:$0xff] %v5205_v40  ;;  %7887 = vst [vmem:[#allocation47_spill] sm:$0xff] %v5208_v6  ;;  %v1477_v59 = vmax.f32 %v5134_v50, %v5145_v32  ;;  %v5244_v42 = vmul.f32 %v3786_v12, %v7906_v14  ;;  %v1486_v47 = vmax.f32 %v5142_v10, %v5153_v56  ;;  %v1487_v52 = vsel %vm7356_vm0, %v5156_v22, -inf }
 0x179   : > { %7889 = vst [vmem:[#allocation56_spill] sm:$0xff] %v5211_v18  ;;  %7891 = vst [vmem:[#allocation48_spill] sm:$0xff] %v5214_v54  ;;  %v1464_v9 = vrot.slane %v1463_v55, 2  ;;  %v1470_v58 = vmax.f32 %v1468_v16, %v1469_v17  ;;  %v1495_v28 = vmax.f32 %v5159_v5, %v5162_v7  ;;  %v5255_v63 = vmul.f32 %v3786_v12, %v7908_v13 }
 0x17a   : > { %7893 = vst [vmem:[#allocation58_spill] sm:$0xff] %v5217_v31  ;;  %7895 = vst [vmem:[#allocation39_spill] sm:$0xff] %v5220_v4  ;;  %v1479_v62 = vmax.f32 %v1477_v59, %v1478_v34  ;;  %v1488_v14 = vmax.f32 %v1486_v47, %v1487_v52  ;;  %v1504_v53 = vmax.f32 %v5170_v2, %v5173_v19  ;;  %v1505_v16 = vsel %vm7356_vm0, %v5176_v48, -inf }
 0x17b   : > { %7897 = vst [vmem:[#allocation49_spill] sm:$0xff] %v5223_v20  ;;  %7899 = vst [vmem:[#allocation59_spill] sm:$0xff] %v5226_v41  ;;  %v1456_v8 = vmax.f32 %v1454_v21, %v1455_v39  ;;  %v1471_v3 = vrot.slane %v1470_v58, 4  ;;  %v1497_v22 = vmax.f32 %v1495_v28, %v1496_v44  ;;  %v1513_v17 = vmax.f32 %v5179_v0, %v5182_v49  ;;  %v7910_v39 = vld [vmem:[#allocation44_spill] sm:$0xff] }
 0x17c   : > { %7901 = vst [vmem:[#allocation40_spill] sm:$0xff] %v5229_v45  ;;  %7903 = vst [vmem:[#allocation41_spill] sm:$0xff] %v5232_v24  ;;  %v1480_v37 = vrot.slane %v1479_v62, 4  ;;  %v1489_v35 = vrot.slane %v1488_v14, 4  ;;  %v1514_v13 = vsel %vm7356_vm0, %v5185_v43, -inf  ;;  %v1465_v12 = vmax.f32 %v1463_v55, %v1464_v9  ;;  %v7912_v9 = vld [vmem:[#allocation54_spill] sm:$0xff] }
 0x17d   : > { %7905 = vst [vmem:[#allocation50_spill] sm:$0xff] %v5235_v26  ;;  %7907 = vst [vmem:[#allocation60_spill] sm:$0xff] %v5244_v42  ;;  %v1472_v59 = vmax.f32 %v1470_v58, %v1471_v3  ;;  %v1498_v47 = vrot.slane %v1497_v22, 4  ;;  %v1506_v46 = vmax.f32 %v1504_v53, %v1505_v16  ;;  %v1515_v21 = vmax.f32 %v1513_v17, %v1514_v13  ;;  %v7914_v17 = vld [vmem:[#allocation5_spill] sm:$0xff] }
 0x17e   : > { %7909 = vst [vmem:[#allocation42_spill] sm:$0xff] %v5255_v63  ;;  %v1481_v34 = vmax.f32 %v1479_v62, %v1480_v37  ;;  %v1490_v52 = vmax.f32 %v1488_v14, %v1489_v35  ;;  %v1522_v44 = vmax.f32 %v5190_v36, %v5193_v51  ;;  %v5270_v28 = vmul.f32 %v3788_v1, %v7910_v39 }
 0x17f   : > { %v1473_v48 = vrot.slane %v1472_v59, 2  ;;  %v1499_v61 = vmax.f32 %v1497_v22, %v1498_v47  ;;  %v1507_v19 = vrot.slane %v1506_v46, 4  ;;  %v1516_v7 = vrot.slane %v1515_v21, 4 }
 0x180   : > { %7911 = vst [vmem:[#allocation51_spill] sm:$0xff] %v5270_v28  ;;  %v1482_v60 = vrot.slane %v1481_v34, 2  ;;  %v1491_v49 = vrot.slane %v1490_v52, 2  ;;  %v1523_v3 = vsel %vm7356_vm0, %v5196_v33, -inf  ;;  %v1457_v37 = vrot.slane %v1456_v8, 1  ;;  %v7916_v33 = vld [vmem:[#allocation45_spill] sm:$0xff] }
 0x181   : > { %v1474_v55 = vmax.f32 %v1472_v59, %v1473_v48  ;;  %v1524_v53 = vmax.f32 %v1522_v44, %v1523_v3  ;;  %v5275_v58 = vmul.f32 %v3788_v1, %v7912_v9  ;;  %v1466_v62 = vrot.slane %v1465_v12, 1  ;;  %v7920_v3 = vld [vmem:[#allocation6_spill] sm:$0xff] }
 0x182   : > { %v1483_v35 = vmax.f32 %v1481_v34, %v1482_v60  ;;  %v1500_v14 = vrot.slane %v1499_v61, 2  ;;  %v1531_v16 = vmax.f32 %v5199_v15, %v5202_v25  ;;  %v5280_v22 = vmul.f32 %v3788_v1, %v7914_v17  ;;  %v7918_v34 = vld [vmem:[#allocation57_spill] sm:$0xff] }
 0x183   : > { %7913 = vst [vmem:[#allocation61_spill] sm:$0xff] %v5275_v58  ;;  %v5282_v13 = vmax.f32 %v1490_v52, %v1491_v49  ;;  %v1508_v47 = vmax.f32 %v1506_v46, %v1507_v19  ;;  %v1525_v39 = vrot.slane %v1524_v53, 4  ;;  %v5285_v43 = vmul.f32 %v3790_v27, %v7916_v33 }
 0x184   : > { %7915 = vst [vmem:[#allocation43_spill] sm:$0xff] %v5280_v22  ;;  %v1475_v60 = vrot.slane %v1474_v55, 1  ;;  %v1517_v48 = vmax.f32 %v1515_v21, %v1516_v7  ;;  %v1532_v59 = vsel %vm7356_vm0, %v5205_v40, -inf  ;;  %v5290_v44 = vmul.f32 %v3790_v27, %v7918_v34 }
 0x185   : > { %7917 = vst [vmem:[#allocation52_spill] sm:$0xff] %v5285_v43  ;;  %v5293_v9 = vmul.f32 %v3790_v27, %v7920_v3  ;;  %v5295_v1 = vmax.f32 %v1456_v8, %v1457_v37  ;;  %v1484_v49 = vrot.slane %v1483_v35, 1  ;;  %v5297_v52 = vmax.f32 %v1465_v12, %v1466_v62 }
 0x186   : > { %7919 = vst [vmem:[#allocation62_spill] sm:$0xff] %v5290_v44  ;;  %v5299_v46 = vmax.f32 %v1499_v61, %v1500_v14  ;;  %v1526_v19 = vmax.f32 %v1524_v53, %v1525_v39  ;;  %v1533_v33 = vmax.f32 %v1531_v16, %v1532_v59  ;;  %v1493_v7 = vrot.slane %v5282_v13, 1 }
 0x187   : > { %7921 = vst [vmem:[#allocation53_spill] sm:$0xff] %v5295_v1  ;;  %7922 = vst [vmem:[#allocation4_spill] sm:$0xff] %v5297_v52  ;;  %v1509_v21 = vrot.slane %v1508_v47, 2  ;;  %v1540_v17 = vmax.f32 %v5208_v6, %v5214_v54  ;;  %v1541_v34 = vsel %vm7356_vm0, %v5217_v31, -inf  ;;  %v5306_v27 = vmax.f32 %v1474_v55, %v1475_v60 }
 0x188   : > { %v1518_v8 = vrot.slane %v1517_v48, 2  ;;  %v1534_v37 = vrot.slane %v1533_v33, 4  ;;  %v1549_v12 = vmax.f32 %v5211_v18, %v5223_v20  ;;  %v5310_v61 = vmax.f32 %v1483_v35, %v1484_v49 }
 0x189   : > { %7923 = vst [vmem:[#allocation44_spill] sm:$0xff] %v5306_v27  ;;  %v1542_v53 = vmax.f32 %v1540_v17, %v1541_v34  ;;  %v1550_v62 = vsel %vm7356_vm0, %v5226_v41, -inf  ;;  %v1558_v14 = vmax.f32 %v5220_v4, %v5232_v24  ;;  %v1502_v16 = vrot.slane %v5299_v46, 1 }
 0x18a   : > { %7924 = vst [vmem:[#allocation54_spill] sm:$0xff] %v5310_v61  ;;  %v1527_v39 = vrot.slane %v1526_v19, 2  ;;  %v1535_v59 = vmax.f32 %v1533_v33, %v1534_v37  ;;  %v1551_v55 = vmax.f32 %v1549_v12, %v1550_v62  ;;  %v1510_v60 = vmax.f32 %v1508_v47, %v1509_v21 }
 0x18b   : > { %v1543_v3 = vrot.slane %v1542_v53, 4  ;;  %v1559_v31 = vsel %vm7356_vm0, %v5235_v26, -inf  ;;  %v1567_v35 = vmax.f32 %v5229_v45, %v5244_v42  ;;  %v1568_v41 = vsel %vm7356_vm0, %v5255_v63, -inf }
 0x18c   : > { %v1536_v49 = vrot.slane %v1535_v59, 2  ;;  %v1552_v17 = vrot.slane %v1551_v55, 4  ;;  %v1560_v34 = vmax.f32 %v1558_v14, %v1559_v31  ;;  %v1519_v40 = vmax.f32 %v1517_v48, %v1518_v8 }
 0x18d   : > { %v1544_v24 = vmax.f32 %v1542_v53, %v1543_v3  ;;  %v1569_v20 = vmax.f32 %v1567_v35, %v1568_v41  ;;  %v1576_v33 = vmax.f32 %v5270_v28, %v5275_v58  ;;  %v1528_v47 = vmax.f32 %v1526_v19, %v1527_v39 }
 0x18e   : > { %v1553_v21 = vmax.f32 %v1551_v55, %v1552_v17  ;;  %v1561_v37 = vrot.slane %v1560_v34, 4  ;;  %v1577_v12 = vsel %vm7356_vm0, %v5280_v22, -inf  ;;  %v1585_v31 = vmax.f32 %v5285_v43, %v5290_v44 }
 0x18f   : > { %v1545_v62 = vrot.slane %v1544_v24, 2  ;;  %v1570_v26 = vrot.slane %v1569_v20, 4  ;;  %v1578_v42 = vmax.f32 %v1576_v33, %v1577_v12  ;;  %v1537_v14 = vmax.f32 %v1535_v59, %v1536_v49 }
 0x190   : > { %v1554_v63 = vrot.slane %v1553_v21, 2  ;;  %v1562_v48 = vmax.f32 %v1560_v34, %v1561_v37  ;;  %v1586_v41 = vsel %vm7356_vm0, %v5293_v9, -inf  ;;  %v1511_v55 = vrot.slane %v1510_v60, 1 }
 0x191   : > { %v1546_v8 = vmax.f32 %v1544_v24, %v1545_v62  ;;  %v1571_v53 = vmax.f32 %v1569_v20, %v1570_v26  ;;  %v1579_v19 = vrot.slane %v1578_v42, 4  ;;  %v1587_v39 = vmax.f32 %v1585_v31, %v1586_v41 }
 0x192   : > { %v1520_v3 = vrot.slane %v1519_v40, 1  ;;  %v1555_v35 = vmax.f32 %v1553_v21, %v1554_v63  ;;  %v1563_v17 = vrot.slane %v1562_v48, 2  ;;  %v1529_v22 = vrot.slane %v1528_v47, 1 }
 0x193   : > { %v1572_v58 = vrot.slane %v1571_v53, 2  ;;  %v1580_v33 = vmax.f32 %v1578_v42, %v1579_v19  ;;  %v1588_v12 = vrot.slane %v1587_v39, 4  ;;  %v1538_v54 = vrot.slane %v1537_v14, 1 }
 0x194   : > { %v1547_v44 = vrot.slane %v1546_v8, 1  ;;  %v1556_v59 = vrot.slane %v1555_v35, 1  ;;  %v1564_v49 = vmax.f32 %v1562_v48, %v1563_v17  ;;  %v5332_v34 = vmax.f32 %v5282_v13, %v1493_v7  ;;  %v7946_v17 = vld [vmem:[#allocation14_spill] sm:$0xff] }
 0x195   : > { %v1573_v37 = vmax.f32 %v1571_v53, %v1572_v58  ;;  %v1581_v24 = vrot.slane %v1580_v33, 2  ;;  %v1589_v20 = vmax.f32 %v1587_v39, %v1588_v12  ;;  %v5335_v26 = vmax.f32 %v5299_v46, %v1502_v16  ;;  %v7941_v53 = vld [vmem:[#allocation49_spill] sm:$0xff]  ;;  %v7948_v12 = vld [vmem:[#allocation26_spill] sm:$0xff] }
 0x196   : > { %7925 = vst [vmem:[#allocation5_spill] sm:$0xff] %v5332_v34  ;;  %v5337_v62 = vmax.f32 %v1510_v60, %v1511_v55  ;;  %v5339_v63 = vmax.f32 %v1519_v40, %v1520_v3  ;;  %v1565_v21 = vrot.slane %v1564_v49, 1  ;;  %v5341_v42 = vmax.f32 %v1528_v47, %v1529_v22  ;;  %v7937_v60 = vld [vmem:[#allocation27_spill] sm:$0xff]  ;;  %v7938_v47 = vld [vmem:[#allocation30_spill] sm:$0xff]  ;;  %v7942_v39 = vld [vmem:[#allocation41_spill] sm:$0xff] }
 0x197   : > { %7926 = vst [vmem:[#allocation45_spill] sm:$0xff] %v5335_v26  ;;  %v1574_v31 = vrot.slane %v1573_v37, 1  ;;  %v1582_v41 = vmax.f32 %v1580_v33, %v1581_v24  ;;  %v1590_v48 = vrot.slane %v1589_v20, 2  ;;  %v5343_v19 = vmax.f32 %v1537_v14, %v1538_v54  ;;  %v7939_v14 = vld [vmem:[#allocation33_spill] sm:$0xff]  ;;  %v7943_v55 = vld [vmem:[#allocation60_spill] sm:$0xff]  ;;  %v7952_v24 = vld [vmem:[#allocation31_spill] sm:$0xff] }
 0x198   : > { %7927 = vst [vmem:[#allocation57_spill] sm:$0xff] %v5337_v62  ;;  %7928 = vst [vmem:[#allocation6_spill] sm:$0xff] %v5339_v63  ;;  %v5345_v13 = vmax.f32 %v1546_v8, %v1547_v44  ;;  %v5347_v58 = vmax.f32 %v1555_v35, %v1556_v59  ;;  %v5349_v7 = vmax.f32 %v1564_v49, %v1565_v21  ;;  %v7940_v8 = vld [vmem:[#allocation48_spill] sm:$0xff]  ;;  %v7944_v3 = vld [vmem:[#allocation61_spill] sm:$0xff] }
 0x199   : > { %7929 = vst [vmem:[#allocation63_spill] sm:$0xff] %v5341_v42  ;;  %7930 = vst [vmem:[#allocation64_spill] sm:$0xff] %v5343_v19  ;;  %v5351_v46 = vmax.f32 %v1573_v37, %v1574_v31  ;;  %v1583_v16 = vrot.slane %v1582_v41, 1  ;;  %v1591_v40 = vmax.f32 %v1589_v20, %v1590_v48  ;;  %vm1594_vm1 = vcmp.eq.f32.partialorder %v5102_v29, %v5295_v1  ;;  %v7945_v35 = vld [vmem:[#allocation62_spill] sm:$0xff]  ;;  %v7947_v33 = vld [vmem:[#allocation24_spill] sm:$0xff] }
 0x19a   : > { %7931 = vst [vmem:[#allocation65_spill] sm:$0xff] %v5345_v13  ;;  %7932 = vst [vmem:[#allocation66_spill] sm:$0xff] %v5347_v58  ;;  %vm1595_vm2 = vcmp.eq.f32.partialorder %v5116_v57, %v5297_v52  ;;  %vm1596_vm3 = vcmp.eq.f32.partialorder %v5122_v11, %v5306_v27  ;;  %vm1597_vm4 = vcmp.eq.f32.partialorder %v5134_v50, %v5310_v61  ;;  %v7949_v59 = vld [vmem:[#allocation12_spill] sm:$0xff]  ;;  %v7950_v49 = vld [vmem:[#allocation18_spill] sm:$0xff] }
 0x19b   : > { %7933 = vst [vmem:[#allocation67_spill] sm:$0xff] %v5349_v7  ;;  %7934 = vst [vmem:[#allocation68_spill] sm:$0xff] %v5351_v46  ;;  %vm7395_vm5 = vcmp.eq.f32.partialorder %v5142_v10, %v5332_v34  ;;  %vm7368_vm6 = vcmp.eq.f32.partialorder %v5159_v5, %v5335_v26  ;;  %vm7367_vm7 = vcmp.eq.f32.partialorder %v5170_v2, %v5337_v62  ;;  %v1592_v22 = vrot.slane %v1591_v40, 1  ;;  %v7951_v37 = vld [vmem:[#allocation29_spill] sm:$0xff]  ;;  %v7953_v20 = vld [vmem:[#allocation34_spill] sm:$0xff] }
 0x19c   : > { %v5368_v54 = vmax.f32 %v1582_v41, %v1583_v16  ;;  %vm7372_vm8 = vcmp.eq.f32.partialorder %v5179_v0, %v5339_v63  ;;  %vm7369_vm9 = vcmp.eq.f32.partialorder %v5190_v36, %v5341_v42  ;;  %v7954_v21 = vld [vmem:[#allocation37_spill] sm:$0xff]  ;;  %v7955_v31 = vld [vmem:[#allocation38_spill] sm:$0xff]  ;;  %v7957_v48 = vld [vmem:[#allocation59_spill] sm:$0xff] }
 0x19d   : > { %v5382_v44 = vmax.f32 %v1591_v40, %v1592_v22  ;;  %vm1634_vm14 = vcmp.eq.f32.partialorder %v7954_v21, %v5341_v42  ;;  %vm1635_vm15 = vcmp.eq.f32.partialorder %v7955_v31, %v5343_v19  ;;  %v7956_v41 = vld [vmem:[#allocation58_spill] sm:$0xff]  ;;  %vm1637_vm11 = vcmp.eq.f32.partialorder %v7957_v48, %v5347_v58  ;;  %v7960_v22 = vld [vmem:[#allocation43_spill] sm:$0xff] }
 0x19e   : > { %7935 = vst [vmem:[#allocation69_spill] sm:$0xff] %v5368_v54  ;;  %vm1636_vm0 = vcmp.eq.f32.partialorder %v7956_v41, %v5345_v13  ;;  %v7958_v16 = vld [vmem:[#allocation50_spill] sm:$0xff]  ;;  %vm1640_vm13 = vcmp.eq.f32.partialorder %v7960_v22, %v5368_v54  ;;  %v3915_v21 = vmov 0.0  }
 0x19f   : > { %7936 = vst [vmem:[#allocation70_spill] sm:$0xff] %v5382_v44  ;;  %vm1638_vm10 = vcmp.eq.f32.partialorder %v7958_v16, %v5349_v7  ;;  %v7959_v40 = vld [vmem:[#allocation42_spill] sm:$0xff]  ;;  %v3574_v31 = vsel %vm1594_vm1, 1.0, %v3915_v21  ;;  %v3575_v48 = vsel %vm1595_vm2, 1.0, %v3915_v21  ;;  %v3576_v16 = vsel %vm1596_vm3, 1.0, %v3915_v21 }
 0x1a0   : > { %vm1641_vm12 = vcmp.eq.f32.partialorder %v5293_v9, %v5382_v44  ;;  %v3577_v22 = vsel %vm1597_vm4, 1.0, %v3915_v21  ;;  %v3578_v29 = vsel %vm7395_vm5, 1.0, %v3915_v21  ;;  %v3579_v57 = vsel %vm7368_vm6, 1.0, %v3915_v21  ;;  %1738 = vst [vmem:[%s5485_s22] sm:$0xff] %v3574_v31  ;;  %1739 = vst [vmem:[%s5485_s22 + $0x8] sm:$0xff] %v3575_v48 }
 0x1a1   : > { %v3580_v11 = vsel %vm7367_vm7, 1.0, %v3915_v21  ;;  %1740 = vst [vmem:[%s5485_s22 + $0x10] sm:$0xff] %v3576_v16  ;;  %v3581_v2 = vsel %vm7372_vm8, 1.0, %v3915_v21  ;;  %v3582_v5 = vsel %vm7369_vm9, 1.0, %v3915_v21  ;;  %vm7961_vm7 = vcmp.eq.f32.partialorder %v5199_v15, %v5343_v19  ;;  %1741 = vst [vmem:[%s5485_s22 + $0x18] sm:$0xff] %v3577_v22 }
 0x1a2   : > { %v3583_v31 = vsel %vm7961_vm7, 1.0, %v3915_v21  ;;  %vm7962_vm6 = vcmp.eq.f32.partialorder %v5208_v6, %v5345_v13  ;;  %1742 = vst [vmem:[%s5485_s22 + $0x20] sm:$0xff] %v3578_v29  ;;  %1743 = vst [vmem:[%s5485_s22 + $0x28] sm:$0xff] %v3579_v57  ;;  %vm7963_vm9 = vcmp.eq.f32.partialorder %v5211_v18, %v5347_v58  ;;  %vm7964_vm7 = vcmp.eq.f32.partialorder %v5220_v4, %v5349_v7 }
 0x1a3   : > { %v3584_v48 = vsel %vm7962_vm6, 1.0, %v3915_v21  ;;  %1744 = vst [vmem:[%s5485_s22 + $0x30] sm:$0xff] %v3580_v11  ;;  %v3585_v16 = vsel %vm7963_vm9, 1.0, %v3915_v21  ;;  %v3586_v15 = vsel %vm7964_vm7, 1.0, %v3915_v21  ;;  %vm7965_vm6 = vcmp.eq.f32.partialorder %v5229_v45, %v5351_v46  ;;  %1745 = vst [vmem:[%s5485_s22 + $0x38] sm:$0xff] %v3581_v2 }
 0x1a4   : > { %v3587_v29 = vsel %vm7965_vm6, 1.0, %v3915_v21  ;;  %vm7966_vm8 = vcmp.eq.f32.partialorder %v5270_v28, %v5368_v54  ;;  %1746 = vst [vmem:[%s5485_s22 + $0x40] sm:$0xff] %v3582_v5  ;;  %1747 = vst [vmem:[%s5485_s22 + $0x48] sm:$0xff] %v3583_v31  ;;  %vm7967_vm9 = vcmp.eq.f32.partialorder %v5285_v43, %v5382_v44  ;;  %vm7968_vm7 = vcmp.eq.f32.partialorder %v5105_v23, %v5295_v1 }
 0x1a5   : > { %v3588_v57 = vsel %vm7966_vm8, 1.0, %v3915_v21  ;;  %1748 = vst [vmem:[%s5485_s22 + $0x50] sm:$0xff] %v3584_v48  ;;  %v3589_v11 = vsel %vm7967_vm9, 1.0, %v3915_v21  ;;  %v3590_v22 = vsel %vm7968_vm7, 1.0, %v3915_v21  ;;  %vm7969_vm8 = vcmp.eq.f32.partialorder %v5125_v30, %v5297_v52  ;;  %1749 = vst [vmem:[%s5485_s22 + $0x58] sm:$0xff] %v3585_v16 }
 0x1a6   : > { %v3591_v5 = vsel %vm7969_vm8, 1.0, %v3915_v21  ;;  %vm7970_vm6 = vcmp.eq.f32.partialorder %v5128_v38, %v5306_v27  ;;  %1750 = vst [vmem:[%s5485_s22 + $0x60] sm:$0xff] %v3586_v15  ;;  %1751 = vst [vmem:[%s5485_s22 + $0x68] sm:$0xff] %v3587_v29  ;;  %vm7971_vm9 = vcmp.eq.f32.partialorder %v5145_v32, %v5310_v61  ;;  %vm7972_vm7 = vcmp.eq.f32.partialorder %v5153_v56, %v5332_v34 }
 0x1a7   : > { %v3592_v2 = vsel %vm7970_vm6, 1.0, %v3915_v21  ;;  %1752 = vst [vmem:[%s5485_s22 + $0x70] sm:$0xff] %v3588_v57  ;;  %v3593_v31 = vsel %vm7971_vm9, 1.0, %v3915_v21  ;;  %v3594_v48 = vsel %vm7972_vm7, 1.0, %v3915_v21  ;;  %vm7973_vm8 = vcmp.eq.f32.partialorder %v7937_v60, %v5335_v26  ;;  %1753 = vst [vmem:[%s5485_s22 + $0x78] sm:$0xff] %v3589_v11 }
 0x1a8   : > { %v3595_v15 = vsel %vm7973_vm8, 1.0, %v3915_v21  ;;  %vm7974_vm6 = vcmp.eq.f32.partialorder %v7938_v47, %v5337_v62  ;;  %1754 = vst [vmem:[%s5485_s22 + $0x80] sm:$0xff] %v3590_v22  ;;  %1755 = vst [vmem:[%s5485_s22 + $0x88] sm:$0xff] %v3591_v5  ;;  %vm7975_vm9 = vcmp.eq.f32.partialorder %v7939_v14, %v5339_v63  ;;  %vm7976_vm7 = vcmp.eq.f32.partialorder %v5193_v51, %v5341_v42 }
 0x1a9   : > { %v3596_v16 = vsel %vm7974_vm6, 1.0, %v3915_v21  ;;  %1756 = vst [vmem:[%s5485_s22 + $0x90] sm:$0xff] %v3592_v2  ;;  %v3597_v29 = vsel %vm7975_vm9, 1.0, %v3915_v21  ;;  %v3598_v57 = vsel %vm7976_vm7, 1.0, %v3915_v21  ;;  %vm7977_vm8 = vcmp.eq.f32.partialorder %v5202_v25, %v5343_v19  ;;  %1757 = vst [vmem:[%s5485_s22 + $0x98] sm:$0xff] %v3593_v31 }
 0x1aa   : > { %v3599_v11 = vsel %vm7977_vm8, 1.0, %v3915_v21  ;;  %vm7978_vm6 = vcmp.eq.f32.partialorder %v7940_v8, %v5345_v13  ;;  %1758 = vst [vmem:[%s5485_s22 + $0xa0] sm:$0xff] %v3594_v48  ;;  %1759 = vst [vmem:[%s5485_s22 + $0xa8] sm:$0xff] %v3595_v15  ;;  %vm7979_vm9 = vcmp.eq.f32.partialorder %v7941_v53, %v5347_v58  ;;  %vm7980_vm7 = vcmp.eq.f32.partialorder %v7942_v39, %v5349_v7 }
 0x1ab   : > { %v3600_v22 = vsel %vm7978_vm6, 1.0, %v3915_v21  ;;  %1760 = vst [vmem:[%s5485_s22 + $0xb0] sm:$0xff] %v3596_v16  ;;  %v3601_v5 = vsel %vm7979_vm9, 1.0, %v3915_v21  ;;  %v3602_v2 = vsel %vm7980_vm7, 1.0, %v3915_v21  ;;  %vm7981_vm8 = vcmp.eq.f32.partialorder %v7943_v55, %v5351_v46  ;;  %1761 = vst [vmem:[%s5485_s22 + $0xb8] sm:$0xff] %v3597_v29 }
 0x1ac   : > { %v3603_v31 = vsel %vm7981_vm8, 1.0, %v3915_v21  ;;  %vm7982_vm6 = vcmp.eq.f32.partialorder %v7944_v3, %v5368_v54  ;;  %1762 = vst [vmem:[%s5485_s22 + $0xc0] sm:$0xff] %v3598_v57  ;;  %1763 = vst [vmem:[%s5485_s22 + $0xc8] sm:$0xff] %v3599_v11  ;;  %vm7983_vm9 = vcmp.eq.f32.partialorder %v7945_v35, %v5382_v44  ;;  %vm7984_vm7 = vcmp.eq.f32.partialorder %v7946_v17, %v5295_v1 }
 0x1ad   : > { %v3604_v48 = vsel %vm7982_vm6, 1.0, %v3915_v21  ;;  %1764 = vst [vmem:[%s5485_s22 + $0xd0] sm:$0xff] %v3600_v22  ;;  %v3605_v15 = vsel %vm7983_vm9, 1.0, %v3915_v21  ;;  %v3606_v16 = vsel %vm7984_vm7, 1.0, %v3915_v21  ;;  %vm7985_vm8 = vcmp.eq.f32.partialorder %v7947_v33, %v5297_v52  ;;  %1765 = vst [vmem:[%s5485_s22 + $0xd8] sm:$0xff] %v3601_v5 }
 0x1ae   : > { %v3607_v29 = vsel %vm7985_vm8, 1.0, %v3915_v21  ;;  %vm7986_vm6 = vcmp.eq.f32.partialorder %v7948_v12, %v5306_v27  ;;  %1766 = vst [vmem:[%s5485_s22 + $0xe0] sm:$0xff] %v3602_v2  ;;  %1767 = vst [vmem:[%s5485_s22 + $0xe8] sm:$0xff] %v3603_v31  ;;  %vm7987_vm9 = vcmp.eq.f32.partialorder %v7949_v59, %v5310_v61  ;;  %vm7988_vm7 = vcmp.eq.f32.partialorder %v7950_v49, %v5332_v34 }
 0x1af   : > { %v3608_v57 = vsel %vm7986_vm6, 1.0, %v3915_v21  ;;  %1768 = vst [vmem:[%s5485_s22 + $0xf0] sm:$0xff] %v3604_v48  ;;  %v3609_v11 = vsel %vm7987_vm9, 1.0, %v3915_v21  ;;  %v3610_v22 = vsel %vm7988_vm7, 1.0, %v3915_v21  ;;  %vm7989_vm8 = vcmp.eq.f32.partialorder %v7951_v37, %v5335_v26  ;;  %1769 = vst [vmem:[%s5485_s22 + $0xf8] sm:$0xff] %v3605_v15 }
 0x1b0   : > { %v3611_v5 = vsel %vm7989_vm8, 1.0, %v3915_v21  ;;  %vm7990_vm6 = vcmp.eq.f32.partialorder %v7952_v24, %v5337_v62  ;;  %1770 = vst [vmem:[%s5485_s22 + $0x100] sm:$0x7] %v3606_v16  ;;  %1771 = vst [vmem:[%s5485_s22 + $0x108] sm:$0x7] %v3607_v29  ;;  %vm7991_vm9 = vcmp.eq.f32.partialorder %v7953_v20, %v5339_v63  ;;  %v3614_v37 = vsel %vm1634_vm14, 1.0, %v3915_v21 }
 0x1b1   : > { %v3612_v2 = vsel %vm7990_vm6, 1.0, %v3915_v21  ;;  %1772 = vst [vmem:[%s5485_s22 + $0x110] sm:$0x7] %v3608_v57  ;;  %v3613_v31 = vsel %vm7991_vm9, 1.0, %v3915_v21  ;;  %v3615_v15 = vsel %vm1635_vm15, 1.0, %v3915_v21  ;;  %v3616_v16 = vsel %vm1636_vm0, 1.0, %v3915_v21 }
 0x1b2   : > { %1773 = vst [vmem:[%s5485_s22 + $0x118] sm:$0x7] %v3609_v11  ;;  %1774 = vst [vmem:[%s5485_s22 + $0x120] sm:$0x7] %v3610_v22  ;;  %v3617_v57 = vsel %vm1637_vm11, 1.0, %v3915_v21  ;;  %v3618_v48 = vsel %vm1638_vm10, 1.0, %v3915_v21  ;;  %vm7996_vm7 = vcmp.eq.f32.partialorder %v7959_v40, %v5351_v46  ;;  %vm8006_vm9 = vcmp.eq.f32.partialorder %v5179_v0, %v5339_v63 }
 0x1b3   : > { %1775 = vst [vmem:[%s5485_s22 + $0x128] sm:$0x7] %v3611_v5  ;;  %1776 = vst [vmem:[%s5485_s22 + $0x130] sm:$0x7] %v3612_v2  ;;  %v3619_v11 = vsel %vm7996_vm7, 1.0, %v3915_v21  ;;  %v3620_v5 = vsel %vm1640_vm13, 1.0, %v3915_v21  ;;  %vm8007_vm7 = vcmp.eq.f32.partialorder %v5190_v36, %v5341_v42 }
 0x1b4   : > { %1777 = vst [vmem:[%s5485_s22 + $0x138] sm:$0x7] %v3613_v31  ;;  %1778 = vst [vmem:[%s5485_s22 + $0x140] sm:$0x7] %v3614_v37  ;;  %v3621_v2 = vsel %vm1641_vm12, 1.0, %v3915_v21  ;;  %v7998_v40 = vld [vmem:[#allocation15_spill] sm:$0xff] }
 0x1b5   : > { %1779 = vst [vmem:[%s5485_s22 + $0x148] sm:$0x7] %v3615_v15  ;;  %1780 = vst [vmem:[%s5485_s22 + $0x150] sm:$0x7] %v3616_v16  ;;  %v1793_v29 = vsel %vm1594_vm1, %v7998_v40, 19.0  ;;  %v1794_v37 = vsel %vm1595_vm2, %v7998_v40, 19.0 }
 0x1b6   : > { %1781 = vst [vmem:[%s5485_s22 + $0x158] sm:$0x7] %v3617_v57  ;;  %1782 = vst [vmem:[%s5485_s22 + $0x160] sm:$0x7] %v3618_v48  ;;  %v1795_v15 = vsel %vm1596_vm3, %v7998_v40, 19.0  ;;  %v1796_v21 = vsel %vm1597_vm4, %v7998_v40, 19.0 }
 0x1b7   : > { %1783 = vst [vmem:[%s5485_s22 + $0x168] sm:$0x7] %v3619_v11  ;;  %1784 = vst [vmem:[%s5485_s22 + $0x170] sm:$0x7] %v3620_v5  ;;  %v1797_v48 = vsel %vm7395_vm5, %v7998_v40, 19.0  ;;  %v8002_v16 = vld [vmem:[#allocation23_spill] sm:$0xff]  ;;  %vm8021_vm5 = vcmp.eq.f32.partialorder %v5153_v56, %v5332_v34 }
 0x1b8   : > { %1785 = vst [vmem:[%s5485_s22 + $0x178] sm:$0x7] %v3621_v2  ;;  %vm8003_vm8 = vcmp.eq.f32.partialorder %v8002_v16, %v5335_v26  ;;  %v8004_v11 = vld [vmem:[#allocation28_spill] sm:$0xff]  ;;  %v5735_v2 = vsel %vm8006_vm9, %v7998_v40, 19.0  ;;  %v5741_v10 = vsel %vm8007_vm7, %v7998_v40, 19.0  ;;  %v8008_v16 = vld [vmem:[#allocation46_spill] sm:$0xff]  ;;  %vm8011_vm9 = vcmp.eq.f32.partialorder %v5211_v18, %v5347_v58 }
 0x1b9   : > { %v5723_v57 = vsel %vm8003_vm8, %v7998_v40, 19.0  ;;  %vm8005_vm6 = vcmp.eq.f32.partialorder %v8004_v11, %v5337_v62  ;;  %vm8009_vm8 = vcmp.eq.f32.partialorder %v8008_v16, %v5343_v19  ;;  %v5759_v0 = vsel %vm8011_vm9, %v7998_v40, 19.0 }
 0x1ba   : > { %v5729_v5 = vsel %vm8005_vm6, %v7998_v40, 19.0  ;;  %v5747_v50 = vsel %vm8009_vm8, %v7998_v40, 19.0  ;;  %vm8010_vm6 = vcmp.eq.f32.partialorder %v5208_v6, %v5345_v13  ;;  %vm8012_vm7 = vcmp.eq.f32.partialorder %v5220_v4, %v5349_v7  ;;  %v8016_v4 = vld [vmem:[#allocation16_spill] sm:$0xff] }
 0x1bb   : > { %v5753_v11 = vsel %vm8010_vm6, %v7998_v40, 19.0  ;;  %v5765_v36 = vsel %vm8012_vm7, %v7998_v40, 19.0  ;;  %vm8013_vm8 = vcmp.eq.f32.partialorder %v5229_v45, %v5351_v46  ;;  %vm8014_vm6 = vcmp.eq.f32.partialorder %v5270_v28, %v5368_v54 }
 0x1bc   : > { %v5771_v16 = vsel %vm8013_vm8, %v7998_v40, 19.0  ;;  %v5777_v6 = vsel %vm8014_vm6, %v7998_v40, 19.0  ;;  %vm8015_vm9 = vcmp.eq.f32.partialorder %v5285_v43, %v5382_v44  ;;  %vm8017_vm7 = vcmp.eq.f32.partialorder %v5105_v23, %v5295_v1 }
 0x1bd   : > { %v5783_v18 = vsel %vm8015_vm9, %v7998_v40, 19.0  ;;  %v1809_v31 = vsel %vm8017_vm7, %v8016_v4, 19.0  ;;  %vm8018_vm8 = vcmp.eq.f32.partialorder %v5125_v30, %v5297_v52  ;;  %vm8019_vm6 = vcmp.eq.f32.partialorder %v5128_v38, %v5306_v27 }
 0x1be   : > { %v1810_v45 = vsel %vm8018_vm8, %v8016_v4, 19.0  ;;  %v1811_v28 = vsel %vm8019_vm6, %v8016_v4, 19.0  ;;  %vm8020_vm9 = vcmp.eq.f32.partialorder %v5145_v32, %v5310_v61  ;;  %v1813_v23 = vsel %vm8021_vm5, %v8016_v4, 19.0 }
 0x1bf   : > { %v1812_v40 = vsel %vm8020_vm9, %v8016_v4, 19.0  ;;  %vm8022_vm7 = vcmp.eq.f32.partialorder %v7937_v60, %v5335_v26  ;;  %vm8023_vm8 = vcmp.eq.f32.partialorder %v7938_v47, %v5337_v62  ;;  %vm8024_vm6 = vcmp.eq.f32.partialorder %v7939_v14, %v5339_v63 }
 0x1c0   : > { %v1814_v30 = vsel %vm8022_vm7, %v8016_v4, 19.0  ;;  %v1815_v38 = vsel %vm8023_vm8, %v8016_v4, 19.0  ;;  %v5817_v32 = vsel %vm8024_vm6, %v8016_v4, 19.0  ;;  %vm8025_vm5 = vcmp.eq.f32.partialorder %v5193_v51, %v5341_v42 }
 0x1c1   : > { %v5823_v56 = vsel %vm8025_vm5, %v8016_v4, 19.0  ;;  %vm8026_vm9 = vcmp.eq.f32.partialorder %v5202_v25, %v5343_v19  ;;  %vm8027_vm7 = vcmp.eq.f32.partialorder %v7940_v8, %v5345_v13  ;;  %vm8028_vm8 = vcmp.eq.f32.partialorder %v7941_v53, %v5347_v58 }
 0x1c2   : > { %v5829_v60 = vsel %vm8026_vm9, %v8016_v4, 19.0  ;;  %v5835_v47 = vsel %vm8027_vm7, %v8016_v4, 19.0  ;;  %v5841_v14 = vsel %vm8028_vm8, %v8016_v4, 19.0  ;;  %vm8029_vm6 = vcmp.eq.f32.partialorder %v7942_v39, %v5349_v7  ;;  %v8033_v39 = vld [vmem:[#allocation19_spill] sm:$0xff] }
 0x1c3   : > { %v5847_v51 = vsel %vm8029_vm6, %v8016_v4, 19.0  ;;  %vm8030_vm5 = vcmp.eq.f32.partialorder %v7943_v55, %v5351_v46  ;;  %vm8031_vm9 = vcmp.eq.f32.partialorder %v7944_v3, %v5368_v54  ;;  %vm8032_vm7 = vcmp.eq.f32.partialorder %v7945_v35, %v5382_v44  ;;  %v8039_v35 = vld [vmem:[#allocation29_spill] sm:$0xff] }
 0x1c4   : > { %v5853_v25 = vsel %vm8030_vm5, %v8016_v4, 19.0  ;;  %v5859_v8 = vsel %vm8031_vm9, %v8016_v4, 19.0  ;;  %v5865_v53 = vsel %vm8032_vm7, %v8016_v4, 19.0  ;;  %vm8034_vm8 = vcmp.eq.f32.partialorder %v7946_v17, %v5295_v1 }
 0x1c5   : > { %v1825_v43 = vsel %vm8034_vm8, %v8033_v39, 19.0  ;;  %vm8035_vm6 = vcmp.eq.f32.partialorder %v7947_v33, %v5297_v52  ;;  %vm8036_vm5 = vcmp.eq.f32.partialorder %v7948_v12, %v5306_v27  ;;  %vm8037_vm9 = vcmp.eq.f32.partialorder %v7949_v59, %v5310_v61  ;;  %v8041_v52 = vld [vmem:[#allocation31_spill] sm:$0xff] }
 0x1c6   : > { %v1826_v55 = vsel %vm8035_vm6, %v8033_v39, 19.0  ;;  %v1827_v3 = vsel %vm8036_vm5, %v8033_v39, 19.0  ;;  %v1828_v4 = vsel %vm8037_vm9, %v8033_v39, 19.0  ;;  %vm8038_vm7 = vcmp.eq.f32.partialorder %v7950_v49, %v5332_v34  ;;  %v8048_v34 = vld [vmem:[#allocation42_spill] sm:$0xff] }
 0x1c7   : > { %v1829_v17 = vsel %vm8038_vm7, %v8033_v39, 19.0  ;;  %vm8040_vm8 = vcmp.eq.f32.partialorder %v8039_v35, %v5335_v26  ;;  %vm8042_vm6 = vcmp.eq.f32.partialorder %v8041_v52, %v5337_v62  ;;  %vm8043_vm5 = vcmp.eq.f32.partialorder %v7953_v20, %v5339_v63 }
 0x1c8   : > { %v1830_v33 = vsel %vm8040_vm8, %v8033_v39, 19.0  ;;  %v1831_v12 = vsel %vm8042_vm6, %v8033_v39, 19.0  ;;  %v1832_v59 = vsel %vm8043_vm5, %v8033_v39, 19.0  ;;  %v5903_v49 = vsel %vm1634_vm14, %v8033_v39, 19.0 }
 0x1c9   : > { %v5909_v35 = vsel %vm1635_vm15, %v8033_v39, 19.0  ;;  %v5915_v52 = vsel %vm1636_vm0, %v8033_v39, 19.0  ;;  %v5921_v63 = vsel %vm1637_vm11, %v8033_v39, 19.0  ;;  %v5927_v42 = vsel %vm1638_vm10, %v8033_v39, 19.0 }
 0x1ca   : > { %vm8049_vm9 = vcmp.eq.f32.partialorder %v8048_v34, %v5351_v46  ;;  %v5939_v13 = vsel %vm1640_vm13, %v8033_v39, 19.0  ;;  %v5945_v20 = vsel %vm1641_vm12, %v8033_v39, 19.0  ;;  %v1841_v61 = vmin.f32 %v1793_v29, %v1809_v31 }
 0x1cb   : > { %v5933_v19 = vsel %vm8049_vm9, %v8033_v39, 19.0  ;;  %vm8051_vm7 = vcmask 1042432   ;;  %v1850_v58 = vmin.f32 %v1794_v37, %v1810_v45  ;;  %v1859_v46 = vmin.f32 %v1795_v15, %v1811_v28 }
 0x1cc   : > { %v1842_v7 = vsel %vm8051_vm7, %v1825_v43, inf  ;;  %vm8052_vm8 = vmmov %vm8051_vm7  ;;  %v1868_v26 = vmin.f32 %v1796_v21, %v1812_v40  ;;  %v1877_v22 = vmin.f32 %v1797_v48, %v1813_v23  ;;  %v1886_v29 = vmin.f32 %v5723_v57, %v1814_v30 }
 0x1cd   : > { %v1851_v34 = vsel %vm8052_vm8, %v1826_v55, inf  ;;  %vm8053_vm6 = vmmov %vm8051_vm7  ;;  %v1843_v27 = vmin.f32 %v1841_v61, %v1842_v7  ;;  %v1895_v61 = vmin.f32 %v5729_v5, %v1815_v38 }
 0x1ce   : > { %v1860_v62 = vsel %vm8053_vm6, %v1827_v3, inf  ;;  %v1852_v41 = vmin.f32 %v1850_v58, %v1851_v34  ;;  %vm8054_vm5 = vmmov %vm8053_vm6 }
 0x1cf   : > { %v1869_v54 = vsel %vm8054_vm5, %v1828_v4, inf  ;;  %v1861_v1 = vmin.f32 %v1859_v46, %v1860_v62  ;;  %vm8055_vm9 = vmmov %vm8054_vm5  ;;  %v1844_v31 = vrot.slane %v1843_v27, 4 }
 0x1d0   : > { %v1870_v24 = vmin.f32 %v1868_v26, %v1869_v54  ;;  %v1878_v39 = vsel %vm8055_vm9, %v1829_v17, inf  ;;  %v1853_v43 = vrot.slane %v1852_v41, 4  ;;  %vm8056_vm7 = vmmov %vm8054_vm5 }
 0x1d1   : > { %v1879_v45 = vmin.f32 %v1877_v22, %v1878_v39  ;;  %v1887_v55 = vsel %vm8056_vm7, %v1830_v33, inf  ;;  %v1862_v28 = vrot.slane %v1861_v1, 4  ;;  %v1845_v34 = vmin.f32 %v1843_v27, %v1844_v31  ;;  %vm8057_vm8 = vmmov %vm8054_vm5 }
 0x1d2   : > { %v1871_v37 = vrot.slane %v1870_v24, 4  ;;  %v1888_v3 = vmin.f32 %v1886_v29, %v1887_v55  ;;  %v1854_v58 = vmin.f32 %v1852_v41, %v1853_v43  ;;  %v1896_v23 = vsel %vm8057_vm8, %v1831_v12, inf  ;;  %vm8058_vm6 = vmmov %vm8054_vm5 }
 0x1d3   : > { %v1880_v4 = vrot.slane %v1879_v45, 4  ;;  %v1863_v26 = vmin.f32 %v1861_v1, %v1862_v28  ;;  %v1897_v46 = vmin.f32 %v1895_v61, %v1896_v23  ;;  %v1846_v30 = vrot.slane %v1845_v34, 2  ;;  %vm8065_vm9 = vmmov %vm8054_vm5 }
 0x1d4   : > { %v1872_v62 = vmin.f32 %v1870_v24, %v1871_v37  ;;  %v1889_v7 = vrot.slane %v1888_v3, 4  ;;  %v1855_v54 = vrot.slane %v1854_v58, 2  ;;  %v1904_v39 = vmin.f32 %v5735_v2, %v5817_v32  ;;  %vm8066_vm7 = vmmov %vm8054_vm5 }
 0x1d5   : > { %v1881_v17 = vmin.f32 %v1879_v45, %v1880_v4  ;;  %v1864_v33 = vrot.slane %v1863_v26, 2  ;;  %v1898_v15 = vrot.slane %v1897_v46, 4  ;;  %v1847_v38 = vmin.f32 %v1845_v34, %v1846_v30  ;;  %vm8068_vm8 = vmmov %vm8054_vm5 }
 0x1d6   : > { %v1873_v40 = vrot.slane %v1872_v62, 2  ;;  %v1890_v22 = vmin.f32 %v1888_v3, %v1889_v7  ;;  %v1856_v27 = vmin.f32 %v1854_v58, %v1855_v54  ;;  %v1905_v21 = vsel %vm8058_vm6, %v1832_v59, inf  ;;  %vm8069_vm6 = vmmov %vm8054_vm5 }
 0x1d7   : > { %v1882_v41 = vrot.slane %v1881_v17, 2  ;;  %v1865_v12 = vmin.f32 %v1863_v26, %v1864_v33  ;;  %v1899_v48 = vmin.f32 %v1897_v46, %v1898_v15  ;;  %v1848_v57 = vrot.slane %v1847_v38, 1 }
 0x1d8   : > { %v1874_v1 = vmin.f32 %v1872_v62, %v1873_v40  ;;  %v1891_v24 = vrot.slane %v1890_v22, 2  ;;  %v1857_v5 = vrot.slane %v1856_v27, 1  ;;  %v1906_v31 = vmin.f32 %v1904_v39, %v1905_v21 }
 0x1d9   : > { %v1883_v29 = vmin.f32 %v1881_v17, %v1882_v41  ;;  %v1866_v43 = vrot.slane %v1865_v12, 1  ;;  %v1900_v2 = vrot.slane %v1899_v48, 2  ;;  %v5959_v55 = vmin.f32 %v1847_v38, %v1848_v57 }
 0x1da   : > { %v1875_v45 = vrot.slane %v1874_v1, 1  ;;  %v1892_v32 = vmin.f32 %v1890_v22, %v1891_v24  ;;  %v5961_v28 = vmin.f32 %v1856_v27, %v1857_v5  ;;  %v1907_v3 = vrot.slane %v1906_v31, 4 }
 0x1db   : > { %8059 = vst [vmem:[#allocation71_spill] sm:$0xff] %v5959_v55  ;;  %v1884_v37 = vrot.slane %v1883_v29, 1  ;;  %v5963_v61 = vmin.f32 %v1865_v12, %v1866_v43  ;;  %v1901_v58 = vmin.f32 %v1899_v48, %v1900_v2  ;;  %v1913_v26 = vmin.f32 %v5741_v10, %v5823_v56 }
 0x1dc   : > { %8060 = vst [vmem:[#allocation72_spill] sm:$0xff] %v5961_v28  ;;  %v5965_v59 = vmin.f32 %v1874_v1, %v1875_v45  ;;  %v1893_v34 = vrot.slane %v1892_v32, 1  ;;  %v1908_v23 = vmin.f32 %v1906_v31, %v1907_v3  ;;  %v1914_v62 = vsel %vm8054_vm5, %v5903_v49, inf }
 0x1dd   : > { %8061 = vst [vmem:[#allocation73_spill] sm:$0xff] %v5963_v61  ;;  %v5967_v4 = vmin.f32 %v1883_v29, %v1884_v37  ;;  %v1902_v46 = vrot.slane %v1901_v58, 1  ;;  %v1922_v30 = vmin.f32 %v5747_v50, %v5829_v60  ;;  %v1923_v54 = vsel %vm8065_vm9, %v5909_v35, inf  ;;  %vm8071_vm9 = vmmov %vm8054_vm5 }
 0x1de   : > { %8062 = vst [vmem:[#allocation74_spill] sm:$0xff] %v5965_v59  ;;  %v5973_v7 = vmin.f32 %v1892_v32, %v1893_v34  ;;  %v1909_v17 = vrot.slane %v1908_v23, 2  ;;  %v1915_v39 = vmin.f32 %v1913_v26, %v1914_v62  ;;  %v1931_v33 = vmin.f32 %v5753_v11, %v5835_v47 }
 0x1df   : > { %8063 = vst [vmem:[#allocation75_spill] sm:$0xff] %v5967_v4  ;;  %v1932_v10 = vsel %vm8066_vm7, %v5915_v52, inf  ;;  %v5983_v56 = vmin.f32 %v1901_v58, %v1902_v46  ;;  %v1924_v49 = vmin.f32 %v1922_v30, %v1923_v54  ;;  %v1940_v40 = vmin.f32 %v5759_v0, %v5841_v14  ;;  %vm8072_vm7 = vmmov %vm8054_vm5 }
 0x1e0   : > { %8064 = vst [vmem:[#allocation76_spill] sm:$0xff] %v5973_v7  ;;  %v1941_v50 = vsel %vm8068_vm8, %v5921_v63, inf  ;;  %v1910_v60 = vmin.f32 %v1908_v23, %v1909_v17  ;;  %v1916_v22 = vrot.slane %v1915_v39, 4  ;;  %v1933_v35 = vmin.f32 %v1931_v33, %v1932_v10 }
 0x1e1   : > { %8067 = vst [vmem:[#allocation77_spill] sm:$0xff] %v5983_v56  ;;  %v1949_v15 = vmin.f32 %v5765_v36, %v5847_v51  ;;  %v1925_v38 = vrot.slane %v1924_v49, 4  ;;  %v1942_v47 = vmin.f32 %v1940_v40, %v1941_v50  ;;  %v1950_v52 = vsel %vm8069_vm6, %v5927_v42, inf }
 0x1e2   : > { %v1958_v11 = vmin.f32 %v5771_v16, %v5853_v25  ;;  %v1911_v27 = vrot.slane %v1910_v60, 1  ;;  %v1917_v41 = vmin.f32 %v1915_v39, %v1916_v22  ;;  %v1934_v0 = vrot.slane %v1933_v35, 4 }
 0x1e3   : > { %v1951_v14 = vmin.f32 %v1949_v15, %v1950_v52  ;;  %v1926_v21 = vmin.f32 %v1924_v49, %v1925_v38  ;;  %v1943_v63 = vrot.slane %v1942_v47, 4  ;;  %v1959_v12 = vsel %vm8054_vm5, %v5933_v19, inf }
 0x1e4   : > { %v1967_v36 = vmin.f32 %v5777_v6, %v5859_v8  ;;  %v5999_v51 = vmin.f32 %v1910_v60, %v1911_v27  ;;  %v1918_v1 = vrot.slane %v1917_v41, 2  ;;  %v1935_v24 = vmin.f32 %v1933_v35, %v1934_v0  ;;  %v8078_v27 = vld [vmem:[#allocation3_spill] sm:$0xff] }
 0x1e5   : > { %v1952_v42 = vrot.slane %v1951_v14, 4  ;;  %v1927_v48 = vrot.slane %v1926_v21, 2  ;;  %v1944_v57 = vmin.f32 %v1942_v47, %v1943_v63  ;;  %v1960_v25 = vmin.f32 %v1958_v11, %v1959_v12  ;;  %v2109_v47 = vpop.permute.xlu0 %2108 }
 0x1e6   : > { %8070 = vst [vmem:[#allocation78_spill] sm:$0xff] %v5999_v51  ;;  %v1968_v16 = vsel %vm8071_vm9, %v5939_v13, inf  ;;  %v1919_v5 = vmin.f32 %v1917_v41, %v1918_v1  ;;  %v1936_v29 = vrot.slane %v1935_v24, 2  ;;  %v1976_v6 = vmin.f32 %v5783_v18, %v5865_v53  ;;  %v8079_v41 = vld [vmem:[#allocation7_spill] sm:$0xff]  ;;  %v8083_v1 = vld [vmem:[#allocation53_spill] sm:$0xff] }
 0x1e7   : > { %v1953_v31 = vmin.f32 %v1951_v14, %v1952_v42  ;;  %v1969_v43 = vmin.f32 %v1967_v36, %v1968_v16  ;;  %v1928_v45 = vmin.f32 %v1926_v21, %v1927_v48  ;;  %v1945_v19 = vrot.slane %v1944_v57, 2  ;;  %v8085_v48 = vld [vmem:[#allocation4_spill] sm:$0xff]  ;;  %v8174_v36 = vld [vmem:[#allocation34_spill] sm:$0xff] }
 0x1e8   : > { %v1961_v32 = vrot.slane %v1960_v25, 4  ;;  %v1920_v8 = vrot.slane %v1919_v5, 1  ;;  %v1937_v2 = vmin.f32 %v1935_v24, %v1936_v29  ;;  %v1977_v13 = vsel %vm8072_vm7, %v5945_v20, inf  ;;  %v8166_v42 = vld [vmem:[#allocation12_spill] sm:$0xff] }
 0x1e9   : > { %v1954_v37 = vrot.slane %v1953_v31, 2  ;;  %v1970_v3 = vrot.slane %v1969_v43, 4  ;;  %v1929_v34 = vrot.slane %v1928_v45, 1  ;;  %v1946_v58 = vmin.f32 %v1944_v57, %v1945_v19 }
 0x1ea   : > { %v1962_v23 = vmin.f32 %v1960_v25, %v1961_v32  ;;  %v6007_v26 = vmin.f32 %v1919_v5, %v1920_v8  ;;  %v1938_v62 = vrot.slane %v1937_v2, 1  ;;  %v1978_v18 = vmin.f32 %v1976_v6, %v1977_v13  ;;  %v8091_v13 = vld [vmem:[#allocation54_spill] sm:$0xff] }
 0x1eb   : > { %v1955_v46 = vmin.f32 %v1953_v31, %v1954_v37  ;;  %v1971_v30 = vmin.f32 %v1969_v43, %v1970_v3  ;;  %v6009_v54 = vmin.f32 %v1928_v45, %v1929_v34  ;;  %v1947_v17 = vrot.slane %v1946_v58, 1  ;;  %v8089_v34 = vld [vmem:[#allocation44_spill] sm:$0xff]  ;;  %v8164_v3 = vld [vmem:[#allocation26_spill] sm:$0xff] }
 0x1ec   : > { %8073 = vst [vmem:[#allocation79_spill] sm:$0xff] %v6007_v26  ;;  %v1963_v39 = vrot.slane %v1962_v23, 2  ;;  %v6011_v53 = vmin.f32 %v1937_v2, %v1938_v62  ;;  %v2001_v49 = vcombine.low %v5959_v55, %v5961_v28  ;;  %v1979_v50 = vrot.slane %v1978_v18, 4  ;;  %v8134_v28 = vld [vmem:[#allocation9_spill] sm:$0xff] }
 0x1ed   : > { %8074 = vst [vmem:[#allocation80_spill] sm:$0xff] %v6009_v54  ;;  %v1956_v33 = vrot.slane %v1955_v46, 1  ;;  %v1972_v10 = vrot.slane %v1971_v30, 2  ;;  %v6015_v40 = vmin.f32 %v1946_v58, %v1947_v17  ;;  %v2002_v60 = vcombine.low %v5963_v61, %v5965_v59  ;;  %v8132_v59 = vld [vmem:[#allocation22_spill] sm:$0xff] }
 0x1ee   : > { %8075 = vst [vmem:[#allocation81_spill] sm:$0xff] %v6011_v53  ;;  %v1964_v20 = vmin.f32 %v1962_v23, %v1963_v39  ;;  %v2003_v15 = vcombine.low %v5967_v4, %v5973_v7  ;;  %v2004_v38 = vcombine.low %v5983_v56, %v5999_v51  ;;  %v1980_v11 = vmin.f32 %v1978_v18, %v1979_v50  ;;  %v8096_v50 = vld [vmem:[#allocation45_spill] sm:$0xff]  ;;  %v8126_v51 = vld [vmem:[#allocation52_spill] sm:$0xff]  ;;  %v8128_v7 = vld [vmem:[#allocation11_spill] sm:$0xff] }
 0x1ef   : > { %8076 = vst [vmem:[#allocation82_spill] sm:$0xff] %v6015_v40  ;;  %v6019_v22 = vmin.f32 %v1955_v46, %v1956_v33  ;;  %v1973_v35 = vmin.f32 %v1971_v30, %v1972_v10  ;;  %v8080_v0 = vunpack.c.0.s8 %v8079_v41  ;;  %v2050_v21 = vcombine.low %v6007_v26, %v6009_v54  ;;  %v8092_v46 = vld [vmem:[#allocation8_spill] sm:$0xff]  ;;  %v8093_v30 = vld [vmem:[#allocation5_spill] sm:$0xff] }
 0x1f0   : > { %v1965_v52 = vrot.slane %v1964_v20, 1  ;;  %v2051_v12 = vcombine.low %v6011_v53, %v6015_v40  ;;  %v6037_v24 = vsel %vm1594_vm1, %v2109_v47, 255.0  ;;  %v6042_v57 = vsel %vm1595_vm2, %v2109_v47, 255.0  ;;  %v8123_v53 = vld [vmem:[#allocation51_spill] sm:$0xff]  ;;  %v8124_v54 = vld [vmem:[#allocation69_spill] sm:$0xff] }
 0x1f1   : > { %8077 = vst [vmem:[#allocation83_spill] sm:$0xff] %v6019_v22  ;;  %v6028_v14 = vsub.s32 %v8080_v0, %v8078_v27  ;;  %v1974_v63 = vrot.slane %v1973_v35, 1  ;;  %v1981_v16 = vrot.slane %v1980_v11, 2  ;;  %v6059_v58 = vsel %vm1596_vm3, %v2109_v47, 255.0 }
 0x1f2   : > { %v6044_v25 = vmin.f32 %v1964_v20, %v1965_v52  ;;  %v6064_v62 = vsel %vm1597_vm4, %v2109_v47, 255.0  ;;  %vm8094_vm1 = vcmp.eq.f32.partialorder %v8092_v46, %v8093_v30  ;;  %v8095_v20 = vld [vmem:[#allocation23_spill] sm:$0xff]  ;;  %v8101_v52 = vld [vmem:[#allocation32_spill] sm:$0xff] }
 0x1f3   : > { %8081 = vst [vmem:[#allocation3_spill] sm:$0xff] %v6028_v14  ;;  %v2011_v5 = vrot.slane %v2001_v49, %v6028_v14  ;;  %v2018_v29 = vrot.slane %v2002_v60, %v6028_v14  ;;  %v6048_v31 = vmin.f32 %v1973_v35, %v1974_v63  ;;  %v2025_v43 = vrot.slane %v2003_v15, %v6028_v14  ;;  %v8098_v35 = vld [vmem:[#allocation28_spill] sm:$0xff]  ;;  %v8099_v15 = vld [vmem:[#allocation57_spill] sm:$0xff]  ;;  %v8106_v63 = vld [vmem:[#allocation63_spill] sm:$0xff] }
 0x1f4   : > { %8086 = vst [vmem:[#allocation7_spill] sm:$0xff] %v6044_v25  ;;  %v2032_v45 = vrot.slane %v2004_v38, %v6028_v14  ;;  %v2060_v19 = vrot.slane %v2050_v21, %v6028_v14  ;;  %v1982_v32 = vmin.f32 %v1980_v11, %v1981_v16  ;;  %v2052_v8 = vcombine.low %v6019_v22, %v6044_v25  ;;  %v8102_v11 = vld [vmem:[#allocation6_spill] sm:$0xff]  ;;  %v8105_v21 = vld [vmem:[#allocation35_spill] sm:$0xff]  ;;  %v2114_v25 = vpop.permute.xlu1 %2113  ;;  %v8162_v46 = vld [vmem:[#allocation24_spill] sm:$0xff] }
 0x1f5   : > { %8087 = vst [vmem:[#allocation84_spill] sm:$0xff] %v6048_v31  ;;  %v2033_v6 = vcombine.low %v2011_v5, %v2018_v29  ;;  %v2067_v2 = vrot.slane %v2051_v12, %v6028_v14  ;;  %v6069_v17 = vsel %vm8094_vm1, %v2109_v47, 255.0  ;;  %vm8097_vm2 = vcmp.eq.f32.partialorder %v8095_v20, %v8096_v50  ;;  %v8108_v16 = vld [vmem:[#allocation46_spill] sm:$0xff]  ;;  %v8109_v5 = vld [vmem:[#allocation64_spill] sm:$0xff] }
 0x1f6   : > { %v2034_v37 = vcombine.low %v2025_v43, %v2032_v45  ;;  %v1983_v39 = vrot.slane %v1982_v32, 1  ;;  %v2074_v33 = vrot.slane %v2052_v8, %v6028_v14  ;;  %v6077_v60 = vsel %vm8097_vm2, %v2109_v47, 255.0  ;;  %v8111_v45 = vld [vmem:[#allocation47_spill] sm:$0xff]  ;;  %v8115_v8 = vld [vmem:[#allocation66_spill] sm:$0xff] }
 0x1f7   : > { %v2041_v18 = vrot.slane %v2033_v6, %v6028_v14  ;;  %v2082_v10 = vcombine.low %v2060_v19, %v2067_v2  ;;  %vm8100_vm3 = vcmp.eq.f32.partialorder %v8098_v35, %v8099_v15  ;;  %vm8103_vm4 = vcmp.eq.f32.partialorder %v8101_v52, %v8102_v11  ;;  %v8112_v19 = vld [vmem:[#allocation65_spill] sm:$0xff] }
 0x1f8   : > { %v2048_v49 = vrot.slane %v2034_v37, %v6028_v14  ;;  %v6082_v38 = vsel %vm8100_vm3, %v2109_v47, 255.0  ;;  %v6087_v27 = vsel %vm8103_vm4, %v2109_v47, 255.0  ;;  %v6095_v41 = vmin.f32 %v1982_v32, %v1983_v39  ;;  %v8114_v32 = vld [vmem:[#allocation56_spill] sm:$0xff]  ;;  %v8117_v37 = vld [vmem:[#allocation39_spill] sm:$0xff] }
 0x1f9   : > { %v2090_v0 = vrot.slane %v2082_v10, %v6028_v14  ;;  %vm8107_vm8 = vcmp.eq.f32.partialorder %v8105_v21, %v8106_v63  ;;  %vm8110_vm6 = vcmp.eq.f32.partialorder %v8108_v16, %v8109_v5  ;;  %vm8113_vm5 = vcmp.eq.f32.partialorder %v8111_v45, %v8112_v19  ;;  %v8118_v39 = vld [vmem:[#allocation67_spill] sm:$0xff]  ;;  %v2119_v45 = vpop.permute.xlu0 %2118 }
 0x1fa   : > { %8104 = vst [vmem:[#allocation85_spill] sm:$0xff] %v6095_v41  ;;  %v6101_v12 = vsel %vm8107_vm8, %v2109_v47, 255.0  ;;  %v6106_v29 = vsel %vm8110_vm6, %v2109_v47, 255.0  ;;  %v2049_v43 = vcombine.low %v2041_v18, %v2048_v49  ;;  %v6111_v6 = vsel %vm8113_vm5, %v2109_v47, 255.0  ;;  %v8120_v18 = vld [vmem:[#allocation40_spill] sm:$0xff] }
 0x1fb   : > { %vm8116_vm9 = vcmp.eq.f32.partialorder %v8114_v32, %v8115_v8  ;;  %vm8119_vm7 = vcmp.eq.f32.partialorder %v8117_v37, %v8118_v39  ;;  %v2053_v22 = vcombine.low %v6048_v31, %v6095_v41  ;;  %v8121_v49 = vld [vmem:[#allocation68_spill] sm:$0xff]  ;;  %vm8125_vm2 = vcmp.eq.f32.partialorder %v8123_v53, %v8124_v54  ;;  %v8130_v31 = vld [vmem:[#allocation21_spill] sm:$0xff] }
 0x1fc   : > { %v6116_v2 = vsel %vm8116_vm9, %v2109_v47, 255.0  ;;  %v6121_v10 = vsel %vm8119_vm7, %v2109_v47, 255.0  ;;  %vm8122_vm1 = vcmp.eq.f32.partialorder %v8120_v18, %v8121_v49  ;;  %v6133_v26 = vsel %vm8125_vm2, %v2109_v47, 255.0  ;;  %2101 = vst [vmem:[%s6093_s25] sm:$0xff] %v2049_v43 }
 0x1fd   : > { %v6128_v40 = vsel %vm8122_vm1, %v2109_v47, 255.0  ;;  %vm8127_vm3 = vcmp.eq.f32.partialorder %v8126_v51, %v5382_v44  ;;  %vm8129_vm4 = vcmp.eq.f32.partialorder %v8128_v7, %v8083_v1  ;;  %vm8131_vm8 = vcmp.eq.f32.partialorder %v8130_v31, %v8085_v48  ;;  %v8136_v51 = vld [vmem:[#allocation13_spill] sm:$0xff]  ;;  %v8138_v7 = vld [vmem:[#allocation27_spill] sm:$0xff]  ;;  %v8140_v31 = vld [vmem:[#allocation30_spill] sm:$0xff] }
 0x1fe   : > { %v6138_v56 = vsel %vm8127_vm3, %v2109_v47, 255.0  ;;  %v2137_v41 = vsel %vm8129_vm4, %v2114_v25, 255.0  ;;  %v2138_v4 = vsel %vm8131_vm8, %v2114_v25, 255.0  ;;  %vm8133_vm6 = vcmp.eq.f32.partialorder %v8132_v59, %v8089_v34  ;;  %v8142_v59 = vld [vmem:[#allocation33_spill] sm:$0xff] }
 0x1ff   : > { %v2139_v61 = vsel %vm8133_vm6, %v2114_v25, 255.0  ;;  %vm8135_vm5 = vcmp.eq.f32.partialorder %v8134_v28, %v8091_v13  ;;  %v2081_v47 = vrot.slane %v2053_v22, %v6028_v14  ;;  %vm8137_vm9 = vcmp.eq.f32.partialorder %v8136_v51, %v8093_v30  ;;  %v8144_v28 = vld [vmem:[#allocation36_spill] sm:$0xff]  ;;  %v8146_v51 = vld [vmem:[#allocation55_spill] sm:$0xff] }
 0x200   : > { %v2140_v55 = vsel %vm8135_vm5, %v2114_v25, 255.0  ;;  %v2141_v43 = vsel %vm8137_vm9, %v2114_v25, 255.0  ;;  %vm8139_vm7 = vcmp.eq.f32.partialorder %v8138_v7, %v8096_v50  ;;  %vm8141_vm1 = vcmp.eq.f32.partialorder %v8140_v31, %v8099_v15  ;;  %v8148_v7 = vld [vmem:[#allocation48_spill] sm:$0xff] }
 0x201   : > { %v2142_v53 = vsel %vm8139_vm7, %v2114_v25, 255.0  ;;  %v2143_v18 = vsel %vm8141_vm1, %v2114_v25, 255.0  ;;  %vm8143_vm2 = vcmp.eq.f32.partialorder %v8142_v59, %v8102_v11  ;;  %vm8145_vm3 = vcmp.eq.f32.partialorder %v8144_v28, %v8106_v63  ;;  %v8150_v59 = vld [vmem:[#allocation49_spill] sm:$0xff] }
 0x202   : > { %v6166_v37 = vsel %vm8143_vm2, %v2114_v25, 255.0  ;;  %v6171_v22 = vsel %vm8145_vm3, %v2114_v25, 255.0  ;;  %vm8147_vm4 = vcmp.eq.f32.partialorder %v8146_v51, %v8109_v5  ;;  %vm8149_vm8 = vcmp.eq.f32.partialorder %v8148_v7, %v8112_v19  ;;  %v8152_v28 = vld [vmem:[#allocation41_spill] sm:$0xff]  ;;  %v8154_v51 = vld [vmem:[#allocation60_spill] sm:$0xff] }
 0x203   : > { %v6176_v32 = vsel %vm8147_vm4, %v2114_v25, 255.0  ;;  %v6181_v31 = vsel %vm8149_vm8, %v2114_v25, 255.0  ;;  %v2083_v16 = vcombine.low %v2074_v33, %v2081_v47  ;;  %vm8151_vm6 = vcmp.eq.f32.partialorder %v8150_v59, %v8115_v8  ;;  %v8156_v7 = vld [vmem:[#allocation61_spill] sm:$0xff]  ;;  %v8158_v33 = vld [vmem:[#allocation62_spill] sm:$0xff] }
 0x204   : > { %v6186_v21 = vsel %vm8151_vm6, %v2114_v25, 255.0  ;;  %vm8153_vm5 = vcmp.eq.f32.partialorder %v8152_v28, %v8118_v39  ;;  %vm8155_vm9 = vcmp.eq.f32.partialorder %v8154_v51, %v8121_v49  ;;  %vm8157_vm7 = vcmp.eq.f32.partialorder %v8156_v7, %v8124_v54  ;;  %v8160_v59 = vld [vmem:[#allocation14_spill] sm:$0xff] }
 0x205   : > { %v6191_v52 = vsel %vm8153_vm5, %v2114_v25, 255.0  ;;  %v6196_v35 = vsel %vm8155_vm9, %v2114_v25, 255.0  ;;  %v6201_v20 = vsel %vm8157_vm7, %v2114_v25, 255.0  ;;  %vm8159_vm1 = vcmp.eq.f32.partialorder %v8158_v33, %v5382_v44  ;;  %v8168_v33 = vld [vmem:[#allocation18_spill] sm:$0xff] }
 0x206   : > { %v6206_v47 = vsel %vm8159_vm1, %v2114_v25, 255.0  ;;  %vm8161_vm2 = vcmp.eq.f32.partialorder %v8160_v59, %v8083_v1  ;;  %vm8163_vm3 = vcmp.eq.f32.partialorder %v8162_v46, %v8085_v48  ;;  %v2097_v23 = vrot.slane %v2083_v16, %v6028_v14  ;;  %v8170_v59 = vld [vmem:[#allocation29_spill] sm:$0xff]  ;;  %v8172_v46 = vld [vmem:[#allocation31_spill] sm:$0xff] }
 0x207   : > { %v2153_v28 = vsel %vm8161_vm2, %v2119_v45, 255.0  ;;  %v2154_v51 = vsel %vm8163_vm3, %v2119_v45, 255.0  ;;  %vm8165_vm4 = vcmp.eq.f32.partialorder %v8164_v3, %v8089_v34  ;;  %vm8167_vm8 = vcmp.eq.f32.partialorder %v8166_v42, %v8091_v13  ;;  %v8243_v3 = vld [vmem:[#allocation43_spill] sm:$0xff] }
 0x208   : > { %v2155_v7 = vsel %vm8165_vm4, %v2119_v45, 255.0  ;;  %v2156_v25 = vsel %vm8167_vm8, %v2119_v45, 255.0  ;;  %vm8169_vm6 = vcmp.eq.f32.partialorder %v8168_v33, %v8093_v30  ;;  %vm8171_vm5 = vcmp.eq.f32.partialorder %v8170_v59, %v8096_v50  ;;  %v8177_v30 = vld [vmem:[#allocation38_spill] sm:$0xff] }
 0x209   : > { %v2157_v1 = vsel %vm8169_vm6, %v2119_v45, 255.0  ;;  %v2158_v48 = vsel %vm8171_vm5, %v2119_v45, 255.0  ;;  %vm8173_vm9 = vcmp.eq.f32.partialorder %v8172_v46, %v8099_v15  ;;  %vm8175_vm7 = vcmp.eq.f32.partialorder %v8174_v36, %v8102_v11 }
 0x20a   : > { %v2159_v16 = vsel %vm8173_vm9, %v2119_v45, 255.0  ;;  %v2160_v34 = vsel %vm8175_vm7, %v2119_v45, 255.0  ;;  %v6236_v13 = vsel %vm1634_vm14, %v2119_v45, 255.0  ;;  %v2098_v42 = vcombine.low %v2090_v0, %v2097_v23  ;;  %v8181_v23 = vld [vmem:[#allocation42_spill] sm:$0xff] }
 0x20b   : > { %v6241_v33 = vsel %vm1635_vm15, %v2119_v45, 255.0  ;;  %v6246_v15 = vsel %vm1636_vm0, %v2119_v45, 255.0  ;;  %v6251_v11 = vsel %vm1637_vm11, %v2119_v45, 255.0  ;;  %v6256_v63 = vsel %vm1638_vm10, %v2119_v45, 255.0 }
 0x20c   : > { %vm8182_vm14 = vcmp.eq.f32.partialorder %v8181_v23, %v8121_v49  ;;  %v6266_v19 = vsel %vm1640_vm13, %v2119_v45, 255.0  ;;  %v6271_v8 = vsel %vm1641_vm12, %v2119_v45, 255.0  ;;  %2102 = vst [vmem:[%s6093_s25 + $0x8] sm:$0xff] %v2098_v42  ;;  %v2169_v39 = vmin.f32 %v6037_v24, %v2137_v41 }
 0x20d   : > { %v6261_v0 = vsel %vm8182_vm14, %v2119_v45, 255.0  ;;  %vm8184_vm0 = vcmask 1042432   ;;  %v2178_v46 = vmin.f32 %v6042_v57, %v2138_v4  ;;  %v2187_v23 = vmin.f32 %v6059_v58, %v2139_v61 }
 0x20e   : > { %v2170_v36 = vsel %vm8184_vm0, %v2153_v28, inf  ;;  %vm8185_vm10 = vmmov %vm8184_vm0  ;;  %v2196_v5 = vmin.f32 %v6064_v62, %v2140_v55  ;;  %v2205_v42 = vmin.f32 %v6069_v17, %v2141_v43  ;;  %v2214_v4 = vmin.f32 %v6077_v60, %v2142_v53 }
 0x20f   : > { %v2179_v49 = vsel %vm8185_vm10, %v2154_v51, inf  ;;  %vm8186_vm11 = vmmov %vm8184_vm0  ;;  %v2171_v44 = vmin.f32 %v2169_v39, %v2170_v36  ;;  %v2232_v53 = vmin.f32 %v6087_v27, %v6166_v37 }
 0x210   : > { %v2188_v54 = vsel %vm8186_vm11, %v2155_v7, inf  ;;  %vm8187_vm13 = vmmov %vm8184_vm0  ;;  %v2180_v45 = vmin.f32 %v2178_v46, %v2179_v49  ;;  %v2223_v7 = vmin.f32 %v6082_v38, %v2143_v18 }
 0x211   : > { %v2197_v50 = vsel %vm8187_vm13, %v2156_v25, inf  ;;  %vm8188_vm12 = vmmov %vm8184_vm0  ;;  %v2189_v41 = vmin.f32 %v2187_v23, %v2188_v54  ;;  %v2172_v57 = vrot.slane %v2171_v44, 4 }
 0x212   : > { %v2206_v24 = vsel %vm8188_vm12, %v2157_v1, inf  ;;  %v2198_v28 = vmin.f32 %v2196_v5, %v2197_v50  ;;  %vm8189_vm15 = vmmov %vm8184_vm0  ;;  %v2181_v61 = vrot.slane %v2180_v45, 4 }
 0x213   : > { %v2215_v51 = vsel %vm8189_vm15, %v2158_v48, inf  ;;  %v2207_v58 = vmin.f32 %v2205_v42, %v2206_v24  ;;  %v2190_v55 = vrot.slane %v2189_v41, 4  ;;  %vm8190_vm1 = vmmov %vm8184_vm0  ;;  %v2173_v46 = vmin.f32 %v2171_v44, %v2172_v57 }
 0x214   : > { %v2199_v62 = vrot.slane %v2198_v28, 4  ;;  %v2216_v25 = vmin.f32 %v2214_v4, %v2215_v51  ;;  %v2224_v36 = vsel %vm8190_vm1, %v2159_v16, inf  ;;  %v2182_v17 = vmin.f32 %v2180_v45, %v2181_v61  ;;  %vm8191_vm2 = vmmov %vm8184_vm0 }
 0x215   : > { %v2208_v39 = vrot.slane %v2207_v58, 4  ;;  %v2225_v1 = vmin.f32 %v2223_v7, %v2224_v36  ;;  %v2191_v54 = vmin.f32 %v2189_v41, %v2190_v55  ;;  %v2174_v48 = vrot.slane %v2173_v46, 2  ;;  %vm8192_vm3 = vmmov %vm8184_vm0 }
 0x216   : > { %v2200_v50 = vmin.f32 %v2198_v28, %v2199_v62  ;;  %v2217_v5 = vrot.slane %v2216_v25, 4  ;;  %v2183_v60 = vrot.slane %v2182_v17, 2  ;;  %v2233_v42 = vsel %vm8191_vm2, %v2160_v34, inf  ;;  %vm8193_vm4 = vmmov %vm8184_vm0 }
 0x217   : > { %v2209_v49 = vmin.f32 %v2207_v58, %v2208_v39  ;;  %v2226_v43 = vrot.slane %v2225_v1, 4  ;;  %v2192_v38 = vrot.slane %v2191_v54, 2  ;;  %v2175_v16 = vmin.f32 %v2173_v46, %v2174_v48  ;;  %vm8194_vm8 = vmmov %vm8184_vm0 }
 0x218   : > { %v2201_v18 = vrot.slane %v2200_v50, 2  ;;  %v2218_v23 = vmin.f32 %v2216_v25, %v2217_v5  ;;  %v2184_v44 = vmin.f32 %v2182_v17, %v2183_v60  ;;  %v2234_v51 = vmin.f32 %v2232_v53, %v2233_v42  ;;  %vm8195_vm6 = vmmov %vm8184_vm0 }
 0x219   : > { %v2210_v45 = vrot.slane %v2209_v49, 2  ;;  %v2227_v24 = vmin.f32 %v2225_v1, %v2226_v43  ;;  %v2193_v4 = vmin.f32 %v2191_v54, %v2192_v38  ;;  %v2176_v57 = vrot.slane %v2175_v16, 1  ;;  %vm8196_vm5 = vmmov %vm8184_vm0 }
 0x21a   : > { %v2202_v41 = vmin.f32 %v2200_v50, %v2201_v18  ;;  %v2219_v28 = vrot.slane %v2218_v23, 2  ;;  %v2185_v61 = vrot.slane %v2184_v44, 1  ;;  %v2235_v62 = vrot.slane %v2234_v51, 4  ;;  %vm8197_vm9 = vmmov %vm8184_vm0 }
 0x21b   : > { %v2211_v27 = vmin.f32 %v2209_v49, %v2210_v45  ;;  %v2228_v37 = vrot.slane %v2227_v24, 2  ;;  %v2194_v7 = vrot.slane %v2193_v4, 1  ;;  %v6291_v36 = vmin.f32 %v2175_v16, %v2176_v57  ;;  %vm8198_vm7 = vmmov %vm8184_vm0 }
 0x21c   : > { %v2203_v58 = vrot.slane %v2202_v41, 1  ;;  %v2220_v55 = vmin.f32 %v2218_v23, %v2219_v28  ;;  %v6293_v25 = vmin.f32 %v2184_v44, %v2185_v61  ;;  %v2236_v54 = vmin.f32 %v2234_v51, %v2235_v62  ;;  %vm8199_vm14 = vmmov %vm8184_vm0 }
 0x21d   : > { %v2212_v34 = vrot.slane %v2211_v27, 1  ;;  %v2229_v46 = vmin.f32 %v2227_v24, %v2228_v37  ;;  %v6295_v17 = vmin.f32 %v2193_v4, %v2194_v7  ;;  %v2241_v53 = vmin.f32 %v6101_v12, %v6171_v22  ;;  %vm8280_vm10 = vmmov %vm8184_vm0 }
 0x21e   : > { %v6297_v39 = vmin.f32 %v2202_v41, %v2203_v58  ;;  %v2221_v1 = vrot.slane %v2220_v55, 1  ;;  %v2242_v48 = vsel %vm8192_vm3, %v6236_v13, inf  ;;  %v2237_v49 = vrot.slane %v2236_v54, 2  ;;  %vm8281_vm11 = vmmov %vm8184_vm0 }
 0x21f   : > { %v6299_v50 = vmin.f32 %v2211_v27, %v2212_v34  ;;  %v2230_v5 = vrot.slane %v2229_v46, 1  ;;  %v2250_v43 = vmin.f32 %v6106_v29, %v6176_v32  ;;  %v2251_v38 = vsel %vm8193_vm4, %v6241_v33, inf  ;;  %vm8282_vm13 = vmmov %vm8184_vm0 }
 0x220   : > { %v6305_v60 = vmin.f32 %v2220_v55, %v2221_v1  ;;  %v2243_v23 = vmin.f32 %v2241_v53, %v2242_v48  ;;  %v2259_v42 = vmin.f32 %v6111_v6, %v6181_v31  ;;  %v2260_v12 = vsel %vm8194_vm8, %v6246_v15, inf  ;;  %vm8283_vm12 = vmmov %vm8184_vm0 }
 0x221   : > { %v6311_v18 = vmin.f32 %v2229_v46, %v2230_v5  ;;  %v2238_v22 = vmin.f32 %v2236_v54, %v2237_v49  ;;  %v2252_v13 = vmin.f32 %v2250_v43, %v2251_v38  ;;  %v2268_v16 = vmin.f32 %v6116_v2, %v6186_v21  ;;  %vm8284_vm15 = vmmov %vm8184_vm0 }
 0x222   : > { %v2269_v29 = vsel %vm8195_vm6, %v6251_v11, inf  ;;  %v2244_v32 = vrot.slane %v2243_v23, 4  ;;  %v2261_v44 = vmin.f32 %v2259_v42, %v2260_v12  ;;  %v2277_v33 = vmin.f32 %v6121_v10, %v6191_v52  ;;  %vm8285_vm1 = vmmov %vm8184_vm0 }
 0x223   : > { %v2278_v45 = vsel %vm8196_vm5, %v6256_v63, inf  ;;  %v2239_v31 = vrot.slane %v2238_v22, 1  ;;  %v2253_v6 = vrot.slane %v2252_v13, 4  ;;  %v2270_v24 = vmin.f32 %v2268_v16, %v2269_v29  ;;  %vm8286_vm2 = vmmov %vm8184_vm0 }
 0x224   : > { %v2286_v15 = vmin.f32 %v6128_v40, %v6196_v35  ;;  %v2245_v4 = vmin.f32 %v2243_v23, %v2244_v32  ;;  %v2262_v41 = vrot.slane %v2261_v44, 4  ;;  %v2279_v21 = vmin.f32 %v2277_v33, %v2278_v45  ;;  %vm8287_vm3 = vmmov %vm8184_vm0 }
 0x225   : > { %v2287_v11 = vsel %vm8197_vm9, %v6261_v0, inf  ;;  %v2240_v2 = vmin.f32 %v2238_v22, %v2239_v31  ;;  %v2254_v28 = vmin.f32 %v2252_v13, %v2253_v6  ;;  %v2271_v51 = vrot.slane %v2270_v24, 4  ;;  %vm8288_vm4 = vmmov %vm8184_vm0 }
 0x226   : > { %v2288_v57 = vmin.f32 %v2286_v15, %v2287_v11  ;;  %v2246_v52 = vrot.slane %v2245_v4, 2  ;;  %v2263_v10 = vmin.f32 %v2261_v44, %v2262_v41  ;;  %v2280_v61 = vrot.slane %v2279_v21, 4  ;;  %vm8289_vm8 = vmmov %vm8184_vm0 }
 0x227   : > { %v2295_v63 = vmin.f32 %v6133_v26, %v6201_v20  ;;  %v2255_v27 = vrot.slane %v2254_v28, 2  ;;  %v2272_v37 = vmin.f32 %v2270_v24, %v2271_v51  ;;  %v2296_v40 = vsel %vm8198_vm7, %v6266_v19, inf  ;;  %vm8290_vm6 = vmmov %vm8184_vm0 }
 0x228   : > { %v2289_v7 = vrot.slane %v2288_v57, 4  ;;  %v2247_v35 = vmin.f32 %v2245_v4, %v2246_v52  ;;  %v2264_v58 = vrot.slane %v2263_v10, 2  ;;  %v2281_v55 = vmin.f32 %v2279_v21, %v2280_v61  ;;  %vm8291_vm5 = vmmov %vm8184_vm0 }
 0x229   : > { %v2297_v0 = vmin.f32 %v2295_v63, %v2296_v40  ;;  %v2256_v62 = vmin.f32 %v2254_v28, %v2255_v27  ;;  %v2273_v34 = vrot.slane %v2272_v37, 2  ;;  %v2304_v1 = vmin.f32 %v6138_v56, %v6206_v47  ;;  %vm8292_vm9 = vmmov %vm8184_vm0 }
 0x22a   : > { %v2290_v46 = vmin.f32 %v2288_v57, %v2289_v7  ;;  %v2248_v54 = vrot.slane %v2247_v35, 1  ;;  %v2265_v5 = vmin.f32 %v2263_v10, %v2264_v58  ;;  %v2282_v53 = vrot.slane %v2281_v55, 2  ;;  %vm8293_vm7 = vmmov %vm8184_vm0 }
 0x22b   : > { %v2298_v26 = vrot.slane %v2297_v0, 4  ;;  %v2257_v20 = vrot.slane %v2256_v62, 1  ;;  %v2274_v48 = vmin.f32 %v2272_v37, %v2273_v34  ;;  %v2305_v19 = vsel %vm8199_vm14, %v6271_v8, inf  ;;  %vm8294_vm14 = vmmov %vm8184_vm0 }
 0x22c   : > { %v2291_v49 = vrot.slane %v2290_v46, 2  ;;  %v2249_v43 = vmin.f32 %v2247_v35, %v2248_v54  ;;  %v2266_v38 = vrot.slane %v2265_v5, 1  ;;  %v2283_v23 = vmin.f32 %v2281_v55, %v2282_v53  ;;  %v8200_v55 = vld [vmem:[#allocation10_spill] sm:$0xff] }
 0x22d   : > { %v2299_v42 = vmin.f32 %v2297_v0, %v2298_v26  ;;  %v2258_v12 = vmin.f32 %v2256_v62, %v2257_v20  ;;  %v2275_v22 = vrot.slane %v2274_v48, 1  ;;  %v2306_v16 = vmin.f32 %v2304_v1, %v2305_v19  ;;  %v8201_v62 = vld [vmem:[#allocation17_spill] sm:$0xff]  ;;  %v8202_v1 = vld [vmem:[#allocation20_spill] sm:$0xff]  ;;  %v8205_v19 = vld [vmem:[#allocation23_spill] sm:$0xff] }
 0x22e   : > { %v2292_v13 = vmin.f32 %v2290_v46, %v2291_v49  ;;  %v2267_v29 = vmin.f32 %v2265_v5, %v2266_v38  ;;  %v2284_v56 = vrot.slane %v2283_v23, 1  ;;  %v2329_v32 = vcombine.low %v6291_v36, %v6293_v25  ;;  %v8203_v5 = vld [vmem:[#allocation25_spill] sm:$0xff] }
 0x22f   : > { %v2300_v47 = vrot.slane %v2299_v42, 2  ;;  %v2276_v44 = vmin.f32 %v2274_v48, %v2275_v22  ;;  %v2307_v45 = vrot.slane %v2306_v16, 4  ;;  %v2330_v8 = vcombine.low %v6295_v17, %v6297_v39  ;;  %v8204_v48 = vld [vmem:[#allocation8_spill] sm:$0xff] }
 0x230   : > { %v2293_v33 = vrot.slane %v2292_v13, 1  ;;  %v2331_v6 = vcombine.low %v6299_v50, %v6305_v60  ;;  %v2332_v24 = vcombine.low %v6311_v18, %v2240_v2  ;;  %v2285_v15 = vmin.f32 %v2283_v23, %v2284_v56  ;;  %v8206_v23 = vld [vmem:[#allocation28_spill] sm:$0xff]  ;;  %v8209_v56 = vld [vmem:[#allocation46_spill] sm:$0xff] }
 0x231   : > { %v2301_v31 = vmin.f32 %v2299_v42, %v2300_v47  ;;  %v2308_v4 = vmin.f32 %v2306_v16, %v2307_v45  ;;  %v2339_v41 = vrot.slane %v2329_v32, %v6028_v14  ;;  %v2346_v21 = vrot.slane %v2330_v8, %v6028_v14  ;;  %v8208_v16 = vld [vmem:[#allocation35_spill] sm:$0xff] }
 0x232   : > { %v2294_v36 = vmin.f32 %v2292_v13, %v2293_v33  ;;  %v2353_v11 = vrot.slane %v2331_v6, %v6028_v14  ;;  %v2360_v28 = vrot.slane %v2332_v24, %v6028_v14  ;;  %v2378_v51 = vcombine.low %v2249_v43, %v2258_v12  ;;  %v8207_v12 = vld [vmem:[#allocation32_spill] sm:$0xff]  ;;  %v8210_v32 = vld [vmem:[#allocation47_spill] sm:$0xff] }
 0x233   : > { %v2302_v25 = vrot.slane %v2301_v31, 1  ;;  %v2309_v17 = vrot.slane %v2308_v4, 2  ;;  %v2361_v39 = vcombine.low %v2339_v41, %v2346_v21  ;;  %v2379_v57 = vcombine.low %v2267_v29, %v2276_v44  ;;  %v8211_v33 = vld [vmem:[#allocation56_spill] sm:$0xff]  ;;  %v8212_v8 = vld [vmem:[#allocation39_spill] sm:$0xff] }
 0x234   : > { %v2362_v50 = vcombine.low %v2353_v11, %v2360_v28  ;;  %v2380_v52 = vcombine.low %v2285_v15, %v2294_v36  ;;  %v2388_v63 = vrot.slane %v2378_v51, %v6028_v14  ;;  %v2431_v0 = vmax.f32 %v8200_v55, 1e-30  ;;  %v8213_v6 = vld [vmem:[#allocation40_spill] sm:$0xff]  ;;  %v8214_v15 = vld [vmem:[#allocation51_spill] sm:$0xff]  ;;  %v8217_v11 = vld [vmem:[#allocation21_spill] sm:$0xff] }
 0x235   : > { %v2310_v60 = vmin.f32 %v2308_v4, %v2309_v17  ;;  %v2369_v18 = vrot.slane %v2361_v39, %v6028_v14  ;;  %v2303_v10 = vmin.f32 %v2301_v31, %v2302_v25  ;;  %v2395_v27 = vrot.slane %v2379_v57, %v6028_v14  ;;  %v8215_v41 = vld [vmem:[#allocation52_spill] sm:$0xff]  ;;  %v8216_v36 = vld [vmem:[#allocation11_spill] sm:$0xff]  ;;  %v8218_v17 = vld [vmem:[#allocation22_spill] sm:$0xff] }
 0x236   : > { %v2376_v2 = vrot.slane %v2362_v50, %v6028_v14  ;;  %v2402_v35 = vrot.slane %v2380_v52, %v6028_v14  ;;  %v2432_v34 = vmax.f32 %v8201_v62, 1e-30  ;;  %v2433_v54 = vmax.f32 %v8202_v1, 1e-30  ;;  %v8219_v51 = vld [vmem:[#allocation9_spill] sm:$0xff]  ;;  %v8222_v52 = vld [vmem:[#allocation30_spill] sm:$0xff] }
 0x237   : > { %v2311_v61 = vrot.slane %v2310_v60, 1  ;;  %v2410_v58 = vcombine.low %v2388_v63, %v2395_v27  ;;  %v2434_v53 = vmax.f32 %v8203_v5, 1e-30  ;;  %v2435_v49 = vmax.f32 %v8204_v48, 1e-30  ;;  %v8220_v50 = vld [vmem:[#allocation13_spill] sm:$0xff] }
 0x238   : > { %v2377_v37 = vcombine.low %v2369_v18, %v2376_v2  ;;  %3791 = vlog2.f32 %v2431_v0  ;;  %v2436_v43 = vmax.f32 %v8205_v19, 1e-30  ;;  %v2437_v42 = vmax.f32 %v8206_v23, 1e-30  ;;  %v8221_v18 = vld [vmem:[#allocation27_spill] sm:$0xff]  ;;  %v8223_v63 = vld [vmem:[#allocation33_spill] sm:$0xff] }
 0x239   : > { %v2312_v7 = vmin.f32 %v2310_v60, %v2311_v61  ;;  %v2418_v20 = vrot.slane %v2410_v58, %v6028_v14  ;;  %3793 = vlog2.f32 %v2432_v34  ;;  %v2438_v22 = vmax.f32 %v8207_v12, 1e-30  ;;  %v8226_v0 = vld [vmem:[#allocation48_spill] sm:$0xff] }
 0x23a   : > { %2429 = vst [vmem:[%s6354_s10] sm:$0xff] %v2377_v37  ;;  %3795 = vlog2.f32 %v2433_v54  ;;  %v2439_v29 = vmax.f32 %v8208_v16, 1e-30  ;;  %v2440_v47 = vmax.f32 %v8209_v56, 1e-30  ;;  %v2441_v44 = vmax.f32 %v8210_v32, 1e-30 }
 0x23b   : > { %v2381_v40 = vcombine.low %v2303_v10, %v2312_v7  ;;  %3797 = vlog2.f32 %v2434_v53  ;;  %v2442_v45 = vmax.f32 %v8211_v33, 1e-30  ;;  %v2443_v31 = vmax.f32 %v8212_v8, 1e-30  ;;  %v8224_v37 = vld [vmem:[#allocation36_spill] sm:$0xff]  ;;  %v8228_v53 = vld [vmem:[#allocation41_spill] sm:$0xff] }
 0x23c   : > { %3799 = vlog2.f32 %v2435_v49  ;;  %v2444_v24 = vmax.f32 %v8213_v6, 1e-30  ;;  %v2445_v4 = vmax.f32 %v8214_v15, 1e-30  ;;  %v2446_v21 = vmax.f32 %v8215_v41, 1e-30 }
 0x23d   : > { %v2409_v46 = vrot.slane %v2381_v40, %v6028_v14  ;;  %3801 = vlog2.f32 %v2436_v43  ;;  %v2447_v25 = vmax.f32 %v8216_v36, 1e-30  ;;  %v2448_v28 = vmax.f32 %v8217_v11, 1e-30  ;;  %v8225_v40 = vld [vmem:[#allocation55_spill] sm:$0xff]  ;;  %v8229_v49 = vld [vmem:[#allocation60_spill] sm:$0xff] }
 0x23e   : > { %3803 = vlog2.f32 %v2437_v42  ;;  %v2449_v39 = vmax.f32 %v8218_v17, 1e-30  ;;  %v2450_v57 = vmax.f32 %v8219_v51, 1e-30  ;;  %v2451_v60 = vmax.f32 %v8220_v50, 1e-30 }
 0x23f   : > { %v2411_v26 = vcombine.low %v2402_v35, %v2409_v46  ;;  %3805 = vlog2.f32 %v2438_v22  ;;  %v2452_v2 = vmax.f32 %v8221_v18, 1e-30  ;;  %v8227_v46 = vld [vmem:[#allocation49_spill] sm:$0xff]  ;;  %v8231_v22 = vld [vmem:[#allocation62_spill] sm:$0xff] }
 0x240   : > { %3807 = vlog2.f32 %v2439_v29  ;;  %v8239_v10 = vld [vmem:[#allocation58_spill] sm:$0xff] }
 0x241   : > { %v2425_v38 = vrot.slane %v2411_v26, %v6028_v14  ;;  %3809 = vlog2.f32 %v2440_v47  ;;  %v8232_v47 = vld [vmem:[#allocation14_spill] sm:$0xff] }
 0x242   : > { %v3792_v61 = vpop.eup %3791  ;;  %3811 = vlog2.f32 %v2441_v44  ;;  %v8233_v44 = vld [vmem:[#allocation24_spill] sm:$0xff]  ;;  %v8242_v50 = vld [vmem:[#allocation42_spill] sm:$0xff] }
 0x243   : > { %v2426_v13 = vcombine.low %v2418_v20, %v2425_v38  ;;  %v3794_v58 = vpop.eup %3793  ;;  %3813 = vlog2.f32 %v2442_v45  ;;  %v8230_v38 = vld [vmem:[#allocation61_spill] sm:$0xff]  ;;  %v8240_v45 = vld [vmem:[#allocation59_spill] sm:$0xff] }
 0x244   : > { %v3796_v20 = vpop.eup %3795  ;;  %3815 = vlog2.f32 %v2443_v31  ;;  %v2482_v27 = vmul.f32 0.6931472, %v3794_v58 }
 0x245   : > { %2430 = vst [vmem:[%s6354_s10 + $0x8] sm:$0xff] %v2426_v13  ;;  %v3798_v29 = vpop.eup %3797  ;;  %3817 = vlog2.f32 %v2444_v24  ;;  %v2480_v24 = vmul.f32 0.6931472, %v3792_v61  ;;  %v8244_v61 = vmax.f32 %v8222_v52, 1e-30 }
 0x246   : > { %v3800_v54 = vpop.eup %3799  ;;  %3819 = vlog2.f32 %v2445_v4  ;;  %v2484_v4 = vmul.f32 0.6931472, %v3796_v20  ;;  %v2486_v35 = vmul.f32 0.6931472, %v3798_v29 }
 0x247   : > { %v3802_v42 = vpop.eup %3801  ;;  %3821 = vlog2.f32 %v2446_v21  ;;  %v2575_v20 = vmul.f32 %v2480_v24, %v8200_v55  ;;  %v8245_v24 = vmax.f32 %v8223_v63, 1e-30 }
 0x248   : > { %v3804_v7 = vpop.eup %3803  ;;  %3823 = vlog2.f32 %v2447_v25  ;;  %v2488_v25 = vmul.f32 0.6931472, %v3800_v54  ;;  %v2490_v14 = vmul.f32 0.6931472, %v3802_v42 }
 0x249   : > { %v3806_v26 = vpop.eup %3805  ;;  %3825 = vlog2.f32 %v2448_v28  ;;  %v2576_v28 = vmul.f32 %v2482_v27, %v8201_v62  ;;  %v2492_v18 = vmul.f32 0.6931472, %v3804_v7 }
 0x24a   : > { %v3808_v59 = vpop.eup %3807  ;;  %3827 = vlog2.f32 %v2449_v39  ;;  %v2494_v13 = vmul.f32 0.6931472, %v3806_v26  ;;  %v2577_v39 = vmul.f32 %v2484_v4, %v8202_v1  ;;  %v2579_v27 = vmul.f32 %v2488_v25, %v8204_v48 }
 0x24b   : > { %v3810_v21 = vpop.eup %3809  ;;  %3829 = vlog2.f32 %v2450_v57  ;;  %v2496_v31 = vmul.f32 0.6931472, %v3808_v59  ;;  %v2578_v57 = vmul.f32 %v2486_v35, %v8203_v5  ;;  %v8246_v4 = vmax.f32 %v8224_v37, 1e-30 }
 0x24c   : > { %v3812_v58 = vpop.eup %3811  ;;  %3831 = vlog2.f32 %v2451_v60  ;;  %v2498_v34 = vmul.f32 0.6931472, %v3810_v21  ;;  %v2580_v59 = vmul.f32 %v2490_v14, %v8205_v19  ;;  %v8247_v35 = vmax.f32 %v8225_v40, 1e-30 }
 0x24d   : > { %v3814_v43 = vpop.eup %3813  ;;  %3833 = vlog2.f32 %v2452_v2  ;;  %v2500_v60 = vmul.f32 0.6931472, %v3812_v58  ;;  %v6428_v58 = vmul.f32 %v2494_v13, %v8207_v12 }
 0x24e   : > { %v3816_v29 = vpop.eup %3815  ;;  %3835 = vlog2.f32 %v8244_v61  ;;  %v2502_v42 = vmul.f32 0.6931472, %v3814_v43  ;;  %v2581_v43 = vmul.f32 %v2492_v18, %v8206_v23  ;;  %v6436_v14 = vmul.f32 %v2498_v34, %v8209_v56 }
 0x24f   : > { %v3818_v54 = vpop.eup %3817  ;;  %3837 = vlog2.f32 %v8245_v24  ;;  %v2504_v2 = vmul.f32 0.6931472, %v3816_v29  ;;  %v8248_v29 = vmax.f32 %v8226_v0, 1e-30  ;;  %v6441_v18 = vmul.f32 %v2500_v60, %v8210_v32 }
 0x250   : > { %v3820_v7 = vpop.eup %3819  ;;  %v2506_v26 = vmul.f32 0.6931472, %v3818_v54  ;;  %3839 = vlog2.f32 %v8246_v4  ;;  %v6433_v54 = vmul.f32 %v2496_v31, %v8208_v16  ;;  %v6444_v13 = vmul.f32 %v2502_v42, %v8211_v33 }
 0x251   : > { %v3822_v21 = vpop.eup %3821  ;;  %v2508_v61 = vmul.f32 0.6931472, %v3820_v7  ;;  %3841 = vlog2.f32 %v8247_v35  ;;  %v8249_v35 = vmax.f32 %v8227_v46, 1e-30  ;;  %v6449_v31 = vmul.f32 %v2504_v2, %v8212_v8 }
 0x252   : > { %v3824_v24 = vpop.eup %3823  ;;  %v2510_v25 = vmul.f32 0.6931472, %v3822_v21  ;;  %3843 = vlog2.f32 %v8248_v29  ;;  %v8250_v29 = vmax.f32 %v8228_v53, 1e-30  ;;  %v6452_v34 = vmul.f32 %v2506_v26, %v8213_v6 }
 0x253   : > { %v3826_v7 = vpop.eup %3825  ;;  %v2512_v4 = vmul.f32 0.6931472, %v3824_v24  ;;  %3845 = vlog2.f32 %v8249_v35  ;;  %v8251_v35 = vmax.f32 %v8229_v49, 1e-30  ;;  %v6457_v60 = vmul.f32 %v2508_v61, %v8214_v15 }
 0x254   : > { %v3828_v21 = vpop.eup %3827  ;;  %v2514_v12 = vmul.f32 0.6931472, %v3826_v7  ;;  %3847 = vlog2.f32 %v8250_v29  ;;  %v8252_v29 = vmax.f32 %v8230_v38, 1e-30  ;;  %v6463_v2 = vmul.f32 %v2510_v25, %v8215_v41 }
 0x255   : > { %v3830_v24 = vpop.eup %3829  ;;  %v2516_v56 = vmul.f32 0.6931472, %v3828_v21  ;;  %3849 = vlog2.f32 %v8251_v35  ;;  %v2591_v42 = vmul.f32 %v2512_v4, %v8216_v36  ;;  %v8253_v8 = vmax.f32 %v8231_v22, 1e-30 }
 0x256   : > { %v3832_v7 = vpop.eup %3831  ;;  %v2518_v33 = vmul.f32 0.6931472, %v3830_v24  ;;  %3851 = vlog2.f32 %v8252_v29  ;;  %v2592_v26 = vmul.f32 %v2514_v12, %v8217_v11  ;;  %v8254_v24 = vmax.f32 %v8232_v47, 1e-30  ;;  %v8256_v11 = vld [vmem:[#allocation13_spill] sm:$0xff] }
 0x257   : > { %v3834_v6 = vpop.eup %3833  ;;  %v2520_v21 = vmul.f32 0.6931472, %v3832_v7  ;;  %3853 = vlog2.f32 %v8253_v8  ;;  %v2593_v61 = vmul.f32 %v2516_v56, %v8218_v17  ;;  %v6469_v35 = vadd.f32 %v2591_v42, %v2575_v20  ;;  %v8257_v42 = vld [vmem:[#allocation26_spill] sm:$0xff]  ;;  %v8259_v17 = vld [vmem:[#allocation27_spill] sm:$0xff] }
 0x258   : > { %v3836_v4 = vpop.eup %3835  ;;  %v2522_v36 = vmul.f32 0.6931472, %v3834_v6  ;;  %3855 = vlog2.f32 %v8254_v24  ;;  %v2594_v29 = vmul.f32 %v2518_v33, %v8219_v51  ;;  %v6474_v25 = vadd.f32 %v2592_v26, %v2576_v28  ;;  %v8260_v26 = vld [vmem:[#allocation12_spill] sm:$0xff] }
 0x259   : > { %v3838_v41 = vpop.eup %3837  ;;  %v2524_v12 = vmul.f32 0.6931472, %v3836_v4  ;;  %v8255_v7 = vmax.f32 %v8233_v44, 1e-30  ;;  %v2595_v8 = vmul.f32 %v2520_v21, %v8256_v11  ;;  %v6479_v15 = vadd.f32 %v2593_v61, %v2577_v39  ;;  %v8262_v61 = vld [vmem:[#allocation18_spill] sm:$0xff] }
 0x25a   : > { %v3840_v56 = vpop.eup %3839  ;;  %v2526_v20 = vmul.f32 0.6931472, %v3838_v41  ;;  %v8258_v6 = vmax.f32 %v8257_v42, 1e-30  ;;  %v2596_v24 = vmul.f32 %v2522_v36, %v8259_v17  ;;  %v6484_v32 = vadd.f32 %v2594_v29, %v2578_v57  ;;  %v8264_v29 = vld [vmem:[#allocation29_spill] sm:$0xff] }
 0x25b   : > { %3857 = vlog2.f32 %v8255_v7  ;;  %v3842_v33 = vpop.eup %3841  ;;  %v2528_v28 = vmul.f32 0.6931472, %v3840_v56  ;;  %v8261_v4 = vmax.f32 %v8260_v26, 1e-30  ;;  %v2597_v7 = vmul.f32 %v2524_v12, %v8222_v52 }
 0x25c   : > { %3859 = vlog2.f32 %v8258_v6  ;;  %v6489_v51 = vadd.f32 %v2595_v8, %v2579_v27  ;;  %v3844_v39 = vpop.eup %3843  ;;  %v2530_v21 = vmul.f32 0.6931472, %v3842_v33  ;;  %v8263_v41 = vmax.f32 %v8262_v61, 1e-30  ;;  %v8266_v8 = vld [vmem:[#allocation31_spill] sm:$0xff] }
 0x25d   : > { %3861 = vlog2.f32 %v8261_v4  ;;  %v2598_v6 = vmul.f32 %v2526_v20, %v8223_v63  ;;  %v6494_v11 = vadd.f32 %v2596_v24, %v2580_v59  ;;  %v3846_v36 = vpop.eup %3845  ;;  %v2532_v57 = vmul.f32 0.6931472, %v3844_v39  ;;  %v8268_v39 = vld [vmem:[#allocation34_spill] sm:$0xff] }
 0x25e   : > { %3863 = vlog2.f32 %v8263_v41  ;;  %v8265_v56 = vmax.f32 %v8264_v29, 1e-30  ;;  %v2599_v4 = vmul.f32 %v2528_v28, %v8224_v37  ;;  %v6499_v17 = vadd.f32 %v2597_v7, %v2581_v43  ;;  %v3848_v27 = vpop.eup %3847 }
 0x25f   : > { %v2534_v12 = vmul.f32 0.6931472, %v3846_v36  ;;  %v8267_v33 = vmax.f32 %v8266_v8, 1e-30  ;;  %v2600_v41 = vmul.f32 %v2530_v21, %v8225_v40  ;;  %v6505_v20 = vadd.f32 %v2598_v6, %v6428_v58  ;;  %v3850_v59 = vpop.eup %3849  ;;  %v8270_v36 = vld [vmem:[#allocation37_spill] sm:$0xff] }
 0x260   : > { %3865 = vlog2.f32 %v8265_v56  ;;  %v2536_v24 = vmul.f32 0.6931472, %v3848_v27  ;;  %v8269_v63 = vmax.f32 %v8268_v39, 1e-30  ;;  %v2601_v56 = vmul.f32 %v2532_v57, %v8226_v0  ;;  %v3852_v28 = vpop.eup %3851 }
 0x261   : > { %3867 = vlog2.f32 %v8267_v33  ;;  %v6511_v43 = vadd.f32 %v2599_v4, %v6433_v54  ;;  %v2538_v7 = vmul.f32 0.6931472, %v3850_v59  ;;  %v8271_v37 = vmax.f32 %v8270_v36, 1e-30  ;;  %v3854_v6 = vpop.eup %3853 }
 0x262   : > { %3869 = vlog2.f32 %v8269_v63  ;;  %v2602_v21 = vmul.f32 %v2534_v12, %v8227_v46  ;;  %v6517_v58 = vadd.f32 %v2600_v41, %v6436_v14  ;;  %v2540_v27 = vmul.f32 0.6931472, %v3852_v28  ;;  %v3856_v57 = vpop.eup %3855 }
 0x263   : > { %3871 = vlog2.f32 %v8271_v37  ;;  %v8272_v33 = vmax.f32 %v8177_v30, 1e-30  ;;  %v2603_v63 = vmul.f32 %v2536_v24, %v8228_v53  ;;  %v6523_v54 = vadd.f32 %v2601_v56, %v6441_v18 }
 0x264   : > { %v2542_v4 = vmul.f32 0.6931472, %v3854_v6  ;;  %v8273_v59 = vmax.f32 %v8239_v10, 1e-30  ;;  %v2604_v37 = vmul.f32 %v2538_v7, %v8229_v49  ;;  %v6529_v14 = vadd.f32 %v2602_v21, %v6444_v13 }
 0x265   : > { %3873 = vlog2.f32 %v8272_v33  ;;  %v3858_v12 = vpop.eup %3857  ;;  %v2544_v41 = vmul.f32 0.6931472, %v3856_v57  ;;  %v8274_v28 = vmax.f32 %v8240_v45, 1e-30  ;;  %v2605_v24 = vmul.f32 %v2540_v27, %v8230_v38  ;;  %v8275_v33 = vld [vmem:[#allocation50_spill] sm:$0xff] }
 0x266   : > { %3875 = vlog2.f32 %v8273_v59  ;;  %v6535_v18 = vadd.f32 %v2603_v63, %v6449_v31  ;;  %v3860_v56 = vpop.eup %3859  ;;  %v2546_v6 = vmul.f32 0.6931472, %v3858_v12  ;;  %v8276_v53 = vmax.f32 %v8275_v33, 1e-30 }
 0x267   : > { %3877 = vlog2.f32 %v8274_v28  ;;  %v2606_v7 = vmul.f32 %v2542_v4, %v8231_v22  ;;  %v6541_v13 = vadd.f32 %v2604_v37, %v6452_v34  ;;  %v3862_v21 = vpop.eup %3861  ;;  %v2548_v57 = vmul.f32 0.6931472, %v3860_v56 }
 0x268   : > { %3879 = vlog2.f32 %v8276_v53  ;;  %v8277_v59 = vmax.f32 %v8242_v50, 1e-30  ;;  %v2607_v27 = vmul.f32 %v2544_v41, %v8232_v47  ;;  %v6547_v31 = vadd.f32 %v2605_v24, %v6457_v60  ;;  %v3864_v63 = vpop.eup %3863 }
 0x269   : > { %v2550_v12 = vmul.f32 0.6931472, %v3862_v21  ;;  %v8278_v28 = vmax.f32 %v8243_v3, 1e-30  ;;  %v2608_v53 = vmul.f32 %v2546_v6, %v8233_v44  ;;  %v6553_v34 = vadd.f32 %v2606_v7, %v6463_v2 }
 0x26a   : > { %3881 = vlog2.f32 %v8277_v59  ;;  %v3866_v4 = vpop.eup %3865  ;;  %v2552_v37 = vmul.f32 0.6931472, %v3864_v63  ;;  %v8279_v56 = vmax.f32 %v5293_v9, 1e-30  ;;  %v2609_v41 = vmul.f32 %v2548_v57, %v8257_v42 }
 0x26b   : > { %3883 = vlog2.f32 %v8278_v28  ;;  %v2624_v60 = vsel %vm8184_vm0, %v2607_v27, 0.0  ;;  %v3868_v24 = vpop.eup %3867  ;;  %v2554_v59 = vmul.f32 0.6931472, %v3866_v4  ;;  %v2610_v21 = vmul.f32 %v2550_v12, %v8260_v26 }
 0x26c   : > { %3885 = vlog2.f32 %v8279_v56  ;;  %v2625_v28 = vadd.f32 %v2624_v60, %v6469_v35  ;;  %v2633_v6 = vsel %vm8280_vm10, %v2608_v53, 0.0  ;;  %v3870_v44 = vpop.eup %3869  ;;  %v2556_v2 = vmul.f32 0.6931472, %v3868_v24 }
 0x26d   : > { %v2611_v7 = vmul.f32 %v2552_v37, %v8262_v61  ;;  %v2634_v63 = vadd.f32 %v2633_v6, %v6474_v25  ;;  %v2642_v56 = vsel %vm8281_vm11, %v2609_v41, 0.0  ;;  %v3872_v47 = vpop.eup %3871  ;;  %v2558_v57 = vmul.f32 0.6931472, %v3870_v44 }
 0x26e   : > { %v2612_v27 = vmul.f32 %v2554_v59, %v8264_v29  ;;  %v2626_v42 = vrot.slane %v2625_v28, 4  ;;  %v2643_v4 = vadd.f32 %v2642_v56, %v6479_v15  ;;  %v2560_v26 = vmul.f32 0.6931472, %v3872_v47 }
 0x26f   : > { %v3874_v12 = vpop.eup %3873  ;;  %v2613_v35 = vmul.f32 %v2556_v2, %v8266_v8  ;;  %v2635_v53 = vrot.slane %v2634_v63, 4  ;;  %v2651_v60 = vsel %vm8282_vm13, %v2610_v21, 0.0  ;;  %v2614_v25 = vmul.f32 %v2558_v57, %v8268_v39 }
 0x270   : > { %v3876_v24 = vpop.eup %3875  ;;  %v2562_v37 = vmul.f32 0.6931472, %v3874_v12  ;;  %v2627_v6 = vadd.f32 %v2626_v42, %v2625_v28  ;;  %v2644_v41 = vrot.slane %v2643_v4, 4  ;;  %v2615_v59 = vmul.f32 %v2560_v26, %v8270_v36 }
 0x271   : > { %v3878_v61 = vpop.eup %3877  ;;  %v2564_v44 = vmul.f32 0.6931472, %v3876_v24  ;;  %v2636_v29 = vadd.f32 %v2635_v53, %v2634_v63  ;;  %v2652_v15 = vadd.f32 %v2651_v60, %v6484_v32 }
 0x272   : > { %v3880_v56 = vpop.eup %3879  ;;  %v2566_v47 = vmul.f32 0.6931472, %v3878_v61  ;;  %v2616_v2 = vmul.f32 %v2562_v37, %v8177_v30  ;;  %v2628_v8 = vrot.slane %v2627_v6, 2  ;;  %v2645_v22 = vadd.f32 %v2644_v41, %v2643_v4 }
 0x273   : > { %v2568_v38 = vmul.f32 0.6931472, %v3880_v56  ;;  %v2617_v12 = vmul.f32 %v2564_v44, %v8239_v10  ;;  %v2637_v57 = vrot.slane %v2636_v29, 2  ;;  %v2653_v42 = vrot.slane %v2652_v15, 4 }
 0x274   : > { %v3882_v21 = vpop.eup %3881  ;;  %v2618_v24 = vmul.f32 %v2566_v47, %v8240_v45  ;;  %v2629_v26 = vadd.f32 %v2628_v8, %v2627_v6  ;;  %v2646_v63 = vrot.slane %v2645_v22, 2  ;;  %v2660_v8 = vsel %vm8283_vm12, %v2611_v7, 0.0 }
 0x275   : > { %v3884_v28 = vpop.eup %3883  ;;  %v2570_v39 = vmul.f32 0.6931472, %v3882_v21  ;;  %v6576_v61 = vmul.f32 %v2568_v38, %v8275_v33  ;;  %v2638_v60 = vadd.f32 %v2637_v57, %v2636_v29  ;;  %v2654_v37 = vadd.f32 %v2653_v42, %v2652_v15 }
 0x276   : > { %v3886_v53 = vpop.eup %3885  ;;  %v2572_v32 = vmul.f32 0.6931472, %v3884_v28  ;;  %v2630_v44 = vrot.slane %v2629_v26, 1  ;;  %v2647_v56 = vadd.f32 %v2646_v63, %v2645_v22  ;;  %v2661_v15 = vadd.f32 %v2660_v8, %v6489_v51 }
 0x277   : > { %v2574_v4 = vmul.f32 0.6931472, %v3886_v53  ;;  %v6579_v41 = vmul.f32 %v2570_v39, %v8242_v50  ;;  %v2639_v21 = vrot.slane %v2638_v60, 1  ;;  %v2655_v47 = vrot.slane %v2654_v37, 2 }
 0x278   : > { %v6582_v10 = vmul.f32 %v2572_v32, %v8243_v3  ;;  %v6588_v38 = vadd.f32 %v2630_v44, %v2629_v26  ;;  %v2648_v29 = vrot.slane %v2647_v56, 1  ;;  %v2669_v22 = vsel %vm8284_vm15, %v2612_v27, 0.0 }
 0x279   : > { %v6586_v6 = vmul.f32 %v2574_v4, %v5293_v9  ;;  %v6591_v57 = vadd.f32 %v2639_v21, %v2638_v60  ;;  %v2656_v39 = vadd.f32 %v2655_v47, %v2654_v37  ;;  %v2678_v42 = vsel %vm8285_vm1, %v2613_v35, 0.0 }
 0x27a   : > { %v6595_v28 = vadd.f32 %v2648_v29, %v2647_v56  ;;  %v2662_v63 = vrot.slane %v2661_v15, 4  ;;  %v2670_v7 = vadd.f32 %v2669_v22, %v6494_v11  ;;  %v2679_v53 = vadd.f32 %v2678_v42, %v6499_v17 }
 0x27b   : > { %v2657_v32 = vrot.slane %v2656_v39, 1  ;;  %v2687_v26 = vsel %vm8286_vm2, %v2614_v25, 0.0  ;;  %v2696_v4 = vsel %vm8287_vm3, %v2615_v59, 0.0  ;;  %v2705_v51 = vsel %vm8288_vm4, %v2616_v2, 0.0 }
 0x27c   : > { %v2663_v60 = vadd.f32 %v2662_v63, %v2661_v15  ;;  %v2671_v37 = vrot.slane %v2670_v7, 4  ;;  %v2680_v44 = vrot.slane %v2679_v53, 4  ;;  %v2688_v27 = vadd.f32 %v2687_v26, %v6505_v20 }
 0x27d   : > { %v6603_v35 = vadd.f32 %v2657_v32, %v2656_v39  ;;  %v2697_v56 = vadd.f32 %v2696_v4, %v6511_v43  ;;  %v2706_v11 = vadd.f32 %v2705_v51, %v6517_v58  ;;  %v2714_v17 = vsel %vm8289_vm8, %v2617_v12, 0.0 }
 0x27e   : > { %v2664_v21 = vrot.slane %v2663_v60, 2  ;;  %v2672_v47 = vadd.f32 %v2671_v37, %v2670_v7  ;;  %v2681_v25 = vadd.f32 %v2680_v44, %v2679_v53  ;;  %v2689_v8 = vrot.slane %v2688_v27, 4 }
 0x27f   : > { %v2698_v59 = vrot.slane %v2697_v56, 4  ;;  %v2707_v29 = vrot.slane %v2706_v11, 4  ;;  %v2715_v2 = vadd.f32 %v2714_v17, %v6523_v54  ;;  %v2723_v15 = vsel %vm8290_vm6, %v2618_v24, 0.0 }
 0x280   : > { %v2665_v22 = vadd.f32 %v2664_v21, %v2663_v60  ;;  %v2673_v20 = vrot.slane %v2672_v47, 2  ;;  %v2682_v39 = vrot.slane %v2681_v25, 2  ;;  %v2690_v42 = vadd.f32 %v2689_v8, %v2688_v27 }
 0x281   : > { %v2699_v63 = vadd.f32 %v2698_v59, %v2697_v56  ;;  %v2708_v43 = vadd.f32 %v2707_v29, %v2706_v11  ;;  %v2716_v32 = vrot.slane %v2715_v2, 4  ;;  %v2724_v58 = vadd.f32 %v2723_v15, %v6529_v14 }
 0x282   : > { %v2666_v12 = vrot.slane %v2665_v22, 1  ;;  %v2674_v26 = vadd.f32 %v2673_v20, %v2672_v47  ;;  %v2683_v7 = vadd.f32 %v2682_v39, %v2681_v25  ;;  %v2691_v53 = vrot.slane %v2690_v42, 2 }
 0x283   : > { %v2700_v4 = vrot.slane %v2699_v63, 2  ;;  %v2709_v51 = vrot.slane %v2708_v43, 2  ;;  %v2717_v37 = vadd.f32 %v2716_v32, %v2715_v2  ;;  %v2725_v44 = vrot.slane %v2724_v58, 4 }
 0x284   : > { %v6611_v54 = vadd.f32 %v2666_v12, %v2665_v22  ;;  %v2675_v24 = vrot.slane %v2674_v26, 1  ;;  %v2684_v60 = vrot.slane %v2683_v7, 1  ;;  %v2692_v17 = vadd.f32 %v2691_v53, %v2690_v42 }
 0x285   : > { %v2701_v21 = vadd.f32 %v2700_v4, %v2699_v63  ;;  %v2710_v27 = vadd.f32 %v2709_v51, %v2708_v43  ;;  %v2718_v56 = vrot.slane %v2717_v37, 2  ;;  %v2726_v11 = vadd.f32 %v2725_v44, %v2724_v58 }
 0x286   : > { %v2676_v8 = vadd.f32 %v2675_v24, %v2674_v26  ;;  %v2685_v59 = vadd.f32 %v2684_v60, %v2683_v7  ;;  %v2693_v14 = vrot.slane %v2692_v17, 1  ;;  %v2732_v47 = vsel %vm8291_vm5, %v6576_v61, 0.0 }
 0x287   : > { %v2702_v25 = vrot.slane %v2701_v21, 1  ;;  %v2711_v29 = vrot.slane %v2710_v27, 1  ;;  %v2719_v15 = vadd.f32 %v2718_v56, %v2717_v37  ;;  %v2727_v2 = vrot.slane %v2726_v11, 2 }
 0x288   : > { %v2694_v20 = vadd.f32 %v2693_v14, %v2692_v17  ;;  %v2733_v22 = vadd.f32 %v2732_v47, %v6535_v18  ;;  %v2741_v39 = vsel %vm8292_vm9, %v6579_v41, 0.0  ;;  %v2750_v42 = vsel %vm8293_vm7, %v6582_v10, 0.0 }
 0x289   : > { %v2703_v63 = vadd.f32 %v2702_v25, %v2701_v21  ;;  %v2712_v43 = vadd.f32 %v2711_v29, %v2710_v27  ;;  %v2720_v32 = vrot.slane %v2719_v15, 1  ;;  %v2728_v58 = vadd.f32 %v2727_v2, %v2726_v11 }
 0x28a   : > { %v2734_v12 = vrot.slane %v2733_v22, 4  ;;  %v2742_v61 = vadd.f32 %v2741_v39, %v6541_v13  ;;  %v2751_v26 = vadd.f32 %v2750_v42, %v6547_v31  ;;  %v2759_v7 = vsel %vm8294_vm14, %v6586_v6, 0.0 }
 0x28b   : > { %v2721_v53 = vadd.f32 %v2720_v32, %v2719_v15  ;;  %v2729_v18 = vrot.slane %v2728_v58, 1  ;;  %v2760_v4 = vadd.f32 %v2759_v7, %v6553_v34  ;;  %v2767_v41 = vsub.f32 0.0, %v6588_v38  ;;  %v8296_v7 = vld [vmem:[#allocation71_spill] sm:$0xff] }
 0x28c   : > { %v2735_v51 = vadd.f32 %v2734_v12, %v2733_v22  ;;  %v2743_v10 = vrot.slane %v2742_v61, 4  ;;  %v2752_v37 = vrot.slane %v2751_v26, 4  ;;  %v2768_v44 = vsub.f32 0.0, %v6591_v57 }
 0x28d   : > { %v2730_v24 = vadd.f32 %v2729_v18, %v2728_v58  ;;  %v2761_v60 = vrot.slane %v2760_v4, 4  ;;  %v2769_v13 = vsub.f32 0.0, %v6595_v28  ;;  %v2770_v31 = vsub.f32 0.0, %v6603_v35  ;;  %v8297_v18 = vld [vmem:[#allocation15_spill] sm:$0xff] }
 0x28e   : > { %v2736_v17 = vrot.slane %v2735_v51, 2  ;;  %v2744_v21 = vadd.f32 %v2743_v10, %v2742_v61  ;;  %v2753_v6 = vadd.f32 %v2752_v37, %v2751_v26  ;;  %v2771_v27 = vsub.f32 0.0, %v6611_v54  ;;  %v8300_v10 = vld [vmem:[#allocation74_spill] sm:$0xff]  ;;  %v8301_v37 = vld [vmem:[#allocation75_spill] sm:$0xff] }
 0x28f   : > { %v2762_v56 = vadd.f32 %v2761_v60, %v2760_v4  ;;  %v2772_v34 = vsub.f32 0.0, %v2676_v8  ;;  %v2773_v11 = vsub.f32 0.0, %v2685_v59  ;;  %v2774_v38 = vsub.f32 0.0, %v2694_v20  ;;  %v8295_v20 = vld [vmem:[#allocation3_spill] sm:$0xff] }
 0x290   : > { %v2737_v14 = vadd.f32 %v2736_v17, %v2735_v51  ;;  %v2745_v47 = vrot.slane %v2744_v21, 2  ;;  %v2754_v25 = vrot.slane %v2753_v6, 2  ;;  %v2775_v29 = vsub.f32 0.0, %v2703_v63  ;;  %v8298_v63 = vld [vmem:[#allocation72_spill] sm:$0xff]  ;;  %v8299_v51 = vld [vmem:[#allocation73_spill] sm:$0xff] }
 0x291   : > { %v2763_v57 = vrot.slane %v2762_v56, 2  ;;  %v2776_v15 = vsub.f32 0.0, %v2712_v43  ;;  %v2777_v2 = vsub.f32 0.0, %v2721_v53  ;;  %v2778_v22 = vsub.f32 0.0, %v2730_v24  ;;  %v8303_v17 = vld [vmem:[#allocation77_spill] sm:$0xff] }
 0x292   : > { %v2738_v28 = vrot.slane %v2737_v14, 1  ;;  %v2746_v39 = vadd.f32 %v2745_v47, %v2744_v21  ;;  %v2755_v35 = vadd.f32 %v2754_v25, %v2753_v6  ;;  %v2799_v42 = vcombine.low %v2767_v41, %v2768_v44  ;;  %v8302_v44 = vld [vmem:[#allocation76_spill] sm:$0xff]  ;;  %v8304_v21 = vld [vmem:[#allocation78_spill] sm:$0xff]  ;;  %v8305_v6 = vld [vmem:[#allocation79_spill] sm:$0xff] }
 0x293   : > { %v2764_v32 = vadd.f32 %v2763_v57, %v2762_v56  ;;  %v2800_v58 = vcombine.low %v2769_v13, %v2770_v31  ;;  %v2801_v12 = vcombine.low %v2771_v27, %v2772_v34  ;;  %v2802_v54 = vcombine.low %v2773_v11, %v2774_v38  ;;  %v8306_v38 = vld [vmem:[#allocation80_spill] sm:$0xff]  ;;  %v8308_v47 = vld [vmem:[#allocation82_spill] sm:$0xff]  ;;  %v8309_v25 = vld [vmem:[#allocation83_spill] sm:$0xff] }
 0x294   : > { %v2739_v61 = vadd.f32 %v2738_v28, %v2737_v14  ;;  %v2747_v8 = vrot.slane %v2746_v39, 1  ;;  %v2756_v59 = vrot.slane %v2755_v35, 1  ;;  %v2809_v26 = vrot.slane %v2799_v42, %v8295_v20  ;;  %v8307_v14 = vld [vmem:[#allocation81_spill] sm:$0xff]  ;;  %v8310_v28 = vld [vmem:[#allocation7_spill] sm:$0xff] }
 0x295   : > { %vm2901_vm0 = vcmp.eq.f32.partialorder %v8297_v18, %v8296_v7  ;;  %vm2902_vm10 = vcmp.eq.f32.partialorder %v8297_v18, %v8298_v63  ;;  %v2765_v43 = vrot.slane %v2764_v32, 1  ;;  %v2816_v53 = vrot.slane %v2800_v58, %v8295_v20  ;;  %v8313_v58 = vld [vmem:[#allocation16_spill] sm:$0xff] }
 0x296   : > { %v2823_v4 = vrot.slane %v2801_v12, %v8295_v20  ;;  %v2830_v41 = vrot.slane %v2802_v54, %v8295_v20  ;;  %vm2903_vm11 = vcmp.eq.f32.partialorder %v8297_v18, %v8299_v51  ;;  %vm2904_vm13 = vcmp.eq.f32.partialorder %v8297_v18, %v8300_v10 }
 0x297   : > { %vm2905_vm12 = vcmp.eq.f32.partialorder %v8297_v18, %v8301_v37  ;;  %vm2906_vm15 = vcmp.eq.f32.partialorder %v8297_v18, %v8302_v44  ;;  %v2748_v24 = vadd.f32 %v2747_v8, %v2746_v39  ;;  %v2757_v60 = vadd.f32 %v2756_v59, %v2755_v35 }
 0x298   : > { %v2779_v13 = vsub.f32 0.0, %v2739_v61  ;;  %v2848_v31 = vcombine.low %v2775_v29, %v2776_v15  ;;  %vm2907_vm1 = vcmp.eq.f32.partialorder %v8297_v18, %v8303_v17  ;;  %vm2908_vm2 = vcmp.eq.f32.partialorder %v8297_v18, %v8304_v21 }
 0x299   : > { %vm2909_vm3 = vcmp.eq.f32.partialorder %v8297_v18, %v8305_v6  ;;  %v2766_v27 = vadd.f32 %v2765_v43, %v2764_v32  ;;  %v2831_v56 = vcombine.low %v2809_v26, %v2816_v53  ;;  %v2832_v34 = vcombine.low %v2823_v4, %v2830_v41  ;;  %v8314_v43 = vld [vmem:[#allocation19_spill] sm:$0xff] }
 0x29a   : > { %v2849_v11 = vcombine.low %v2777_v2, %v2778_v22  ;;  %v2780_v29 = vsub.f32 0.0, %v2748_v24  ;;  %v2781_v57 = vsub.f32 0.0, %v2757_v60  ;;  %v2858_v15 = vrot.slane %v2848_v31, %v8295_v20  ;;  %v8311_v2 = vld [vmem:[#allocation84_spill] sm:$0xff]  ;;  %v8312_v22 = vld [vmem:[#allocation85_spill] sm:$0xff] }
 0x29b   : > { %v2782_v39 = vsub.f32 0.0, %v2766_v27  ;;  %v2839_v35 = vrot.slane %v2831_v56, %v8295_v20  ;;  %v2846_v42 = vrot.slane %v2832_v34, %v8295_v20  ;;  %vm2938_vm7 = vcmp.eq.f32.partialorder %v8314_v43, %v8302_v44  ;;  %v8316_v27 = vld [vmem:[#allocation46_spill] sm:$0xff] }
 0x29c   : > { %v2865_v32 = vrot.slane %v2849_v11, %v8295_v20  ;;  %v2850_v12 = vcombine.low %v2779_v13, %v2780_v29  ;;  %vm2939_vm5 = vcmp.eq.f32.partialorder %v8314_v43, %v8303_v17  ;;  %vm2940_vm14 = vcmp.eq.f32.partialorder %v8314_v43, %v8304_v21  ;;  %v8320_v11 = vld [vmem:[#allocation56_spill] sm:$0xff] }
 0x29d   : > { %v2847_v54 = vcombine.low %v2839_v35, %v2846_v42  ;;  %v2851_v61 = vcombine.low %v2781_v57, %v2782_v39  ;;  %v6740_v41 = vsel %vm2901_vm0, -1.0, %v8200_v55  ;;  %v6746_v24 = vsel %vm2902_vm10, -1.0, %v8201_v62  ;;  %v8324_v39 = vld [vmem:[#allocation40_spill] sm:$0xff]  ;;  %v8326_v42 = vld [vmem:[#allocation51_spill] sm:$0xff] }
 0x29e   : > { %v2880_v8 = vcombine.low %v2858_v15, %v2865_v32  ;;  %v2872_v59 = vrot.slane %v2850_v12, %v8295_v20  ;;  %vm2945_vm6 = vcmp.eq.f32.partialorder %v8314_v43, %v8309_v25  ;;  %vm2946_vm4 = vcmp.eq.f32.partialorder %v8314_v43, %v8310_v28  ;;  %v8328_v12 = vld [vmem:[#allocation52_spill] sm:$0xff] }
 0x29f   : > { %v2879_v26 = vrot.slane %v2851_v61, %v8295_v20  ;;  %2899 = vst [vmem:[%s6682_s15] sm:$0xff] %v2847_v54  ;;  %vm2947_vm8 = vcmp.eq.f32.partialorder %v8314_v43, %v8311_v2  ;;  %vm2948_vm9 = vcmp.eq.f32.partialorder %v8314_v43, %v8312_v22  ;;  %v2951_v55 = vsel %vm2903_vm11, -1.0, %v8202_v1  ;;  %v8331_v61 = vld [vmem:[#allocation11_spill] sm:$0xff] }
 0x2a0   : > { %v2888_v53 = vrot.slane %v2880_v8, %v8295_v20  ;;  %v2952_v62 = vsel %vm2904_vm13, -1.0, %v8203_v5  ;;  %v6768_v60 = vsel %vm2905_vm12, -1.0, %v8204_v48  ;;  %v6774_v13 = vsel %vm2906_vm15, -1.0, %v8205_v19  ;;  %v8315_v5 = vld [vmem:[#allocation32_spill] sm:$0xff] }
 0x2a1   : > { %v2881_v4 = vcombine.low %v2872_v59, %v2879_v26  ;;  %v6781_v1 = vsel %vm2907_vm1, -1.0, %v8206_v23  ;;  %v6787_v48 = vsel %vm2908_vm2, -1.0, %v8315_v5  ;;  %v6793_v19 = vsel %vm2909_vm3, -1.0, %v8208_v16  ;;  %v8318_v23 = vld [vmem:[#allocation47_spill] sm:$0xff]  ;;  %v8333_v59 = vld [vmem:[#allocation21_spill] sm:$0xff] }
 0x2a2   : > { %vm8317_vm0 = vcmp.eq.f32.partialorder %v8297_v18, %v8306_v38  ;;  %vm8319_vm10 = vcmp.eq.f32.partialorder %v8297_v18, %v8307_v14  ;;  %vm8321_vm11 = vcmp.eq.f32.partialorder %v8297_v18, %v8308_v47  ;;  %v8322_v16 = vld [vmem:[#allocation39_spill] sm:$0xff]  ;;  %vm8323_vm13 = vcmp.eq.f32.partialorder %v8297_v18, %v8309_v25  ;;  %v8339_v5 = vld [vmem:[#allocation13_spill] sm:$0xff] }
 0x2a3   : > { %v2895_v31 = vrot.slane %v2881_v4, %v8295_v20  ;;  %v6799_v56 = vsel %vm8317_vm0, -1.0, %v8316_v27  ;;  %v6805_v34 = vsel %vm8319_vm10, -1.0, %v8318_v23  ;;  %v6811_v29 = vsel %vm8321_vm11, -1.0, %v8320_v11  ;;  %v8341_v23 = vld [vmem:[#allocation27_spill] sm:$0xff]  ;;  %v8362_v20 = vld [vmem:[#allocation26_spill] sm:$0xff] }
 0x2a4   : > { %v6817_v57 = vsel %vm8323_vm13, -1.0, %v8322_v16  ;;  %vm8325_vm12 = vcmp.eq.f32.partialorder %v8297_v18, %v8310_v28  ;;  %vm8327_vm15 = vcmp.eq.f32.partialorder %v8297_v18, %v8311_v2  ;;  %vm8329_vm1 = vcmp.eq.f32.partialorder %v8297_v18, %v8312_v22 }
 0x2a5   : > { %v2896_v15 = vcombine.low %v2888_v53, %v2895_v31  ;;  %v6823_v35 = vsel %vm8325_vm12, -1.0, %v8324_v39  ;;  %v6829_v32 = vsel %vm8327_vm15, -1.0, %v8326_v42  ;;  %v6835_v54 = vsel %vm8329_vm1, -1.0, %v8328_v12  ;;  %v8335_v53 = vld [vmem:[#allocation22_spill] sm:$0xff]  ;;  %v8337_v31 = vld [vmem:[#allocation9_spill] sm:$0xff]  ;;  %v8346_v42 = vld [vmem:[#allocation36_spill] sm:$0xff] }
 0x2a6   : > { %8330 = vst [vmem:[#allocation38_spill] sm:$0xff] %v6835_v54  ;;  %vm8332_vm2 = vcmp.eq.f32.partialorder %v8313_v58, %v8296_v7  ;;  %vm8334_vm3 = vcmp.eq.f32.partialorder %v8313_v58, %v8298_v63  ;;  %vm8336_vm0 = vcmp.eq.f32.partialorder %v8313_v58, %v8299_v51  ;;  %vm8338_vm10 = vcmp.eq.f32.partialorder %v8313_v58, %v8300_v10  ;;  %v8344_v39 = vld [vmem:[#allocation33_spill] sm:$0xff]  ;;  %v8364_v54 = vld [vmem:[#allocation12_spill] sm:$0xff] }
 0x2a7   : > { %v2965_v8 = vsel %vm8332_vm2, -1.0, %v8331_v61  ;;  %v2966_v26 = vsel %vm8334_vm3, -1.0, %v8333_v59  ;;  %v2967_v4 = vsel %vm8336_vm0, -1.0, %v8335_v53  ;;  %v2968_v18 = vsel %vm8338_vm10, -1.0, %v8337_v31  ;;  %2900 = vst [vmem:[%s6682_s15 + $0x8] sm:$0xff] %v2896_v15  ;;  %v8351_v53 = vld [vmem:[#allocation41_spill] sm:$0xff] }
 0x2a8   : > { %vm8340_vm11 = vcmp.eq.f32.partialorder %v8313_v58, %v8301_v37  ;;  %vm8342_vm13 = vcmp.eq.f32.partialorder %v8313_v58, %v8302_v44  ;;  %vm8343_vm12 = vcmp.eq.f32.partialorder %v8313_v58, %v8303_v17  ;;  %vm8345_vm15 = vcmp.eq.f32.partialorder %v8313_v58, %v8304_v21 }
 0x2a9   : > { %v2969_v27 = vsel %vm8340_vm11, -1.0, %v8339_v5  ;;  %v2970_v11 = vsel %vm8342_vm13, -1.0, %v8341_v23  ;;  %v2971_v16 = vsel %vm8343_vm12, -1.0, %v8222_v52  ;;  %v6870_v15 = vsel %vm8345_vm15, -1.0, %v8344_v39  ;;  %v8358_v39 = vld [vmem:[#allocation14_spill] sm:$0xff] }
 0x2aa   : > { %vm8347_vm1 = vcmp.eq.f32.partialorder %v8313_v58, %v8305_v6  ;;  %vm8348_vm2 = vcmp.eq.f32.partialorder %v8313_v58, %v8306_v38  ;;  %vm8349_vm3 = vcmp.eq.f32.partialorder %v8313_v58, %v8307_v14  ;;  %vm8350_vm0 = vcmp.eq.f32.partialorder %v8313_v58, %v8308_v47 }
 0x2ab   : > { %v6876_v12 = vsel %vm8347_vm1, -1.0, %v8346_v42  ;;  %v6882_v61 = vsel %vm8348_vm2, -1.0, %v8225_v40  ;;  %v6888_v52 = vsel %vm8349_vm3, -1.0, %v8226_v0  ;;  %v6894_v59 = vsel %vm8350_vm0, -1.0, %v8227_v46  ;;  %v8354_v0 = vld [vmem:[#allocation61_spill] sm:$0xff]  ;;  %v8356_v46 = vld [vmem:[#allocation62_spill] sm:$0xff] }
 0x2ac   : > { %vm8352_vm10 = vcmp.eq.f32.partialorder %v8313_v58, %v8309_v25  ;;  %vm8353_vm11 = vcmp.eq.f32.partialorder %v8313_v58, %v8310_v28  ;;  %vm8355_vm13 = vcmp.eq.f32.partialorder %v8313_v58, %v8311_v2  ;;  %vm8357_vm12 = vcmp.eq.f32.partialorder %v8313_v58, %v8312_v22 }
 0x2ad   : > { %v6900_v31 = vsel %vm8352_vm10, -1.0, %v8351_v53  ;;  %v6906_v40 = vsel %vm8353_vm11, -1.0, %v8229_v49  ;;  %v6912_v5 = vsel %vm8355_vm13, -1.0, %v8354_v0  ;;  %v6918_v23 = vsel %vm8357_vm12, -1.0, %v8356_v46  ;;  %v8360_v53 = vld [vmem:[#allocation24_spill] sm:$0xff]  ;;  %v8366_v46 = vld [vmem:[#allocation18_spill] sm:$0xff] }
 0x2ae   : > { %vm8359_vm15 = vcmp.eq.f32.partialorder %v8314_v43, %v8296_v7  ;;  %vm8361_vm1 = vcmp.eq.f32.partialorder %v8314_v43, %v8298_v63  ;;  %vm8363_vm2 = vcmp.eq.f32.partialorder %v8314_v43, %v8299_v51  ;;  %vm8365_vm3 = vcmp.eq.f32.partialorder %v8314_v43, %v8300_v10  ;;  %v8370_v51 = vld [vmem:[#allocation34_spill] sm:$0xff] }
 0x2af   : > { %v2981_v42 = vsel %vm8359_vm15, -1.0, %v8358_v39  ;;  %v2982_v49 = vsel %vm8361_vm1, -1.0, %v8360_v53  ;;  %v2983_v0 = vsel %vm8363_vm2, -1.0, %v8362_v20  ;;  %v2984_v58 = vsel %vm8365_vm3, -1.0, %v8364_v54  ;;  %v8368_v39 = vld [vmem:[#allocation29_spill] sm:$0xff]  ;;  %v8369_v53 = vld [vmem:[#allocation31_spill] sm:$0xff] }
 0x2b0   : > { %vm8367_vm0 = vcmp.eq.f32.partialorder %v8314_v43, %v8301_v37  ;;  %v2986_v63 = vsel %vm2938_vm7, -1.0, %v8368_v39  ;;  %v2987_v20 = vsel %vm2939_vm5, -1.0, %v8369_v53  ;;  %v2988_v10 = vsel %vm2940_vm14, -1.0, %v8370_v51  ;;  %v8373_v54 = vld [vmem:[#allocation58_spill] sm:$0xff] }
 0x2b1   : > { %v2985_v7 = vsel %vm8367_vm0, -1.0, %v8366_v46  ;;  %vm8371_vm10 = vcmp.eq.f32.partialorder %v8314_v43, %v8305_v6  ;;  %vm8372_vm7 = vcmp.eq.f32.partialorder %v8314_v43, %v8306_v38  ;;  %vm8374_vm5 = vcmp.eq.f32.partialorder %v8314_v43, %v8307_v14 }
 0x2b2   : > { %v6956_v37 = vsel %vm8371_vm10, -1.0, %v8270_v36  ;;  %v6962_v44 = vsel %vm8372_vm7, -1.0, %v8177_v30  ;;  %v6968_v17 = vsel %vm8374_vm5, -1.0, %v8373_v54  ;;  %vm8375_vm14 = vcmp.eq.f32.partialorder %v8314_v43, %v8308_v47 }
 0x2b3   : > { %v6974_v21 = vsel %vm8375_vm14, -1.0, %v8240_v45  ;;  %v6980_v36 = vsel %vm2945_vm6, -1.0, %v8275_v33  ;;  %v6986_v30 = vsel %vm2946_vm4, -1.0, %v8242_v50  ;;  %v6992_v6 = vsel %vm2947_vm8, -1.0, %v8243_v3 }
 0x2b4   : > { %v6998_v45 = vsel %vm2948_vm9, -1.0, %v5293_v9  ;;  %v2997_v33 = vmax.f32 %v6740_v41, %v2965_v8  ;;  %vm8376_vm6 = vcmask 1042432   ;;  %v3006_v14 = vmax.f32 %v6746_v24, %v2966_v26 }
 0x2b5   : > { %v2998_v38 = vsel %vm8376_vm6, %v2981_v42, -inf  ;;  %vm8377_vm4 = vmmov %vm8376_vm6  ;;  %v3015_v47 = vmax.f32 %v2951_v55, %v2967_v4  ;;  %v3024_v28 = vmax.f32 %v2952_v62, %v2968_v18  ;;  %v3033_v22 = vmax.f32 %v6768_v60, %v2969_v27 }
 0x2b6   : > { %v3007_v50 = vsel %vm8377_vm4, %v2982_v49, -inf  ;;  %vm8378_vm11 = vmmov %vm8377_vm4  ;;  %v2999_v2 = vmax.f32 %v2997_v33, %v2998_v38  ;;  %v3042_v8 = vmax.f32 %v6774_v13, %v2970_v11  ;;  %v3051_v4 = vmax.f32 %v6781_v1, %v2971_v16 }
 0x2b7   : > { %v3016_v25 = vsel %vm8378_vm11, %v2983_v0, -inf  ;;  %vm8379_vm8 = vmmov %vm8377_vm4  ;;  %v3008_v46 = vmax.f32 %v3006_v14, %v3007_v50  ;;  %v3060_v13 = vmax.f32 %v6787_v48, %v6870_v15 }
 0x2b8   : > { %v3025_v3 = vsel %vm8379_vm8, %v2984_v58, -inf  ;;  %vm8380_vm9 = vmmov %vm8377_vm4  ;;  %v3017_v43 = vmax.f32 %v3015_v47, %v3016_v25  ;;  %v3000_v26 = vrot.slane %v2999_v2, 4 }
 0x2b9   : > { %v3034_v9 = vsel %vm8380_vm9, %v2985_v7, -inf  ;;  %v3026_v41 = vmax.f32 %v3024_v28, %v3025_v3  ;;  %vm8381_vm13 = vmmov %vm8377_vm4  ;;  %v3009_v42 = vrot.slane %v3008_v46, 4 }
 0x2ba   : > { %v3043_v24 = vsel %vm8381_vm13, %v2986_v63, -inf  ;;  %v3035_v55 = vmax.f32 %v3033_v22, %v3034_v9  ;;  %v3018_v62 = vrot.slane %v3017_v43, 4  ;;  %vm8382_vm12 = vmmov %vm8377_vm4  ;;  %v3001_v58 = vmax.f32 %v2999_v2, %v3000_v26 }
 0x2bb   : > { %v3027_v18 = vrot.slane %v3026_v41, 4  ;;  %v3044_v49 = vmax.f32 %v3042_v8, %v3043_v24  ;;  %v3052_v0 = vsel %vm8382_vm12, %v2987_v20, -inf  ;;  %v3010_v60 = vmax.f32 %v3008_v46, %v3009_v42  ;;  %vm8383_vm15 = vmmov %vm8377_vm4 }
 0x2bc   : > { %v3036_v27 = vrot.slane %v3035_v55, 4  ;;  %v3053_v7 = vmax.f32 %v3051_v4, %v3052_v0  ;;  %v3019_v39 = vmax.f32 %v3017_v43, %v3018_v62  ;;  %v3002_v11 = vrot.slane %v3001_v58, 2  ;;  %vm8384_vm1 = vmmov %vm8377_vm4 }
 0x2bd   : > { %v3028_v53 = vmax.f32 %v3026_v41, %v3027_v18  ;;  %v3045_v51 = vrot.slane %v3044_v49, 4  ;;  %v3011_v63 = vrot.slane %v3010_v60, 2  ;;  %v3061_v14 = vsel %vm8383_vm15, %v2988_v10, -inf  ;;  %vm8385_vm2 = vmmov %vm8384_vm1 }
 0x2be   : > { %v3037_v54 = vmax.f32 %v3035_v55, %v3036_v27  ;;  %v3054_v33 = vrot.slane %v3053_v7, 4  ;;  %v3020_v1 = vrot.slane %v3019_v39, 2  ;;  %v3003_v20 = vmax.f32 %v3001_v58, %v3002_v11  ;;  %vm8386_vm3 = vmmov %vm8384_vm1 }
 0x2bf   : > { %v3029_v16 = vrot.slane %v3028_v53, 2  ;;  %v3046_v38 = vmax.f32 %v3044_v49, %v3045_v51  ;;  %v3012_v50 = vmax.f32 %v3010_v60, %v3011_v63  ;;  %v3062_v46 = vmax.f32 %v3060_v13, %v3061_v14  ;;  %vm8387_vm0 = vmmov %vm8384_vm1 }
 0x2c0   : > { %v3038_v47 = vrot.slane %v3037_v54, 2  ;;  %v3055_v25 = vmax.f32 %v3053_v7, %v3054_v33  ;;  %v3021_v28 = vmax.f32 %v3019_v39, %v3020_v1  ;;  %v3004_v22 = vrot.slane %v3003_v20, 1  ;;  %vm8388_vm10 = vmmov %vm8387_vm0 }
 0x2c1   : > { %v3030_v3 = vmax.f32 %v3028_v53, %v3029_v16  ;;  %v3047_v2 = vrot.slane %v3046_v38, 2  ;;  %v3013_v9 = vrot.slane %v3012_v50, 1  ;;  %v3063_v24 = vrot.slane %v3062_v46, 4  ;;  %vm8389_vm7 = vmmov %vm8387_vm0 }
 0x2c2   : > { %v3039_v48 = vmax.f32 %v3037_v54, %v3038_v47  ;;  %v3056_v15 = vrot.slane %v3055_v25, 2  ;;  %v3022_v43 = vrot.slane %v3021_v28, 1  ;;  %v7015_v26 = vmax.f32 %v3003_v20, %v3004_v22  ;;  %vm8390_vm5 = vmmov %vm8387_vm0 }
 0x2c3   : > { %v3031_v41 = vrot.slane %v3030_v3, 1  ;;  %v3048_v8 = vmax.f32 %v3046_v38, %v3047_v2  ;;  %v7017_v42 = vmax.f32 %v3012_v50, %v3013_v9  ;;  %v3064_v49 = vmax.f32 %v3062_v46, %v3063_v24  ;;  %vm8392_vm14 = vmmov %vm8387_vm0 }
 0x2c4   : > { %v3040_v10 = vrot.slane %v3039_v48, 1  ;;  %v3057_v55 = vmax.f32 %v3055_v25, %v3056_v15  ;;  %v7019_v4 = vmax.f32 %v3021_v28, %v3022_v43  ;;  %v3069_v60 = vmax.f32 %v6793_v19, %v6876_v12  ;;  %v8391_v43 = vld [vmem:[#allocation38_spill] sm:$0xff] }
 0x2c5   : > { %v7021_v62 = vmax.f32 %v3030_v3, %v3031_v41  ;;  %v3049_v18 = vrot.slane %v3048_v8, 1  ;;  %v3070_v27 = vsel %vm8384_vm1, %v6956_v37, -inf  ;;  %v3065_v39 = vrot.slane %v3064_v49, 2 }
 0x2c6   : > { %v7023_v0 = vmax.f32 %v3039_v48, %v3040_v10  ;;  %v3058_v58 = vrot.slane %v3057_v55, 1  ;;  %v3078_v53 = vmax.f32 %v6799_v56, %v6882_v61  ;;  %v3079_v51 = vsel %vm8385_vm2, %v6962_v44, -inf }
 0x2c7   : > { %v7029_v7 = vmax.f32 %v3048_v8, %v3049_v18  ;;  %v3071_v11 = vmax.f32 %v3069_v60, %v3070_v27  ;;  %v3087_v63 = vmax.f32 %v6805_v34, %v6888_v52  ;;  %v3088_v19 = vsel %vm8386_vm3, %v6968_v17, -inf }
 0x2c8   : > { %v7035_v13 = vmax.f32 %v3057_v55, %v3058_v58  ;;  %v3066_v12 = vmax.f32 %v3064_v49, %v3065_v39  ;;  %v3080_v37 = vmax.f32 %v3078_v53, %v3079_v51  ;;  %v3096_v54 = vmax.f32 %v6811_v29, %v6894_v59 }
 0x2c9   : > { %v3097_v56 = vsel %vm8387_vm0, %v6974_v21, -inf  ;;  %v3072_v61 = vrot.slane %v3071_v11, 4  ;;  %v3089_v33 = vmax.f32 %v3087_v63, %v3088_v19  ;;  %v3105_v44 = vmax.f32 %v6817_v57, %v6900_v31 }
 0x2ca   : > { %v3106_v1 = vsel %vm8388_vm10, %v6980_v36, -inf  ;;  %v3067_v34 = vrot.slane %v3066_v12, 1  ;;  %v3081_v52 = vrot.slane %v3080_v37, 4  ;;  %v3098_v16 = vmax.f32 %v3096_v54, %v3097_v56 }
 0x2cb   : > { %v3114_v17 = vmax.f32 %v6823_v35, %v6906_v40  ;;  %v3073_v38 = vmax.f32 %v3071_v11, %v3072_v61  ;;  %v3090_v14 = vrot.slane %v3089_v33, 4  ;;  %v3107_v29 = vmax.f32 %v3105_v44, %v3106_v1 }
 0x2cc   : > { %v3115_v59 = vsel %vm8389_vm7, %v6986_v30, -inf  ;;  %v7053_v21 = vmax.f32 %v3066_v12, %v3067_v34  ;;  %v3082_v20 = vmax.f32 %v3080_v37, %v3081_v52  ;;  %v3099_v50 = vrot.slane %v3098_v16, 4  ;;  %v8393_v12 = vld [vmem:[#allocation53_spill] sm:$0xff]  ;;  %v8395_v34 = vld [vmem:[#allocation44_spill] sm:$0xff] }
 0x2cd   : > { %v3116_v57 = vmax.f32 %v3114_v17, %v3115_v59  ;;  %v3074_v31 = vrot.slane %v3073_v38, 2  ;;  %v3091_v47 = vmax.f32 %v3089_v33, %v3090_v14  ;;  %v3108_v36 = vrot.slane %v3107_v29, 4  ;;  %v8394_v33 = vld [vmem:[#allocation4_spill] sm:$0xff] }
 0x2ce   : > { %v3123_v25 = vmax.f32 %v6829_v32, %v6912_v5  ;;  %v3083_v28 = vrot.slane %v3082_v20, 2  ;;  %v3100_v3 = vmax.f32 %v3098_v16, %v3099_v50  ;;  %v3124_v40 = vsel %vm8390_vm5, %v6992_v6, -inf  ;;  %v8396_v16 = vld [vmem:[#allocation54_spill] sm:$0xff] }
 0x2cf   : > { %v3117_v35 = vrot.slane %v3116_v57, 4  ;;  %v3075_v2 = vmax.f32 %v3073_v38, %v3074_v31  ;;  %v3092_v46 = vrot.slane %v3091_v47, 2  ;;  %v3109_v30 = vmax.f32 %v3107_v29, %v3108_v36  ;;  %v8397_v29 = vld [vmem:[#allocation5_spill] sm:$0xff]  ;;  %v8400_v31 = vld [vmem:[#allocation6_spill] sm:$0xff]  ;;  %v8401_v36 = vld [vmem:[#allocation63_spill] sm:$0xff] }
 0x2d0   : > { %v3125_v22 = vmax.f32 %v3123_v25, %v3124_v40  ;;  %v3084_v9 = vmax.f32 %v3082_v20, %v3083_v28  ;;  %v3101_v48 = vrot.slane %v3100_v3, 2  ;;  %v3132_v41 = vmax.f32 %v8391_v43, %v6918_v23  ;;  %v8402_v28 = vld [vmem:[#allocation64_spill] sm:$0xff]  ;;  %v8404_v40 = vld [vmem:[#allocation66_spill] sm:$0xff] }
 0x2d1   : > { %v3118_v15 = vmax.f32 %v3116_v57, %v3117_v35  ;;  %v3076_v8 = vrot.slane %v3075_v2, 1  ;;  %v3093_v24 = vmax.f32 %v3091_v47, %v3092_v46  ;;  %v3110_v10 = vrot.slane %v3109_v30, 2  ;;  %v8399_v57 = vld [vmem:[#allocation57_spill] sm:$0xff]  ;;  %v8405_v46 = vld [vmem:[#allocation67_spill] sm:$0xff] }
 0x2d2   : > { %v3126_v32 = vrot.slane %v3125_v22, 4  ;;  %v3085_v5 = vrot.slane %v3084_v9, 1  ;;  %v3102_v55 = vmax.f32 %v3100_v3, %v3101_v48  ;;  %v3133_v6 = vsel %vm8392_vm14, %v6998_v45, -inf  ;;  %v8403_v3 = vld [vmem:[#allocation65_spill] sm:$0xff] }
 0x2d3   : > { %v3119_v18 = vrot.slane %v3118_v15, 2  ;;  %v3077_v49 = vmax.f32 %v3075_v2, %v3076_v8  ;;  %v3094_v58 = vrot.slane %v3093_v24, 1  ;;  %v3111_v60 = vmax.f32 %v3109_v30, %v3110_v10 }
 0x2d4   : > { %v3127_v27 = vmax.f32 %v3125_v22, %v3126_v32  ;;  %v3086_v39 = vmax.f32 %v3084_v9, %v3085_v5  ;;  %v3103_v53 = vrot.slane %v3102_v55, 1  ;;  %v3134_v11 = vmax.f32 %v3132_v41, %v3133_v6 }
 0x2d5   : > { %v3120_v51 = vmax.f32 %v3118_v15, %v3119_v18  ;;  %v3095_v63 = vmax.f32 %v3093_v24, %v3094_v58  ;;  %v3112_v23 = vrot.slane %v3111_v60, 1  ;;  %v3141_v37 = vsub.f32 %v8393_v12, %v7015_v26  ;;  %v8398_v26 = vld [vmem:[#allocation45_spill] sm:$0xff] }
 0x2d6   : > { %v3128_v19 = vrot.slane %v3127_v27, 2  ;;  %v3104_v54 = vmax.f32 %v3102_v55, %v3103_v53  ;;  %v3135_v61 = vrot.slane %v3134_v11, 4  ;;  %v3142_v45 = vsub.f32 %v8394_v33, %v7017_v42  ;;  %v8408_v18 = vld [vmem:[#allocation69_spill] sm:$0xff] }
 0x2d7   : > { %v3121_v56 = vrot.slane %v3120_v51, 1  ;;  %v3113_v44 = vmax.f32 %v3111_v60, %v3112_v23  ;;  %v3143_v52 = vsub.f32 %v8395_v34, %v7019_v4  ;;  %v3144_v17 = vsub.f32 %v8396_v16, %v7021_v62  ;;  %v3315_v34 = vld [vmem:[%s5485_s22 + $0x8] sm:$0xff] (%p3986_p4)  ;;  %v3319_v16 = vld [vmem:[%s5485_s22 + $0x18] sm:$0xff] (%p3986_p4) }
 0x2d8   : > { %v3129_v1 = vmax.f32 %v3127_v27, %v3128_v19  ;;  %v3136_v14 = vmax.f32 %v3134_v11, %v3135_v61  ;;  %v3145_v59 = vsub.f32 %v8397_v29, %v7023_v0  ;;  %v3146_v20 = vsub.f32 %v8398_v26, %v7029_v7  ;;  %v8406_v7 = vld [vmem:[#allocation68_spill] sm:$0xff]  ;;  %3316 = vst [vmem:[%s7112_s27 + $0x8] sm:$0xff] (%p3986_p4), %v3315_v34  ;;  %v3327_v29 = vld [vmem:[%s5485_s22 + $0x38] sm:$0xff] (%p3986_p4) }
 0x2d9   : > { %v3122_v38 = vmax.f32 %v3120_v51, %v3121_v56  ;;  %v3147_v42 = vsub.f32 %v8399_v57, %v7035_v13  ;;  %v3148_v47 = vsub.f32 %v8400_v31, %v7053_v21  ;;  %v3149_v4 = vsub.f32 %v8401_v36, %v3077_v49  ;;  %v8407_v21 = vld [vmem:[#allocation3_spill] sm:$0xff]  ;;  %v8409_v51 = vld [vmem:[#allocation70_spill] sm:$0xff]  ;;  %3320 = vst [vmem:[%s7112_s27 + $0x18] sm:$0xff] (%p3986_p4), %v3319_v16  ;;  %v3331_v26 = vld [vmem:[%s5485_s22 + $0x48] sm:$0xff] (%p3986_p4) }
 0x2da   : > { %v3130_v50 = vrot.slane %v3129_v1, 1  ;;  %v3137_v25 = vrot.slane %v3136_v14, 2  ;;  %v3150_v62 = vsub.f32 %v8402_v28, %v3086_v39  ;;  %v3151_v35 = vsub.f32 %v8403_v3, %v3095_v63  ;;  %3328 = vst [vmem:[%s7112_s27 + $0x38] sm:$0xff] (%p3986_p4), %v3327_v29  ;;  %3332 = vst [vmem:[%s7112_s27 + $0x48] sm:$0xff] (%p3986_p4), %v3331_v26  ;;  %v3337_v57 = vld [vmem:[%s5485_s22 + $0x60] sm:$0xff] (%p3986_p4)  ;;  %v3341_v31 = vld [vmem:[%s5485_s22 + $0x70] sm:$0xff] (%p3986_p4) }
 0x2db   : > { %v3152_v2 = vsub.f32 %v8404_v40, %v3104_v54  ;;  %v3153_v30 = vsub.f32 %v8405_v46, %v3113_v44  ;;  %v3154_v22 = vsub.f32 %v8406_v7, %v3122_v38  ;;  %v3173_v9 = vcombine.low %v3141_v37, %v3142_v45  ;;  %v3323_v38 = vld [vmem:[%s5485_s22 + $0x28] sm:$0xff] (%p3986_p4)  ;;  %3338 = vst [vmem:[%s7112_s27 + $0x60] sm:$0xff] (%p3986_p4), %v3337_v57  ;;  %v3345_v36 = vld [vmem:[%s5485_s22 + $0x80] sm:$0xff] (%p3986_p4)  ;;  %v3351_v28 = vld [vmem:[%s5485_s22 + $0x98] sm:$0xff] (%p3986_p4) }
 0x2dc   : > { %v3131_v0 = vmax.f32 %v3129_v1, %v3130_v50  ;;  %v3138_v48 = vmax.f32 %v3136_v14, %v3137_v25  ;;  %v3174_v13 = vcombine.low %v3143_v52, %v3144_v17  ;;  %v3175_v15 = vcombine.low %v3145_v59, %v3146_v20  ;;  %v3313_v1 = vld [vmem:[%s5485_s22] sm:$0xff] (%p3986_p4)  ;;  %v3317_v52 = vld [vmem:[%s5485_s22 + $0x10] sm:$0xff] (%p3986_p4)  ;;  %3324 = vst [vmem:[%s7112_s27 + $0x28] sm:$0xff] (%p3986_p4), %v3323_v38  ;;  %v3335_v50 = vld [vmem:[%s5485_s22 + $0x58] sm:$0xff] (%p3986_p4) }
 0x2dd   : > { %v3176_v43 = vcombine.low %v3147_v42, %v3148_v47  ;;  %v3183_v41 = vrot.slane %v3173_v9, %v8407_v21  ;;  %v3222_v8 = vcombine.low %v3149_v4, %v3150_v62  ;;  %v3223_v24 = vcombine.low %v3151_v35, %v3152_v2  ;;  %v3321_v17 = vld [vmem:[%s5485_s22 + $0x20] sm:$0xff] (%p3986_p4)  ;;  %3314 = vst [vmem:[%s7112_s27] sm:$0xff] (%p3986_p4), %v3313_v1  ;;  %v3325_v14 = vld [vmem:[%s5485_s22 + $0x30] sm:$0xff] (%p3986_p4)  ;;  %v3339_v42 = vld [vmem:[%s5485_s22 + $0x68] sm:$0xff] (%p3986_p4) }
 0x2de   : > { %v3139_v10 = vrot.slane %v3138_v48, 1  ;;  %v3190_v32 = vrot.slane %v3174_v13, %v8407_v21  ;;  %v3197_v5 = vrot.slane %v3175_v15, %v8407_v21  ;;  %v3155_v6 = vsub.f32 %v8408_v18, %v3131_v0  ;;  %3318 = vst [vmem:[%s7112_s27 + $0x10] sm:$0xff] (%p3986_p4), %v3317_v52  ;;  %3322 = vst [vmem:[%s7112_s27 + $0x20] sm:$0xff] (%p3986_p4), %v3321_v17  ;;  %v3329_v59 = vld [vmem:[%s5485_s22 + $0x40] sm:$0xff] (%p3986_p4)  ;;  %v3333_v20 = vld [vmem:[%s5485_s22 + $0x50] sm:$0xff] (%p3986_p4) }
 0x2df   : > { %v3204_v55 = vrot.slane %v3176_v43, %v8407_v21  ;;  %v3224_v49 = vcombine.low %v3153_v30, %v3154_v22  ;;  %v3232_v58 = vrot.slane %v3222_v8, %v8407_v21  ;;  %v3239_v53 = vrot.slane %v3223_v24, %v8407_v21  ;;  %3326 = vst [vmem:[%s7112_s27 + $0x30] sm:$0xff] (%p3986_p4), %v3325_v14  ;;  %v3343_v47 = vld [vmem:[%s5485_s22 + $0x78] sm:$0xff] (%p3986_p4)  ;;  %v3347_v4 = vld [vmem:[%s5485_s22 + $0x88] sm:$0xff] (%p3986_p4)  ;;  %v3349_v25 = vld [vmem:[%s5485_s22 + $0x90] sm:$0xff] (%p3986_p4) }
 0x2e0   : > { %v3140_v60 = vmax.f32 %v3138_v48, %v3139_v10  ;;  %v3205_v27 = vcombine.low %v3183_v41, %v3190_v32  ;;  %3330 = vst [vmem:[%s7112_s27 + $0x40] sm:$0xff] (%p3986_p4), %v3329_v59  ;;  %3334 = vst [vmem:[%s7112_s27 + $0x50] sm:$0xff] (%p3986_p4), %v3333_v20  ;;  %v3353_v62 = vld [vmem:[%s5485_s22 + $0xa0] sm:$0xff] (%p3986_p4)  ;;  %v3355_v3 = vld [vmem:[%s5485_s22 + $0xa8] sm:$0xff] (%p3986_p4) }
 0x2e1   : > { %v3206_v39 = vcombine.low %v3197_v5, %v3204_v55  ;;  %v3246_v37 = vrot.slane %v3224_v49, %v8407_v21  ;;  %v3254_v54 = vcombine.low %v3232_v58, %v3239_v53  ;;  %3336 = vst [vmem:[%s7112_s27 + $0x58] sm:$0xff] (%p3986_p4), %v3335_v50  ;;  %3340 = vst [vmem:[%s7112_s27 + $0x68] sm:$0xff] (%p3986_p4), %v3339_v42  ;;  %v3357_v35 = vld [vmem:[%s5485_s22 + $0xb0] sm:$0xff] (%p3986_p4)  ;;  %v3359_v40 = vld [vmem:[%s5485_s22 + $0xb8] sm:$0xff] (%p3986_p4) }
 0x2e2   : > { %v3156_v11 = vsub.f32 %v8409_v51, %v3140_v60  ;;  %v3213_v63 = vrot.slane %v3205_v27, %v8407_v21  ;;  %3342 = vst [vmem:[%s7112_s27 + $0x70] sm:$0xff] (%p3986_p4), %v3341_v31  ;;  %3344 = vst [vmem:[%s7112_s27 + $0x78] sm:$0xff] (%p3986_p4), %v3343_v47  ;;  %v3361_v2 = vld [vmem:[%s5485_s22 + $0xc0] sm:$0xff] (%p3986_p4)  ;;  %v3363_v0 = vld [vmem:[%s5485_s22 + $0xc8] sm:$0xff] (%p3986_p4) }
 0x2e3   : > { %v3220_v23 = vrot.slane %v3206_v39, %v8407_v21  ;;  %v3262_v33 = vrot.slane %v3254_v54, %v8407_v21  ;;  %3346 = vst [vmem:[%s7112_s27 + $0x100] sm:$0xff] (%p3986_p4), %v3345_v36  ;;  %3348 = vst [vmem:[%s7112_s27 + $0x108] sm:$0xff] (%p3986_p4), %v3347_v4  ;;  %v3365_v46 = vld [vmem:[%s5485_s22 + $0xd0] sm:$0xff] (%p3986_p4)  ;;  %v3367_v30 = vld [vmem:[%s5485_s22 + $0xd8] sm:$0xff] (%p3986_p4) }
 0x2e4   : > { %v3225_v12 = vcombine.low %v3155_v6, %v3156_v11  ;;  %3350 = vst [vmem:[%s7112_s27 + $0x110] sm:$0xff] (%p3986_p4), %v3349_v25  ;;  %3352 = vst [vmem:[%s7112_s27 + $0x118] sm:$0xff] (%p3986_p4), %v3351_v28  ;;  %v3369_v7 = vld [vmem:[%s5485_s22 + $0xe0] sm:$0xff] (%p3986_p4)  ;;  %v3371_v22 = vld [vmem:[%s5485_s22 + $0xe8] sm:$0xff] (%p3986_p4) }
 0x2e5   : > { %v3221_v19 = vcombine.low %v3213_v63, %v3220_v23  ;;  %3354 = vst [vmem:[%s7112_s27 + $0x120] sm:$0xff] (%p3986_p4), %v3353_v62  ;;  %3356 = vst [vmem:[%s7112_s27 + $0x128] sm:$0xff] (%p3986_p4), %v3355_v3  ;;  %v3373_v9 = vld [vmem:[%s5485_s22 + $0xf0] sm:$0xff] (%p3986_p4)  ;;  %v3375_v48 = vld [vmem:[%s5485_s22 + $0xf8] sm:$0xff] (%p3986_p4) }
 0x2e6   : > { %v3253_v56 = vrot.slane %v3225_v12, %v8407_v21  ;;  %3358 = vst [vmem:[%s7112_s27 + $0x130] sm:$0xff] (%p3986_p4), %v3357_v35  ;;  %3360 = vst [vmem:[%s7112_s27 + $0x138] sm:$0xff] (%p3986_p4), %v3359_v40  ;;  %v3377_v13 = vld [vmem:[%s5485_s22 + $0x100] sm:$0xff] (%p3986_p4)  ;;  %v3379_v15 = vld [vmem:[%s5485_s22 + $0x108] sm:$0xff] (%p3986_p4) }
 0x2e7   : > { %3273 = vst [vmem:[%s346_s19] sm:$0xff] %v3221_v19  ;;  %3362 = vst [vmem:[%s7112_s27 + $0x140] sm:$0xff] (%p3986_p4), %v3361_v2  ;;  %v3381_v43 = vld [vmem:[%s5485_s22 + $0x110] sm:$0xff] (%p3986_p4)  ;;  %v3385_v41 = vld [vmem:[%s5485_s22 + $0x120] sm:$0xff] (%p3986_p4) }
 0x2e8   : > { %v3255_v61 = vcombine.low %v3246_v37, %v3253_v56  ;;  %3297 = sbr.rel (!%p3986_p4) target bundleno = 756 (0x2f4), region = 40  ;;  %3364 = vst [vmem:[%s7112_s27 + $0x148] sm:$0xff] (%p3986_p4), %v3363_v0  ;;  %3366 = vst [vmem:[%s7112_s27 + $0x150] sm:$0xff] (%p3986_p4), %v3365_v46  ;;  %v3387_v8 = vld [vmem:[%s5485_s22 + $0x128] sm:$0xff] (%p3986_p4)  ;;  %v3389_v24 = vld [vmem:[%s5485_s22 + $0x130] sm:$0xff] (%p3986_p4) }
 0x2e9   : > { %3368 = vst [vmem:[%s7112_s27 + $0x158] sm:$0xff] (%p3986_p4), %v3367_v30  ;;  %3370 = vst [vmem:[%s7112_s27 + $0x160] sm:$0xff] (%p3986_p4), %v3369_v7  ;;  %v3391_v10 = vld [vmem:[%s5485_s22 + $0x138] sm:$0xff] (%p3986_p4)  ;;  %v3393_v32 = vld [vmem:[%s5485_s22 + $0x140] sm:$0xff] (%p3986_p4) }
 0x2ea   : > { %v3269_v45 = vrot.slane %v3255_v61, %v8407_v21  ;;  %3372 = vst [vmem:[%s7112_s27 + $0x168] sm:$0xff] (%p3986_p4), %v3371_v22  ;;  %3374 = vst [vmem:[%s7112_s27 + $0x170] sm:$0xff] (%p3986_p4), %v3373_v9  ;;  %v3383_v21 = vld [vmem:[%s5485_s22 + $0x118] sm:$0xff] (%p3986_p4)  ;;  %v3395_v5 = vld [vmem:[%s5485_s22 + $0x148] sm:$0xff] (%p3986_p4) }
 0x2eb   : > { %3376 = vst [vmem:[%s7112_s27 + $0x178] sm:$0xff] (%p3986_p4), %v3375_v48  ;;  %3378 = vst [vmem:[%s7112_s27 + $0x200] sm:$0xff] (%p3986_p4), %v3377_v13  ;;  %v3397_v55 = vld [vmem:[%s5485_s22 + $0x150] sm:$0xff] (%p3986_p4)  ;;  %v3399_v18 = vld [vmem:[%s5485_s22 + $0x158] sm:$0xff] (%p3986_p4) }
 0x2ec   : > { %v3270_v44 = vcombine.low %v3262_v33, %v3269_v45  ;;  %3380 = vst [vmem:[%s7112_s27 + $0x208] sm:$0xff] (%p3986_p4), %v3379_v15  ;;  %3382 = vst [vmem:[%s7112_s27 + $0x210] sm:$0xff] (%p3986_p4), %v3381_v43  ;;  %v3401_v6 = vld [vmem:[%s5485_s22 + $0x160] sm:$0xff] (%p3986_p4)  ;;  %v3403_v49 = vld [vmem:[%s5485_s22 + $0x168] sm:$0xff] (%p3986_p4) }
 0x2ed   : > { %3384 = vst [vmem:[%s7112_s27 + $0x218] sm:$0xff] (%p3986_p4), %v3383_v21  ;;  %3386 = vst [vmem:[%s7112_s27 + $0x220] sm:$0xff] (%p3986_p4), %v3385_v41  ;;  %v3405_v58 = vld [vmem:[%s5485_s22 + $0x170] sm:$0xff] (%p3986_p4)  ;;  %v3407_v60 = vld [vmem:[%s5485_s22 + $0x178] sm:$0xff] (%p3986_p4) }
 0x2ee   : > { %3274 = vst [vmem:[%s346_s19 + $0x8] sm:$0xff] %v3270_v44  ;;  %3388 = vst [vmem:[%s7112_s27 + $0x228] sm:$0xff] (%p3986_p4), %v3387_v8 }
 0x2ef   : > { %3390 = vst [vmem:[%s7112_s27 + $0x230] sm:$0xff] %v3389_v24  ;;  %3392 = vst [vmem:[%s7112_s27 + $0x238] sm:$0xff] %v3391_v10 }
 0x2f0   : > { %3394 = vst [vmem:[%s7112_s27 + $0x240] sm:$0xff] %v3393_v32  ;;  %3396 = vst [vmem:[%s7112_s27 + $0x248] sm:$0xff] %v3395_v5 }
 0x2f1   : > { %3398 = vst [vmem:[%s7112_s27 + $0x250] sm:$0xff] %v3397_v55  ;;  %3400 = vst [vmem:[%s7112_s27 + $0x258] sm:$0xff] %v3399_v18 }
 0x2f2   : > { %3402 = vst [vmem:[%s7112_s27 + $0x260] sm:$0xff] %v3401_v6  ;;  %3404 = vst [vmem:[%s7112_s27 + $0x268] sm:$0xff] %v3403_v49 }
 0x2f3   : > { %3406 = vst [vmem:[%s7112_s27 + $0x270] sm:$0xff] %v3405_v58  ;;  %3408 = vst [vmem:[%s7112_s27 + $0x278] sm:$0xff] %v3407_v60 }
 0x2f4 PF: > { %p16_p8 = scmp.ge.s32.totalorder %s3976_s9, 4   ;;  %s8410_s27 = smov %s3905_s28 }
 0x2f5   : > { %s8411_s28 = smov %s3984_s12  ;;  %s8412_s29 = smov %s3976_s9 }
 0x2f6   :  { %18 = sbr.rel (!%p16_p8) target bundleno = 2 (0x2), region = 142 }

// kernel: road_anomaly_forward.4
= control target key start
LH: loop header
LB: loop body
LE: loop exit
PB: predicated region body
PF: predicated region fallthrough
CT: control target
= control target key end

     0   :  { %s1390_s24 = smov 0   ;;  %s1392_s25 = smov 0   ;;  %s1825_s0 = inlined_call_operand.vmem [shape: f32[3,1024], index: 0, kind: input, shape index: {}]   ;;  %s1826_s1 = inlined_call_operand.vmem [shape: f32[19,1024], index: 1, kind: input, shape index: {}]   ;;  %s1827_s2 = inlined_call_operand.vmem [shape: f32[1,1024], index: 2, kind: input, shape index: {}]   ;;  %s1828_s3 = inlined_call_operand.vmem [shape: f32[3,1024], index: 3, kind: input, shape index: {}]   ;;  %s1829_s4 = inlined_call_operand.vmem [shape: f32[23,3], index: 4, kind: input, shape index: {}]   ;;  %s1830_s5 = inlined_call_operand.vmem [shape: f32[3,1], index: 5, kind: input, shape index: {}]   ;;  %s1831_s6 = inlined_call_operand.vmem [shape: f32[3,1024], index: 6, kind: output, shape index: {0}]   ;;  %s1832_s7 = inlined_call_operand.vmem [shape: f32[1,1024], index: 7, kind: output, shape index: {1}]  }
   0x1   :  { %s1394_s26 = smov 0  }
   0x2 LB: > { %s1217_s27 = sadd.s32 4294967295, %s1344_s26   ;;  %s1407_s28 = sadd.s32 1, %s1344_s26   ;;  %s1344_s26 = sphi %s1394_s26, %s1861_s26   ;;  %s1340_s25 = sphi %s1392_s25, %s1860_s25   ;;  %s1336_s24 = sphi %s1390_s24, %s1859_s24  }
   0x3   : > { %s48_s29 = ssub.s32 %s1344_s26, %s1407_s28  ;;  %s51_s30 = sadd.s32 1, %s1340_s25 }
   0x4   : > { %p49_p0 = scmp.eq.s32.totalorder %s48_s29, 0  ;;  %p58_p1 = scmp.ne.s32.totalorder %s1340_s25, %s1336_s24 }
   0x5   : > { %p59_p2 = scmp.eq.s32.totalorder %s1344_s26, 0  ;;  %p1220_p4 = scmp.ge.s32.totalorder %s1344_s26, 2 }
   0x6   : > { %s1416_s8 = scalar_select %p49_p0, %s1340_s25, %s51_s30  }
   0x7   : > { %p60_p3 = por %p59_p2, %p58_p1  ;;  %236 = sbr.rel (%p1220_p4) target bundleno = 25 (0x19), region = 24 }
   0xe   : > { %248 = sbr.rel (!%p60_p3) target bundleno = 25 (0x19), region = 32  ;;  %s250_s9 = sand.u32 (%p60_p3), 1, %s1340_s25  }
   0xf   : > { %s1250_s10 = sshll.u32 (%p60_p3), %s1344_s26, 5  ;;  %s1251_s11 = smul.u32 (%p60_p3), 96, %s250_s9 }
  0x10   : > { %s255_s14 = scalar_lea.vmem (%p60_p3), %s1826_s1, %s1250_s10 }
  0x11   : > { %v268_v0 = vld [vmem:[%s255_s14] sm:$0xff] (%p60_p3)  ;;  %v270_v1 = vld [vmem:[%s255_s14 + $0x8] sm:$0xff] (%p60_p3)  ;;  %v272_v2 = vld [vmem:[%s255_s14 + $0x10] sm:$0xff] (%p60_p3)  ;;  %s252_s15 = scalar_lea.vmem (%p60_p3), [#allocation2], %s1251_s11 }
  0x12   : > { %v274_v3 = vld [vmem:[%s255_s14 + $0x18] sm:$0xff] (%p60_p3)  ;;  %v276_v4 = vld [vmem:[%s255_s14 + $0x40] sm:$0xff] (%p60_p3)  ;;  %v278_v5 = vld [vmem:[%s255_s14 + $0x48] sm:$0xff] (%p60_p3)  ;;  %269 = vst [vmem:[%s252_s15] sm:$0xff] (%p60_p3), %v268_v0 }
  0x13   : > { %271 = vst [vmem:[%s252_s15 + $0x8] sm:$0xff] (%p60_p3), %v270_v1  ;;  %273 = vst [vmem:[%s252_s15 + $0x10] sm:$0xff] (%p60_p3), %v272_v2  ;;  %v280_v6 = vld [vmem:[%s255_s14 + $0x50] sm:$0xff] (%p60_p3)  ;;  %v282_v7 = vld [vmem:[%s255_s14 + $0x58] sm:$0xff] (%p60_p3) }
  0x14   : > { %275 = vst [vmem:[%s252_s15 + $0x18] sm:$0xff] (%p60_p3), %v274_v3  ;;  %277 = vst [vmem:[%s252_s15 + $0x20] sm:$0xff] (%p60_p3), %v276_v4  ;;  %v284_v8 = vld [vmem:[%s255_s14 + $0x80] sm:$0xff] (%p60_p3)  ;;  %v286_v9 = vld [vmem:[%s255_s14 + $0x88] sm:$0xff] (%p60_p3) }
  0x15   : > { %279 = vst [vmem:[%s252_s15 + $0x28] sm:$0xff] %v278_v5  ;;  %281 = vst [vmem:[%s252_s15 + $0x30] sm:$0xff] %v280_v6  ;;  %v288_v10 = vld [vmem:[%s255_s14 + $0x90] sm:$0xff]  ;;  %v290_v11 = vld [vmem:[%s255_s14 + $0x98] sm:$0xff] }
  0x16   : > { %283 = vst [vmem:[%s252_s15 + $0x38] sm:$0xff] %v282_v7  ;;  %285 = vst [vmem:[%s252_s15 + $0x40] sm:$0xff] %v284_v8 }
  0x17   : > { %287 = vst [vmem:[%s252_s15 + $0x48] sm:$0xff] %v286_v9  ;;  %289 = vst [vmem:[%s252_s15 + $0x50] sm:$0xff] %v288_v10 }
  0x18   : > { %291 = vst [vmem:[%s252_s15 + $0x58] sm:$0xff] %v290_v11 }
  0x19 PF: > { %p1223_p5 = scmp.ge.s32.totalorder %s1344_s26, 1  ;;  %p313_p6 = scmp.lt.s32.totalorder %s1344_s26, 3 }
  0x1b   : > { %p314_p7 = pnand %p1223_p5, %p313_p6 }
  0x1c   : > { %v677_v12 = vld [vmem:[%s1829_s4 + $0x3] sm:$0xff] (!%p314_p7)  ;;  %v1346_v13 = vmov (!%p314_p7), 1   ;;  %v1347_v14 = vmov (!%p314_p7), 0   ;;  %v678_v15 = vld [vmem:[%s1829_s4 + $0xb] sm:$0xff] (!%p314_p7)  ;;  %v679_v16 = vld [vmem:[%s1829_s4 + $0x13] sm:$0x7] (!%p314_p7)  ;;  %v1833_v29 = vlaneseq (!%p314_p7) }
  0x1d   : > { %317 = sbr.rel (%p314_p7) target bundleno = 282 (0x11a), region = 63  ;;  %1282 = vset.pattern.permute.xlu1 (!%p314_p7), %v1346_v13  ;;  %1281 = vset.pattern.permute.xlu0 (!%p314_p7), %v1347_v14  ;;  %v447_v17 = vld [vmem:[%s1829_s4 + $0x13] sm:$0x7] (!%p314_p7)  ;;  %v1348_v18 = vmov (!%p314_p7), 2   ;;  %v631_v19 = vld [vmem:[%s1829_s4] sm:$0x7] (!%p314_p7) }
  0x1e   : > { %694 = vperm.xlu1 (!%p314_p7), %1282, %v677_v12   ;;  %462 = vperm.xlu0 (!%p314_p7), %1281, %v677_v12   ;;  %v398_v20 = vld [vmem:[%s1829_s4] sm:$0x7] (!%p314_p7)  ;;  %v910_v21 = vld [vmem:[%s1829_s4 + $0x13] sm:$0x7] (!%p314_p7)  ;;  %v527_v22 = vld [vmem:[%s1829_s4 + $0x16] sm:$0x1] (!%p314_p7) }
  0x1f   : > { %v862_v23 = vld [vmem:[%s1829_s4] sm:$0x7] (!%p314_p7)  ;;  %v759_v26 = vld [vmem:[%s1829_s4 + $0x16] sm:$0x1] (!%p314_p7)  ;;  %s1224_s10 = sshll.u32 (!%p314_p7), %s1217_s27, 2  ;;  %s320_s12 = sand.u32 (!%p314_p7), 1, %s1336_s24  }
  0x20   : > { %v563_v24 = vld [vmem:[%s1830_s5] sm:$0x1] (!%p314_p7)  ;;  %v1026_v25 = vld [vmem:[%s1830_s5 + $0x2] sm:$0x1] (!%p314_p7)  ;;  %v990_v27 = vld [vmem:[%s1829_s4 + $0x16] sm:$0x1] (!%p314_p7) }
  0x21   : > { %v795_v28 = vld [vmem:[%s1830_s5 + $0x1] sm:$0x1] (!%p314_p7)  ;;  %p370_p8 = scmp.lt.s32.totalorder (!%p314_p7), %s1224_s10, 7  ;;  %s1252_s16 = smul.u32 (!%p314_p7), 96, %s320_s12  ;;  %v1481_v30 = vshrl.u32 (!%p314_p7), %v1833_v29, 7  ;;  %vm416_vm0 = vcmask (!%p314_p7), 1042432  }
  0x22   : > { %699 = vperm.xlu1 (!%p314_p7), %1282, %v678_v15   ;;  %467 = vperm.xlu0 (!%p314_p7), %1281, %v678_v15   ;;  %v1349_v0 = vmov (!%p314_p7), 1966171168  }
  0x23   : > { %v1502_v37 = vsub.s32 (!%p314_p7), 0, %v1481_v30  ;;  %v1505_v38 = vsub.s32 (!%p314_p7), 1, %v1481_v30  ;;  %v1508_v39 = vsub.s32 (!%p314_p7), 2, %v1481_v30  ;;  %v1511_v40 = vsub.s32 (!%p314_p7), 3, %v1481_v30  ;;  %s1519_s24 = scalar_lea.vmem (!%p314_p7), [#allocation2], %s1252_s16 }
  0x24   : > { %s1863_s10 = smov (!%p370_p8, %s1224_s10), 7  ;;  %v1522_v43 = vld [vmem:[%s1519_s24] sm:$0xff]  ;;  %v1531_v48 = vld [vmem:[%s1519_s24 + $0x8] sm:$0xff]  ;;  %v1534_v49 = vld [vmem:[%s1519_s24 + $0x10] sm:$0xff]  ;;  %v1567_v1 = vunpack.c.l.s4 %v1349_v0 }
  0x25   : > { %s1473_s11 = sshll.u32 %s1863_s10, 2  ;;  %s1489_s17 = scalar_lea.vmem %s1827_s2, %s1863_s10  ;;  %v1537_v50 = vld [vmem:[%s1519_s24 + $0x18] sm:$0xff]  ;;  %v1548_v56 = vld [vmem:[%s1519_s24 + $0x20] sm:$0xff]  ;;  %v1559_v61 = vld [vmem:[%s1519_s24 + $0x28] sm:$0xff] }
  0x26   : > { %704 = vperm.xlu1 %1282, %v679_v16   ;;  %472 = vperm.xlu0 %1281, %v447_v17   ;;  %s373_s15 = scalar_lea.vmem %s1825_s0, %s1473_s11  ;;  %v1514_v41 = vld [vmem:[%s1489_s17] sm:$0xf]  ;;  %v1562_v62 = vld [vmem:[%s1519_s24 + $0x30] sm:$0xff]  ;;  %v1565_v63 = vld [vmem:[%s1519_s24 + $0x38] sm:$0xff]  ;;  %s1782_s20 = scalar_lea.vmem %s1831_s6, %s1473_s11 }
  0x27   : > { %v1483_v31 = vld [vmem:[%s373_s15] sm:$0x77]  ;;  %v1491_v32 = vld [vmem:[%s373_s15 + $0x8] sm:$0x77]  ;;  %v459_v4 = vld [vmem:[%s1519_s24 + $0x58] sm:$0x7]  ;;  %s385_s23 = scalar_lea.vmem %s1828_s3, %s1473_s11  ;;  %s396_s9 = scalar_lea.vmem %s1832_s7, %s1863_s10 }
  0x28   : > { %v1493_v33 = vld [vmem:[%s373_s15] sm:$0x77]  ;;  %v1495_v34 = vld [vmem:[%s373_s15 + $0x8] sm:$0x77]  ;;  %v641_v44 = vcombine.high %v1483_v31, %v1483_v31 }
  0x29   : > { %v1497_v35 = vld [vmem:[%s373_s15] sm:$0x77]  ;;  %v1499_v36 = vld [vmem:[%s373_s15 + $0x8] sm:$0x77] }
  0x2a   : > { %1284 = vset.pattern.permute.xlu1 %v1348_v18  ;;  %1283 = vset.pattern.permute.xlu0 %v1348_v18  ;;  %v1517_v42 = vld [vmem:[%s1489_s17] sm:$0xf]  ;;  %v457_v29 = vld [vmem:[%s1519_s24 + $0x48] sm:$0x7] }
  0x2b   : > { %930 = vperm.xlu1 %1284, %v678_v15   ;;  %925 = vperm.xlu0 %1283, %v677_v12  }
  0x2f   : > { %1285 = vset.pattern.permute.xlu1 %v1347_v14  ;;  %1286 = vset.pattern.permute.xlu0 %v1346_v13 }
  0x30   : > { %636 = vperm.xlu0 %1286, %v631_v19   ;;  %403 = vperm.xlu1 %1285, %v398_v20   ;;  %v688_v19 = vld [vmem:[%s1519_s24 + $0x40] sm:$0x7]  ;;  %v689_v20 = vld [vmem:[%s1519_s24 + $0x48] sm:$0x7] }
  0x34   : > { %1287 = vset.pattern.permute.xlu1 %v1348_v18  ;;  %1288 = vset.pattern.permute.xlu0 %v1347_v14 }
  0x35   : > { %935 = vperm.xlu1 %1287, %v910_v21   ;;  %531 = vperm.xlu0 %1288, %v527_v22  }
  0x39   : > { %867 = vperm.xlu1 %1287, %v862_v23   ;;  %566 = vperm.xlu0 %1288, %v563_v24  }
  0x3d   : > { %1289 = vset.pattern.permute.xlu1 %v1346_v13  ;;  %1029 = vperm.xlu0 %1288, %v1026_v25   ;;  %v690_v25 = vld [vmem:[%s1519_s24 + $0x50] sm:$0x7] }
  0x3e   : > { %763 = vperm.xlu1 %1289, %v759_v26   ;;  %v691_v26 = vld [vmem:[%s1519_s24 + $0x58] sm:$0x7] }
  0x42   : > { %1290 = vset.pattern.permute.xlu1 %v1348_v18 }
  0x43   : > { %994 = vperm.xlu1 %1290, %v990_v27   ;;  %v456_v27 = vld [vmem:[%s1519_s24 + $0x40] sm:$0x7] }
  0x47   : > { %1291 = vset.pattern.permute.xlu1 %v1347_v14 }
  0x48   : > { %798 = vperm.xlu1 %1291, %v795_v28  }
  0x9d   : > { %v695_v47 = vpop.permute.xlu1 %694  ;;  %v463_v51 = vpop.permute.xlu0 %462 }
  0x9e   : > { %v707_v5 = vmul.f32 %v695_v47, %v1522_v43  ;;  %v708_v6 = vmul.f32 %v695_v47, %v1531_v48  ;;  %v709_v7 = vmul.f32 %v695_v47, %v1534_v49  ;;  %v710_v8 = vmul.f32 %v695_v47, %v1537_v50 }
  0x9f   : > { %v475_v9 = vmul.f32 %v1522_v43, %v463_v51  ;;  %v476_v10 = vmul.f32 %v1531_v48, %v463_v51  ;;  %v477_v11 = vmul.f32 %v1534_v49, %v463_v51  ;;  %v478_v12 = vmul.f32 %v1537_v50, %v463_v51 }
  0xa1   : > { %v700_v13 = vpop.permute.xlu1 %699  ;;  %v468_v14 = vpop.permute.xlu0 %467 }
  0xa2   : > { %v711_v15 = vmul.f32 %v700_v13, %v1548_v56  ;;  %v712_v16 = vmul.f32 %v700_v13, %v1559_v61  ;;  %v713_v17 = vmul.f32 %v700_v13, %v1562_v62  ;;  %v714_v18 = vmul.f32 %v700_v13, %v1565_v63  ;;  %v458_v13 = vld [vmem:[%s1519_s24 + $0x50] sm:$0x7] }
  0xa3   : > { %v479_v21 = vmul.f32 %v1548_v56, %v468_v14  ;;  %v480_v22 = vmul.f32 %v1559_v61, %v468_v14  ;;  %v481_v23 = vmul.f32 %v1562_v62, %v468_v14  ;;  %v482_v24 = vmul.f32 %v1565_v63, %v468_v14 }
  0xa4   : > { %v719_v28 = vadd.f32 %v711_v15, %v707_v5  ;;  %v728_v47 = vadd.f32 %v712_v16, %v708_v6  ;;  %v737_v51 = vadd.f32 %v713_v17, %v709_v7  ;;  %v746_v0 = vadd.f32 %v714_v18, %v710_v8 }
  0xa5   : > { %v487_v3 = vadd.f32 %v479_v21, %v475_v9  ;;  %v496_v2 = vadd.f32 %v480_v22, %v476_v10  ;;  %v505_v60 = vadd.f32 %v481_v23, %v477_v11  ;;  %v514_v59 = vadd.f32 %v482_v24, %v478_v12  ;;  %v705_v58 = vpop.permute.xlu1 %704  ;;  %v473_v57 = vpop.permute.xlu0 %472  ;;  %v1608_v21 = vld [vmem:[%s1489_s17] sm:$0xf] }
  0xa6   : > { %v715_v55 = vmul.f32 %v705_v58, %v688_v19  ;;  %v716_v54 = vmul.f32 %v705_v58, %v689_v20  ;;  %v717_v53 = vmul.f32 %v705_v58, %v690_v25  ;;  %v718_v14 = vmul.f32 %v705_v58, %v691_v26 }
  0xa7   : > { %v483_v52 = vmul.f32 %v473_v57, %v456_v27  ;;  %v484_v46 = vmul.f32 %v473_v57, %v457_v29  ;;  %v485_v45 = vmul.f32 %v473_v57, %v458_v13  ;;  %v486_v5 = vmul.f32 %v473_v57, %v459_v4 }
  0xa8   : > { %v720_v6 = vsel %vm416_vm0, %v715_v55, 0.0  ;;  %v729_v7 = vsel %vm416_vm0, %v716_v54, 0.0  ;;  %v738_v8 = vsel %vm416_vm0, %v717_v53, 0.0  ;;  %v747_v9 = vsel %vm416_vm0, %v718_v14, 0.0 }
  0xa9   : > { %v721_v10 = vadd.f32 %v720_v6, %v719_v28  ;;  %v730_v11 = vadd.f32 %v729_v7, %v728_v47  ;;  %v739_v12 = vadd.f32 %v738_v8, %v737_v51  ;;  %v748_v15 = vadd.f32 %v747_v9, %v746_v0 }
  0xaa   : > { %v488_v16 = vsel %vm416_vm0, %v483_v52, 0.0  ;;  %v497_v58 = vsel %vm416_vm0, %v484_v46, 0.0  ;;  %v506_v29 = vsel %vm416_vm0, %v485_v45, 0.0  ;;  %v515_v57 = vsel %vm416_vm0, %v486_v5, 0.0  ;;  %v926_v45 = vpop.permute.xlu0 %925  ;;  %v931_v28 = vpop.permute.xlu1 %930 }
  0xab   : > { %v722_v55 = vrot.slane %v721_v10, 4  ;;  %v731_v4 = vrot.slane %v730_v11, 4  ;;  %v740_v54 = vrot.slane %v739_v12, 4  ;;  %v749_v17 = vrot.slane %v748_v15, 4 }
  0xac   : > { %v489_v53 = vadd.f32 %v488_v16, %v487_v3  ;;  %v498_v18 = vadd.f32 %v497_v58, %v496_v2  ;;  %v507_v19 = vadd.f32 %v506_v29, %v505_v60  ;;  %v516_v20 = vadd.f32 %v515_v57, %v514_v59 }
  0xad   : > { %v1610_v22 = vadd.f32 %v722_v55, %v721_v10  ;;  %v1612_v23 = vadd.f32 %v731_v4, %v730_v11  ;;  %v1614_v52 = vadd.f32 %v740_v54, %v739_v12  ;;  %v1616_v46 = vadd.f32 %v749_v17, %v748_v15 }
  0xae   : > { %v490_v24 = vrot.slane %v489_v53, 4  ;;  %v499_v25 = vrot.slane %v498_v18, 4  ;;  %v508_v26 = vrot.slane %v507_v19, 4  ;;  %v517_v27 = vrot.slane %v516_v20, 4 }
  0xaf   : > { %v942_v12 = vmul.f32 %v931_v28, %v1548_v56  ;;  %v943_v15 = vmul.f32 %v931_v28, %v1559_v61  ;;  %v944_v16 = vmul.f32 %v931_v28, %v1562_v62  ;;  %v945_v58 = vmul.f32 %v931_v28, %v1565_v63  ;;  %v637_v29 = vpop.permute.xlu0 %636  ;;  %v404_v17 = vpop.permute.xlu1 %403 }
  0xb0   : > { %v491_v47 = vadd.f32 %v490_v24, %v489_v53  ;;  %v500_v51 = vadd.f32 %v499_v25, %v498_v18  ;;  %v509_v0 = vadd.f32 %v508_v26, %v507_v19  ;;  %v518_v13 = vadd.f32 %v517_v27, %v516_v20 }
  0xb1   : > { %v938_v55 = vmul.f32 %v926_v45, %v1522_v43  ;;  %v939_v4 = vmul.f32 %v926_v45, %v1531_v48  ;;  %v940_v54 = vmul.f32 %v926_v45, %v1534_v49  ;;  %v941_v61 = vmul.f32 %v926_v45, %v1537_v50 }
  0xb2   : > { %v492_v9 = vrot.slane %v491_v47, 2  ;;  %v501_v10 = vrot.slane %v500_v51, 2  ;;  %v510_v11 = vrot.slane %v509_v0, 2  ;;  %v519_v57 = vrot.slane %v518_v13, 2 }
  0xb3   : > { %v645_v62 = vmul.f32 %v637_v29, %v1483_v31  ;;  %v646_v63 = vmul.f32 %v641_v44, %v637_v29  ;;  %v647_v43 = vmul.f32 %v637_v29, %v1491_v32  ;;  %v1834_v48 = vcombine.high %v1491_v32, %v1491_v32 }
  0xb4   : > { %v1638_v53 = vadd.f32 %v492_v9, %v491_v47  ;;  %v1640_v18 = vadd.f32 %v501_v10, %v500_v51  ;;  %v1642_v56 = vadd.f32 %v510_v11, %v509_v0  ;;  %v412_v19 = vmul.f32 %v404_v17, %v1493_v33 }
  0xb5   : > { %v648_v49 = vmul.f32 %v1834_v48, %v637_v29  ;;  %v1835_v20 = vcombine.high %v1493_v33, %v1493_v33  ;;  %v414_v50 = vmul.f32 %v404_v17, %v1495_v34  ;;  %v1836_v45 = vcombine.high %v1495_v34, %v1495_v34 }
  0xb6   : > { %v649_v31 = vsel %vm416_vm0, %v645_v62, 0.0  ;;  %v656_v44 = vsel %vm416_vm0, %v646_v63, 0.0  ;;  %v663_v26 = vsel %vm416_vm0, %v647_v43, 0.0  ;;  %v417_v33 = vsel %vm416_vm0, %v412_v19, 0.0 }
  0xb7   : > { %v413_v24 = vmul.f32 %v1835_v20, %v404_v17  ;;  %v415_v25 = vmul.f32 %v1836_v45, %v404_v17  ;;  %v670_v32 = vsel %vm416_vm0, %v648_v49, 0.0  ;;  %v650_v27 = vrot.slane %v649_v31, 4  ;;  %v919_v45 = vld [vmem:[%s1519_s24 + $0x40] sm:$0x7] }
  0xb8   : > { %v657_v28 = vrot.slane %v656_v44, 4  ;;  %v664_v47 = vrot.slane %v663_v26, 4  ;;  %v671_v51 = vrot.slane %v670_v32, 4  ;;  %v431_v34 = vsel %vm416_vm0, %v414_v50, 0.0  ;;  %v936_v50 = vpop.permute.xlu1 %935 }
  0xb9   : > { %v424_v0 = vsel %vm416_vm0, %v413_v24, 0.0  ;;  %v438_v9 = vsel %vm416_vm0, %v415_v25, 0.0  ;;  %v1669_v10 = vadd.f32 %v519_v57, %v518_v13  ;;  %v651_v11 = vadd.f32 %v650_v27, %v649_v31  ;;  %v921_v27 = vld [vmem:[%s1519_s24 + $0x50] sm:$0x7] }
  0xba   : > { %v658_v29 = vadd.f32 %v657_v28, %v656_v44  ;;  %v665_v17 = vadd.f32 %v664_v47, %v663_v26  ;;  %v418_v62 = vrot.slane %v417_v33, 4  ;;  %v425_v63 = vrot.slane %v424_v0, 4  ;;  %v920_v44 = vld [vmem:[%s1519_s24 + $0x48] sm:$0x7]  ;;  %v922_v26 = vld [vmem:[%s1519_s24 + $0x58] sm:$0x7] }
  0xbb   : > { %v432_v43 = vrot.slane %v431_v34, 4  ;;  %v439_v48 = vrot.slane %v438_v9, 4  ;;  %v652_v49 = vrot.slane %v651_v11, 2  ;;  %v1671_v24 = vadd.f32 %v671_v51, %v670_v32 }
  0xbc   : > { %v659_v19 = vrot.slane %v658_v29, 2  ;;  %v666_v20 = vrot.slane %v665_v17, 2  ;;  %v419_v25 = vadd.f32 %v418_v62, %v417_v33  ;;  %v426_v13 = vadd.f32 %v425_v63, %v424_v0 }
  0xbd   : > { %v433_v57 = vadd.f32 %v432_v43, %v431_v34  ;;  %v440_v31 = vadd.f32 %v439_v48, %v438_v9  ;;  %v950_v28 = vadd.f32 %v942_v12, %v938_v55  ;;  %v959_v47 = vadd.f32 %v943_v15, %v939_v4  ;;  %v868_v55 = vpop.permute.xlu1 %867 }
  0xbe   : > { %v968_v2 = vadd.f32 %v944_v16, %v940_v54  ;;  %v977_v8 = vadd.f32 %v945_v58, %v941_v61  ;;  %v420_v6 = vrot.slane %v419_v25, 2  ;;  %v427_v5 = vrot.slane %v426_v13, 2 }
  0xbf   : > { %v434_v14 = vrot.slane %v433_v57, 2  ;;  %v441_v7 = vrot.slane %v440_v31, 2  ;;  %v946_v3 = vmul.f32 %v936_v50, %v919_v45  ;;  %v947_v32 = vmul.f32 %v936_v50, %v920_v44 }
  0xc0   : > { %v948_v51 = vmul.f32 %v936_v50, %v921_v27  ;;  %v949_v60 = vmul.f32 %v936_v50, %v922_v26  ;;  %v1677_v59 = vadd.f32 %v652_v49, %v651_v11  ;;  %v1679_v33 = vadd.f32 %v659_v19, %v658_v29 }
  0xc1   : > { %v1681_v0 = vadd.f32 %v666_v20, %v665_v17  ;;  %v673_v34 = vrot.slane %v1671_v24, 2  ;;  %v951_v12 = vsel %vm416_vm0, %v946_v3, 0.0  ;;  %v960_v15 = vsel %vm416_vm0, %v947_v32, 0.0 }
  0xc2   : > { %v969_v16 = vsel %vm416_vm0, %v948_v51, 0.0  ;;  %v978_v58 = vsel %vm416_vm0, %v949_v60, 0.0  ;;  %v421_v4 = vadd.f32 %v420_v6, %v419_v25  ;;  %v428_v54 = vadd.f32 %v427_v5, %v426_v13 }
  0xc3   : > { %v435_v61 = vadd.f32 %v434_v14, %v433_v57  ;;  %v442_v9 = vadd.f32 %v441_v7, %v440_v31  ;;  %v952_v11 = vadd.f32 %v951_v12, %v950_v28  ;;  %v961_v29 = vadd.f32 %v960_v15, %v959_v47 }
  0xc4   : > { %v970_v62 = vadd.f32 %v969_v16, %v968_v2  ;;  %v979_v17 = vadd.f32 %v978_v58, %v977_v8  ;;  %v876_v63 = vmul.f32 %v868_v55, %v1497_v35  ;;  %v1837_v3 = vcombine.high %v1497_v35, %v1497_v35 }
  0xc5   : > { %v878_v48 = vmul.f32 %v868_v55, %v1499_v36  ;;  %v1838_v60 = vcombine.high %v1499_v36, %v1499_v36  ;;  %v953_v6 = vrot.slane %v952_v11, 4  ;;  %v962_v5 = vrot.slane %v961_v29, 4 }
  0xc6   : > { %v877_v43 = vmul.f32 %v1837_v3, %v868_v55  ;;  %v971_v14 = vrot.slane %v970_v62, 4  ;;  %v980_v7 = vrot.slane %v979_v17, 4  ;;  %v880_v19 = vsel %vm416_vm0, %v876_v63, 0.0 }
  0xc7   : > { %v879_v49 = vmul.f32 %v1838_v60, %v868_v55  ;;  %v894_v8 = vsel %vm416_vm0, %v878_v48, 0.0  ;;  %v954_v35 = vadd.f32 %v953_v6, %v952_v11  ;;  %v963_v50 = vadd.f32 %v962_v5, %v961_v29 }
  0xc8   : > { %v887_v2 = vsel %vm416_vm0, %v877_v43, 0.0  ;;  %v972_v45 = vadd.f32 %v971_v14, %v970_v62  ;;  %v981_v25 = vadd.f32 %v980_v7, %v979_v17  ;;  %v881_v13 = vrot.slane %v880_v19, 4  ;;  %v532_v14 = vpop.permute.xlu0 %531 }
  0xc9   : > { %v901_v20 = vsel %vm416_vm0, %v879_v49, 0.0  ;;  %v888_v57 = vrot.slane %v887_v2, 4  ;;  %v895_v36 = vrot.slane %v894_v8, 4  ;;  %v955_v44 = vrot.slane %v954_v35, 2 }
  0xca   : > { %v902_v31 = vrot.slane %v901_v20, 4  ;;  %v964_v27 = vrot.slane %v963_v50, 2  ;;  %v973_v26 = vrot.slane %v972_v45, 2  ;;  %v982_v28 = vrot.slane %v981_v25, 2 }
  0xcb   : > { %v882_v47 = vadd.f32 %v881_v13, %v880_v19  ;;  %v889_v32 = vadd.f32 %v888_v57, %v887_v2  ;;  %v896_v51 = vadd.f32 %v895_v36, %v894_v8  ;;  %v422_v15 = vrot.slane %v421_v4, 1 }
  0xcc   : > { %v903_v12 = vadd.f32 %v902_v31, %v901_v20  ;;  %v429_v16 = vrot.slane %v428_v54, 1  ;;  %v436_v58 = vrot.slane %v435_v61, 1  ;;  %v443_v55 = vrot.slane %v442_v9, 1 }
  0xcd   : > { %v883_v11 = vrot.slane %v882_v47, 2  ;;  %v890_v29 = vrot.slane %v889_v32, 2  ;;  %v897_v62 = vrot.slane %v896_v51, 2  ;;  %v956_v63 = vadd.f32 %v955_v44, %v954_v35 }
  0xce   : > { %v904_v17 = vrot.slane %v903_v12, 2  ;;  %v965_v3 = vadd.f32 %v964_v27, %v963_v50  ;;  %v974_v43 = vadd.f32 %v973_v26, %v972_v45  ;;  %v983_v48 = vadd.f32 %v982_v28, %v981_v25  ;;  %v1712_v28 = vpop.permute.xlu1 %763 }
  0xcf   : > { %v884_v60 = vadd.f32 %v883_v11, %v882_v47  ;;  %v891_v49 = vadd.f32 %v890_v29, %v889_v32  ;;  %v898_v6 = vadd.f32 %v897_v62, %v896_v51  ;;  %v1839_v7 = vrot.slane %v1514_v41, %v1502_v37 }
  0xd0   : > { %v905_v5 = vadd.f32 %v904_v17, %v903_v12  ;;  %v1840_v2 = vrot.slane %v1514_v41, %v1505_v38  ;;  %v1841_v20 = vrot.slane %v1514_v41, %v1508_v39  ;;  %v1842_v50 = vrot.slane %v1514_v41, %v1511_v40 }
  0xd1   : > { %v555_v19 = vmul.f32 %v1839_v7, %v532_v14  ;;  %v885_v25 = vrot.slane %v884_v60, 1  ;;  %v892_v13 = vrot.slane %v891_v49, 1  ;;  %v899_v57 = vrot.slane %v898_v6, 1 }
  0xd2   : > { %v556_v8 = vmul.f32 %v1840_v2, %v532_v14  ;;  %v557_v35 = vmul.f32 %v1841_v20, %v532_v14  ;;  %v558_v45 = vmul.f32 %v1842_v50, %v532_v14  ;;  %v906_v36 = vrot.slane %v905_v5, 1  ;;  %v567_v20 = vpop.permute.xlu0 %566 }
  0xd3   : > { %v423_v31 = vadd.f32 %v422_v15, %v421_v4  ;;  %v430_v44 = vadd.f32 %v429_v16, %v428_v54  ;;  %v437_v27 = vadd.f32 %v436_v58, %v435_v61  ;;  %v444_v26 = vadd.f32 %v443_v55, %v442_v9 }
  0xd4   : > { %v494_v47 = vrot.slane %v1638_v53, 1  ;;  %v503_v32 = vrot.slane %v1640_v18, 1  ;;  %v512_v51 = vrot.slane %v1642_v56, 1  ;;  %v521_v12 = vrot.slane %v1669_v10, 1 }
  0xd5   : > { %v886_v41 = vadd.f32 %v885_v25, %v884_v60  ;;  %v893_v11 = vadd.f32 %v892_v13, %v891_v49  ;;  %v900_v29 = vadd.f32 %v899_v57, %v898_v6  ;;  %v907_v62 = vadd.f32 %v906_v36, %v905_v5 }
  0xd6   : > { %v495_v17 = vadd.f32 %v494_v47, %v1638_v53  ;;  %v504_v4 = vadd.f32 %v503_v32, %v1640_v18  ;;  %v513_v54 = vadd.f32 %v512_v51, %v1642_v56  ;;  %v522_v61 = vadd.f32 %v521_v12, %v1669_v10  ;;  %v995_v56 = vpop.permute.xlu1 %994 }
  0xd7   : > { %v957_v9 = vrot.slane %v956_v63, 1  ;;  %v966_v15 = vrot.slane %v965_v3, 1  ;;  %v975_v16 = vrot.slane %v974_v43, 1  ;;  %v984_v58 = vrot.slane %v983_v48, 1 }
  0xd8   : > { %v523_v55 = vadd.f32 %v495_v17, %v423_v31  ;;  %v524_v14 = vadd.f32 %v504_v4, %v430_v44  ;;  %v525_v7 = vadd.f32 %v513_v54, %v437_v27  ;;  %v526_v2 = vadd.f32 %v522_v61, %v444_v26 }
  0xd9   : > { %v958_v60 = vadd.f32 %v957_v9, %v956_v63  ;;  %v967_v49 = vadd.f32 %v966_v15, %v965_v3  ;;  %v976_v6 = vadd.f32 %v975_v16, %v974_v43  ;;  %v985_v5 = vadd.f32 %v984_v58, %v983_v48 }
  0xda   : > { %v559_v53 = vadd.f32 %v555_v19, %v523_v55  ;;  %v560_v50 = vadd.f32 %v556_v8, %v524_v14  ;;  %v561_v18 = vadd.f32 %v557_v35, %v525_v7  ;;  %v562_v25 = vadd.f32 %v558_v45, %v526_v2 }
  0xdb   : > { %v674_v10 = vadd.f32 %v673_v34, %v1671_v24  ;;  %v986_v13 = vadd.f32 %v958_v60, %v886_v41  ;;  %v987_v57 = vadd.f32 %v967_v49, %v893_v11  ;;  %v988_v36 = vadd.f32 %v976_v6, %v900_v29  ;;  %v1030_v41 = vpop.permute.xlu0 %1029 }
  0xdc   : > { %v569_v31 = vadd.f32 %v567_v20, %v559_v53  ;;  %v570_v44 = vadd.f32 %v567_v20, %v560_v50  ;;  %v571_v27 = vadd.f32 %v567_v20, %v561_v18  ;;  %v989_v63 = vadd.f32 %v985_v5, %v907_v62 }
  0xdd   : > { %v572_v3 = vadd.f32 %v567_v20, %v562_v25  ;;  %v1843_v43 = vrot.slane %v1608_v21, %v1502_v37  ;;  %v1844_v19 = vrot.slane %v1608_v21, %v1505_v38  ;;  %v1845_v35 = vrot.slane %v1608_v21, %v1508_v39 }
  0xde   : > { %1298 = vtanh.f32 %v569_v31  ;;  %v1846_v34 = vrot.slane %v1608_v21, %v1511_v40  ;;  %v654_v26 = vrot.slane %v1677_v59, 1  ;;  %v661_v47 = vrot.slane %v1679_v33, 1  ;;  %v799_v31 = vpop.permute.xlu1 %798 }
  0xdf   : > { %v1018_v48 = vmul.f32 %v1843_v43, %v995_v56  ;;  %v1019_v8 = vmul.f32 %v1844_v19, %v995_v56  ;;  %v1020_v24 = vmul.f32 %v1845_v35, %v995_v56  ;;  %1300 = vtanh.f32 %v570_v44 }
  0xe0   : > { %v1021_v45 = vmul.f32 %v1846_v34, %v995_v56  ;;  %1302 = vtanh.f32 %v571_v27  ;;  %v655_v29 = vadd.f32 %v654_v26, %v1677_v59  ;;  %v668_v62 = vrot.slane %v1681_v0, 1 }
  0xe1   : > { %v1022_v32 = vadd.f32 %v1018_v48, %v986_v13  ;;  %v1023_v51 = vadd.f32 %v1019_v8, %v987_v57  ;;  %v1024_v12 = vadd.f32 %v1020_v24, %v988_v36  ;;  %1304 = vtanh.f32 %v572_v3 }
  0xe2   : > { %v1025_v11 = vadd.f32 %v1021_v45, %v989_v63  ;;  %v662_v61 = vadd.f32 %v661_v47, %v1679_v33  ;;  %v675_v9 = vrot.slane %v674_v10, 1  ;;  %v1847_v15 = vrot.slane %v1610_v22, 2 }
  0xe3   : > { %v1032_v17 = vadd.f32 %v1030_v41, %v1022_v32  ;;  %v1033_v4 = vadd.f32 %v1030_v41, %v1023_v51  ;;  %v1034_v21 = vadd.f32 %v1030_v41, %v1024_v12  ;;  %v1848_v58 = vrot.slane %v1612_v23, 2 }
  0xe4   : > { %v1035_v54 = vadd.f32 %v1030_v41, %v1025_v11  ;;  %v725_v16 = vadd.f32 %v1847_v15, %v1610_v22  ;;  %v1849_v59 = vrot.slane %v1614_v52, 2  ;;  %v1850_v7 = vrot.slane %v1616_v46, 2 }
  0xe5   : > { %1306 = vtanh.f32 %v1032_v17  ;;  %v734_v55 = vadd.f32 %v1848_v58, %v1612_v23  ;;  %v669_v33 = vadd.f32 %v668_v62, %v1681_v0  ;;  %v676_v60 = vadd.f32 %v675_v9, %v674_v10 }
  0xe6   : > { %v743_v14 = vadd.f32 %v1849_v59, %v1614_v52  ;;  %v752_v2 = vadd.f32 %v1850_v7, %v1616_v46  ;;  %1308 = vtanh.f32 %v1033_v4  ;;  %v726_v49 = vrot.slane %v725_v16, 1 }
  0xe7   : > { %1310 = vtanh.f32 %v1034_v21  ;;  %v735_v22 = vrot.slane %v734_v55, 1  ;;  %v1851_v23 = vrot.slane %v1517_v42, %v1502_v37  ;;  %v1852_v52 = vrot.slane %v1517_v42, %v1505_v38 }
  0xe8   : > { %v744_v6 = vrot.slane %v743_v14, 1  ;;  %v753_v5 = vrot.slane %v752_v2, 1  ;;  %1312 = vtanh.f32 %v1035_v54  ;;  %v727_v46 = vadd.f32 %v726_v49, %v725_v16  ;;  %v1299_v10 = vpop.eup %1298 }
  0xe9   : > { %v787_v20 = vmul.f32 %v1851_v23, %v1712_v28  ;;  %v788_v53 = vmul.f32 %v1852_v52, %v1712_v28  ;;  %v1853_v0 = vrot.slane %v1517_v42, %v1508_v39  ;;  %v736_v18 = vadd.f32 %v735_v22, %v734_v55  ;;  %v1301_v36 = vpop.eup %1300 }
  0xea   : > { %v745_v25 = vadd.f32 %v744_v6, %v743_v14  ;;  %v754_v56 = vadd.f32 %v753_v5, %v752_v2  ;;  %v1854_v37 = vrot.slane %v1517_v42, %v1511_v40  ;;  %v755_v57 = vadd.f32 %v727_v46, %v655_v29  ;;  %v1303_v3 = vpop.eup %1302 }
  0xeb   : > { %v789_v50 = vmul.f32 %v1853_v0, %v1712_v28  ;;  %v577_v38 = vadd.f32 1.0, %v1299_v10  ;;  %v756_v44 = vadd.f32 %v736_v18, %v662_v61  ;;  %v1855_v39 = vunpack.c.0.s8 %v1567_v1  ;;  %v1305_v8 = vpop.eup %1304 }
  0xec   : > { %v790_v13 = vmul.f32 %v1854_v37, %v1712_v28  ;;  %v757_v27 = vadd.f32 %v745_v25, %v669_v33  ;;  %v758_v63 = vadd.f32 %v754_v56, %v676_v60  ;;  %v578_v48 = vadd.f32 1.0, %v1301_v36 }
  0xed   : > { %v1774_v43 = vsub.s32 %v1855_v39, %v1481_v30  ;;  %v791_v19 = vadd.f32 %v787_v20, %v755_v57  ;;  %v579_v35 = vadd.f32 1.0, %v1303_v3  ;;  %v581_v24 = vmul.f32 0.5, %v577_v38 }
  0xee   : > { %v792_v40 = vadd.f32 %v788_v53, %v756_v44  ;;  %v793_v42 = vadd.f32 %v789_v50, %v757_v27  ;;  %v580_v28 = vadd.f32 1.0, %v1305_v8  ;;  %v582_v34 = vmul.f32 0.5, %v578_v48 }
  0xef   : > { %v794_v45 = vadd.f32 %v790_v13, %v758_v63  ;;  %v801_v26 = vadd.f32 %v799_v31, %v791_v19  ;;  %v1307_v47 = vpop.eup %1306  ;;  %v583_v32 = vmul.f32 0.5, %v579_v35  ;;  %v1232_v51 = vadd.f32 -0.485, %v581_v24 }
  0xf0   : > { %v802_v12 = vadd.f32 %v799_v31, %v792_v40  ;;  %v803_v41 = vadd.f32 %v799_v31, %v793_v42  ;;  %v1309_v11 = vpop.eup %1308  ;;  %v584_v1 = vmul.f32 0.5, %v580_v28  ;;  %v1233_v30 = vadd.f32 -0.485, %v582_v34 }
  0xf1   : > { %v1040_v29 = vadd.f32 1.0, %v1307_v47  ;;  %v804_v62 = vadd.f32 %v799_v31, %v794_v45  ;;  %v1311_v17 = vpop.eup %1310  ;;  %v1234_v4 = vadd.f32 -0.485, %v583_v32  ;;  %v590_v21 = vmul.f32 4.366812, %v1232_v51 }
  0xf2   : > { %v1041_v54 = vadd.f32 1.0, %v1309_v11  ;;  %1314 = vtanh.f32 %v801_v26  ;;  %v1313_v61 = vpop.eup %1312  ;;  %v1235_v9 = vadd.f32 -0.485, %v584_v1  ;;  %v591_v15 = vmul.f32 4.366812, %v1233_v30 }
  0xf3   : > { %v1042_v16 = vadd.f32 1.0, %v1311_v17  ;;  %v1044_v58 = vmul.f32 0.5, %v1040_v29  ;;  %v592_v55 = vmul.f32 4.366812, %v1234_v4  ;;  %v1043_v59 = vadd.f32 1.0, %v1313_v61 }
  0xf4   : > { %v1045_v14 = vmul.f32 0.5, %v1041_v54  ;;  %1316 = vtanh.f32 %v802_v12  ;;  %v593_v7 = vmul.f32 4.366812, %v1235_v9  ;;  %v598_v2 = vcombine.low %v590_v21, %v591_v15  ;;  %v1247_v29 = vld [vmem:[%s385_s23 + $0x2] ss:$4 sm:$0xf] }
  0xf5   : > { %v1046_v33 = vmul.f32 0.5, %v1042_v16  ;;  %v1242_v60 = vadd.f32 -0.406, %v1044_v58  ;;  %v1047_v49 = vmul.f32 0.5, %v1043_v59  ;;  %1318 = vtanh.f32 %v803_v41 }
  0xf6   : > { %v1243_v22 = vadd.f32 -0.406, %v1045_v14  ;;  %v599_v6 = vcombine.low %v592_v55, %v593_v7  ;;  %v606_v5 = vrot.slane %v598_v2, %v1774_v43  ;;  %1320 = vtanh.f32 %v804_v62  ;;  %v628_v62 = vld [vmem:[%s385_s23] ss:$4 sm:$0xf] }
  0xf7   : > { %v1244_v23 = vadd.f32 -0.406, %v1046_v33  ;;  %v1053_v20 = vmul.f32 4.4444447, %v1242_v60  ;;  %v1245_v52 = vadd.f32 -0.406, %v1047_v49  ;;  %v1856_v10 = vlaneseq }
  0xf8   : > { %v1054_v53 = vmul.f32 4.4444447, %v1243_v22  ;;  %v613_v46 = vrot.slane %v599_v6, %v1774_v43  ;;  %v1241_v4 = vld [vmem:[%s385_s23 + $0x1] ss:$4 sm:$0xf] }
  0xf9   : > { %v1055_v0 = vmul.f32 4.4444447, %v1244_v23  ;;  %v1056_v50 = vmul.f32 4.4444447, %v1245_v52  ;;  %vm1785_vm1 = vcmp.lt.s32.totalorder %v1856_v10, 512 }
  0xfa   : > { %v1061_v18 = vcombine.low %v1053_v20, %v1054_v53  ;;  %v614_v25 = vcombine.low %v606_v5, %v613_v46 }
  0xfb   : > { %v1062_v13 = vcombine.low %v1055_v0, %v1056_v50 }
  0xfc   : > { %v1315_v56 = vpop.eup %1314  ;;  %v1069_v57 = vrot.slane %v1061_v18, %v1774_v43  ;;  %v621_v36 = vrot.slane %v614_v25, %v1774_v43 }
  0xfd   : > { %v809_v38 = vadd.f32 1.0, %v1315_v56  ;;  %v1076_v44 = vrot.slane %v1062_v13, %v1774_v43 }
  0xfe   : > { %v1317_v31 = vpop.eup %1316  ;;  %627 = vst.msk [vmem:[%s1782_s20] ss:$4 sm:$0xf] %vm1785_vm1, %v621_v36  ;;  %v629_v21 = vsub.f32 %v628_v62, %v621_v36 }
  0xff   : > { %v810_v27 = vadd.f32 1.0, %v1317_v31  ;;  %v813_v63 = vmul.f32 0.5, %v809_v38  ;;  %v1319_v3 = vpop.eup %1318  ;;  %v1077_v39 = vcombine.low %v1069_v57, %v1076_v44 }
 0x100   : > { %v811_v48 = vadd.f32 1.0, %v1319_v3  ;;  %v1321_v35 = vpop.eup %1320  ;;  %v630_v15 = vand.u32 2147483647, %v629_v21 }
 0x101   : > { %v814_v19 = vmul.f32 0.5, %v810_v27  ;;  %v1236_v8 = vadd.f32 -0.456, %v813_v63  ;;  %v1084_v24 = vrot.slane %v1077_v39, %v1774_v43  ;;  %v812_v40 = vadd.f32 1.0, %v1321_v35 }
 0x102   : > { %v815_v42 = vmul.f32 0.5, %v811_v48 }
 0x103   : > { %v1237_v28 = vadd.f32 -0.456, %v814_v19  ;;  %v822_v34 = vmul.f32 4.4642854, %v1236_v8  ;;  %v816_v45 = vmul.f32 0.5, %v812_v40  ;;  %v1090_v54 = vsub.f32 %v1247_v29, %v1084_v24 }
 0x104   : > { %1246 = vst.msk [vmem:[%s1782_s20 + $0x2] ss:$4 sm:$0xf] %vm1785_vm1, %v1084_v24  ;;  %v1238_v26 = vadd.f32 -0.456, %v815_v42 }
 0x105   : > { %v823_v47 = vmul.f32 4.4642854, %v1237_v28  ;;  %v1239_v32 = vadd.f32 -0.456, %v816_v45  ;;  %v1091_v58 = vand.u32 2147483647, %v1090_v54 }
 0x106   : > { %v824_v51 = vmul.f32 4.4642854, %v1238_v26 }
 0x107   : > { %v830_v12 = vcombine.low %v822_v34, %v823_v47  ;;  %v825_v41 = vmul.f32 4.4642854, %v1239_v32 }
 0x109   : > { %v831_v11 = vcombine.low %v824_v51, %v825_v41  ;;  %v838_v1 = vrot.slane %v830_v12, %v1774_v43 }
 0x10b   : > { %v845_v30 = vrot.slane %v831_v11, %v1774_v43 }
 0x10d   : > { %v846_v17 = vcombine.low %v838_v1, %v845_v30 }
 0x10f   : > { %v853_v61 = vrot.slane %v846_v17, %v1774_v43 }
 0x111   : > { %1240 = vst.msk [vmem:[%s1782_s20 + $0x1] ss:$4 sm:$0xf] %vm1785_vm1, %v853_v61  ;;  %v859_v9 = vsub.f32 %v1241_v4, %v853_v61 }
 0x113   : > { %v860_v16 = vand.u32 2147483647, %v859_v9 }
 0x115   : > { %v861_v55 = vadd.f32 %v860_v16, %v630_v15 }
 0x117   : > { %v1092_v59 = vadd.f32 %v1091_v58, %v861_v55 }
 0x119   : > { %1093 = vst.msk [vmem:[%s396_s9] sm:$0xf] %vm1785_vm1, %v1092_v59 }
 0x11a PF: > { %p15_p9 = scmp.ge.s32.totalorder %s1407_s28, 4   ;;  %s1859_s24 = smov %s1340_s25 }
 0x11b   : > { %s1860_s25 = smov %s1416_s8  ;;  %s1861_s26 = smov %s1407_s28 }
 0x11c   :  { %17 = sbr.rel (!%p15_p9) target bundleno = 2 (0x2), region = 127 }

// kernel: road_anomaly_forward.5
= control target key start
LH: loop header
LB: loop body
LE: loop exit
PB: predicated region body
PF: predicated region fallthrough
CT: control target
= control target key end

     0   :  { %s1306_s0 = inlined_call_operand.vmem [shape: f32[3,1024], index: 0, kind: input, shape index: {}]   ;;  %s1307_s1 = inlined_call_operand.vmem [shape: f32[3,1024], index: 1, kind: input, shape index: {}]   ;;  %s1308_s2 = inlined_call_operand.vmem [shape: f32[19,1024], index: 2, kind: input, shape index: {}]   ;;  %s1309_s3 = inlined_call_operand.vmem [shape: f32[1,1024], index: 3, kind: input, shape index: {}]   ;;  %s1310_s4 = inlined_call_operand.vmem [shape: f32[1,1024], index: 4, kind: input, shape index: {}]   ;;  %s1311_s5 = inlined_call_operand.vmem [shape: f32[1,1024], index: 5, kind: input, shape index: {}]   ;;  %s1312_s6 = inlined_call_operand.vmem [shape: f32[28,1], index: 6, kind: input, shape index: {}]   ;;  %s1313_s7 = inlined_call_operand.<no memory space> [shape: f32[1,1], index: 7, kind: input, shape index: {}]   ;;  %s1314_s8 = inlined_call_operand.vmem [shape: f32[1,1024], index: 8, kind: output, shape index: {}]  }
   0x1   :  { %v13_v0 = vstv %s1313_s7 }
   0x2   :  { %14 = vst [vmem:[#allocation2] sm:$0x1] %v13_v0 }
   0x3   :  { %s1093_s29 = smov 0   ;;  %s1095_s30 = smov 0  }
   0x4   :  { %s1097_s9 = smov 0  }
   0x5 LB: > { %s951_s7 = sadd.s32 4294967295, %s1041_s9   ;;  %s1110_s10 = sadd.s32 1, %s1041_s9   ;;  %s1041_s9 = sphi %s1097_s9, %s1319_s9   ;;  %s1037_s30 = sphi %s1095_s30, %s1318_s30   ;;  %s1033_s29 = sphi %s1093_s29, %s1317_s29  }
   0x6   : > { %s76_s11 = ssub.s32 %s1041_s9, %s1110_s10  ;;  %s79_s12 = sadd.s32 1, %s1037_s30 }
   0x7   : > { %p77_p0 = scmp.eq.s32.totalorder %s76_s11, 0  ;;  %p86_p1 = scmp.ne.s32.totalorder %s1037_s30, %s1033_s29 }
   0x8   : > { %p87_p2 = scmp.eq.s32.totalorder %s1041_s9, 0  ;;  %p954_p4 = scmp.ge.s32.totalorder %s1041_s9, 2 }
   0x9   : > { %s1119_s13 = scalar_select %p77_p0, %s1037_s30, %s79_s12  }
   0xa   : > { %p88_p3 = por %p87_p2, %p86_p1  ;;  %264 = sbr.rel (%p954_p4) target bundleno = 28 (0x1c), region = 24 }
  0x11   : > { %285 = sbr.rel (!%p88_p3) target bundleno = 28 (0x1c), region = 36  ;;  %s287_s14 = sand.u32 (%p88_p3), 1, %s1037_s30  }
  0x12   : > { %s968_s15 = sshll.u32 (%p88_p3), %s1041_s9, 5  ;;  %s969_s16 = smul.u32 (%p88_p3), 96, %s287_s14 }
  0x13   : > { %s292_s19 = scalar_lea.vmem (%p88_p3), %s1308_s2, %s968_s15 }
  0x14   : > { %v305_v1 = vld [vmem:[%s292_s19] sm:$0xff] (%p88_p3)  ;;  %v307_v2 = vld [vmem:[%s292_s19 + $0x8] sm:$0xff] (%p88_p3)  ;;  %v309_v3 = vld [vmem:[%s292_s19 + $0x10] sm:$0xff] (%p88_p3)  ;;  %s289_s20 = scalar_lea.vmem (%p88_p3), [#allocation3], %s969_s16 }
  0x15   : > { %v311_v4 = vld [vmem:[%s292_s19 + $0x18] sm:$0xff] (%p88_p3)  ;;  %v313_v5 = vld [vmem:[%s292_s19 + $0x40] sm:$0xff] (%p88_p3)  ;;  %v315_v6 = vld [vmem:[%s292_s19 + $0x48] sm:$0xff] (%p88_p3)  ;;  %306 = vst [vmem:[%s289_s20] sm:$0xff] (%p88_p3), %v305_v1 }
  0x16   : > { %308 = vst [vmem:[%s289_s20 + $0x8] sm:$0xff] (%p88_p3), %v307_v2  ;;  %310 = vst [vmem:[%s289_s20 + $0x10] sm:$0xff] (%p88_p3), %v309_v3  ;;  %v317_v7 = vld [vmem:[%s292_s19 + $0x50] sm:$0xff] (%p88_p3)  ;;  %v319_v8 = vld [vmem:[%s292_s19 + $0x58] sm:$0xff] (%p88_p3) }
  0x17   : > { %312 = vst [vmem:[%s289_s20 + $0x18] sm:$0xff] (%p88_p3), %v311_v4  ;;  %314 = vst [vmem:[%s289_s20 + $0x20] sm:$0xff] (%p88_p3), %v313_v5  ;;  %v321_v9 = vld [vmem:[%s292_s19 + $0x80] sm:$0xff] (%p88_p3)  ;;  %v323_v10 = vld [vmem:[%s292_s19 + $0x88] sm:$0xff] (%p88_p3) }
  0x18   : > { %316 = vst [vmem:[%s289_s20 + $0x28] sm:$0xff] %v315_v6  ;;  %318 = vst [vmem:[%s289_s20 + $0x30] sm:$0xff] %v317_v7  ;;  %v325_v11 = vld [vmem:[%s292_s19 + $0x90] sm:$0xff]  ;;  %v327_v12 = vld [vmem:[%s292_s19 + $0x98] sm:$0xff] }
  0x19   : > { %320 = vst [vmem:[%s289_s20 + $0x38] sm:$0xff] %v319_v8  ;;  %322 = vst [vmem:[%s289_s20 + $0x40] sm:$0xff] %v321_v9 }
  0x1a   : > { %324 = vst [vmem:[%s289_s20 + $0x48] sm:$0xff] %v323_v10  ;;  %326 = vst [vmem:[%s289_s20 + $0x50] sm:$0xff] %v325_v11 }
  0x1b   : > { %328 = vst [vmem:[%s289_s20 + $0x58] sm:$0xff] %v327_v12 }
  0x1c PF: > { %p957_p5 = scmp.ge.s32.totalorder %s1041_s9, 1  ;;  %p357_p6 = scmp.lt.s32.totalorder %s1041_s9, 3 }
  0x1e   : > { %p358_p7 = pnand %p957_p5, %p357_p6 }
  0x1f   : > { %v548_v13 = vld [vmem:[%s1312_s6 + $0x6] sm:$0xff] (!%p358_p7)  ;;  %v451_v14 = vld [vmem:[%s1312_s6] sm:$0x7] (!%p358_p7)  ;;  %v1043_v15 = vmov (!%p358_p7), 0   ;;  %v549_v16 = vld [vmem:[%s1312_s6 + $0xe] sm:$0xff] (!%p358_p7)  ;;  %s958_s20 = sshll.u32 (!%p358_p7), %s951_s7, 2  ;;  %v1315_v23 = vlaneseq (!%p358_p7) }
  0x20   : > { %361 = sbr.rel (%p358_p7) target bundleno = 247 (0xf7), region = 71  ;;  %998 = vset.pattern.permute.xlu1 (!%p358_p7), %v1043_v15  ;;  %997 = vset.pattern.permute.xlu0 (!%p358_p7), %v1043_v15  ;;  %v498_v17 = vld [vmem:[%s1312_s6 + $0x3] sm:$0x7] (!%p358_p7)  ;;  %v550_v18 = vld [vmem:[%s1312_s6 + $0x16] sm:$0x7] (!%p358_p7)  ;;  %p419_p8 = scmp.lt.s32.totalorder (!%p358_p7), %s958_s20, 7 }
  0x21   : > { %565 = vperm.xlu0 (!%p358_p7), %997, %v548_v13   ;;  %456 = vperm.xlu1 (!%p358_p7), %998, %v451_v14   ;;  %v630_v19 = vld [vmem:[%s1312_s6 + $0x19] sm:$0x1] (!%p358_p7)  ;;  %v666_v20 = vld [vmem:[%s1312_s6 + $0x1a] sm:$0x1] (!%p358_p7)  ;;  %v702_v21 = vld [vmem:[%s1312_s6 + $0x1b] sm:$0x1] (!%p358_p7) }
  0x22   : > { %v738_v22 = vld [vmem:[#allocation2] sm:$0x1] (!%p358_p7)  ;;  %s364_s25 = sand.u32 (!%p358_p7), 1, %s1033_s29   ;;  %v1166_v26 = vshrl.u32 (!%p358_p7), %v1315_v23, 7  ;;  %vm469_vm0 = vcmask (!%p358_p7), 1042432  }
  0x23   : > { %s970_s7 = smul.u32 (!%p358_p7), 96, %s364_s25 }
  0x24   : > { %v1173_v31 = vsub.s32 (!%p358_p7), 0, %v1166_v26  ;;  %v1176_v32 = vsub.s32 (!%p358_p7), 1, %v1166_v26  ;;  %v1179_v33 = vsub.s32 (!%p358_p7), 2, %v1166_v26  ;;  %v1182_v34 = vsub.s32 (!%p358_p7), 3, %v1166_v26 }
  0x25   : > { %570 = vperm.xlu0 (!%p358_p7), %997, %v549_v16   ;;  %503 = vperm.xlu1 (!%p358_p7), %998, %v498_v17   ;;  %s1206_s19 = scalar_lea.vmem (!%p358_p7), [#allocation3], %s970_s7 }
  0x26   : > { %v551_v50 = vld [vmem:[%s1206_s19] sm:$0xff] (!%p358_p7)  ;;  %v552_v51 = vld [vmem:[%s1206_s19 + $0x8] sm:$0xff] (!%p358_p7)  ;;  %v553_v56 = vld [vmem:[%s1206_s19 + $0x10] sm:$0xff] (!%p358_p7) }
  0x27   : > { %s1321_s20 = smov (!%p419_p8, %s958_s20), 7  ;;  %v554_v57 = vld [vmem:[%s1206_s19 + $0x18] sm:$0xff]  ;;  %v555_v58 = vld [vmem:[%s1206_s19 + $0x20] sm:$0xff]  ;;  %v556_v0 = vld [vmem:[%s1206_s19 + $0x28] sm:$0xff] }
  0x28   : > { %s959_s21 = sshll.u32 %s1321_s20, 2  ;;  %s434_s12 = scalar_lea.vmem %s1309_s3, %s1321_s20  ;;  %v557_v1 = vld [vmem:[%s1206_s19 + $0x30] sm:$0xff]  ;;  %v558_v2 = vld [vmem:[%s1206_s19 + $0x38] sm:$0xff] }
  0x29   : > { %575 = vperm.xlu0 %997, %v550_v18   ;;  %634 = vperm.xlu1 %998, %v630_v19   ;;  %s422_s24 = scalar_lea.vmem %s1306_s0, %s959_s21  ;;  %s428_s9 = scalar_lea.vmem %s1307_s1, %s959_s21  ;;  %v1188_v37 = vld [vmem:[%s434_s12] sm:$0xf] }
  0x2a   : > { %v452_v24 = vld [vmem:[%s422_s24] sm:$0x77]  ;;  %v453_v25 = vld [vmem:[%s422_s24 + $0x8] sm:$0x77]  ;;  %s439_s15 = scalar_lea.vmem %s1310_s4, %s1321_s20  ;;  %s444_s18 = scalar_lea.vmem %s1311_s5, %s1321_s20  ;;  %v641_v45 = vrot.slane %v1188_v37, %v1173_v31  ;;  %v645_v46 = vrot.slane %v1188_v37, %v1176_v32  ;;  %v649_v47 = vrot.slane %v1188_v37, %v1179_v33  ;;  %v653_v48 = vrot.slane %v1188_v37, %v1182_v34 }
  0x2b   : > { %v461_v27 = vcombine.high %v452_v24, %v452_v24  ;;  %v462_v28 = vcombine.high %v453_v25, %v453_v25  ;;  %v499_v29 = vld [vmem:[%s428_s9] sm:$0x77]  ;;  %v500_v30 = vld [vmem:[%s428_s9 + $0x8] sm:$0x77]  ;;  %s449_s23 = scalar_lea.vmem %s1314_s8, %s1321_s20 }
  0x2c   : > { %v508_v38 = vcombine.high %v499_v29, %v499_v29  ;;  %v509_v39 = vcombine.high %v500_v30, %v500_v30  ;;  %v1194_v44 = vld [vmem:[%s439_s15] sm:$0xf] }
  0x2d   : > { %670 = vperm.xlu0 %997, %v666_v20   ;;  %706 = vperm.xlu1 %998, %v702_v21   ;;  %v1204_v49 = vld [vmem:[%s444_s18] sm:$0xf]  ;;  %v677_v59 = vrot.slane %v1194_v44, %v1173_v31  ;;  %v681_v60 = vrot.slane %v1194_v44, %v1176_v32  ;;  %v685_v61 = vrot.slane %v1194_v44, %v1179_v33 }
  0x2e   : > { %v689_v62 = vrot.slane %v1194_v44, %v1182_v34  ;;  %v713_v3 = vrot.slane %v1204_v49, %v1173_v31  ;;  %v717_v4 = vrot.slane %v1204_v49, %v1176_v32  ;;  %v721_v5 = vrot.slane %v1204_v49, %v1179_v33 }
  0x2f   : > { %v725_v6 = vrot.slane %v1204_v49, %v1182_v34 }
  0x31   : > { %741 = vperm.xlu0 %997, %v738_v22  }
  0xa0   : > { %v566_v35 = vpop.permute.xlu0 %565  ;;  %v457_v36 = vpop.permute.xlu1 %456 }
  0xa1   : > { %v465_v40 = vmul.f32 %v457_v36, %v452_v24  ;;  %v466_v41 = vmul.f32 %v461_v27, %v457_v36  ;;  %v467_v42 = vmul.f32 %v457_v36, %v453_v25  ;;  %v468_v43 = vmul.f32 %v462_v28, %v457_v36 }
  0xa2   : > { %v578_v12 = vmul.f32 %v566_v35, %v551_v50  ;;  %v579_v13 = vmul.f32 %v566_v35, %v552_v51  ;;  %v580_v14 = vmul.f32 %v566_v35, %v553_v56  ;;  %v581_v15 = vmul.f32 %v566_v35, %v554_v57  ;;  %v560_v51 = vld [vmem:[%s1206_s19 + $0x48] sm:$0x7]  ;;  %v562_v57 = vld [vmem:[%s1206_s19 + $0x58] sm:$0x7] }
  0xa3   : > { %v470_v52 = vsel %vm469_vm0, %v465_v40, 0.0  ;;  %v477_v53 = vsel %vm469_vm0, %v466_v41, 0.0  ;;  %v484_v54 = vsel %vm469_vm0, %v467_v42, 0.0  ;;  %v491_v55 = vsel %vm469_vm0, %v468_v43, 0.0 }
  0xa4   : > { %v571_v63 = vpop.permute.xlu0 %570  ;;  %v471_v7 = vrot.slane %v470_v52, 4  ;;  %v478_v8 = vrot.slane %v477_v53, 4  ;;  %v485_v9 = vrot.slane %v484_v54, 4  ;;  %v492_v10 = vrot.slane %v491_v55, 4  ;;  %v504_v11 = vpop.permute.xlu1 %503 }
  0xa5   : > { %v582_v16 = vmul.f32 %v571_v63, %v555_v58  ;;  %v583_v17 = vmul.f32 %v571_v63, %v556_v0  ;;  %v584_v18 = vmul.f32 %v571_v63, %v557_v1  ;;  %v585_v19 = vmul.f32 %v571_v63, %v558_v2 }
  0xa6   : > { %v512_v20 = vmul.f32 %v504_v11, %v499_v29  ;;  %v513_v21 = vmul.f32 %v508_v38, %v504_v11  ;;  %v514_v22 = vmul.f32 %v504_v11, %v500_v30  ;;  %v515_v24 = vmul.f32 %v509_v39, %v504_v11  ;;  %v559_v30 = vld [vmem:[%s1206_s19 + $0x40] sm:$0x7]  ;;  %v561_v39 = vld [vmem:[%s1206_s19 + $0x50] sm:$0x7] }
  0xa7   : > { %v472_v25 = vadd.f32 %v471_v7, %v470_v52  ;;  %v479_v27 = vadd.f32 %v478_v8, %v477_v53  ;;  %v486_v28 = vadd.f32 %v485_v9, %v484_v54  ;;  %v493_v36 = vadd.f32 %v492_v10, %v491_v55 }
  0xa8   : > { %v516_v40 = vsel %vm469_vm0, %v512_v20, 0.0  ;;  %v523_v35 = vsel %vm469_vm0, %v513_v21, 0.0  ;;  %v530_v41 = vsel %vm469_vm0, %v514_v22, 0.0  ;;  %v537_v42 = vsel %vm469_vm0, %v515_v24, 0.0  ;;  %v576_v56 = vpop.permute.xlu0 %575 }
  0xa9   : > { %v590_v29 = vadd.f32 %v582_v16, %v578_v12  ;;  %v599_v43 = vadd.f32 %v583_v17, %v579_v13  ;;  %v608_v38 = vadd.f32 %v584_v18, %v580_v14  ;;  %v617_v50 = vadd.f32 %v585_v19, %v581_v15 }
  0xaa   : > { %v517_v52 = vrot.slane %v516_v40, 4  ;;  %v524_v53 = vrot.slane %v523_v35, 4  ;;  %v531_v54 = vrot.slane %v530_v41, 4  ;;  %v538_v55 = vrot.slane %v537_v42, 4 }
  0xab   : > { %v473_v58 = vrot.slane %v472_v25, 2  ;;  %v480_v63 = vrot.slane %v479_v27, 2  ;;  %v487_v0 = vrot.slane %v486_v28, 2  ;;  %v494_v1 = vrot.slane %v493_v36, 2 }
  0xac   : > { %v518_v2 = vadd.f32 %v517_v52, %v516_v40  ;;  %v525_v7 = vadd.f32 %v524_v53, %v523_v35  ;;  %v532_v8 = vadd.f32 %v531_v54, %v530_v41  ;;  %v539_v9 = vadd.f32 %v538_v55, %v537_v42 }
  0xad   : > { %v586_v10 = vmul.f32 %v576_v56, %v559_v30  ;;  %v587_v11 = vmul.f32 %v576_v56, %v560_v51  ;;  %v588_v12 = vmul.f32 %v576_v56, %v561_v39  ;;  %v589_v13 = vmul.f32 %v576_v56, %v562_v57 }
  0xae   : > { %v519_v14 = vrot.slane %v518_v2, 2  ;;  %v526_v15 = vrot.slane %v525_v7, 2  ;;  %v533_v16 = vrot.slane %v532_v8, 2  ;;  %v540_v17 = vrot.slane %v539_v9, 2 }
  0xaf   : > { %v591_v18 = vsel %vm469_vm0, %v586_v10, 0.0  ;;  %v600_v19 = vsel %vm469_vm0, %v587_v11, 0.0  ;;  %v609_v20 = vsel %vm469_vm0, %v588_v12, 0.0  ;;  %v618_v21 = vsel %vm469_vm0, %v589_v13, 0.0 }
  0xb0   : > { %v520_v22 = vadd.f32 %v519_v14, %v518_v2  ;;  %v527_v24 = vadd.f32 %v526_v15, %v525_v7  ;;  %v534_v40 = vadd.f32 %v533_v16, %v532_v8  ;;  %v541_v35 = vadd.f32 %v540_v17, %v539_v9 }
  0xb1   : > { %v592_v41 = vadd.f32 %v591_v18, %v590_v29  ;;  %v601_v42 = vadd.f32 %v600_v19, %v599_v43  ;;  %v610_v30 = vadd.f32 %v609_v20, %v608_v38  ;;  %v619_v51 = vadd.f32 %v618_v21, %v617_v50  ;;  %v635_v18 = vpop.permute.xlu1 %634 }
  0xb2   : > { %v474_v39 = vadd.f32 %v473_v58, %v472_v25  ;;  %v481_v52 = vadd.f32 %v480_v63, %v479_v27  ;;  %v488_v53 = vadd.f32 %v487_v0, %v486_v28  ;;  %v495_v54 = vadd.f32 %v494_v1, %v493_v36 }
  0xb3   : > { %v593_v55 = vrot.slane %v592_v41, 4  ;;  %v602_v56 = vrot.slane %v601_v42, 4  ;;  %v611_v57 = vrot.slane %v610_v30, 4  ;;  %v620_v10 = vrot.slane %v619_v51, 4 }
  0xb4   : > { %v521_v11 = vrot.slane %v520_v22, 1  ;;  %v528_v12 = vrot.slane %v527_v24, 1  ;;  %v535_v23 = vrot.slane %v534_v40, 1  ;;  %v542_v13 = vrot.slane %v541_v35, 1 }
  0xb5   : > { %v594_v2 = vadd.f32 %v593_v55, %v592_v41  ;;  %v603_v7 = vadd.f32 %v602_v56, %v601_v42  ;;  %v612_v8 = vadd.f32 %v611_v57, %v610_v30  ;;  %v621_v9 = vadd.f32 %v620_v10, %v619_v51  ;;  %v671_v56 = vpop.permute.xlu0 %670 }
  0xb6   : > { %v475_v29 = vrot.slane %v474_v39, 1  ;;  %v482_v43 = vrot.slane %v481_v52, 1  ;;  %v489_v38 = vrot.slane %v488_v53, 1  ;;  %v496_v50 = vrot.slane %v495_v54, 1 }
  0xb7   : > { %v595_v25 = vrot.slane %v594_v2, 2  ;;  %v604_v27 = vrot.slane %v603_v7, 2  ;;  %v613_v28 = vrot.slane %v612_v8, 2  ;;  %v622_v36 = vrot.slane %v621_v9, 2 }
  0xb8   : > { %v522_v58 = vadd.f32 %v521_v11, %v520_v22  ;;  %v529_v63 = vadd.f32 %v528_v12, %v527_v24  ;;  %v536_v0 = vadd.f32 %v535_v23, %v534_v40  ;;  %v543_v1 = vadd.f32 %v542_v13, %v541_v35 }
  0xb9   : > { %v596_v14 = vadd.f32 %v595_v25, %v594_v2  ;;  %v605_v15 = vadd.f32 %v604_v27, %v603_v7  ;;  %v614_v16 = vadd.f32 %v613_v28, %v612_v8  ;;  %v623_v17 = vadd.f32 %v622_v36, %v621_v9  ;;  %v707_v8 = vpop.permute.xlu1 %706 }
  0xba   : > { %v476_v19 = vadd.f32 %v475_v29, %v474_v39  ;;  %v483_v20 = vadd.f32 %v482_v43, %v481_v52  ;;  %v490_v21 = vadd.f32 %v489_v38, %v488_v53  ;;  %v497_v41 = vadd.f32 %v496_v50, %v495_v54  ;;  %v742_v50 = vpop.permute.xlu0 %741 }
  0xbb   : > { %v597_v42 = vrot.slane %v596_v14, 1  ;;  %v606_v30 = vrot.slane %v605_v15, 1  ;;  %v615_v51 = vrot.slane %v614_v16, 1  ;;  %v624_v55 = vrot.slane %v623_v17, 1 }
  0xbc   : > { %v544_v57 = vadd.f32 %v522_v58, %v476_v19  ;;  %v545_v10 = vadd.f32 %v529_v63, %v483_v20  ;;  %v546_v22 = vadd.f32 %v536_v0, %v490_v21  ;;  %v547_v24 = vadd.f32 %v543_v1, %v497_v41 }
  0xbd   : > { %v598_v23 = vadd.f32 %v597_v42, %v596_v14  ;;  %v607_v40 = vadd.f32 %v606_v30, %v605_v15  ;;  %v616_v35 = vadd.f32 %v615_v51, %v614_v16  ;;  %v625_v11 = vadd.f32 %v624_v55, %v623_v17 }
  0xbe   : > { %v658_v39 = vmul.f32 %v641_v45, %v635_v18  ;;  %v659_v52 = vmul.f32 %v645_v46, %v635_v18  ;;  %v660_v53 = vmul.f32 %v649_v47, %v635_v18  ;;  %v661_v54 = vmul.f32 %v653_v48, %v635_v18 }
  0xbf   : > { %v626_v12 = vadd.f32 %v598_v23, %v544_v57  ;;  %v627_v13 = vadd.f32 %v607_v40, %v545_v10  ;;  %v628_v2 = vadd.f32 %v616_v35, %v546_v22  ;;  %v629_v7 = vadd.f32 %v625_v11, %v547_v24 }
  0xc0   : > { %v694_v45 = vmul.f32 %v677_v59, %v671_v56  ;;  %v695_v46 = vmul.f32 %v681_v60, %v671_v56  ;;  %v696_v47 = vmul.f32 %v685_v61, %v671_v56  ;;  %v697_v48 = vmul.f32 %v689_v62, %v671_v56 }
  0xc1   : > { %v662_v9 = vadd.f32 %v658_v39, %v626_v12  ;;  %v663_v29 = vadd.f32 %v659_v52, %v627_v13  ;;  %v664_v43 = vadd.f32 %v660_v53, %v628_v2  ;;  %v665_v38 = vadd.f32 %v661_v54, %v629_v7 }
  0xc2   : > { %v730_v59 = vmul.f32 %v713_v3, %v707_v8  ;;  %v731_v60 = vmul.f32 %v717_v4, %v707_v8  ;;  %v732_v61 = vmul.f32 %v721_v5, %v707_v8  ;;  %v733_v44 = vmul.f32 %v725_v6, %v707_v8 }
  0xc3   : > { %v698_v62 = vadd.f32 %v694_v45, %v662_v9  ;;  %v699_v25 = vadd.f32 %v695_v46, %v663_v29  ;;  %v700_v27 = vadd.f32 %v696_v47, %v664_v43  ;;  %v701_v28 = vadd.f32 %v697_v48, %v665_v38 }
  0xc4   : > { %v747_v36 = vrot.slane %v742_v50, %v1173_v31  ;;  %v780_v10 = vmul.f32 0.25, %v1188_v37  ;;  %v1044_v22 = vmov 1966171168  }
  0xc5   : > { %v734_v58 = vadd.f32 %v730_v59, %v698_v62  ;;  %v735_v3 = vadd.f32 %v731_v60, %v699_v25  ;;  %v736_v63 = vadd.f32 %v732_v61, %v700_v27  ;;  %v737_v0 = vadd.f32 %v733_v44, %v701_v28 }
  0xc6   : > { %v817_v24 = vunpack.c.l.s4 %v1044_v22  ;;  %v785_v23 = vrot.slane %v780_v10, %v1173_v31  ;;  %v789_v35 = vrot.slane %v780_v10, %v1176_v32  ;;  %v793_v52 = vrot.slane %v780_v10, %v1179_v33 }
  0xc7   : > { %v748_v1 = vadd.f32 %v747_v36, %v734_v58  ;;  %v749_v4 = vadd.f32 %v747_v36, %v735_v3  ;;  %v750_v14 = vadd.f32 %v747_v36, %v736_v63  ;;  %v751_v15 = vadd.f32 %v747_v36, %v737_v0 }
  0xc8   : > { %v818_v54 = vunpack.c.0.s8 %v817_v24  ;;  %v797_v13 = vrot.slane %v780_v10, %v1182_v34  ;;  %v1316_v34 = vlaneseq }
  0xc9   : > { %v752_v16 = vsub.f32 0.0, %v748_v1  ;;  %v753_v5 = vsub.f32 0.0, %v749_v4  ;;  %v754_v17 = vsub.f32 0.0, %v750_v14  ;;  %v755_v18 = vsub.f32 0.0, %v751_v15 }
  0xca   : > { %v821_v47 = vsub.s32 %v818_v54, %v1166_v26  ;;  %vm841_vm1 = vcmp.lt.s32.totalorder %v1316_v34, 512 }
  0xcb   : > { %v756_v49 = vmul.f32 1.442695, %v752_v16  ;;  %v758_v6 = vmul.f32 1.442695, %v753_v5  ;;  %v760_v19 = vmul.f32 1.442695, %v754_v17 }
  0xcc   : > { %v762_v20 = vmul.f32 1.442695, %v755_v18 }
  0xcd   : > { %1003 = vpow2.f32 %v756_v49 }
  0xce   : > { %1005 = vpow2.f32 %v758_v6 }
  0xcf   : > { %1007 = vpow2.f32 %v760_v19 }
  0xd0   : > { %1009 = vpow2.f32 %v762_v20 }
  0xd7   : > { %v1004_v21 = vpop.eup %1003 }
  0xd8   : > { %v1006_v41 = vpop.eup %1005  ;;  %v764_v42 = vadd.f32 1.0, %v1004_v21 }
  0xd9   : > { %v1008_v30 = vpop.eup %1007  ;;  %v765_v51 = vadd.f32 1.0, %v1006_v41 }
  0xda   : > { %v1010_v55 = vpop.eup %1009  ;;  %v766_v56 = vadd.f32 1.0, %v1008_v30  ;;  %1011 = vrcp.f32 %v764_v42 }
  0xdb   : > { %v767_v57 = vadd.f32 1.0, %v1010_v55  ;;  %1013 = vrcp.f32 %v765_v51 }
  0xdc   : > { %1015 = vrcp.f32 %v766_v56 }
  0xdd   : > { %1017 = vrcp.f32 %v767_v57 }
  0xe4   : > { %v1012_v40 = vpop.eup %1011 }
  0xe5   : > { %v1014_v11 = vpop.eup %1013  ;;  %v776_v39 = vmul.f32 0.75, %v1012_v40 }
  0xe6   : > { %v1016_v53 = vpop.eup %1015  ;;  %v777_v12 = vmul.f32 0.75, %v1014_v11 }
  0xe7   : > { %v1018_v2 = vpop.eup %1017  ;;  %v778_v7 = vmul.f32 0.75, %v1016_v53  ;;  %v802_v8 = vadd.f32 %v785_v23, %v776_v39 }
  0xe8   : > { %v779_v37 = vmul.f32 0.75, %v1018_v2  ;;  %v803_v45 = vadd.f32 %v789_v35, %v777_v12 }
  0xe9   : > { %v804_v46 = vadd.f32 %v793_v52, %v778_v7  ;;  %v806_v31 = vmul.f32 255.0, %v802_v8 }
  0xea   : > { %v805_v32 = vadd.f32 %v797_v13, %v779_v37  ;;  %v807_v48 = vmul.f32 255.0, %v803_v45 }
  0xeb   : > { %v808_v9 = vmul.f32 255.0, %v804_v46 }
  0xec   : > { %v809_v29 = vmul.f32 255.0, %v805_v32  ;;  %v814_v33 = vcombine.low %v806_v31, %v807_v48 }
  0xee   : > { %v815_v43 = vcombine.low %v808_v9, %v809_v29  ;;  %v822_v38 = vrot.slane %v814_v33, %v821_v47 }
  0xf0   : > { %v829_v50 = vrot.slane %v815_v43, %v821_v47 }
  0xf2   : > { %v830_v59 = vcombine.low %v822_v38, %v829_v50 }
  0xf4   : > { %v837_v60 = vrot.slane %v830_v59, %v821_v47 }
  0xf6   : > { %843 = vst.msk [vmem:[%s449_s23] sm:$0xf] %vm841_vm1, %v837_v60 }
  0xf7 PF: > { %p17_p9 = scmp.ge.s32.totalorder %s1110_s10, 4   ;;  %s1317_s29 = smov %s1037_s30 }
  0xf8   : > { %s1318_s30 = smov %s1119_s13  ;;  %s1319_s9 = smov %s1110_s10 }
  0xf9   :  { %19 = sbr.rel (!%p17_p9) target bundleno = 5 (0x5), region = 125 }

</bundles_post_ra>
